<compile_context>
chip_gen: v5e
topology: v5e:2x2
jax: 0.10.0
libtpu: 0.0.40
codegen_flags: <defaults>
</compile_context>

<pallas_src>
import functools

import jax
import jax.numpy as jnp
from jax.experimental import pallas as pl
from jax.experimental.pallas import tpu as pltpu

EPS = 1e-5


def _rup8(x):
    return (x + 7) // 8 * 8


def _att_def_kernel(qs_ref, left_ref, w1_ref, w2_ref, out1_ref, out2_ref,
                    *, F, NL, NR, KP, QP, OPP_ROW, OFFS):
    """One grid step processes a block of `blk` batch elements.

    qs_ref  : [blk, QP, 2F+2]  packed query-side stream (right team rows 0:Nr,
                               opp row at OPP_ROW, zero padding elsewhere;
                               feature layout [right|opp|right-bias|opp-bias]).
    left_ref: [blk, KP, F]     left team, zero-padded to KP rows.
    w1_ref  : [R1, 48]         packed: W_qs | w_left | b_left | gamma | beta |
                               wq1 | wv1 | wk1 (all row offsets multiples of 8).
    w2_ref  : [192, 96]        rows 0:96 = wq2, rows 96:192 = wk2.
    out1_ref: [blk, QP]        opp_att_to_right (cols >= NR are zero prob).
    out2_ref: [blk, QP, KP]    right_att_to_left (rows >= NR / cols >= NL junk,
                               sliced off in the wrapper).
    """
    blk = qs_ref.shape[0]
    Fq = qs_ref.shape[2]
    off_wl, off_bl, off_g, off_b, off_q1, off_v1, off_k1 = OFFS

    gamma = w1_ref[off_g:off_g + 1, :]       # [1, 48]
    beta = w1_ref[off_b:off_b + 1, :]        # [1, 48]

    def ln_relu(h):
        # two-pass variance (numerically robust), f32 throughout
        mu = jnp.mean(h, axis=-1, keepdims=True)
        d = h - mu
        var = jnp.mean(d * d, axis=-1, keepdims=True)
        hn = d * jax.lax.rsqrt(var + EPS)
        return jnp.maximum(hn * gamma + beta, 0.0)

    def softmax(x):
        # exact softmax: these are the kernel's returned probabilities
        m = jnp.max(x, axis=-1, keepdims=True)
        e = jnp.exp(x - m)
        return e / jnp.sum(e, axis=-1, keepdims=True)

    # ---- embeds: Linear + LayerNorm + ReLU (one matmul per stream) -------------
    # QP and KP are multiples of 8, so these flattens are layout preserving.
    qs2 = qs_ref[...].reshape(blk * QP, Fq)          # [blk*QP, 2F+2]
    le2 = left_ref[...].reshape(blk * KP, F)         # [blk*KP, F]

    qs_e = ln_relu(jnp.dot(qs2, w1_ref[0:Fq, :],
                           preferred_element_type=jnp.float32))
    le_e = ln_relu(jnp.dot(le2, w1_ref[off_wl:off_wl + F, :],
                           preferred_element_type=jnp.float32)
                   + w1_ref[off_bl:off_bl + 1, :])

    # ---- stage-1 projections (flat 2-D, sublane-aligned weight slices) ---------
    wq1 = w1_ref[off_q1:off_q1 + 48, :]
    wv1 = w1_ref[off_v1:off_v1 + 48, :]
    wk1 = w1_ref[off_k1:off_k1 + 48, :]

    q1 = jnp.dot(qs_e, wq1, preferred_element_type=jnp.float32).reshape(blk, QP, 48)
    v1q = jnp.dot(qs_e, wv1, preferred_element_type=jnp.float32)          # [blk*QP, 48]
    k1l = jnp.dot(le_e, wk1, preferred_element_type=jnp.float32).reshape(blk, KP, 48)
    v1l = jnp.dot(le_e, wv1, preferred_element_type=jnp.float32).reshape(blk, KP, 48)

    # ---- fused attention of (right team + opp) queries over the left team ------
    s1 = jnp.einsum('bqd,bkd->bqk', q1, k1l,
                    preferred_element_type=jnp.float32)                   # [blk,QP,KP]
    if NL < KP:   # mask padded left players (nonzero after bias+LN+ReLU)
        kidx = jax.lax.broadcasted_iota(jnp.int32, (1, 1, KP), 2)
        s1 = jnp.where(kidx < NL, s1, -1e30)
    att1 = softmax(s1)                                                    # [blk,QP,KP]
    ctx = jnp.einsum('bqk,bkd->bqd', att1, v1l,
                     preferred_element_type=jnp.float32)                  # [blk,QP,48]

    # rows 0:NR of att1 are right_att_to_left; extra rows are sliced off outside
    out2_ref[...] = att1

    # ---- stage 2: cat([v1, ctx]) @ W  ==  v1 @ W_top + ctx @ W_bot -------------
    ctx2 = ctx.reshape(blk * QP, 48)
    k2 = (jnp.dot(v1q, w2_ref[96:144, :], preferred_element_type=jnp.float32)
          + jnp.dot(ctx2, w2_ref[144:192, :], preferred_element_type=jnp.float32)
          ).reshape(blk, QP, 96)                                          # keys

    opp_v1 = v1q.reshape(blk, QP, 48)[:, OPP_ROW, :]                      # [blk, 48]
    opp_ctx = ctx[:, OPP_ROW, :]                                          # [blk, 48]
    q2 = (jnp.dot(opp_v1, w2_ref[0:48, :], preferred_element_type=jnp.float32)
          + jnp.dot(opp_ctx, w2_ref[48:96, :], preferred_element_type=jnp.float32))

    s2 = jnp.einsum('bqd,bkd->bqk', q2.reshape(blk, 1, 96), k2,
                    preferred_element_type=jnp.float32)                   # [blk,1,QP]
    kidx2 = jax.lax.broadcasted_iota(jnp.int32, (1, 1, QP), 2)
    s2 = jnp.where(kidx2 < NR, s2, -1e30)    # opp row / padding are never valid keys
    out1_ref[...] = softmax(s2).reshape(blk, QP)


@functools.partial(jax.jit, static_argnames=('num_blocks',))
def att_def_forward(opp_state, left_state, right_state, params, num_blocks=2):
    """opp_state [B,F], left_state [B,Nl,F], right_state [B,Nr,F].

    num_blocks: batch-grid length (static). 2 (default) gives one step per v7x
    TensorCore; use 1 on single-TC chips (v5e/v6e) to avoid the extra grid step.
    """
    B, F = opp_state.shape
    Nl = left_state.shape[1]
    Nr = right_state.shape[1]

    KP = _rup8(Nl)            # padded left-team rows (stage-1 keys)
    NRP = _rup8(Nr)           # padded right-team rows
    OPP_ROW = NRP             # opp occupies the row right after the right team
    QP = _rup8(NRP + 1)       # padded query-side rows (right team + opp)
    Fq = 2 * F + 2            # [right feats | opp feats | right-bias | opp-bias]
    f32 = jnp.float32

    # --- batch blocking (blk multiple of 8 so the 2-D out1 block is legal) ------
    nb = max(1, int(num_blocks))
    if nb == 1 or B <= 8:
        nb, blk = 1, B
    else:
        blk = _rup8((B + nb - 1) // nb)
    Bp = blk * nb

    # --- pack right team + opp into one query-side stream (biases folded via
    #     indicator columns so a single embed matmul serves both streams) --------
    qs = jnp.zeros((Bp, QP, Fq), f32)
    qs = qs.at[:B, :Nr, :F].set(right_state.astype(f32))
    qs = qs.at[:B, :Nr, 2 * F].set(1.0)
    qs = qs.at[:B, OPP_ROW, F:2 * F].set(opp_state.astype(f32))
    qs = qs.at[:B, OPP_ROW, 2 * F + 1].set(1.0)

    left = jnp.zeros((Bp, KP, F), f32)
    left = left.at[:B, :Nl, :].set(left_state.astype(f32))

    # --- pack all weights into two refs; every row offset is a multiple of 8 ----
    off_wl = _rup8(Fq)
    off_bl = _rup8(off_wl + F)
    off_g = off_bl + 8
    off_b = off_g + 8
    off_q1 = off_b + 8
    off_v1 = off_q1 + 48
    off_k1 = off_v1 + 48
    w1_rows = off_k1 + 48

    w1 = jnp.zeros((w1_rows, 48), f32)
    w1 = w1.at[0:F].set(params['w_right'])
    w1 = w1.at[F:2 * F].set(params['w_opp'])
    w1 = w1.at[2 * F].set(params['b_right'][0])
    w1 = w1.at[2 * F + 1].set(params['b_opp'][0])
    w1 = w1.at[off_wl:off_wl + F].set(params['w_left'])
    w1 = w1.at[off_bl].set(params['b_left'][0])
    w1 = w1.at[off_g].set(params['gamma'][0])
    w1 = w1.at[off_b].set(params['beta'][0])
    w1 = w1.at[off_q1:off_q1 + 48].set(params['wq1'])
    w1 = w1.at[off_v1:off_v1 + 48].set(params['wv1'])
    w1 = w1.at[off_k1:off_k1 + 48].set(params['wk1'])

    w2 = jnp.concatenate([params['wq2'], params['wk2']], axis=0)   # [192, 96]

    kernel = functools.partial(
        _att_def_kernel,
        F=F, NL=Nl, NR=Nr, KP=KP, QP=QP, OPP_ROW=OPP_ROW,
        OFFS=(off_wl, off_bl, off_g, off_b, off_q1, off_v1, off_k1))

    out1, out2 = pl.pallas_call(
        kernel,
        grid=(nb,),
        in_specs=[
            pl.BlockSpec((blk, QP, Fq), lambda b: (b, 0, 0)),
            pl.BlockSpec((blk, KP, F), lambda b: (b, 0, 0)),
            pl.BlockSpec((w1_rows, 48), lambda b: (0, 0)),
            pl.BlockSpec((192, 96), lambda b: (0, 0)),
        ],
        out_specs=(
            pl.BlockSpec((blk, QP), lambda b: (b, 0)),
            pl.BlockSpec((blk, QP, KP), lambda b: (b, 0, 0)),
        ),
        out_shape=(
            jax.ShapeDtypeStruct((Bp, QP), f32),
            jax.ShapeDtypeStruct((Bp, QP, KP), f32),
        ),
        compiler_params=pltpu.CompilerParams(
            dimension_semantics=("parallel",)),
    )(qs, left, w1, w2)

    opp_att_to_right = out1[:B, :Nr].reshape(B, 1, Nr)
    right_att_to_left = out2[:B, :Nr, :Nl]

    # torch `.squeeze(0)` only fires when the leading dim is 1
    if B == 1:
        opp_att_to_right = jnp.squeeze(opp_att_to_right, axis=0)
        right_att_to_left = jnp.squeeze(right_att_to_left, axis=0)
    return opp_att_to_right, right_att_to_left


def reference_forward(opp_state, left_state, right_state, p):
    """Pure-JAX reference matching the PyTorch forward (for correctness check)."""
    def ln_relu(x, w, b):
        h = x @ w + b
        mu = jnp.mean(h, axis=-1, keepdims=True)
        var = jnp.mean((h - mu) ** 2, axis=-1, keepdims=True)
        hn = (h - mu) / jnp.sqrt(var + EPS) * p['gamma'][0] + p['beta'][0]
        return jnp.maximum(hn, 0.0)

    sm = lambda x: jax.nn.softmax(x, axis=-1)

    opp_e = ln_relu(opp_state, p['w_opp'], p['b_opp'][0])[:, None, :]   # [B,1,48]
    left_e = ln_relu(left_state, p['w_left'], p['b_left'][0])           # [B,Nl,48]
    right_e = ln_relu(right_state, p['w_right'], p['b_right'][0])       # [B,Nr,48]

    opp_q1, opp_v1 = opp_e @ p['wq1'], opp_e @ p['wv1']
    left_k1, left_v1 = left_e @ p['wk1'], left_e @ p['wv1']
    opp_att_left = sm(jnp.einsum('bqd,bkd->bqk', opp_q1, left_k1))
    opp_cat = jnp.concatenate([opp_v1, opp_att_left @ left_v1], axis=-1)

    right_q1, right_v1 = right_e @ p['wq1'], right_e @ p['wv1']
    right_att_left = sm(jnp.einsum('bqd,bkd->bqk', right_q1, left_k1))
    right_cat = jnp.concatenate([right_v1, right_att_left @ left_v1], axis=-1)

    opp_q2 = opp_cat @ p['wq2']
    right_k2 = right_cat @ p['wk2']
    opp_att_right = sm(jnp.einsum('bqd,bkd->bqk', opp_q2, right_k2))
    return opp_att_right, right_att_left


def init_params(key, feat_dim):
    ks = jax.random.split(key, 12)
    s = 0.1
    return {
        # Linear weights stored as [in, out] (transposed vs torch's [out, in]).
        'w_opp': jax.random.normal(ks[0], (feat_dim, 48), jnp.float32) * s,
        'b_opp': jax.random.normal(ks[1], (1, 48), jnp.float32) * s,
        'w_left': jax.random.normal(ks[2], (feat_dim, 48), jnp.float32) * s,
        'b_left': jax.random.normal(ks[3], (1, 48), jnp.float32) * s,
        'w_right': jax.random.normal(ks[4], (feat_dim, 48), jnp.float32) * s,
        'b_right': jax.random.normal(ks[5], (1, 48), jnp.float32) * s,
        'gamma': jnp.ones((1, 48), jnp.float32),
        'beta': jnp.zeros((1, 48), jnp.float32),
        'wq1': jax.random.normal(ks[6], (48, 48), jnp.float32) * s,
        'wv1': jax.random.normal(ks[7], (48, 48), jnp.float32) * s,
        'wk1': jax.random.normal(ks[8], (48, 48), jnp.float32) * s,
        'wq2': jax.random.normal(ks[9], (96, 96), jnp.float32) * s,
        'wk2': jax.random.normal(ks[10], (96, 96), jnp.float32) * s,
    }


if __name__ == "__main__":
    # batch, player_state feature dim, #left players, #right players
    B, F, NL, NR = 32, 24, 10, 11

    key = jax.random.PRNGKey(0)
    k_in, k_par = jax.random.split(key)
    ki = jax.random.split(k_in, 3)

    opp_state = jax.random.normal(ki[0], (B, F), jnp.float32)
    left_state = jax.random.normal(ki[1], (B, NL, F), jnp.float32)
    right_state = jax.random.normal(ki[2], (B, NR, F), jnp.float32)

    params = init_params(k_par, F)

    out1, out2 = att_def_forward(opp_state, left_state, right_state, params)
    jax.block_until_ready((out1, out2))

    ref1, ref2 = reference_forward(opp_state, left_state, right_state, params)
    assert out1.shape == (B, 1, NR) and out2.shape == (B, NR, NL)
    assert jnp.allclose(out1, ref1, rtol=1e-3, atol=1e-5), "opp_att_to_right mismatch"
    assert jnp.allclose(out2, ref2, rtol=1e-3, atol=1e-5), "right_att_to_left mismatch"

    print("KERNEL_OK")
</pallas_src>

<mosaic_0001>
module attributes {stable_mosaic.version = 11 : i64} {
  func.func @_att_def_kernel(%arg0: i32, %arg1: memref<16x24x50xf32, #tpu.memory_space<vmem>>, %arg2: memref<16x16x24xf32, #tpu.memory_space<vmem>>, %arg3: memref<248x48xf32, #tpu.memory_space<vmem>>, %arg4: memref<192x96xf32, #tpu.memory_space<vmem>>, %arg5: memref<16x24xf32, #tpu.memory_space<vmem>>, %arg6: memref<16x24x16xf32, #tpu.memory_space<vmem>>) attributes {dimension_semantics = [#tpu.dimension_semantics<parallel>], iteration_bounds = array<i64: 2>, scalar_prefetch = 0 : i64, scratch_operands = 0 : i64, tpu.core_type = #tpu.core_type<tc>, window_params = [{transform_indices = @transform_0, window_bounds = array<i64: 16, 24, 50>}, {transform_indices = @transform_1, window_bounds = array<i64: 16, 16, 24>}, {pipeline_mode = #tpu.pipeline_mode<synchronous>, transform_indices = @transform_2, window_bounds = array<i64: 248, 48>}, {pipeline_mode = #tpu.pipeline_mode<synchronous>, transform_indices = @transform_3, window_bounds = array<i64: 192, 96>}, {transform_indices = @transform_4, window_bounds = array<i64: 16, 24>}, {transform_indices = @transform_5, window_bounds = array<i64: 16, 24, 16>}]} {
    %c88 = arith.constant 88 : index
    %c0 = arith.constant 0 : index
    %0 = vector.load %arg3[%c88, %c0] : memref<248x48xf32, #tpu.memory_space<vmem>>, vector<1x48xf32>
    %c96 = arith.constant 96 : index
    %c0_0 = arith.constant 0 : index
    %1 = vector.load %arg3[%c96, %c0_0] : memref<248x48xf32, #tpu.memory_space<vmem>>, vector<1x48xf32>
    %c0_1 = arith.constant 0 : index
    %c0_2 = arith.constant 0 : index
    %c0_3 = arith.constant 0 : index
    %2 = vector.load %arg1[%c0_1, %c0_2, %c0_3] : memref<16x24x50xf32, #tpu.memory_space<vmem>>, vector<16x24x50xf32>
    %3 = vector.shape_cast %2 : vector<16x24x50xf32> to vector<384x50xf32>
    %c0_4 = arith.constant 0 : index
    %c0_5 = arith.constant 0 : index
    %c0_6 = arith.constant 0 : index
    %4 = vector.load %arg2[%c0_4, %c0_5, %c0_6] : memref<16x16x24xf32, #tpu.memory_space<vmem>>, vector<16x16x24xf32>
    %5 = vector.shape_cast %4 : vector<16x16x24xf32> to vector<256x24xf32>
    %c0_7 = arith.constant 0 : index
    %c0_8 = arith.constant 0 : index
    %6 = vector.load %arg3[%c0_7, %c0_8] : memref<248x48xf32, #tpu.memory_space<vmem>>, vector<50x48xf32>
    %cst = arith.constant dense<0.000000e+00> : vector<384x48xf32>
    %7 = tpu.matmul %3, %6, %cst {dimension_numbers = #tpu.dot_dimension_numbers<[1], [0], [0], [1], [0, 0, 1, 1], [], []>} : vector<384x50xf32>, vector<50x48xf32>, vector<384x48xf32> -> vector<384x48xf32>
    %cst_9 = arith.constant dense<0.000000e+00> : vector<384xf32>
    %8 = vector.multi_reduction <add>, %7, %cst_9 [1] : vector<384x48xf32> to vector<384xf32>
    %9 = vector.shape_cast %8 : vector<384xf32> to vector<384x1xf32>
    %cst_10 = arith.constant 4.800000e+01 : f32
    %10 = vector.broadcast %cst_10 : f32 to vector<384x1xf32>
    %11 = arith.divf %9, %10 : vector<384x1xf32>
    %12 = vector.broadcast %11 : vector<384x1xf32> to vector<384x48xf32>
    %13 = arith.subf %7, %12 : vector<384x48xf32>
    %14 = arith.mulf %13, %13 : vector<384x48xf32>
    %cst_11 = arith.constant dense<0.000000e+00> : vector<384xf32>
    %15 = vector.multi_reduction <add>, %14, %cst_11 [1] : vector<384x48xf32> to vector<384xf32>
    %16 = vector.shape_cast %15 : vector<384xf32> to vector<384x1xf32>
    %cst_12 = arith.constant 4.800000e+01 : f32
    %17 = vector.broadcast %cst_12 : f32 to vector<384x1xf32>
    %18 = arith.divf %16, %17 : vector<384x1xf32>
    %cst_13 = arith.constant 9.99999974E-6 : f32
    %19 = vector.broadcast %cst_13 : f32 to vector<384x1xf32>
    %20 = arith.addf %18, %19 : vector<384x1xf32>
    %21 = math.rsqrt %20 : vector<384x1xf32>
    %22 = vector.broadcast %21 : vector<384x1xf32> to vector<384x48xf32>
    %23 = arith.mulf %13, %22 : vector<384x48xf32>
    %24 = vector.broadcast %0 : vector<1x48xf32> to vector<384x48xf32>
    %25 = arith.mulf %23, %24 : vector<384x48xf32>
    %26 = vector.broadcast %1 : vector<1x48xf32> to vector<384x48xf32>
    %27 = arith.addf %25, %26 : vector<384x48xf32>
    %cst_14 = arith.constant 0.000000e+00 : f32
    %28 = vector.broadcast %cst_14 : f32 to vector<384x48xf32>
    %29 = arith.maximumf %27, %28 : vector<384x48xf32>
    %c56 = arith.constant 56 : index
    %c0_15 = arith.constant 0 : index
    %30 = vector.load %arg3[%c56, %c0_15] : memref<248x48xf32, #tpu.memory_space<vmem>>, vector<24x48xf32>
    %cst_16 = arith.constant dense<0.000000e+00> : vector<256x48xf32>
    %31 = tpu.matmul %5, %30, %cst_16 {dimension_numbers = #tpu.dot_dimension_numbers<[1], [0], [0], [1], [0, 0, 1, 1], [], []>} : vector<256x24xf32>, vector<24x48xf32>, vector<256x48xf32> -> vector<256x48xf32>
    %c80 = arith.constant 80 : index
    %c0_17 = arith.constant 0 : index
    %32 = vector.load %arg3[%c80, %c0_17] : memref<248x48xf32, #tpu.memory_space<vmem>>, vector<1x48xf32>
    %33 = vector.broadcast %32 : vector<1x48xf32> to vector<256x48xf32>
    %34 = arith.addf %31, %33 : vector<256x48xf32>
    %cst_18 = arith.constant dense<0.000000e+00> : vector<256xf32>
    %35 = vector.multi_reduction <add>, %34, %cst_18 [1] : vector<256x48xf32> to vector<256xf32>
    %36 = vector.shape_cast %35 : vector<256xf32> to vector<256x1xf32>
    %cst_19 = arith.constant 4.800000e+01 : f32
    %37 = vector.broadcast %cst_19 : f32 to vector<256x1xf32>
    %38 = arith.divf %36, %37 : vector<256x1xf32>
    %39 = vector.broadcast %38 : vector<256x1xf32> to vector<256x48xf32>
    %40 = arith.subf %34, %39 : vector<256x48xf32>
    %41 = arith.mulf %40, %40 : vector<256x48xf32>
    %cst_20 = arith.constant dense<0.000000e+00> : vector<256xf32>
    %42 = vector.multi_reduction <add>, %41, %cst_20 [1] : vector<256x48xf32> to vector<256xf32>
    %43 = vector.shape_cast %42 : vector<256xf32> to vector<256x1xf32>
    %cst_21 = arith.constant 4.800000e+01 : f32
    %44 = vector.broadcast %cst_21 : f32 to vector<256x1xf32>
    %45 = arith.divf %43, %44 : vector<256x1xf32>
    %cst_22 = arith.constant 9.99999974E-6 : f32
    %46 = vector.broadcast %cst_22 : f32 to vector<256x1xf32>
    %47 = arith.addf %45, %46 : vector<256x1xf32>
    %48 = math.rsqrt %47 : vector<256x1xf32>
    %49 = vector.broadcast %48 : vector<256x1xf32> to vector<256x48xf32>
    %50 = arith.mulf %40, %49 : vector<256x48xf32>
    %51 = vector.broadcast %0 : vector<1x48xf32> to vector<256x48xf32>
    %52 = arith.mulf %50, %51 : vector<256x48xf32>
    %53 = vector.broadcast %1 : vector<1x48xf32> to vector<256x48xf32>
    %54 = arith.addf %52, %53 : vector<256x48xf32>
    %cst_23 = arith.constant 0.000000e+00 : f32
    %55 = vector.broadcast %cst_23 : f32 to vector<256x48xf32>
    %56 = arith.maximumf %54, %55 : vector<256x48xf32>
    %c104 = arith.constant 104 : index
    %c0_24 = arith.constant 0 : index
    %57 = vector.load %arg3[%c104, %c0_24] : memref<248x48xf32, #tpu.memory_space<vmem>>, vector<48x48xf32>
    %c152 = arith.constant 152 : index
    %c0_25 = arith.constant 0 : index
    %58 = vector.load %arg3[%c152, %c0_25] : memref<248x48xf32, #tpu.memory_space<vmem>>, vector<48x48xf32>
    %c200 = arith.constant 200 : index
    %c0_26 = arith.constant 0 : index
    %59 = vector.load %arg3[%c200, %c0_26] : memref<248x48xf32, #tpu.memory_space<vmem>>, vector<48x48xf32>
    %cst_27 = arith.constant dense<0.000000e+00> : vector<384x48xf32>
    %60 = tpu.matmul %29, %57, %cst_27 {dimension_numbers = #tpu.dot_dimension_numbers<[1], [0], [0], [1], [0, 0, 1, 1], [], []>} : vector<384x48xf32>, vector<48x48xf32>, vector<384x48xf32> -> vector<384x48xf32>
    %61 = vector.shape_cast %60 : vector<384x48xf32> to vector<16x24x48xf32>
    %cst_28 = arith.constant dense<0.000000e+00> : vector<384x48xf32>
    %62 = tpu.matmul %29, %58, %cst_28 {dimension_numbers = #tpu.dot_dimension_numbers<[1], [0], [0], [1], [0, 0, 1, 1], [], []>} : vector<384x48xf32>, vector<48x48xf32>, vector<384x48xf32> -> vector<384x48xf32>
    %cst_29 = arith.constant dense<0.000000e+00> : vector<256x48xf32>
    %63 = tpu.matmul %56, %59, %cst_29 {dimension_numbers = #tpu.dot_dimension_numbers<[1], [0], [0], [1], [0, 0, 1, 1], [], []>} : vector<256x48xf32>, vector<48x48xf32>, vector<256x48xf32> -> vector<256x48xf32>
    %64 = vector.shape_cast %63 : vector<256x48xf32> to vector<16x16x48xf32>
    %cst_30 = arith.constant dense<0.000000e+00> : vector<256x48xf32>
    %65 = tpu.matmul %56, %58, %cst_30 {dimension_numbers = #tpu.dot_dimension_numbers<[1], [0], [0], [1], [0, 0, 1, 1], [], []>} : vector<256x48xf32>, vector<48x48xf32>, vector<256x48xf32> -> vector<256x48xf32>
    %66 = vector.shape_cast %65 : vector<256x48xf32> to vector<16x16x48xf32>
    "tpu.trace_start"() <{level = 10 : i32, message = "bqd,bkd->bqk"}> : () -> ()
    %cst_31 = arith.constant dense<0.000000e+00> : vector<16x24x16xf32>
    %67 = tpu.matmul %61, %64, %cst_31 {dimension_numbers = #tpu.dot_dimension_numbers<[2], [2], [1], [1], [0, 0, 0, 1, 1, 1], [0], [0]>} : vector<16x24x48xf32>, vector<16x16x48xf32>, vector<16x24x16xf32> -> vector<16x24x16xf32>
    "tpu.trace_stop"() : () -> ()
    %68 = tpu.iota {dimensions = array<i32: 2>} : vector<1x1x16xi32>
    %c10_i32 = arith.constant 10 : i32
    %69 = vector.broadcast %c10_i32 : i32 to vector<1x1x16xi32>
    %70 = arith.cmpi slt, %68, %69 : vector<1x1x16xi32>
    %cst_32 = arith.constant -1.000000e+30 : f32
    %71 = vector.shape_cast %70 : vector<1x1x16xi1> to vector<1x1x16xi1>
    %72 = vector.broadcast %71 : vector<1x1x16xi1> to vector<16x24x16xi1>
    %73 = vector.broadcast %cst_32 : f32 to vector<16x24x16xf32>
    %74 = arith.select %72, %67, %73 : vector<16x24x16xi1>, vector<16x24x16xf32>
    %cst_33 = arith.constant dense<0xFF800000> : vector<16x24xf32>
    %75 = vector.multi_reduction <maximumf>, %74, %cst_33 [2] : vector<16x24x16xf32> to vector<16x24xf32>
    %76 = vector.shape_cast %75 : vector<16x24xf32> to vector<16x24x1xf32>
    %77 = vector.broadcast %76 : vector<16x24x1xf32> to vector<16x24x16xf32>
    %78 = arith.subf %74, %77 : vector<16x24x16xf32>
    %79 = math.exp %78 : vector<16x24x16xf32>
    %cst_34 = arith.constant dense<0.000000e+00> : vector<16x24xf32>
    %80 = vector.multi_reduction <add>, %79, %cst_34 [2] : vector<16x24x16xf32> to vector<16x24xf32>
    %81 = vector.shape_cast %80 : vector<16x24xf32> to vector<16x24x1xf32>
    %82 = vector.broadcast %81 : vector<16x24x1xf32> to vector<16x24x16xf32>
    %83 = arith.divf %79, %82 : vector<16x24x16xf32>
    "tpu.trace_start"() <{level = 10 : i32, message = "bqk,bkd->bqd"}> : () -> ()
    %cst_35 = arith.constant dense<0.000000e+00> : vector<16x24x48xf32>
    %84 = tpu.matmul %83, %66, %cst_35 {dimension_numbers = #tpu.dot_dimension_numbers<[2], [1], [1], [2], [0, 0, 0, 1, 1, 2], [0], [0]>} : vector<16x24x16xf32>, vector<16x16x48xf32>, vector<16x24x48xf32> -> vector<16x24x48xf32>
    "tpu.trace_stop"() : () -> ()
    %c0_36 = arith.constant 0 : index
    %c0_37 = arith.constant 0 : index
    %c0_38 = arith.constant 0 : index
    %85 = vector.load %arg6[%c0_36, %c0_37, %c0_38] : memref<16x24x16xf32, #tpu.memory_space<vmem>>, vector<16x24x16xf32>
    tpu.vector_store %arg6[%c0_36, %c0_37, %c0_38], %83 {strides = array<i32>} : memref<16x24x16xf32, #tpu.memory_space<vmem>>, vector<16x24x16xf32>,
    %86 = vector.shape_cast %84 : vector<16x24x48xf32> to vector<384x48xf32>
    %c96_39 = arith.constant 96 : index
    %c0_40 = arith.constant 0 : index
    %87 = vector.load %arg4[%c96_39, %c0_40] : memref<192x96xf32, #tpu.memory_space<vmem>>, vector<48x96xf32>
    %cst_41 = arith.constant dense<0.000000e+00> : vector<384x96xf32>
    %88 = tpu.matmul %62, %87, %cst_41 {dimension_numbers = #tpu.dot_dimension_numbers<[1], [0], [0], [1], [0, 0, 1, 1], [], []>} : vector<384x48xf32>, vector<48x96xf32>, vector<384x96xf32> -> vector<384x96xf32>
    %c144 = arith.constant 144 : index
    %c0_42 = arith.constant 0 : index
    %89 = vector.load %arg4[%c144, %c0_42] : memref<192x96xf32, #tpu.memory_space<vmem>>, vector<48x96xf32>
    %cst_43 = arith.constant dense<0.000000e+00> : vector<384x96xf32>
    %90 = tpu.matmul %86, %89, %cst_43 {dimension_numbers = #tpu.dot_dimension_numbers<[1], [0], [0], [1], [0, 0, 1, 1], [], []>} : vector<384x48xf32>, vector<48x96xf32>, vector<384x96xf32> -> vector<384x96xf32>
    %91 = arith.addf %88, %90 : vector<384x96xf32>
    %92 = vector.shape_cast %91 : vector<384x96xf32> to vector<16x24x96xf32>
    %93 = vector.shape_cast %62 : vector<384x48xf32> to vector<16x24x48xf32>
    %94 = vector.extract_strided_slice %93 {offsets = [0, 16, 0], sizes = [16, 1, 48], strides = [1, 1, 1]} : vector<16x24x48xf32> to vector<16x1x48xf32>
    %95 = vector.shape_cast %94 : vector<16x1x48xf32> to vector<16x48xf32>
    %96 = vector.extract_strided_slice %84 {offsets = [0, 16, 0], sizes = [16, 1, 48], strides = [1, 1, 1]} : vector<16x24x48xf32> to vector<16x1x48xf32>
    %97 = vector.shape_cast %96 : vector<16x1x48xf32> to vector<16x48xf32>
    %c0_44 = arith.constant 0 : index
    %c0_45 = arith.constant 0 : index
    %98 = vector.load %arg4[%c0_44, %c0_45] : memref<192x96xf32, #tpu.memory_space<vmem>>, vector<48x96xf32>
    %cst_46 = arith.constant dense<0.000000e+00> : vector<16x96xf32>
    %99 = tpu.matmul %95, %98, %cst_46 {dimension_numbers = #tpu.dot_dimension_numbers<[1], [0], [0], [1], [0, 0, 1, 1], [], []>} : vector<16x48xf32>, vector<48x96xf32>, vector<16x96xf32> -> vector<16x96xf32>
    %c48 = arith.constant 48 : index
    %c0_47 = arith.constant 0 : index
    %100 = vector.load %arg4[%c48, %c0_47] : memref<192x96xf32, #tpu.memory_space<vmem>>, vector<48x96xf32>
    %cst_48 = arith.constant dense<0.000000e+00> : vector<16x96xf32>
    %101 = tpu.matmul %97, %100, %cst_48 {dimension_numbers = #tpu.dot_dimension_numbers<[1], [0], [0], [1], [0, 0, 1, 1], [], []>} : vector<16x48xf32>, vector<48x96xf32>, vector<16x96xf32> -> vector<16x96xf32>
    %102 = arith.addf %99, %101 : vector<16x96xf32>
    %103 = vector.shape_cast %102 : vector<16x96xf32> to vector<16x1x96xf32>
    "tpu.trace_start"() <{level = 10 : i32, message = "bqd,bkd->bqk"}> : () -> ()
    %cst_49 = arith.constant dense<0.000000e+00> : vector<16x1x24xf32>
    %104 = tpu.matmul %103, %92, %cst_49 {dimension_numbers = #tpu.dot_dimension_numbers<[2], [2], [1], [1], [0, 0, 0, 1, 1, 1], [0], [0]>} : vector<16x1x96xf32>, vector<16x24x96xf32>, vector<16x1x24xf32> -> vector<16x1x24xf32>
    "tpu.trace_stop"() : () -> ()
    %105 = tpu.iota {dimensions = array<i32: 2>} : vector<1x1x24xi32>
    %c11_i32 = arith.constant 11 : i32
    %106 = vector.broadcast %c11_i32 : i32 to vector<1x1x24xi32>
    %107 = arith.cmpi slt, %105, %106 : vector<1x1x24xi32>
    %cst_50 = arith.constant -1.000000e+30 : f32
    %108 = vector.shape_cast %107 : vector<1x1x24xi1> to vector<1x1x24xi1>
    %109 = vector.broadcast %108 : vector<1x1x24xi1> to vector<16x1x24xi1>
    %110 = vector.broadcast %cst_50 : f32 to vector<16x1x24xf32>
    %111 = arith.select %109, %104, %110 : vector<16x1x24xi1>, vector<16x1x24xf32>
    %cst_51 = arith.constant dense<0xFF800000> : vector<16x1xf32>
    %112 = vector.multi_reduction <maximumf>, %111, %cst_51 [2] : vector<16x1x24xf32> to vector<16x1xf32>
    %113 = vector.shape_cast %112 : vector<16x1xf32> to vector<16x1x1xf32>
    %114 = vector.broadcast %113 : vector<16x1x1xf32> to vector<16x1x24xf32>
    %115 = arith.subf %111, %114 : vector<16x1x24xf32>
    %116 = math.exp %115 : vector<16x1x24xf32>
    %cst_52 = arith.constant dense<0.000000e+00> : vector<16x1xf32>
    %117 = vector.multi_reduction <add>, %116, %cst_52 [2] : vector<16x1x24xf32> to vector<16x1xf32>
    %118 = vector.shape_cast %117 : vector<16x1xf32> to vector<16x1x1xf32>
    %119 = vector.broadcast %118 : vector<16x1x1xf32> to vector<16x1x24xf32>
    %120 = arith.divf %116, %119 : vector<16x1x24xf32>
    %121 = vector.shape_cast %120 : vector<16x1x24xf32> to vector<16x24xf32>
    %c0_53 = arith.constant 0 : index
    %c0_54 = arith.constant 0 : index
    %122 = vector.load %arg5[%c0_53, %c0_54] : memref<16x24xf32, #tpu.memory_space<vmem>>, vector<16x24xf32>
    tpu.vector_store %arg5[%c0_53, %c0_54], %121 {strides = array<i32>} : memref<16x24xf32, #tpu.memory_space<vmem>>, vector<16x24xf32>,
    return
  }
  func.func @transform_0(%arg0: i32) -> (i32, i32, i32) {
    %c0_i32 = arith.constant 0 : i32
    %c0_i32_0 = arith.constant 0 : i32
    %c0_i32_1 = arith.constant 0 : i32
    return %arg0, %c0_i32, %c0_i32_0 : i32, i32, i32
  }
  func.func @transform_1(%arg0: i32) -> (i32, i32, i32) {
    %c0_i32 = arith.constant 0 : i32
    %c0_i32_0 = arith.constant 0 : i32
    %c0_i32_1 = arith.constant 0 : i32
    return %arg0, %c0_i32, %c0_i32_0 : i32, i32, i32
  }
  func.func @transform_2(%arg0: i32) -> (i32, i32) {
    %c0_i32 = arith.constant 0 : i32
    %c0_i32_0 = arith.constant 0 : i32
    %c0_i32_1 = arith.constant 0 : i32
    return %c0_i32, %c0_i32_0 : i32, i32
  }
  func.func @transform_3(%arg0: i32) -> (i32, i32) {
    %c0_i32 = arith.constant 0 : i32
    %c0_i32_0 = arith.constant 0 : i32
    %c0_i32_1 = arith.constant 0 : i32
    return %c0_i32, %c0_i32_0 : i32, i32
  }
  func.func @transform_4(%arg0: i32) -> (i32, i32) {
    %c0_i32 = arith.constant 0 : i32
    %c0_i32_0 = arith.constant 0 : i32
    return %arg0, %c0_i32 : i32, i32
  }
  func.func @transform_5(%arg0: i32) -> (i32, i32, i32) {
    %c0_i32 = arith.constant 0 : i32
    %c0_i32_0 = arith.constant 0 : i32
    %c0_i32_1 = arith.constant 0 : i32
    return %arg0, %c0_i32, %c0_i32_0 : i32, i32, i32
  }
}

</mosaic_0001>

<bundles_post_ra>
// kernel: att_def_forward.1
= control target key start
LH: loop header
LB: loop body
LE: loop exit
PB: predicated region body
PF: predicated region fallthrough
CT: control target
= control target key end

     0   :  { %s9037_s18 = smov 0   ;;  %s14806_s0 = inlined_call_operand.vmem [shape: f32[32,24,50], index: 0, kind: input, shape index: {}]   ;;  %s14807_s1 = inlined_call_operand.vmem [shape: f32[32,16,24], index: 1, kind: input, shape index: {}]   ;;  %s14808_s2 = inlined_call_operand.vmem [shape: f32[248,48], index: 2, kind: input, shape index: {}]   ;;  %s14809_s3 = inlined_call_operand.vmem [shape: f32[192,96], index: 3, kind: input, shape index: {}]   ;;  %s14810_s4 = inlined_call_operand.vmem [shape: f32[32,24], index: 4, kind: output, shape index: {0}]   ;;  %s14811_s5 = inlined_call_operand.vmem [shape: f32[32,24,16], index: 5, kind: output, shape index: {1}]  }
   0x1 LB: > { %s7992_s19 = sadd.s32 4294967295, %s9004_s18   ;;  %p7996_p0 = scmp.ge.s32.totalorder %s9004_s18, 1  ;;  %s9004_s18 = sphi %s9037_s18, %s16_s18  }
   0x2   : > { %p204_p1 = scmp.lt.s32.totalorder %s9004_s18, 3 }
   0x4   : > { %p205_p2 = pnand %p7996_p0, %p204_p1 }
   0x6   : > { %208 = sbr.rel (%p205_p2) target bundleno = 2840 (0xb18), region = 36 }
   0xb   : > { %v360_v0 = vld [vmem:[%s14808_s2 + $0x30] sm:$0x3]  ;;  %vm506_vm0 = vcmask 1041408   ;;  %v359_v1 = vld [vmem:[%s14808_s2 + $0x28] sm:$0xff]  ;;  %s7997_s26 = sshll.u32 %s7992_s19, 4  ;;  %v1882_v3 = vld [vmem:[%s14808_s2 + $0x40] sm:$0xff] }
   0xc   : > { %v1883_v2 = vld [vmem:[%s14808_s2 + $0x48] sm:$0xff]  ;;  %8006 = vmatpush.msk.msra.mxu0 %vm506_vm0, %v360_v0  ;;  %p246_p3 = scmp.lt.s32.totalorder %s7997_s26, 31  ;;  %v358_v4 = vld [vmem:[%s14808_s2 + $0x20] sm:$0xff]  ;;  %v1881_v5 = vld [vmem:[%s14808_s2 + $0x38] sm:$0xff]  ;;  %vm14895_vm1 = vcmask 195584   ;;  %vm361_vm2 = vcmask 408576  }
   0xd   : > { %1996 = vmatpush.msra.mxu1 %v1883_v2  ;;  %v357_v6 = vld [vmem:[%s14808_s2 + $0x18] sm:$0xff]  ;;  %v356_v7 = vld [vmem:[%s14808_s2 + $0x10] sm:$0xff]  ;;  %v355_v9 = vld [vmem:[%s14808_s2 + $0x8] sm:$0xff]  ;;  %vm671_vm3 = vcmask 392192  }
   0xe   : > { %520 = vmatpush.msra.mxu0 %v359_v1  ;;  %s15390_s26 = smov (!%p246_p3, %s7997_s26), 31  ;;  %v354_v10 = vld [vmem:[%s14808_s2] sm:$0xff]  ;;  %v9142_v33 = vld [vmem:[%s14808_s2 + $0x50] ss:$0 sm:$0xff] }
   0xf   : > { %1997 = vmatpush.msra.mxu1 %v1882_v3  ;;  %s8556_s10 = smul.u32 24, %s15390_s26  ;;  %s8541_s11 = sshll.u32 %s15390_s26, 4 }
  0x10   : > { %521 = vmatpush.msra.mxu0 %v358_v4  ;;  %s9075_s14 = scalar_lea.vmem %s14807_s1, %s8541_s11 }
  0x11   : > { %1998 = vmatpush.msra.mxu1 %v1881_v5  ;;  %v322_v8 = vld [vmem:[%s9075_s14] sm:$0xff]  ;;  %s9086_s21 = scalar_lea.vmem %s14806_s0, %s8556_s10  ;;  %v323_v12 = vld [vmem:[%s9075_s14 + $0x8] sm:$0xff]  ;;  %v324_v14 = vld [vmem:[%s9075_s14 + $0x10] sm:$0xff]  ;;  %s12445_s6 = scalar_lea.vmem %s14811_s5, %s8556_s10 }
  0x12   : > { %522 = vmatpush.msra.mxu0 %v357_v6  ;;  %8055 = vmatmul.msk.f32.vlgmr.msra.gmra.mxu1 %vm14895_vm1, %v322_v8  ;;  %v274_v11 = vld [vmem:[%s9086_s21] sm:$0xff]  ;;  %v275_v13 = vld [vmem:[%s9086_s21 + $0x8] sm:$0xff]  ;;  %v276_v15 = vld [vmem:[%s9086_s21 + $0x10] sm:$0xff] }
  0x13   : > { %v325_v16 = vld [vmem:[%s9075_s14 + $0x18] sm:$0xff]  ;;  %v326_v18 = vld [vmem:[%s9075_s14 + $0x20] sm:$0xff]  ;;  %v327_v20 = vld [vmem:[%s9075_s14 + $0x28] sm:$0xff] }
  0x14   : > { %523 = vmatpush.msra.mxu0 %v356_v7  ;;  %v277_v17 = vld [vmem:[%s9086_s21 + $0x18] sm:$0xff]  ;;  %v278_v19 = vld [vmem:[%s9086_s21 + $0x20] sm:$0xff]  ;;  %v279_v21 = vld [vmem:[%s9086_s21 + $0x28] sm:$0xff] }
  0x15   : > { %v328_v22 = vld [vmem:[%s9075_s14 + $0x30] sm:$0xff]  ;;  %v281_v24 = vld [vmem:[%s9086_s21 + $0x38] sm:$0xff]  ;;  %v282_v25 = vld [vmem:[%s9086_s21 + $0x40] sm:$0xff] }
  0x16   : > { %524 = vmatpush.msra.mxu0 %v355_v9  ;;  %v280_v23 = vld [vmem:[%s9086_s21 + $0x30] sm:$0xff]  ;;  %v283_v26 = vld [vmem:[%s9086_s21 + $0x48] sm:$0xff]  ;;  %v285_v28 = vld [vmem:[%s9086_s21 + $0x58] sm:$0xff] }
  0x17   : > { %v284_v27 = vld [vmem:[%s9086_s21 + $0x50] sm:$0xff]  ;;  %v286_v29 = vld [vmem:[%s9086_s21 + $0x60] sm:$0xff]  ;;  %v329_v30 = vld [vmem:[%s9075_s14 + $0x38] sm:$0xff] }
  0x18   : > { %525 = vmatpush.msra.mxu0 %v354_v10  ;;  %v287_v31 = vld [vmem:[%s9086_s21 + $0x68] sm:$0xff]  ;;  %v288_v32 = vld [vmem:[%s9086_s21 + $0x70] sm:$0xff]  ;;  %v289_v34 = vld [vmem:[%s9086_s21 + $0x78] sm:$0xff] }
  0x19   : > { %8007 = vmatmul.msk.f32.vlgmr.msra.gmra.mxu0 %vm361_vm2, %v274_v11  ;;  %v330_v38 = vld [vmem:[%s9075_s14 + $0x40] sm:$0xff]  ;;  %v291_v46 = vld [vmem:[%s9086_s21 + $0x88] sm:$0xff]  ;;  %v292_v52 = vld [vmem:[%s9086_s21 + $0x90] sm:$0xff] }
  0x1a   : > { %8056 = vmatmul.msk.f32.gmra.mxu1 %vm14895_vm1, %v323_v12  ;;  %v290_v40 = vld [vmem:[%s9086_s21 + $0x80] sm:$0xff]  ;;  %v293_v58 = vld [vmem:[%s9086_s21 + $0x98] sm:$0xff]  ;;  %v295_v6 = vld [vmem:[%s9086_s21 + $0xa8] sm:$0xff] }
  0x1b   : > { %v294_v0 = vld [vmem:[%s9086_s21 + $0xa0] sm:$0xff]  ;;  %v296_v11 = vld [vmem:[%s9086_s21 + $0xb0] sm:$0xff] }
  0x21   : > { %8008 = vmatmul.msk.f32.gmra.mxu0 %vm361_vm2, %v275_v13 }
  0x22   : > { %8057 = vmatmul.msk.f32.gmra.mxu1 %vm14895_vm1, %v324_v14  ;;  %v331_v14 = vld [vmem:[%s9075_s14 + $0x48] sm:$0xff] }
  0x29   : > { %8009 = vmatmul.msk.f32.gmra.mxu0 %vm361_vm2, %v276_v15 }
  0x2a   : > { %8058 = vmatmul.msk.f32.gmra.mxu1 %vm14895_vm1, %v325_v16  ;;  %v297_v16 = vld [vmem:[%s9086_s21 + $0xb8] sm:$0xff] }
  0x31   : > { %8010 = vmatmul.msk.f32.gmra.mxu0 %vm361_vm2, %v277_v17 }
  0x32   : > { %8059 = vmatmul.msk.f32.gmra.mxu1 %vm14895_vm1, %v326_v18  ;;  %v332_v18 = vld [vmem:[%s9075_s14 + $0x50] sm:$0xff] }
  0x39   : > { %8011 = vmatmul.msk.f32.gmra.mxu0 %vm361_vm2, %v278_v19 }
  0x3a   : > { %8060 = vmatmul.msk.f32.gmra.mxu1 %vm14895_vm1, %v327_v20  ;;  %v298_v20 = vld [vmem:[%s9086_s21 + $0xc0] sm:$0xff] }
  0x41   : > { %8012 = vmatmul.msk.f32.gmra.mxu0 %vm361_vm2, %v279_v21 }
  0x42   : > { %8061 = vmatmul.msk.f32.gmra.mxu1 %vm14895_vm1, %v328_v22  ;;  %v333_v22 = vld [vmem:[%s9075_s14 + $0x58] sm:$0xff] }
  0x49   : > { %8013 = vmatmul.msk.f32.gmra.mxu0 %vm361_vm2, %v280_v23 }
  0x4a   : > { %8062 = vmatmul.msk.f32.gmra.mxu1 %vm14895_vm1, %v329_v30  ;;  %v9006_v30 = vmov 48.0  }
  0x4b   : > { %8569 = vrcp.f32 %v9006_v30 }
  0x51   : > { %8014 = vmatmul.msk.f32.gmra.mxu0 %vm361_vm2, %v281_v24  ;;  %v299_v24 = vld [vmem:[%s9086_s21 + $0xc8] sm:$0xff] }
  0x52   : > { %8063 = vmatmul.msk.f32.gmra.mxu1 %vm14895_vm1, %v330_v38  ;;  %v336_v38 = vld [vmem:[%s9075_s14 + $0x70] sm:$0xff] }
  0x59   : > { %8015 = vmatmul.msk.f32.gmra.mxu0 %vm361_vm2, %v282_v25 }
  0x5a   : > { %8064 = vmatmul.msk.f32.gmra.mxu1 %vm14895_vm1, %v331_v14  ;;  %v305_v14 = vld [vmem:[%s9086_s21 + $0xf8] sm:$0xff] }
  0x61   : > { %8016 = vmatmul.msk.f32.gmra.mxu0 %vm361_vm2, %v283_v26  ;;  %v334_v26 = vld [vmem:[%s9075_s14 + $0x60] sm:$0xff] }
  0x62   : > { %8065 = vmatmul.msk.f32.gmra.mxu1 %vm14895_vm1, %v332_v18 }
  0x69   : > { %8017 = vmatmul.msk.f32.gmra.mxu0 %vm361_vm2, %v284_v27 }
  0x6a   : > { %8066 = vmatmul.msk.f32.gmra.mxu1 %vm14895_vm1, %v333_v22 }
  0x71   : > { %8018 = vmatmul.msk.f32.gmra.mxu0 %vm361_vm2, %v285_v28  ;;  %v300_v28 = vld [vmem:[%s9086_s21 + $0xd0] sm:$0xff] }
  0x72   : > { %8067 = vmatmul.msk.f32.gmra.mxu1 %vm14895_vm1, %v334_v26 }
  0x79   : > { %8019 = vmatmul.msk.f32.gmra.mxu0 %vm361_vm2, %v286_v29 }
  0x81   : > { %8020 = vmatmul.msk.f32.gmra.mxu0 %vm361_vm2, %v287_v31  ;;  %v335_v31 = vld [vmem:[%s9075_s14 + $0x68] sm:$0xff] }
  0x82   : > { %8068 = vmatmul.msk.f32.gmra.mxu1 %vm14895_vm1, %v335_v31  ;;  %v306_v31 = vld [vmem:[%s9086_s21 + $0x100] sm:$0xff] }
  0x89   : > { %8021 = vmatmul.msk.f32.gmra.mxu0 %vm361_vm2, %v288_v32 }
  0x8a   : > { %8069 = vmatmul.msk.f32.gmra.mxu1 %vm14895_vm1, %v336_v38 }
  0x8f   : > { %v2000_v35 = vpop.f32.mrf.mxu1 }
  0x90   : > { %v9147_v36 = vadd.f32 %v9142_v33, %v2000_v35 }
  0x91   : > { %8022 = vmatmul.msk.f32.gmra.mxu0 %vm361_vm2, %v289_v34  ;;  %v301_v34 = vld [vmem:[%s9086_s21 + $0xd8] sm:$0xff] }
  0x92   : > { %v2096_v37 = vsel %vm671_vm3, %v9147_v36, 0.0 }
  0x93   : > { %2097 = vadd.xlane.f32.xlu1 %v2096_v37  ;;  %v8570_v37 = vpop.eup %8569 }
  0x94   : > { %vm821_vm4 = vweird.f32 %v8570_v37 }
  0x96   : > { %v9152_v39 = vpop.f32.mrf.mxu0 }
  0x97   : > { %v672_v41 = vsel %vm671_vm3, %v9152_v39, 0.0  ;;  %v2003_v42 = vpop.f32.mrf.mxu1 }
  0x98   : > { %673 = vadd.xlane.f32.xlu0 %v672_v41  ;;  %v9160_v43 = vadd.f32 %v9142_v33, %v2003_v42  ;;  %v302_v42 = vld [vmem:[%s9086_s21 + $0xe0] sm:$0xff] }
  0x99   : > { %8023 = vmatmul.msk.f32.gmra.mxu0 %vm361_vm2, %v290_v40  ;;  %v817_v40 = vmul.f32 48.0, %v8570_v37 }
  0x9a   : > { %v2099_v44 = vsel %vm671_vm3, %v9160_v43, 0.0 }
  0x9b   : > { %2100 = vadd.xlane.f32.xlu2 %v2099_v44 }
  0x9e   : > { %v9164_v45 = vpop.f32.mrf.mxu0 }
  0x9f   : > { %v675_v47 = vsel %vm671_vm3, %v9164_v45, 0.0  ;;  %v2006_v48 = vpop.f32.mrf.mxu1 }
  0xa0   : > { %676 = vadd.xlane.f32.xlu0 %v675_v47  ;;  %v9170_v49 = vadd.f32 %v9142_v33, %v2006_v48  ;;  %v337_v47 = vld [vmem:[%s9075_s14 + $0x78] sm:$0xff] }
  0xa1   : > { %8024 = vmatmul.msk.f32.gmra.mxu0 %vm361_vm2, %v291_v46  ;;  %v818_v46 = vsub.f32 1.0, %v817_v40  ;;  %8070 = vmatmul.msk.f32.gmra.mxu1 %vm14895_vm1, %v337_v47 }
  0xa2   : > { %v2102_v50 = vsel %vm671_vm3, %v9170_v49, 0.0 }
  0xa3   : > { %v819_v48 = vmul.f32 %v8570_v37, %v818_v46 }
  0xa6   : > { %v9175_v51 = vpop.f32.mrf.mxu0 }
  0xa7   : > { %v678_v53 = vsel %vm671_vm3, %v9175_v51, 0.0  ;;  %v2009_v54 = vpop.f32.mrf.mxu1 }
  0xa8   : > { %2103 = vadd.xlane.f32.xlu0 %v2102_v50  ;;  %679 = vadd.xlane.f32.xlu1 %v678_v53  ;;  %v9181_v55 = vadd.f32 %v9142_v33, %v2009_v54  ;;  %v820_v54 = vadd.f32 %v8570_v37, %v819_v48  ;;  %v307_v48 = vld [vmem:[%s9086_s21 + $0x108] sm:$0xff] }
  0xa9   : > { %8025 = vmatmul.msk.f32.gmra.mxu0 %vm361_vm2, %v292_v52  ;;  %v303_v52 = vld [vmem:[%s9086_s21 + $0xe8] sm:$0xff] }
  0xaa   : > { %v2105_v56 = vsel %vm671_vm3, %v9181_v55, 0.0 }
  0xae   : > { %v9186_v57 = vpop.f32.mrf.mxu0 }
  0xaf   : > { %v2012_v59 = vpop.f32.mrf.mxu1  ;;  %v681_v62 = vsel %vm671_vm3, %v9186_v57, 0.0 }
  0xb0   : > { %2106 = vadd.xlane.f32.xlu1 %v2105_v56  ;;  %v9190_v60 = vadd.f32 %v9142_v33, %v2012_v59  ;;  %v338_v56 = vld [vmem:[%s9075_s14 + $0x80] sm:$0xff] }
  0xb1   : > { %8026 = vmatmul.msk.f32.gmra.mxu0 %vm361_vm2, %v293_v58  ;;  %v9282_v58 = vsel %vm821_vm4, %v8570_v37, %v820_v54  ;;  %8071 = vmatmul.msk.f32.gmra.mxu1 %vm14895_vm1, %v338_v56 }
  0xb2   : > { %v2108_v61 = vsel %vm671_vm3, %v9190_v60, 0.0 }
  0xb3   : > { %2109 = vadd.xlane.f32.xlu2 %v2108_v61  ;;  %v304_v61 = vld [vmem:[%s9086_s21 + $0xf0] sm:$0xff] }
  0xb6   : > { %v9197_v63 = vpop.f32.mrf.mxu0 }
  0xb7   : > { %v2015_v1 = vpop.f32.mrf.mxu1  ;;  %v684_v3 = vsel %vm671_vm3, %v9197_v63, 0.0 }
  0xb8   : > { %682 = vadd.xlane.f32.xlu1 %v681_v62  ;;  %v9202_v2 = vadd.f32 %v9142_v33, %v2015_v1 }
  0xb9   : > { %8027 = vmatmul.msk.f32.gmra.mxu0 %vm361_vm2, %v294_v0 }
  0xba   : > { %v2111_v4 = vsel %vm671_vm3, %v9202_v2, 0.0 }
  0xbb   : > { %685 = vadd.xlane.f32.xlu2 %v684_v3 }
  0xbe   : > { %v9208_v5 = vpop.f32.mrf.mxu0 }
  0xbf   : > { %v687_v7 = vsel %vm671_vm3, %v9208_v5, 0.0  ;;  %v2018_v8 = vpop.f32.mrf.mxu1 }
  0xc0   : > { %2112 = vadd.xlane.f32.xlu1 %v2111_v4  ;;  %v9215_v9 = vadd.f32 %v9142_v33, %v2018_v8  ;;  %v339_v8 = vld [vmem:[%s9075_s14 + $0x88] sm:$0xff] }
  0xc1   : > { %8028 = vmatmul.msk.f32.gmra.mxu0 %vm361_vm2, %v295_v6  ;;  %8072 = vmatmul.msk.f32.gmra.mxu1 %vm14895_vm1, %v339_v8 }
  0xc2   : > { %v2114_v13 = vsel %vm671_vm3, %v9215_v9, 0.0 }
  0xc3   : > { %688 = vadd.xlane.f32.xlu2 %v687_v7 }
  0xc6   : > { %v9217_v10 = vpop.f32.mrf.mxu0 }
  0xc7   : > { %v690_v12 = vsel %vm671_vm3, %v9217_v10, 0.0  ;;  %v2021_v18 = vpop.f32.mrf.mxu1 }
  0xc8   : > { %691 = vadd.xlane.f32.xlu1 %v690_v12 }
  0xc9   : > { %8029 = vmatmul.msk.f32.gmra.mxu0 %vm361_vm2, %v296_v11 }
  0xcb   : > { %2115 = vadd.xlane.f32.xlu2 %v2114_v13 }
  0xce   : > { %v9227_v15 = vpop.f32.mrf.mxu0 }
  0xcf   : > { %v693_v17 = vsel %vm671_vm3, %v9227_v15, 0.0 }
  0xd0   : > { %694 = vadd.xlane.f32.xlu0 %v693_v17 }
  0xd1   : > { %8030 = vmatmul.msk.f32.gmra.mxu0 %vm361_vm2, %v297_v16 }
  0xd6   : > { %v9235_v19 = vpop.f32.mrf.mxu0 }
  0xd7   : > { %v696_v21 = vsel %vm671_vm3, %v9235_v19, 0.0 }
  0xd8   : > { %697 = vadd.xlane.f32.xlu2 %v696_v21 }
  0xd9   : > { %8031 = vmatmul.msk.f32.gmra.mxu0 %vm361_vm2, %v298_v20 }
  0xde   : > { %v9243_v23 = vpop.f32.mrf.mxu0 }
  0xdf   : > { %v699_v25 = vsel %vm671_vm3, %v9243_v23, 0.0 }
  0xe0   : > { %700 = vadd.xlane.f32.xlu1 %v699_v25 }
  0xe1   : > { %8032 = vmatmul.msk.f32.gmra.mxu0 %vm361_vm2, %v299_v24  ;;  %v9317_v24 = vadd.f32 %v9142_v33, %v2021_v18 }
  0xe6   : > { %v9251_v27 = vpop.f32.mrf.mxu0 }
  0xe7   : > { %v702_v29 = vsel %vm671_vm3, %v9251_v27, 0.0 }
  0xe8   : > { %703 = vadd.xlane.f32.xlu0 %v702_v29 }
  0xe9   : > { %8033 = vmatmul.msk.f32.gmra.mxu0 %vm361_vm2, %v300_v28  ;;  %v340_v28 = vld [vmem:[%s9075_s14 + $0x90] sm:$0xff] }
  0xea   : > { %8073 = vmatmul.msk.f32.gmra.mxu1 %vm14895_vm1, %v340_v28 }
  0xee   : > { %v9259_v32 = vpop.f32.mrf.mxu0 }
  0xef   : > { %v705_v35 = vsel %vm671_vm3, %v9259_v32, 0.0 }
  0xf0   : > { %706 = vadd.xlane.f32.xlu0 %v705_v35 }
  0xf1   : > { %8034 = vmatmul.msk.f32.gmra.mxu0 %vm361_vm2, %v301_v34  ;;  %v2117_v34 = vsel %vm671_vm3, %v9317_v24, 0.0 }
  0xf6   : > { %v9267_v41 = vpop.f32.mrf.mxu0 }
  0xf7   : > { %v708_v44 = vsel %vm671_vm3, %v9267_v41, 0.0 }
  0xf8   : > { %709 = vadd.xlane.f32.xlu0 %v708_v44 }
  0xf9   : > { %8035 = vmatmul.msk.f32.gmra.mxu0 %vm361_vm2, %v302_v42  ;;  %v341_v42 = vld [vmem:[%s9075_s14 + $0x98] sm:$0xff] }
  0xfa   : > { %8074 = vmatmul.msk.f32.gmra.mxu1 %vm14895_vm1, %v341_v42 }
  0xfe   : > { %v9275_v50 = vpop.f32.mrf.mxu0 }
  0xff   : > { %v711_v53 = vsel %vm671_vm3, %v9275_v50, 0.0 }
 0x100   : > { %712 = vadd.xlane.f32.xlu0 %v711_v53 }
 0x101   : > { %8036 = vmatmul.msk.f32.gmra.mxu0 %vm361_vm2, %v303_v52 }
 0x106   : > { %v9285_v59 = vpop.f32.mrf.mxu0  ;;  %v2098_v62 = vpop.xlane.xlu1 %2097 }
 0x107   : > { %v714_v0 = vsel %vm671_vm3, %v9285_v59, 0.0  ;;  %v2192_v1 = vmul.f32 %v2098_v62, %v9282_v58 }
 0x108   : > { %715 = vadd.xlane.f32.xlu0 %v714_v0 }
 0x109   : > { %8037 = vmatmul.msk.f32.gmra.mxu0 %vm361_vm2, %v304_v61  ;;  %v9293_v3 = vsub.f32 %v9147_v36, %v2192_v1  ;;  %v342_v61 = vld [vmem:[%s9075_s14 + $0xa0] sm:$0xff]  ;;  %v308_v1 = vld [vmem:[%s9086_s21 + $0x110] sm:$0xff] }
 0x10a   : > { %8075 = vmatmul.msk.f32.gmra.mxu1 %vm14895_vm1, %v342_v61 }
 0x10b   : > { %14899 = vst [vmem:[#allocation2_spill] sm:$0xff] %v9293_v3  ;;  %v674_v4 = vpop.xlane.xlu0 %673  ;;  %v2256_v7 = vmul.f32 %v9293_v3, %v9293_v3 }
 0x10c   : > { %v823_v6 = vmul.f32 %v9282_v58, %v674_v4 }
 0x10d   : > { %v2288_v13 = vsel %vm671_vm3, %v2256_v7, 0.0 }
 0x10e   : > { %v9301_v11 = vsub.f32 %v9152_v39, %v823_v6  ;;  %v9303_v12 = vpop.f32.mrf.mxu0  ;;  %v2101_v36 = vpop.xlane.xlu2 %2100  ;;  %2289 = vadd.xlane.f32.xlu1 %v2288_v13  ;;  %v343_v13 = vld [vmem:[%s9075_s14 + $0xa8] sm:$0xff] }
 0x10f   : > { %v2193_v16 = vmul.f32 %v2101_v36, %v9282_v58  ;;  %v717_v26 = vsel %vm671_vm3, %v9303_v12, 0.0 }
 0x110   : > { %v919_v17 = vmul.f32 %v9301_v11, %v9301_v11 }
 0x111   : > { %8038 = vmatmul.msk.f32.gmra.mxu0 %vm361_vm2, %v305_v14  ;;  %v9312_v39 = vsub.f32 %v9160_v43, %v2193_v16  ;;  %v2024_v14 = vpop.f32.mrf.mxu1 }
 0x112   : > { %v967_v20 = vsel %vm671_vm3, %v919_v17, 0.0  ;;  %8076 = vmatmul.msk.f32.gmra.mxu1 %vm14895_vm1, %v343_v13  ;;  %v309_v17 = vld [vmem:[%s9086_s21 + $0x118] sm:$0xff] }
 0x113   : > { %14900 = vst [vmem:[#allocation3_spill] sm:$0xff] %v9312_v39  ;;  %v677_v21 = vpop.xlane.xlu0 %676  ;;  %968 = vadd.xlane.f32.xlu0 %v967_v20  ;;  %v2257_v25 = vmul.f32 %v9312_v39, %v9312_v39 }
 0x114   : > { %v824_v22 = vmul.f32 %v9282_v58, %v677_v21  ;;  %v9383_v21 = vadd.f32 %v9142_v33, %v2024_v14 }
 0x115   : > { %v2291_v30 = vsel %vm671_vm3, %v2257_v25, 0.0 }
 0x116   : > { %v9326_v43 = vsub.f32 %v9164_v45, %v824_v22  ;;  %v9328_v29 = vpop.f32.mrf.mxu0  ;;  %2292 = vadd.xlane.f32.xlu2 %v2291_v30  ;;  %718 = vadd.xlane.f32.xlu1 %v717_v26  ;;  %v2120_v28 = vsel %vm671_vm3, %v9383_v21, 0.0  ;;  %v344_v30 = vld [vmem:[%s9075_s14 + $0xb0] sm:$0xff] }
 0x117   : > { %v720_v40 = vsel %vm671_vm3, %v9328_v29, 0.0 }
 0x118   : > { %v920_v35 = vmul.f32 %v9326_v43, %v9326_v43 }
 0x119   : > { %8039 = vmatmul.msk.f32.gmra.mxu0 %vm361_vm2, %v306_v31  ;;  %v9433_v13 = vpop.f32.mrf.mxu1 }
 0x11a   : > { %v970_v47 = vsel %vm671_vm3, %v920_v35, 0.0  ;;  %8077 = vmatmul.msk.f32.gmra.mxu1 %vm14895_vm1, %v344_v30  ;;  %v310_v35 = vld [vmem:[%s9086_s21 + $0x120] sm:$0xff] }
 0x11b   : > { %v2104_v37 = vpop.xlane.xlu0 %2103  ;;  %v680_v38 = vpop.xlane.xlu1 %679  ;;  %2118 = vadd.xlane.f32.xlu0 %v2117_v34 }
 0x11c   : > { %v2194_v45 = vmul.f32 %v2104_v37, %v9282_v58  ;;  %v825_v53 = vmul.f32 %v9282_v58, %v680_v38 }
 0x11e   : > { %v9343_v44 = vsub.f32 %v9170_v49, %v2194_v45  ;;  %v9345_v46 = vpop.f32.mrf.mxu0  ;;  %971 = vadd.xlane.f32.xlu2 %v970_v47  ;;  %721 = vadd.xlane.f32.xlu1 %v720_v40  ;;  %v9361_v62 = vsub.f32 %v9175_v51, %v825_v53  ;;  %v345_v47 = vld [vmem:[%s9075_s14 + $0xb8] sm:$0xff]  ;;  %v311_v53 = vld [vmem:[%s9086_s21 + $0x128] sm:$0xff] }
 0x11f   : > { %v723_v56 = vsel %vm671_vm3, %v9345_v46, 0.0 }
 0x120   : > { %14901 = vst [vmem:[#allocation4_spill] sm:$0xff] %v9343_v44  ;;  %v2258_v52 = vmul.f32 %v9343_v44, %v9343_v44  ;;  %v921_v6 = vmul.f32 %v9361_v62, %v9361_v62  ;;  %v320_v44 = vld [vmem:[%s9086_s21 + $0x170] sm:$0xff] }
 0x121   : > { %8040 = vmatmul.msk.f32.gmra.mxu0 %vm361_vm2, %v307_v48  ;;  %v9452_v30 = vpop.f32.mrf.mxu1 }
 0x122   : > { %v2294_v54 = vsel %vm671_vm3, %v2258_v52, 0.0  ;;  %v973_v16 = vsel %vm671_vm3, %v921_v6, 0.0  ;;  %8078 = vmatmul.msk.f32.gmra.mxu1 %vm14895_vm1, %v345_v47 }
 0x123   : > { %v9354_v49 = vpop.xlane.xlu1 %2106  ;;  %2295 = vadd.xlane.f32.xlu0 %v2294_v54 }
 0x126   : > { %v9363_v0 = vpop.f32.mrf.mxu0  ;;  %v9366_v4 = vpop.xlane.xlu2 %2109  ;;  %724 = vadd.xlane.f32.xlu1 %v723_v56 }
 0x127   : > { %v726_v42 = vsel %vm671_vm3, %v9363_v0, 0.0 }
 0x129   : > { %8041 = vmatmul.msk.f32.gmra.mxu0 %vm361_vm2, %v308_v1  ;;  %v346_v1 = vld [vmem:[%s9075_s14 + $0xc0] sm:$0xff] }
 0x12a   : > { %8079 = vmatmul.msk.f32.gmra.mxu1 %vm14895_vm1, %v346_v1 }
 0x12b   : > { %v683_v7 = vpop.xlane.xlu1 %682 }
 0x12c   : > { %v826_v8 = vmul.f32 %v9282_v58, %v683_v7 }
 0x12e   : > { %v9375_v51 = vsub.f32 %v9186_v57, %v826_v8  ;;  %v9377_v36 = vpop.f32.mrf.mxu0  ;;  %v686_v18 = vpop.xlane.xlu2 %685  ;;  %974 = vadd.xlane.f32.xlu1 %v973_v16  ;;  %v312_v8 = vld [vmem:[%s9086_s21 + $0x130] sm:$0xff] }
 0x12f   : > { %v827_v20 = vmul.f32 %v9282_v58, %v686_v18  ;;  %v729_v56 = vsel %vm671_vm3, %v9377_v36, 0.0 }
 0x130   : > { %v922_v22 = vmul.f32 %v9375_v51, %v9375_v51 }
 0x131   : > { %8042 = vmatmul.msk.f32.gmra.mxu0 %vm361_vm2, %v309_v17  ;;  %v9389_v57 = vsub.f32 %v9197_v63, %v827_v20  ;;  %v347_v17 = vld [vmem:[%s9075_s14 + $0xc8] sm:$0xff]  ;;  %v313_v20 = vld [vmem:[%s9086_s21 + $0x138] sm:$0xff] }
 0x132   : > { %v976_v25 = vsel %vm671_vm3, %v922_v22, 0.0  ;;  %8080 = vmatmul.msk.f32.gmra.mxu1 %vm14895_vm1, %v347_v17 }
 0x133   : > { %977 = vadd.xlane.f32.xlu0 %v976_v25  ;;  %v923_v26 = vmul.f32 %v9389_v57, %v9389_v57  ;;  %v9397_v31 = vpop.xlane.xlu1 %2112 }
 0x135   : > { %v979_v63 = vsel %vm671_vm3, %v923_v26, 0.0 }
 0x136   : > { %v9400_v34 = vpop.f32.mrf.mxu0  ;;  %v689_v37 = vpop.xlane.xlu2 %688  ;;  %980 = vadd.xlane.f32.xlu2 %v979_v63  ;;  %2121 = vadd.xlane.f32.xlu1 %v2120_v28 }
 0x137   : > { %v828_v38 = vmul.f32 %v9282_v58, %v689_v37  ;;  %v732_v16 = vsel %vm671_vm3, %v9400_v34, 0.0 }
 0x139   : > { %8043 = vmatmul.msk.f32.gmra.mxu0 %vm361_vm2, %v310_v35  ;;  %v9407_v45 = vsub.f32 %v9208_v5, %v828_v38  ;;  %v348_v38 = vld [vmem:[%s9075_s14 + $0xd0] sm:$0xff] }
 0x13a   : > { %8081 = vmatmul.msk.f32.gmra.mxu1 %vm14895_vm1, %v348_v38 }
 0x13b   : > { %v924_v40 = vmul.f32 %v9407_v45, %v9407_v45  ;;  %v692_v54 = vpop.xlane.xlu1 %691 }
 0x13c   : > { %v829_v5 = vmul.f32 %v9282_v58, %v692_v54 }
 0x13d   : > { %v982_v52 = vsel %vm671_vm3, %v924_v40, 0.0 }
 0x13e   : > { %v9415_v48 = vpop.f32.mrf.mxu0  ;;  %983 = vadd.xlane.f32.xlu2 %v982_v52  ;;  %727 = vadd.xlane.f32.xlu1 %v726_v42  ;;  %v9428_v6 = vsub.f32 %v9217_v10, %v829_v5  ;;  %v9446_v22 = vpop.xlane.xlu2 %2115  ;;  %v314_v52 = vld [vmem:[%s9086_s21 + $0x140] sm:$0xff] }
 0x13f   : > { %v735_v61 = vsel %vm671_vm3, %v9415_v48, 0.0 }
 0x140   : > { %v925_v14 = vmul.f32 %v9428_v6, %v9428_v6 }
 0x141   : > { %8044 = vmatmul.msk.f32.gmra.mxu0 %vm361_vm2, %v311_v53 }
 0x142   : > { %v985_v18 = vsel %vm671_vm3, %v925_v14, 0.0  ;;  %v349_v14 = vld [vmem:[%s9075_s14 + $0xd8] sm:$0xff] }
 0x143   : > { %v695_v25 = vpop.xlane.xlu0 %694  ;;  %8082 = vmatmul.msk.f32.gmra.mxu1 %vm14895_vm1, %v349_v14  ;;  %v317_v14 = vld [vmem:[%s9086_s21 + $0x158] sm:$0xff] }
 0x144   : > { %v830_v28 = vmul.f32 %v9282_v58, %v695_v25  ;;  %v315_v25 = vld [vmem:[%s9086_s21 + $0x148] sm:$0xff] }
 0x146   : > { %v9430_v7 = vpop.f32.mrf.mxu0  ;;  %730 = vadd.xlane.f32.xlu1 %v729_v56  ;;  %736 = vadd.xlane.f32.xlu2 %v735_v61  ;;  %v9460_v40 = vsub.f32 %v9227_v15, %v830_v28 }
 0x147   : > { %v738_v37 = vsel %vm671_vm3, %v9430_v7, 0.0 }
 0x148   : > { %v926_v56 = vmul.f32 %v9460_v40, %v9460_v40 }
 0x149   : > { %8045 = vmatmul.msk.f32.gmra.mxu0 %vm361_vm2, %v312_v8  ;;  %v9478_v8 = vpop.f32.mrf.mxu1 }
 0x14b   : > { %v698_v53 = vpop.xlane.xlu2 %697 }
 0x14c   : > { %v831_v15 = vmul.f32 %v9282_v58, %v698_v53  ;;  %v316_v53 = vld [vmem:[%s9086_s21 + $0x150] sm:$0xff] }
 0x14e   : > { %v9442_v10 = vpop.f32.mrf.mxu0  ;;  %733 = vadd.xlane.f32.xlu1 %v732_v16  ;;  %986 = vadd.xlane.f32.xlu2 %v985_v18  ;;  %v9483_v16 = vsub.f32 %v9235_v19, %v831_v15 }
 0x14f   : > { %v741_v26 = vsel %vm671_vm3, %v9442_v10, 0.0 }
 0x150   : > { %742 = vadd.xlane.f32.xlu0 %v741_v26  ;;  %v927_v19 = vmul.f32 %v9483_v16, %v9483_v16 }
 0x151   : > { %8046 = vmatmul.msk.f32.gmra.mxu0 %vm361_vm2, %v313_v20  ;;  %v988_v20 = vsel %vm671_vm3, %v926_v56, 0.0 }
 0x153   : > { %v701_v63 = vpop.xlane.xlu1 %700 }
 0x154   : > { %v832_v35 = vmul.f32 %v9282_v58, %v701_v63 }
 0x156   : > { %v9463_v42 = vsub.f32 %v9243_v23, %v832_v35  ;;  %v9465_v47 = vpop.f32.mrf.mxu0  ;;  %739 = vadd.xlane.f32.xlu2 %v738_v37  ;;  %v350_v35 = vld [vmem:[%s9075_s14 + $0xe0] sm:$0xff] }
 0x157   : > { %v744_v54 = vsel %vm671_vm3, %v9465_v47, 0.0  ;;  %8083 = vmatmul.msk.f32.gmra.mxu1 %vm14895_vm1, %v350_v35 }
 0x158   : > { %745 = vadd.xlane.f32.xlu1 %v744_v54  ;;  %v928_v5 = vmul.f32 %v9463_v42, %v9463_v42  ;;  %v9508_v54 = vpop.f32.mrf.mxu1 }
 0x159   : > { %8047 = vmatmul.msk.f32.gmra.mxu0 %vm361_vm2, %v314_v52  ;;  %v991_v52 = vsel %vm671_vm3, %v927_v19, 0.0 }
 0x15a   : > { %v994_v23 = vsel %vm671_vm3, %v928_v5, 0.0 }
 0x15b   : > { %v704_v61 = vpop.xlane.xlu0 %703  ;;  %995 = vadd.xlane.f32.xlu0 %v994_v23 }
 0x15c   : > { %v833_v1 = vmul.f32 %v9282_v58, %v704_v61  ;;  %v351_v61 = vld [vmem:[%s9075_s14 + $0xe8] sm:$0xff] }
 0x15e   : > { %v9486_v17 = vsub.f32 %v9251_v27, %v833_v1  ;;  %v9488_v18 = vpop.f32.mrf.mxu0  ;;  %989 = vadd.xlane.f32.xlu2 %v988_v20 }
 0x15f   : > { %v747_v56 = vsel %vm671_vm3, %v9488_v18, 0.0  ;;  %8084 = vmatmul.msk.f32.gmra.mxu1 %vm14895_vm1, %v351_v61 }
 0x160   : > { %v929_v26 = vmul.f32 %v9486_v17, %v9486_v17  ;;  %v9523_v20 = vpop.f32.mrf.mxu1 }
 0x161   : > { %8048 = vmatmul.msk.f32.gmra.mxu0 %vm361_vm2, %v315_v25 }
 0x162   : > { %v997_v28 = vsel %vm671_vm3, %v929_v26, 0.0 }
 0x163   : > { %v707_v63 = vpop.xlane.xlu0 %706  ;;  %998 = vadd.xlane.f32.xlu0 %v997_v28 }
 0x164   : > { %v834_v27 = vmul.f32 %v9282_v58, %v707_v63  ;;  %v352_v63 = vld [vmem:[%s9075_s14 + $0xf0] sm:$0xff] }
 0x166   : > { %v9502_v37 = vsub.f32 %v9259_v32, %v834_v27  ;;  %v9504_v38 = vpop.f32.mrf.mxu0  ;;  %992 = vadd.xlane.f32.xlu2 %v991_v52  ;;  %v318_v52 = vld [vmem:[%s9086_s21 + $0x160] sm:$0xff] }
 0x167   : > { %v750_v15 = vsel %vm671_vm3, %v9504_v38, 0.0  ;;  %8085 = vmatmul.msk.f32.gmra.mxu1 %vm14895_vm1, %v352_v63  ;;  %v319_v63 = vld [vmem:[%s9086_s21 + $0x168] sm:$0xff] }
 0x168   : > { %v930_v5 = vmul.f32 %v9502_v37, %v9502_v37 }
 0x169   : > { %8049 = vmatmul.msk.f32.gmra.mxu0 %vm361_vm2, %v316_v53 }
 0x16a   : > { %v1000_v32 = vsel %vm671_vm3, %v930_v5, 0.0 }
 0x16b   : > { %v710_v23 = vpop.xlane.xlu0 %709  ;;  %1001 = vadd.xlane.f32.xlu1 %v1000_v32  ;;  %751 = vadd.xlane.f32.xlu0 %v750_v15  ;;  %v2901_v15 = vld [vmem:[%s14808_s2 + $0x90] sm:$0xff]  ;;  %v9554_v32 = vpop.f32.mrf.mxu1 }
 0x16c   : > { %v835_v25 = vmul.f32 %v9282_v58, %v710_v23  ;;  %3068 = vmatpush.msrb.mxu1 %v2901_v15  ;;  %8542 = vmatpush.msra.mxu2 %v2901_v15 }
 0x16e   : > { %v9520_v1 = vpop.f32.mrf.mxu0  ;;  %748 = vadd.xlane.f32.xlu2 %v747_v56  ;;  %v9533_v27 = vsub.f32 %v9267_v41, %v835_v25  ;;  %v9550_v41 = vld [vmem:[%s14808_s2 + $0xc0] sm:$0xff]  ;;  %v9567_v25 = vld [vmem:[%s14808_s2 + $0xb8] sm:$0xff] }
 0x16f   : > { %14902 = vst [vmem:[#allocation5_spill] sm:$0xff] %v9520_v1  ;;  %v753_v19 = vsel %vm671_vm3, %v9520_v1, 0.0  ;;  %3229 = vmatpush.msrb.mxu0 %v9550_v41  ;;  %8548 = vmatpush.msra.mxu3 %v9550_v41 }
 0x170   : > { %14903 = vst [vmem:[#allocation6_spill] sm:$0xff] %v9533_v27 }
 0x171   : > { %8050 = vmatmul.msk.f32.gmra.mxu0 %vm361_vm2, %v317_v14  ;;  %v2900_v14 = vld [vmem:[%s14808_s2 + $0x88] sm:$0xff]  ;;  %8549 = vmatpush.msra.mxu3 %v9567_v25 }
 0x172   : > { %3069 = vmatpush.msrb.mxu1 %v2900_v14  ;;  %3230 = vmatpush.msrb.mxu0 %v9567_v25 }
 0x173   : > { %v713_v26 = vpop.xlane.xlu0 %712  ;;  %8543 = vmatpush.msra.mxu2 %v2900_v14  ;;  %v2898_v14 = vld [vmem:[%s14808_s2 + $0x78] sm:$0xff] }
 0x174   : > { %v836_v28 = vmul.f32 %v9282_v58, %v713_v26  ;;  %v353_v26 = vld [vmem:[%s9075_s14 + $0xf8] sm:$0xff] }
 0x175   : > { %8086 = vmatmul.msk.f32.gmra.mxu1 %vm14895_vm1, %v353_v26  ;;  %v2195_v26 = vmul.f32 %v9354_v49, %v9282_v58 }
 0x176   : > { %v9535_v35 = vpop.f32.mrf.mxu0  ;;  %v9539_v53 = vsub.f32 %v9275_v50, %v836_v28  ;;  %754 = vadd.xlane.f32.xlu2 %v753_v19  ;;  %v931_v50 = vmul.f32 %v9533_v27, %v9533_v27 }
 0x177   : > { %v756_v5 = vsel %vm671_vm3, %v9535_v35, 0.0  ;;  %v9617_v39 = vsub.f32 %v9181_v55, %v2195_v26 }
 0x178   : > { %14904 = vst [vmem:[#allocation7_spill] sm:$0xff] %v9539_v53  ;;  %757 = vadd.xlane.f32.xlu0 %v756_v5  ;;  %v932_v56 = vmul.f32 %v9539_v53, %v9539_v53  ;;  %v1003_v19 = vsel %vm671_vm3, %v931_v50, 0.0  ;;  %v2905_v50 = vld [vmem:[%s14808_s2 + $0xb0] sm:$0xff] }
 0x179   : > { %8051 = vmatmul.msk.f32.gmra.mxu0 %vm361_vm2, %v318_v52  ;;  %v2899_v52 = vld [vmem:[%s14808_s2 + $0x80] sm:$0xff]  ;;  %8550 = vmatpush.msra.mxu3 %v2905_v50  ;;  %14907 = vst [vmem:[#allocation10_spill] sm:$0xff] %v9617_v39 }
 0x17a   : > { %v1006_v15 = vsel %vm671_vm3, %v932_v56, 0.0  ;;  %3070 = vmatpush.msrb.mxu1 %v2899_v52  ;;  %3231 = vmatpush.msrb.mxu0 %v2905_v50 }
 0x17b   : > { %v716_v23 = vpop.xlane.xlu0 %715  ;;  %8544 = vmatpush.msra.mxu2 %v2899_v52  ;;  %v2896_v52 = vld [vmem:[%s14808_s2 + $0x68] sm:$0xff] }
 0x17c   : > { %v837_v61 = vmul.f32 %v9282_v58, %v716_v23  ;;  %3071 = vmatpush.msrb.mxu1 %v2898_v14 }
 0x17d   : > { %8545 = vmatpush.msra.mxu2 %v2898_v14  ;;  %v2902_v14 = vld [vmem:[%s14808_s2 + $0x98] sm:$0xff] }
 0x17e   : > { %v9571_v28 = vpop.f32.mrf.mxu0  ;;  %v9580_v5 = vsub.f32 %v9285_v59, %v837_v61  ;;  %1004 = vadd.xlane.f32.xlu2 %v1003_v19  ;;  %v2904_v59 = vld [vmem:[%s14808_s2 + $0xa8] sm:$0xff]  ;;  %v2897_v61 = vld [vmem:[%s14808_s2 + $0x70] sm:$0xff] }
 0x17f   : > { %v759_v23 = vsel %vm671_vm3, %v9571_v28, 0.0  ;;  %3072 = vmatpush.msrb.mxu1 %v2897_v61  ;;  %3232 = vmatpush.msrb.mxu0 %v2904_v59 }
 0x180   : > { %14905 = vst [vmem:[#allocation8_spill] sm:$0xff] %v9580_v5  ;;  %1007 = vadd.xlane.f32.xlu0 %v1006_v15  ;;  %760 = vadd.xlane.f32.xlu1 %v759_v23  ;;  %v933_v19 = vmul.f32 %v9580_v5, %v9580_v5  ;;  %v9608_v15 = vpop.f32.mrf.mxu1 }
 0x181   : > { %8052 = vmatmul.msk.f32.gmra.mxu0 %vm361_vm2, %v319_v63  ;;  %v9595_v56 = vpop.xlane.xlu1 %2289  ;;  %v2903_v63 = vld [vmem:[%s14808_s2 + $0xa0] sm:$0xff]  ;;  %3073 = vmatpush.msrb.mxu1 %v2896_v52 }
 0x182   : > { %3233 = vmatpush.msrb.mxu0 %v2903_v63  ;;  %8546 = vmatpush.msra.mxu2 %v2897_v61  ;;  %v1009_v1 = vsel %vm671_vm3, %v933_v19, 0.0  ;;  %v2259_v19 = vmul.f32 %v9617_v39, %v9617_v39 }
 0x183   : > { %8551 = vmatpush.msra.mxu3 %v2904_v59 }
 0x184   : > { %8547 = vmatpush.msra.mxu2 %v2896_v52  ;;  %3234 = vmatpush.msrb.mxu0 %v2902_v14  ;;  %v2297_v52 = vsel %vm671_vm3, %v2259_v19, 0.0 }
 0x185   : > { %8552 = vmatpush.msra.mxu3 %v2903_v63 }
 0x186   : > { %v969_v49 = vpop.xlane.xlu0 %968  ;;  %v9613_v23 = vpop.f32.mrf.mxu0  ;;  %3599 = vmatpush.msrb.mxu2 %v9550_v41 }
 0x187   : > { %14906 = vst [vmem:[#allocation9_spill] sm:$0xff] %v9613_v23  ;;  %v1111_v3 = vmul.f32 %v969_v49, %v9282_v58  ;;  %v762_v5 = vsel %vm671_vm3, %v9613_v23, 0.0  ;;  %8553 = vmatpush.msra.mxu3 %v2902_v14 }
 0x188   : > { %1010 = vadd.xlane.f32.xlu1 %v1009_v1  ;;  %763 = vadd.xlane.f32.xlu2 %v762_v5  ;;  %v9640_v5 = vpop.f32.mrf.mxu1 }
 0x189   : > { %v1159_v53 = vadd.f32 1e-05, %v1111_v3  ;;  %8053 = vmatmul.msk.f32.gmra.mxu0 %vm361_vm2, %v320_v44  ;;  %v9627_v55 = vpop.xlane.xlu2 %2292  ;;  %v719_v61 = vpop.xlane.xlu1 %718  ;;  %3600 = vmatpush.msrb.mxu2 %v9567_v25  ;;  %v321_v44 = vld [vmem:[%s9086_s21 + $0x178] sm:$0xff] }
 0x18a   : > { %v838_v26 = vmul.f32 %v9282_v58, %v719_v61 }
 0x18b   : > { %8571 = vrsqrt.f32 %v1159_v53  ;;  %3601 = vmatpush.msrb.mxu2 %v2905_v50  ;;  %vm1213_vm6 = vweird.f32 %v1159_v53 }
 0x18c   : > { %v9634_v1 = vsub.f32 %v9303_v12, %v838_v26 }
 0x18d   : > { %3602 = vmatpush.msrb.mxu2 %v2904_v59 }
 0x18e   : > { %14908 = vst [vmem:[#allocation11_spill] sm:$0xff] %v9634_v1  ;;  %v9637_v3 = vpop.f32.mrf.mxu0  ;;  %v934_v49 = vmul.f32 %v9634_v1, %v9634_v1  ;;  %v9649_v27 = vpop.xlane.xlu0 %2118 }
 0x18f   : > { %3603 = vmatpush.msrb.mxu2 %v2903_v63 }
 0x190   : > { %2298 = vadd.xlane.f32.xlu1 %v2297_v52  ;;  %v1012_v41 = vsel %vm671_vm3, %v934_v49, 0.0 }
 0x191   : > { %v8572_v61 = vpop.eup %8571  ;;  %8054 = vmatmul.msk.f32.gmra.mxu0 %vm361_vm2, %v321_v44  ;;  %v972_v25 = vpop.xlane.xlu2 %971  ;;  %1013 = vadd.xlane.f32.xlu0 %v1012_v41 }
 0x192   : > { %v1208_v12 = vmul.f32 %v8572_v61, %v1159_v53  ;;  %v722_v26 = vpop.xlane.xlu1 %721  ;;  %v1112_v39 = vmul.f32 %v972_v25, %v9282_v58  ;;  %3604 = vmatpush.msrb.mxu2 %v2902_v14  ;;  %vm1214_vm5 = vweird.f32 %v8572_v61 }
 0x193   : > { %v839_v23 = vmul.f32 %v9282_v58, %v722_v26  ;;  %vm1215_vm7 = vmor %vm1213_vm6, %vm1214_vm5 }
 0x194   : > { %v1209_v19 = vmul.f32 %v8572_v61, %v1208_v12  ;;  %v1160_v50 = vadd.f32 1e-05, %v1112_v39  ;;  %v9660_v12 = vpop.f32.mrf.mxu1 }
 0x195   : > { %v9652_v52 = vsub.f32 %v9328_v29, %v839_v23  ;;  %14911 = vst [vmem:[#allocation14_spill] sm:$0xff] %v9660_v12 }
 0x196   : > { %v1210_v49 = vmul.f32 0.5, %v1209_v19  ;;  %v9654_v44 = vpop.f32.mrf.mxu0  ;;  %8573 = vrsqrt.f32 %v1160_v50  ;;  %v9667_v19 = vld [vmem:[%s14808_s2 + $0x58] ss:$0 sm:$0xff]  ;;  %vm1223_vm9 = vweird.f32 %v1160_v50 }
 0x197   : > { %14909 = vst [vmem:[#allocation12_spill] sm:$0xff] %v9652_v52  ;;  %v768_v59 = vsel %vm671_vm3, %v9654_v44, 0.0  ;;  %v935_v63 = vmul.f32 %v9652_v52, %v9652_v52 }
 0x198   : > { %14910 = vst [vmem:[#allocation13_spill] sm:$0xff] %v9654_v44  ;;  %v1211_v41 = vsub.f32 1.5, %v1210_v49  ;;  %769 = vadd.xlane.f32.xlu1 %v768_v59  ;;  %v9689_v44 = vadd.f32 %v9142_v33, %v9433_v13 }
 0x199   : > { %v1015_v23 = vsel %vm671_vm3, %v935_v63, 0.0  ;;  %v9678_v63 = vld [vmem:[%s14808_s2 + $0x60] ss:$0 sm:$0xff] }
 0x19a   : > { %v1212_v39 = vmul.f32 %v8572_v61, %v1211_v41  ;;  %v725_v29 = vpop.xlane.xlu1 %724  ;;  %1016 = vadd.xlane.f32.xlu0 %v1015_v23  ;;  %v9673_v41 = vpop.xlane.xlu0 %2295  ;;  %14915 = vst [vmem:[#allocation18_spill] sm:$0xff] %v9689_v44  ;;  %v2123_v13 = vsel %vm671_vm3, %v9689_v44, 0.0 }
 0x19b   : > { %v840_v14 = vmul.f32 %v9282_v58, %v725_v29  ;;  %14913 = vst [vmem:[#allocation16_spill] sm:$0xff] %v9673_v41 }
 0x19c   : > { %v1216_v25 = vsel %vm1215_vm7, %v8572_v61, %v1212_v39  ;;  %v8574_v26 = vpop.eup %8573 }
 0x19d   : > { %v1687_v49 = vmul.f32 %v1216_v25, %v9301_v11  ;;  %v9671_v59 = vsub.f32 %v9345_v46, %v840_v14  ;;  %v1218_v53 = vmul.f32 %v8574_v26, %v1160_v50  ;;  %v9685_v25 = vpop.f32.mrf.mxu1  ;;  %vm1224_vm8 = vweird.f32 %v8574_v26 }
 0x19e   : > { %14914 = vst [vmem:[#allocation17_spill] sm:$0xff] %v9685_v25  ;;  %vm1225_vm10 = vmor %vm1223_vm9, %vm1224_vm8 }
 0x19f   : > { %14912 = vst [vmem:[#allocation15_spill] sm:$0xff] %v9671_v59  ;;  %v1736_v61 = vmul.f32 %v9667_v19, %v1687_v49  ;;  %v936_v39 = vmul.f32 %v9671_v59, %v9671_v59  ;;  %v1219_v29 = vmul.f32 %v8574_v26, %v1218_v53  ;;  %v2196_v53 = vmul.f32 %v9366_v4, %v9282_v58 }
 0x1a1   : > { %v1018_v23 = vsel %vm671_vm3, %v936_v39, 0.0  ;;  %v1785_v11 = vadd.f32 %v9678_v63, %v1736_v61  ;;  %v1220_v46 = vmul.f32 0.5, %v1219_v29 }
 0x1a2   : > { %v975_v14 = vpop.xlane.xlu1 %974  ;;  %1019 = vadd.xlane.f32.xlu2 %v1018_v23 }
 0x1a3   : > { %v1113_v12 = vmul.f32 %v975_v14, %v9282_v58  ;;  %v1833_v49 = vmax.f32 %v1785_v11, 0.0  ;;  %v1221_v52 = vsub.f32 1.5, %v1220_v46  ;;  %v9701_v11 = vsub.f32 %v9190_v60, %v2196_v53 }
 0x1a5   : > { %v1161_v59 = vadd.f32 1e-05, %v1113_v12  ;;  %8087 = vmatmul.msk.f32.vlgmr.msrb.gmra.mxu1 %vm671_vm3, %v1833_v49  ;;  %8135 = vmatmul.msk.f32.vlgmr.msrb.gmra.mxu0 %vm671_vm3, %v1833_v49  ;;  %v1222_v61 = vmul.f32 %v8574_v26, %v1221_v52  ;;  %14916 = vst [vmem:[#allocation19_spill] sm:$0xff] %v9701_v11  ;;  %v9707_v52 = vpop.f32.mrf.mxu1  ;;  %v2260_v60 = vmul.f32 %v9701_v11, %v9701_v11 }
 0x1a6   : > { %v978_v39 = vpop.xlane.xlu0 %977  ;;  %14917 = vst [vmem:[#allocation20_spill] sm:$0xff] %v9707_v52 }
 0x1a7   : > { %8575 = vrsqrt.f32 %v1161_v59  ;;  %v1114_v33 = vmul.f32 %v978_v39, %v9282_v58  ;;  %v1226_v29 = vsel %vm1225_vm10, %v8574_v26, %v1222_v61  ;;  %vm1233_vm12 = vweird.f32 %v1161_v59 }
 0x1a8   : > { %v1688_v12 = vmul.f32 %v1226_v29, %v9326_v43 }
 0x1a9   : > { %v1162_v23 = vadd.f32 1e-05, %v1114_v33  ;;  %v981_v46 = vpop.xlane.xlu2 %980 }
 0x1aa   : > { %v9703_v14 = vpop.xlane.xlu1 %2121  ;;  %2124 = vadd.xlane.f32.xlu2 %v2123_v13  ;;  %v1115_v4 = vmul.f32 %v981_v46, %v9282_v58  ;;  %v1737_v50 = vmul.f32 %v9667_v19, %v1688_v12 }
 0x1ab   : > { %8577 = vrsqrt.f32 %v1162_v23  ;;  %vm1243_vm15 = vweird.f32 %v1162_v23 }
 0x1ac   : > { %v1163_v39 = vadd.f32 1e-05, %v1115_v4  ;;  %v1786_v43 = vadd.f32 %v9678_v63, %v1737_v50  ;;  %v2300_v4 = vsel %vm671_vm3, %v2260_v60, 0.0 }
 0x1ad   : > { %v8576_v49 = vpop.eup %8575  ;;  %v9722_v41 = vpop.f32.mrf.mxu1 }
 0x1ae   : > { %v1228_v26 = vmul.f32 %v8576_v49, %v1161_v59  ;;  %8579 = vrsqrt.f32 %v1163_v39  ;;  %v1834_v61 = vmax.f32 %v1786_v43, 0.0  ;;  %vm1234_vm11 = vweird.f32 %v8576_v49  ;;  %14918 = vst [vmem:[#allocation21_spill] sm:$0xff] %v9722_v41 }
 0x1af   : > { %vm1235_vm13 = vmor %vm1233_vm12, %vm1234_vm11  ;;  %vm1253_vm4 = vweird.f32 %v1163_v39 }
 0x1b0   : > { %v1229_v53 = vmul.f32 %v8576_v49, %v1228_v26  ;;  %8088 = vmatmul.msk.f32.gmra.mxu1 %vm671_vm3, %v1834_v61  ;;  %8136 = vmatmul.msk.f32.gmra.mxu0 %vm671_vm3, %v1834_v61 }
 0x1b1   : > { %v8578_v33 = vpop.eup %8577  ;;  %v984_v12 = vpop.xlane.xlu2 %983 }
 0x1b2   : > { %v1230_v13 = vmul.f32 0.5, %v1229_v53  ;;  %v1238_v29 = vmul.f32 %v8578_v33, %v1162_v23  ;;  %v728_v46 = vpop.xlane.xlu1 %727  ;;  %v1116_v52 = vmul.f32 %v984_v12, %v9282_v58  ;;  %2301 = vadd.xlane.f32.xlu2 %v2300_v4  ;;  %vm1244_vm14 = vweird.f32 %v8578_v33 }
 0x1b3   : > { %v841_v50 = vmul.f32 %v9282_v58, %v728_v46  ;;  %vm1245_vm0 = vmor %vm1243_vm15, %vm1244_vm14 }
 0x1b4   : > { %v1231_v25 = vsub.f32 1.5, %v1230_v13  ;;  %v1239_v26 = vmul.f32 %v8578_v33, %v1238_v29  ;;  %v8580_v43 = vpop.eup %8579  ;;  %v9717_v11 = vadd.f32 1e-05, %v1116_v52 }
 0x1b5   : > { %v9720_v53 = vsub.f32 %v9363_v0, %v841_v50  ;;  %v1248_v44 = vmul.f32 %v8580_v43, %v1163_v39  ;;  %vm1254_vm2 = vweird.f32 %v8580_v43  ;;  %v9748_v39 = vpop.f32.mrf.mxu1 }
 0x1b6   : > { %v1232_v1 = vmul.f32 %v8576_v49, %v1231_v25  ;;  %v1240_v61 = vmul.f32 0.5, %v1239_v26  ;;  %8581 = vrsqrt.f32 %v9717_v11  ;;  %vm9737_vm5 = vmor %vm1253_vm4, %vm1254_vm2  ;;  %vm1263_vm7 = vweird.f32 %v9717_v11 }
 0x1b7   : > { %v937_v60 = vmul.f32 %v9720_v53, %v9720_v53  ;;  %v1249_v52 = vmul.f32 %v8580_v43, %v1248_v44 }
 0x1b8   : > { %v1236_v13 = vsel %vm1235_vm13, %v8576_v49, %v1232_v1  ;;  %v1241_v29 = vsub.f32 1.5, %v1240_v61 }
 0x1b9   : > { %v1689_v12 = vmul.f32 %v1236_v13, %v9361_v62  ;;  %v1021_v0 = vsel %vm671_vm3, %v937_v60, 0.0  ;;  %v1250_v59 = vmul.f32 0.5, %v1249_v52  ;;  %v737_v4 = vpop.xlane.xlu2 %736 }
 0x1ba   : > { %v1242_v25 = vmul.f32 %v8578_v33, %v1241_v29  ;;  %v731_v46 = vpop.xlane.xlu1 %730  ;;  %1022 = vadd.xlane.f32.xlu0 %v1021_v0  ;;  %v9756_v0 = vld [vmem:[%s14808_s2 + $0x50] ss:$0 sm:$0xff] }
 0x1bb   : > { %v842_v50 = vmul.f32 %v9282_v58, %v731_v46  ;;  %v1738_v26 = vmul.f32 %v9667_v19, %v1689_v12  ;;  %v1251_v1 = vsub.f32 1.5, %v1250_v59 }
 0x1bc   : > { %v1246_v41 = vsel %vm1245_vm0, %v8578_v33, %v1242_v25  ;;  %v8582_v49 = vpop.eup %8581  ;;  %v765_v33 = vsel %vm671_vm3, %v9637_v3, 0.0  ;;  %v9760_v25 = vadd.f32 %v9756_v0, %v9452_v30  ;;  %v2197_v30 = vmul.f32 %v9397_v31, %v9282_v58 }
 0x1bd   : > { %v1690_v44 = vmul.f32 %v1246_v41, %v9375_v51  ;;  %v9733_v62 = vsub.f32 %v9377_v36, %v842_v50  ;;  %v1787_v23 = vadd.f32 %v9678_v63, %v1738_v26  ;;  %v1252_v61 = vmul.f32 %v8580_v43, %v1251_v1 }
 0x1be   : > { %v1258_v60 = vmul.f32 %v8582_v49, %v9717_v11  ;;  %vm1264_vm6 = vweird.f32 %v8582_v49 }
 0x1bf   : > { %v1835_v29 = vmax.f32 %v1787_v23, 0.0  ;;  %v938_v51 = vmul.f32 %v9733_v62, %v9733_v62  ;;  %v1739_v36 = vmul.f32 %v9667_v19, %v1690_v44  ;;  %v1256_v41 = vsel %vm9737_vm5, %v8580_v43, %v1252_v61  ;;  %vm9781_vm8 = vmor %vm1263_vm7, %vm1264_vm6 }
 0x1c0   : > { %v1259_v52 = vmul.f32 %v8582_v49, %v1258_v60  ;;  %v1691_v50 = vmul.f32 %v1256_v41, %v9389_v57  ;;  %v9768_v23 = vadd.f32 %v9756_v0, %v9478_v8  ;;  %v2126_v8 = vsel %vm671_vm3, %v9760_v25, 0.0 }
 0x1c1   : > { %8089 = vmatmul.msk.f32.gmra.mxu1 %vm671_vm3, %v1835_v29  ;;  %8137 = vmatmul.msk.f32.gmra.mxu0 %vm671_vm3, %v1835_v29  ;;  %v1024_v12 = vsel %vm671_vm3, %v938_v51, 0.0  ;;  %v987_v46 = vpop.xlane.xlu2 %986  ;;  %v1788_v44 = vadd.f32 %v9678_v63, %v1739_v36  ;;  %v844_v29 = vmul.f32 %v9282_v58, %v737_v4  ;;  %v9794_v41 = vsub.f32 %v9202_v2, %v2197_v30 }
 0x1c2   : > { %v1260_v59 = vmul.f32 0.5, %v1259_v52  ;;  %v734_v43 = vpop.xlane.xlu1 %733  ;;  %766 = vadd.xlane.f32.xlu0 %v765_v33  ;;  %1025 = vadd.xlane.f32.xlu1 %v1024_v12  ;;  %v1117_v1 = vmul.f32 %v987_v46, %v9282_v58  ;;  %v1740_v36 = vmul.f32 %v9667_v19, %v1691_v50  ;;  %v2129_v4 = vsel %vm671_vm3, %v9768_v23, 0.0 }
 0x1c3   : > { %v843_v26 = vmul.f32 %v9282_v58, %v734_v43  ;;  %v743_v33 = vpop.xlane.xlu0 %742  ;;  %v1836_v31 = vmax.f32 %v1788_v44, 0.0  ;;  %v9800_v12 = vsub.f32 %v9415_v48, %v844_v29  ;;  %v9802_v43 = vpop.f32.mrf.mxu1  ;;  %v2198_v48 = vmul.f32 %v9446_v22, %v9282_v58 }
 0x1c4   : > { %v1261_v61 = vsub.f32 1.5, %v1260_v59  ;;  %v9775_v13 = vadd.f32 1e-05, %v1117_v1  ;;  %14923 = vst [vmem:[#allocation22_spill] sm:$0xff] %v9802_v43  ;;  %v1789_v2 = vadd.f32 %v9678_v63, %v1740_v36  ;;  %v2261_v1 = vmul.f32 %v9794_v41, %v9794_v41 }
 0x1c5   : > { %v9773_v60 = vsub.f32 %v9400_v34, %v843_v26  ;;  %v940_v30 = vmul.f32 %v9800_v12, %v9800_v12  ;;  %v9829_v36 = vsub.f32 %v9215_v9, %v2198_v48 }
 0x1c6   : > { %v1262_v57 = vmul.f32 %v8582_v49, %v1261_v61  ;;  %8583 = vrsqrt.f32 %v9775_v13  ;;  %v2303_v22 = vsel %vm671_vm3, %v2261_v1, 0.0  ;;  %vm1273_vm10 = vweird.f32 %v9775_v13 }
 0x1c7   : > { %v939_v34 = vmul.f32 %v9773_v60, %v9773_v60 }
 0x1c8   : > { %v1266_v11 = vsel %vm9781_vm8, %v8582_v49, %v1262_v57  ;;  %v9804_v49 = vpop.f32.mrf.mxu0  ;;  %v1837_v57 = vmax.f32 %v1789_v2, 0.0 }
 0x1c9   : > { %8090 = vmatmul.msk.f32.gmra.mxu1 %vm671_vm3, %v1836_v31  ;;  %8138 = vmatmul.msk.f32.gmra.mxu0 %vm671_vm3, %v1836_v31  ;;  %v1027_v52 = vsel %vm671_vm3, %v939_v34, 0.0  ;;  %v740_v59 = vpop.xlane.xlu2 %739  ;;  %v1692_v46 = vmul.f32 %v1266_v11, %v9407_v45  ;;  %v771_v29 = vsel %vm671_vm3, %v9804_v49, 0.0 }
 0x1ca   : > { %1028 = vadd.xlane.f32.xlu2 %v1027_v52  ;;  %2127 = vadd.xlane.f32.xlu0 %v2126_v8  ;;  %v845_v26 = vmul.f32 %v9282_v58, %v740_v59  ;;  %v1030_v52 = vsel %vm671_vm3, %v940_v30, 0.0 }
 0x1cb   : > { %2130 = vadd.xlane.f32.xlu1 %v2129_v4  ;;  %v1741_v8 = vmul.f32 %v9667_v19, %v1692_v46  ;;  %v9835_v2 = vpop.f32.mrf.mxu1 }
 0x1cc   : > { %v8584_v50 = vpop.eup %8583  ;;  %v9821_v31 = vsub.f32 %v9430_v7, %v845_v26  ;;  %14924 = vst [vmem:[#allocation23_spill] sm:$0xff] %v9835_v2 }
 0x1cd   : > { %v1268_v44 = vmul.f32 %v8584_v50, %v9775_v13  ;;  %v1790_v59 = vadd.f32 %v9678_v63, %v1741_v8  ;;  %vm1274_vm9 = vweird.f32 %v8584_v50 }
 0x1ce   : > { %v996_v61 = vpop.xlane.xlu0 %995  ;;  %v941_v1 = vmul.f32 %v9821_v31, %v9821_v31  ;;  %vm1275_vm11 = vmor %vm1273_vm10, %vm1274_vm9 }
 0x1cf   : > { %v1120_v45 = vmul.f32 %v996_v61, %v9282_v58  ;;  %v1269_v51 = vmul.f32 %v8584_v50, %v1268_v44  ;;  %v846_v44 = vmul.f32 %v9282_v58, %v743_v33  ;;  %v746_v61 = vpop.xlane.xlu1 %745 }
 0x1d0   : > { %v9837_v26 = vpop.f32.mrf.mxu0 }
 0x1d1   : > { %v9823_v34 = vadd.f32 1e-05, %v1120_v45  ;;  %8091 = vmatmul.msk.f32.gmra.mxu1 %vm671_vm3, %v1837_v57  ;;  %8139 = vmatmul.msk.f32.gmra.mxu0 %vm671_vm3, %v1837_v57  ;;  %v1270_v11 = vmul.f32 0.5, %v1269_v51  ;;  %v990_v4 = vpop.xlane.xlu2 %989  ;;  %v2262_v45 = vmul.f32 %v9829_v36, %v9829_v36  ;;  %v774_v8 = vsel %vm671_vm3, %v9837_v26, 0.0 }
 0x1d2   : > { %2304 = vadd.xlane.f32.xlu0 %v2303_v22  ;;  %772 = vadd.xlane.f32.xlu2 %v771_v29  ;;  %v1118_v7 = vmul.f32 %v990_v4, %v9282_v58  ;;  %v1838_v29 = vmax.f32 %v1790_v59, 0.0  ;;  %v9860_v4 = vsub.f32 %v9442_v10, %v846_v44 }
 0x1d3   : > { %8585 = vrsqrt.f32 %v9823_v34  ;;  %1031 = vadd.xlane.f32.xlu1 %v1030_v52  ;;  %v1271_v46 = vsub.f32 1.5, %v1270_v11  ;;  %v1033_v11 = vsel %vm671_vm3, %v941_v1, 0.0  ;;  %v2199_v1 = vmul.f32 %v9649_v27, %v9282_v58 }
 0x1d4   : > { %v9839_v9 = vadd.f32 1e-05, %v1118_v7  ;;  %v2306_v7 = vsel %vm671_vm3, %v2262_v45, 0.0  ;;  %vm1303_vm2 = vweird.f32 %v9823_v34 }
 0x1d5   : > { %v1272_v48 = vmul.f32 %v8584_v50, %v1271_v46  ;;  %v9870_v46 = vadd.f32 %v9756_v0, %v9508_v54 }
 0x1d6   : > { %v999_v30 = vpop.xlane.xlu0 %998  ;;  %8587 = vrsqrt.f32 %v9839_v9  ;;  %vm1283_vm13 = vweird.f32 %v9839_v9 }
 0x1d7   : > { %v1121_v57 = vmul.f32 %v999_v30, %v9282_v58  ;;  %v1276_v51 = vsel %vm1275_vm11, %v8584_v50, %v1272_v48 }
 0x1d8   : > { %v1693_v13 = vmul.f32 %v1276_v51, %v9428_v6  ;;  %v9886_v51 = vpop.f32.mrf.mxu0 }
 0x1d9   : > { %v9851_v22 = vpop.eup %8585  ;;  %v9854_v33 = vadd.f32 1e-05, %v1121_v57  ;;  %8092 = vmatmul.msk.f32.gmra.mxu1 %vm671_vm3, %v1838_v29  ;;  %8140 = vmatmul.msk.f32.gmra.mxu0 %vm671_vm3, %v1838_v29  ;;  %v993_v52 = vpop.xlane.xlu2 %992  ;;  %v942_v29 = vmul.f32 %v9860_v4, %v9860_v4 }
 0x1da   : > { %1034 = vadd.xlane.f32.xlu2 %v1033_v11  ;;  %775 = vadd.xlane.f32.xlu0 %v774_v8  ;;  %v1298_v50 = vmul.f32 %v9851_v22, %v9823_v34  ;;  %v1119_v6 = vmul.f32 %v993_v52, %v9282_v58  ;;  %v1742_v59 = vmul.f32 %v9667_v19, %v1693_v13  ;;  %v9878_v57 = vpop.f32.mrf.mxu1  ;;  %v2132_v52 = vsel %vm671_vm3, %v9870_v46, 0.0 }
 0x1db   : > { %8589 = vrsqrt.f32 %v9854_v33  ;;  %2307 = vadd.xlane.f32.xlu1 %v2306_v7  ;;  %14925 = vst [vmem:[#allocation24_spill] sm:$0xff] %v9878_v57  ;;  %v847_v8 = vmul.f32 %v9282_v58, %v746_v61  ;;  %v777_v61 = vsel %vm671_vm3, %v9886_v51, 0.0  ;;  %vm1304_vm15 = vweird.f32 %v9851_v22 }
 0x1dc   : > { %v8588_v10 = vpop.eup %8587  ;;  %v9874_v48 = vadd.f32 1e-05, %v1119_v6  ;;  %v1791_v44 = vadd.f32 %v9678_v63, %v1742_v59  ;;  %v1299_v54 = vmul.f32 %v9851_v22, %v1298_v50  ;;  %v9893_v6 = vsub.f32 %v9317_v24, %v2199_v1  ;;  %vm9956_vm4 = vmor %vm1303_vm2, %vm1304_vm15 }
 0x1dd   : > { %v1278_v30 = vmul.f32 %v8588_v10, %v9839_v9  ;;  %v9908_v1 = vadd.f32 %v9756_v0, %v9523_v20  ;;  %vm1284_vm12 = vweird.f32 %v8588_v10  ;;  %vm1313_vm8 = vweird.f32 %v9854_v33 }
 0x1de   : > { %v1002_v45 = vpop.xlane.xlu1 %1001  ;;  %8591 = vrsqrt.f32 %v9874_v48  ;;  %v1839_v11 = vmax.f32 %v1791_v44, 0.0  ;;  %14926 = vst [vmem:[#allocation25_spill] sm:$0xff] %v9893_v6  ;;  %v1036_v44 = vsel %vm671_vm3, %v942_v29, 0.0  ;;  %v1300_v57 = vmul.f32 0.5, %v1299_v54  ;;  %v752_v24 = vpop.xlane.xlu0 %751  ;;  %vm1285_vm14 = vmor %vm1283_vm13, %vm1284_vm12 }
 0x1df   : > { %v1122_v27 = vmul.f32 %v1002_v45, %v9282_v58  ;;  %v1279_v13 = vmul.f32 %v8588_v10, %v1278_v30  ;;  %v9903_v45 = vsub.f32 %v9465_v47, %v847_v8  ;;  %v2200_v47 = vmul.f32 %v9703_v14, %v9282_v58 }
 0x1e0   : > { %v2263_v8 = vmul.f32 %v9893_v6, %v9893_v6  ;;  %vm1293_vm5 = vweird.f32 %v9874_v48 }
 0x1e1   : > { %v9890_v7 = vpop.eup %8589  ;;  %v9895_v59 = vadd.f32 1e-05, %v1122_v27  ;;  %v1280_v50 = vmul.f32 0.5, %v1279_v13  ;;  %8093 = vmatmul.msk.f32.gmra.mxu1 %vm671_vm3, %v1839_v11  ;;  %8141 = vmatmul.msk.f32.gmra.mxu0 %vm671_vm3, %v1839_v11  ;;  %v749_v30 = vpop.xlane.xlu2 %748  ;;  %v9929_v9 = vsub.f32 %v9383_v21, %v2200_v47 }
 0x1e2   : > { %2133 = vadd.xlane.f32.xlu2 %v2132_v52  ;;  %1037 = vadd.xlane.f32.xlu0 %v1036_v44  ;;  %v1308_v13 = vmul.f32 %v9890_v7, %v9854_v33  ;;  %v848_v20 = vmul.f32 %v9282_v58, %v749_v30  ;;  %v1301_v52 = vsub.f32 1.5, %v1300_v57  ;;  %v9922_v14 = vpop.f32.mrf.mxu1  ;;  %vm1314_vm7 = vweird.f32 %v9890_v7 }
 0x1e3   : > { %8593 = vrsqrt.f32 %v9895_v59  ;;  %v1281_v27 = vsub.f32 1.5, %v1280_v50  ;;  %778 = vadd.xlane.f32.xlu1 %v777_v61  ;;  %v943_v50 = vmul.f32 %v9903_v45, %v9903_v45  ;;  %14927 = vst [vmem:[#allocation26_spill] sm:$0xff] %v9922_v14  ;;  %vm1315_vm9 = vmor %vm1313_vm8, %vm1314_vm7  ;;  %vm1323_vm11 = vweird.f32 %v9895_v59 }
 0x1e4   : > { %v8592_v29 = vpop.eup %8591  ;;  %v1309_v44 = vmul.f32 %v9890_v7, %v1308_v13  ;;  %v9933_v6 = vsub.f32 %v9488_v18, %v848_v20  ;;  %v2309_v13 = vsel %vm671_vm3, %v2263_v8, 0.0  ;;  %v9948_v8 = vadd.f32 %v9756_v0, %v9554_v32 }
 0x1e5   : > { %v1282_v54 = vmul.f32 %v8588_v10, %v1281_v27  ;;  %v1288_v11 = vmul.f32 %v8592_v29, %v9874_v48  ;;  %v2135_v27 = vsel %vm671_vm3, %v9908_v1, 0.0  ;;  %vm1294_vm0 = vweird.f32 %v8592_v29 }
 0x1e6   : > { %v944_v32 = vmul.f32 %v9933_v6, %v9933_v6  ;;  %vm1295_vm6 = vmor %vm1293_vm5, %vm1294_vm0  ;;  %v2138_v48 = vsel %vm671_vm3, %v9948_v8, 0.0 }
 0x1e7   : > { %v1286_v61 = vsel %vm1285_vm14, %v8588_v10, %v1282_v54  ;;  %v1289_v2 = vmul.f32 %v8592_v29, %v1288_v11  ;;  %v1302_v54 = vmul.f32 %v9851_v22, %v1301_v52  ;;  %v1039_v11 = vsel %vm671_vm3, %v943_v50, 0.0 }
 0x1e8   : > { %v1694_v57 = vmul.f32 %v1286_v61, %v9460_v40  ;;  %v2264_v52 = vmul.f32 %v9929_v9, %v9929_v9 }
 0x1e9   : > { %v9926_v43 = vpop.eup %8593  ;;  %v1290_v30 = vmul.f32 0.5, %v1289_v2  ;;  %v9935_v10 = vpop.xlane.xlu2 %754  ;;  %v1310_v2 = vmul.f32 0.5, %v1309_v44  ;;  %v849_v44 = vmul.f32 %v9282_v58, %v752_v24 }
 0x1ea   : > { %2310 = vadd.xlane.f32.xlu2 %v2309_v13  ;;  %2136 = vadd.xlane.f32.xlu0 %v2135_v27  ;;  %v1743_v40 = vmul.f32 %v9667_v19, %v1694_v57  ;;  %v1318_v18 = vmul.f32 %v9926_v43, %v9895_v59  ;;  %v1306_v27 = vsel %vm9956_vm4, %v9851_v22, %v1302_v54  ;;  %v1042_v22 = vsel %vm671_vm3, %v944_v32, 0.0 }
 0x1eb   : > { %v9941_v21 = vpop.xlane.xlu0 %757  ;;  %v1291_v47 = vsub.f32 1.5, %v1290_v30  ;;  %1040 = vadd.xlane.f32.xlu1 %v1039_v11  ;;  %v1311_v57 = vsub.f32 1.5, %v1310_v2  ;;  %v9974_v24 = vsub.f32 %v9504_v38, %v849_v44  ;;  %v1696_v54 = vmul.f32 %v1306_v27, %v9463_v42 }
 0x1ec   : > { %v1792_v20 = vadd.f32 %v9678_v63, %v1743_v40  ;;  %v1319_v13 = vmul.f32 %v9926_v43, %v1318_v18  ;;  %v9976_v40 = vpop.f32.mrf.mxu1  ;;  %vm1324_vm10 = vweird.f32 %v9926_v43 }
 0x1ed   : > { %v1292_v61 = vmul.f32 %v8592_v29, %v1291_v47  ;;  %14930 = vst [vmem:[#allocation27_spill] sm:$0xff] %v9976_v40  ;;  %v1312_v38 = vmul.f32 %v9890_v7, %v1311_v57  ;;  %v1745_v57 = vmul.f32 %v9667_v19, %v1696_v54  ;;  %vm1325_vm12 = vmor %vm1323_vm11, %vm1324_vm10 }
 0x1ee   : > { %v1840_v34 = vmax.f32 %v1792_v20, 0.0  ;;  %v1320_v50 = vmul.f32 0.5, %v1319_v13 }
 0x1ef   : > { %v1296_v30 = vsel %vm1295_vm6, %v8592_v29, %v1292_v61  ;;  %v2312_v29 = vsel %vm671_vm3, %v2264_v52, 0.0  ;;  %v9988_v52 = vpop.f32.mrf.mxu0 }
 0x1f0   : > { %v1695_v11 = vmul.f32 %v1296_v30, %v9483_v16  ;;  %8094 = vmatmul.msk.f32.gmra.mxu1 %vm671_vm3, %v1840_v34  ;;  %8142 = vmatmul.msk.f32.gmra.mxu0 %vm671_vm3, %v1840_v34  ;;  %v945_v34 = vmul.f32 %v9974_v24, %v9974_v24  ;;  %v1316_v30 = vsel %vm1315_vm9, %v9890_v7, %v1312_v38  ;;  %v1321_v13 = vsub.f32 1.5, %v1320_v50 }
 0x1f1   : > { %v1005_v47 = vpop.xlane.xlu2 %1004 }
 0x1f2   : > { %v1123_v16 = vmul.f32 %v1005_v47, %v9282_v58  ;;  %1043 = vadd.xlane.f32.xlu2 %v1042_v22  ;;  %2313 = vadd.xlane.f32.xlu0 %v2312_v29  ;;  %v1744_v20 = vmul.f32 %v9667_v19, %v1695_v11  ;;  %v780_v11 = vsel %vm671_vm3, %v9988_v52, 0.0  ;;  %v1045_v33 = vsel %vm671_vm3, %v945_v34, 0.0 }
 0x1f3   : > { %v1008_v2 = vpop.xlane.xlu0 %1007  ;;  %v9982_v18 = vpop.xlane.xlu1 %760  ;;  %2139 = vadd.xlane.f32.xlu1 %v2138_v48  ;;  %v10009_v48 = vadd.f32 %v9756_v0, %v9608_v15  ;;  %v1697_v47 = vmul.f32 %v1316_v30, %v9486_v17  ;;  %v1794_v22 = vadd.f32 %v9678_v63, %v1745_v57  ;;  %v1322_v29 = vmul.f32 %v9926_v43, %v1321_v13 }
 0x1f4   : > { %v1124_v61 = vmul.f32 %v1008_v2, %v9282_v58  ;;  %v9990_v42 = vadd.f32 1e-05, %v1123_v16  ;;  %v1793_v44 = vadd.f32 %v9678_v63, %v1744_v20  ;;  %v851_v2 = vmul.f32 %v9282_v58, %v9941_v21  ;;  %v10018_v20 = vpop.f32.mrf.mxu1 }
 0x1f5   : > { %14931 = vst [vmem:[#allocation28_spill] sm:$0xff] %v10018_v20  ;;  %v2384_v17 = vmul.f32 %v9595_v56, %v9282_v58  ;;  %v1842_v21 = vmax.f32 %v1794_v22, 0.0  ;;  %v2141_v34 = vsel %vm671_vm3, %v10009_v48, 0.0  ;;  %v1326_v56 = vsel %vm1325_vm12, %v9926_v43, %v1322_v29 }
 0x1f6   : > { %v9994_v32 = vadd.f32 1e-05, %v1124_v61  ;;  %8595 = vrsqrt.f32 %v9990_v42  ;;  %v1841_v27 = vmax.f32 %v1793_v44, 0.0  ;;  %v10040_v30 = vsub.f32 %v9535_v35, %v851_v2 }
 0x1f7   : > { %v10028_v61 = vpop.f32.mrf.mxu0  ;;  %v1698_v43 = vmul.f32 %v1326_v56, %v9502_v37  ;;  %vm1333_vm14 = vweird.f32 %v9990_v42  ;;  %v852_v37 = vmul.f32 %v9282_v58, %v9982_v18 }
 0x1f8   : > { %8597 = vrsqrt.f32 %v9994_v32  ;;  %8095 = vmatmul.msk.f32.gmra.mxu1 %vm671_vm3, %v1841_v27  ;;  %8143 = vmatmul.msk.f32.gmra.mxu0 %vm671_vm3, %v1841_v27  ;;  %v1746_v27 = vmul.f32 %v9667_v19, %v1697_v47  ;;  %v783_v59 = vsel %vm671_vm3, %v10028_v61, 0.0  ;;  %vm1343_vm2 = vweird.f32 %v9994_v32 }
 0x1fa   : > { %1046 = vadd.xlane.f32.xlu0 %v1045_v33  ;;  %781 = vadd.xlane.f32.xlu2 %v780_v11  ;;  %v10045_v33 = vadd.f32 1e-05, %v2384_v17  ;;  %v1795_v47 = vadd.f32 %v9678_v63, %v1746_v27  ;;  %v1747_v27 = vmul.f32 %v9667_v19, %v1698_v43  ;;  %v14936_v43 = vld [vmem:[#allocation6_spill] sm:$0xff] }
 0x1fb   : > { %v1011_v7 = vpop.xlane.xlu1 %1010 }
 0x1fc   : > { %v1125_v54 = vmul.f32 %v1011_v7, %v9282_v58  ;;  %v8596_v16 = vpop.eup %8595  ;;  %v10051_v7 = vadd.f32 %v9756_v0, %v9640_v5  ;;  %vm2454_vm10 = vweird.f32 %v10045_v33 }
 0x1fd   : > { %v1328_v38 = vmul.f32 %v8596_v16, %v9990_v42  ;;  %vm1334_vm13 = vweird.f32 %v8596_v16 }
 0x1fe   : > { %v10020_v15 = vpop.eup %8597  ;;  %v10026_v50 = vadd.f32 1e-05, %v1125_v54  ;;  %v947_v54 = vmul.f32 %v10040_v30, %v10040_v30  ;;  %vm10062_vm15 = vmor %vm1333_vm14, %vm1334_vm13 }
 0x1ff   : > { %v1338_v44 = vmul.f32 %v10020_v15, %v9994_v32  ;;  %v1329_v57 = vmul.f32 %v8596_v16, %v1328_v38  ;;  %vm1344_vm0 = vweird.f32 %v10020_v15 }
 0x200   : > { %8599 = vrsqrt.f32 %v10026_v50  ;;  %8096 = vmatmul.msk.f32.gmra.mxu1 %vm671_vm3, %v1842_v21  ;;  %8144 = vmatmul.msk.f32.gmra.mxu0 %vm671_vm3, %v1842_v21  ;;  %v10068_v21 = vpop.f32.mrf.mxu1  ;;  %vm10100_vm4 = vmor %vm1343_vm2, %vm1344_vm0  ;;  %vm1353_vm6 = vweird.f32 %v10026_v50 }
 0x201   : > { %v1339_v13 = vmul.f32 %v10020_v15, %v1338_v44  ;;  %v1330_v11 = vmul.f32 0.5, %v1329_v57  ;;  %8601 = vrsqrt.f32 %v10045_v33  ;;  %14934 = vst [vmem:[#allocation29_spill] sm:$0xff] %v10068_v21  ;;  %v2144_v57 = vsel %vm671_vm3, %v10051_v7, 0.0 }
 0x202   : > { %2142 = vadd.xlane.f32.xlu2 %v2141_v34  ;;  %784 = vadd.xlane.f32.xlu0 %v783_v59  ;;  %v1843_v34 = vmax.f32 %v1795_v47, 0.0  ;;  %v2385_v59 = vmul.f32 %v9627_v55, %v9282_v58  ;;  %v1796_v55 = vadd.f32 %v9678_v63, %v1747_v27 }
 0x203   : > { %v1331_v35 = vsub.f32 1.5, %v1330_v11  ;;  %v1340_v22 = vmul.f32 0.5, %v1339_v13  ;;  %v10083_v11 = vsub.f32 %v9571_v28, %v852_v37  ;;  %v10095_v28 = vpop.xlane.xlu2 %763 }
 0x204   : > { %v1014_v29 = vpop.xlane.xlu0 %1013 }
 0x205   : > { %v1332_v17 = vmul.f32 %v8596_v16, %v1331_v35  ;;  %v1126_v38 = vmul.f32 %v1014_v29, %v9282_v58  ;;  %v1341_v18 = vsub.f32 1.5, %v1340_v22  ;;  %14935 = vst [vmem:[#allocation30_spill] sm:$0xff] %v10083_v11  ;;  %v948_v37 = vmul.f32 %v10083_v11, %v10083_v11 }
 0x206   : > { %v10055_v2 = vpop.eup %8599 }
 0x207   : > { %v1348_v44 = vmul.f32 %v10055_v2, %v10026_v50  ;;  %v1336_v42 = vsel %vm10062_vm15, %v8596_v16, %v1332_v17  ;;  %v10073_v56 = vadd.f32 1e-05, %v1126_v38  ;;  %v1051_v16 = vsel %vm671_vm3, %v947_v54, 0.0  ;;  %v10091_v29 = vpop.eup %8601 }
 0x208   : > { %8097 = vmatmul.msk.f32.gmra.mxu1 %vm671_vm3, %v1843_v34  ;;  %8145 = vmatmul.msk.f32.gmra.mxu0 %vm671_vm3, %v1843_v34  ;;  %v1699_v47 = vmul.f32 %v1336_v42, %v14936_v43  ;;  %v1342_v22 = vmul.f32 %v10020_v15, %v1341_v18  ;;  %v10093_v17 = vadd.f32 1e-05, %v2385_v59  ;;  %v1844_v34 = vmax.f32 %v1796_v55, 0.0  ;;  %v2913_v42 = vld [vmem:[%s14808_s2 + $0xf0] sm:$0xff]  ;;  %v10121_v43 = vpop.f32.mrf.mxu1  ;;  %v14941_v55 = vld [vmem:[#allocation7_spill] sm:$0xff] }
 0x209   : > { %v1349_v13 = vmul.f32 %v10055_v2, %v1348_v44  ;;  %8603 = vrsqrt.f32 %v10073_v56  ;;  %3486 = vmatpush.msra.mxu1 %v2913_v42  ;;  %v14939_v59 = vld [vmem:[#allocation16_spill] sm:$0xff]  ;;  %14940 = vst [vmem:[#allocation6_spill] sm:$0xff] %v10121_v43  ;;  %vm1354_vm5 = vweird.f32 %v10055_v2  ;;  %v2911_v42 = vld [vmem:[%s14808_s2 + $0xe0] sm:$0xff]  ;;  %vm1363_vm9 = vweird.f32 %v10073_v56 }
 0x20a   : > { %1052 = vadd.xlane.f32.xlu2 %v1051_v16  ;;  %2145 = vadd.xlane.f32.xlu0 %v2144_v57  ;;  %v1748_v27 = vmul.f32 %v9667_v19, %v1699_v47  ;;  %v1346_v32 = vsel %vm10100_vm4, %v10020_v15, %v1342_v22  ;;  %v2449_v57 = vmul.f32 %v10091_v29, %v10045_v33  ;;  %8605 = vrsqrt.f32 %v10093_v17  ;;  %v2912_v15 = vld [vmem:[%s14808_s2 + $0xe8] sm:$0xff]  ;;  %vm10149_vm7 = vmor %vm1353_vm6, %vm1354_vm5 }
 0x20b   : > { %v1350_v35 = vmul.f32 0.5, %v1349_v13  ;;  %v2386_v13 = vmul.f32 %v14939_v59, %v9282_v58  ;;  %3487 = vmatpush.msra.mxu1 %v2912_v15  ;;  %v1700_v22 = vmul.f32 %v1346_v32, %v14941_v55  ;;  %v2299_v32 = vpop.xlane.xlu1 %2298  ;;  %v2909_v55 = vld [vmem:[%s14808_s2 + $0xd0] sm:$0xff]  ;;  %vm2455_vm11 = vweird.f32 %v10091_v29 }
 0x20c   : > { %vm10218_vm14 = vmor %vm2454_vm10, %vm2455_vm11 }
 0x20d   : > { %v1017_v54 = vpop.xlane.xlu0 %1016  ;;  %v1351_v5 = vsub.f32 1.5, %v1350_v35  ;;  %v1054_v35 = vsel %vm671_vm3, %v948_v37, 0.0  ;;  %3488 = vmatpush.msra.mxu1 %v2911_v42  ;;  %v10141_v37 = vadd.f32 1e-05, %v2386_v13 }
 0x20e   : > { %v1127_v44 = vmul.f32 %v1017_v54, %v9282_v58 }
 0x20f   : > { %v10109_v18 = vpop.eup %8603  ;;  %v1352_v54 = vmul.f32 %v10055_v2, %v1351_v5  ;;  %vm2474_vm10 = vweird.f32 %v10141_v37 }
 0x210   : > { %v1358_v16 = vmul.f32 %v10109_v18, %v10073_v56  ;;  %8098 = vmatmul.msk.f32.gmra.mxu1 %vm671_vm3, %v1844_v34  ;;  %8146 = vmatmul.msk.f32.gmra.mxu0 %vm671_vm3, %v1844_v34  ;;  %v10129_v47 = vadd.f32 1e-05, %v1127_v44  ;;  %v1797_v34 = vadd.f32 %v9678_v63, %v1748_v27  ;;  %v2450_v44 = vmul.f32 %v10091_v29, %v2449_v57  ;;  %v2910_v27 = vld [vmem:[%s14808_s2 + $0xd8] sm:$0xff]  ;;  %v10154_v57 = vpop.eup %8605 }
 0x211   : > { %3489 = vmatpush.msra.mxu1 %v2910_v27  ;;  %v1356_v50 = vsel %vm10149_vm7, %v10055_v2, %v1352_v54  ;;  %v2908_v2 = vld [vmem:[%s14808_s2 + $0xc8] sm:$0xff]  ;;  %v2459_v54 = vmul.f32 %v10154_v57, %v10093_v17  ;;  %vm1364_vm8 = vweird.f32 %v10109_v18  ;;  %v850_v56 = vmul.f32 %v9282_v58, %v9935_v10 }
 0x212   : > { %v1359_v38 = vmul.f32 %v10109_v18, %v1358_v16  ;;  %1055 = vadd.xlane.f32.xlu0 %v1054_v35  ;;  %8607 = vrsqrt.f32 %v10129_v47  ;;  %v1845_v13 = vmax.f32 %v1797_v34, 0.0  ;;  %v1749_v35 = vmul.f32 %v9667_v19, %v1700_v22  ;;  %v14944_v34 = vld [vmem:[#allocation8_spill] sm:$0xff]  ;;  %vm10192_vm12 = vmor %vm1363_vm9, %vm1364_vm8 }
 0x213   : > { %3490 = vmatpush.msra.mxu1 %v2909_v55  ;;  %8609 = vrsqrt.f32 %v10141_v37  ;;  %vm1373_vm15 = vweird.f32 %v10129_v47  ;;  %vm2465_vm5 = vweird.f32 %v10154_v57  ;;  %vm2464_vm7 = vweird.f32 %v10093_v17 }
 0x214   : > { %v1360_v5 = vmul.f32 0.5, %v1359_v38  ;;  %v2387_v38 = vmul.f32 %v2299_v32, %v9282_v58  ;;  %v1701_v32 = vmul.f32 %v1356_v50, %v14944_v34  ;;  %v1798_v27 = vadd.f32 %v9678_v63, %v1749_v35  ;;  %vm10277_vm8 = vmor %vm2464_vm7, %vm2465_vm5 }
 0x215   : > { %v1020_v59 = vpop.xlane.xlu2 %1019  ;;  %3491 = vmatpush.msra.mxu1 %v2908_v2  ;;  %v2460_v50 = vmul.f32 %v10154_v57, %v2459_v54 }
 0x216   : > { %v1128_v15 = vmul.f32 %v1020_v59, %v9282_v58  ;;  %v1361_v42 = vsub.f32 1.5, %v1360_v5  ;;  %v2451_v59 = vmul.f32 0.5, %v2450_v44  ;;  %v10177_v5 = vpop.f32.mrf.mxu1  ;;  %v10180_v16 = vadd.f32 1e-05, %v2387_v38 }
 0x217   : > { %14945 = vst [vmem:[#allocation16_spill] sm:$0xff] %v10177_v5  ;;  %v1750_v34 = vmul.f32 %v9667_v19, %v1701_v32  ;;  %v2461_v10 = vmul.f32 0.5, %v2460_v50 }
 0x218   : > { %v10164_v43 = vadd.f32 1e-05, %v1128_v15  ;;  %8099 = vmatmul.msk.f32.gmra.mxu1 %vm671_vm3, %v1845_v13  ;;  %8147 = vmatmul.msk.f32.gmra.mxu0 %vm671_vm3, %v1845_v13  ;;  %v8608_v22 = vpop.eup %8607  ;;  %v1362_v15 = vmul.f32 %v10109_v18, %v1361_v42  ;;  %v2452_v13 = vsub.f32 1.5, %v2451_v59  ;;  %v1846_v42 = vmax.f32 %v1798_v27, 0.0 }
 0x219   : > { %v1368_v44 = vmul.f32 %v8608_v22, %v10129_v47  ;;  %v10188_v5 = vpop.eup %8609  ;;  %vm1374_vm13 = vweird.f32 %v8608_v22  ;;  %v2462_v47 = vsub.f32 1.5, %v2461_v10 }
 0x21a   : > { %8611 = vrsqrt.f32 %v10164_v43  ;;  %v1366_v19 = vsel %vm10192_vm12, %v10109_v18, %v1362_v15  ;;  %v2453_v32 = vmul.f32 %v10091_v29, %v2452_v13  ;;  %v2469_v27 = vmul.f32 %v10188_v5, %v10141_v37  ;;  %vm1375_vm0 = vmor %vm1373_vm15, %vm1374_vm13 }
 0x21b   : > { %v1369_v55 = vmul.f32 %v8608_v22, %v1368_v44  ;;  %8613 = vrsqrt.f32 %v10180_v16  ;;  %v1799_v15 = vadd.f32 %v9678_v63, %v1750_v34  ;;  %v10231_v34 = vpop.f32.mrf.mxu0  ;;  %vm1383_vm4 = vweird.f32 %v10164_v43 }
 0x21c   : > { %v2457_v33 = vsel %vm10218_vm14, %v10091_v29, %v2453_v32  ;;  %v10243_v32 = vld [vmem:[%s14808_s2 + $0x58] ss:$0 sm:$0xff]  ;;  %vm2475_vm9 = vweird.f32 %v10188_v5  ;;  %vm2484_vm13 = vweird.f32 %v10180_v16 }
 0x21d   : > { %v2125_v21 = vpop.xlane.xlu2 %2124  ;;  %v1370_v38 = vmul.f32 0.5, %v1369_v55  ;;  %vm10313_vm11 = vmor %vm2474_vm10, %vm2475_vm9 }
 0x21e   : > { %v2201_v2 = vmul.f32 %v2125_v21, %v9282_v58  ;;  %v14948_v21 = vld [vmem:[#allocation18_spill] sm:$0xff]  ;;  %v10233_v40 = vpop.f32.mrf.mxu1 }
 0x21f   : > { %v1371_v44 = vsub.f32 1.5, %v1370_v38  ;;  %14953 = vst [vmem:[#allocation7_spill] sm:$0xff] %v10233_v40 }
 0x220   : > { %v8612_v59 = vpop.eup %8611  ;;  %v10203_v54 = vsub.f32 %v14948_v21, %v2201_v2  ;;  %8100 = vmatmul.msk.f32.gmra.mxu1 %vm671_vm3, %v1846_v42  ;;  %8148 = vmatmul.msk.f32.gmra.mxu0 %vm671_vm3, %v1846_v42  ;;  %v14951_v2 = vld [vmem:[#allocation11_spill] sm:$0xff]  ;;  %v14952_v42 = vld [vmem:[#allocation5_spill] sm:$0xff] }
 0x221   : > { %v1378_v55 = vmul.f32 %v8612_v59, %v10164_v43  ;;  %v1702_v35 = vmul.f32 %v1366_v19, %v14951_v2  ;;  %v1372_v38 = vmul.f32 %v8608_v22, %v1371_v44  ;;  %v10225_v21 = vsub.f32 %v14952_v42, %v850_v56  ;;  %v10235_v44 = vpop.eup %8613  ;;  %v14954_v42 = vld [vmem:[#allocation12_spill] sm:$0xff] }
 0x222   : > { %v2265_v18 = vmul.f32 %v10203_v54, %v10203_v54  ;;  %v2470_v56 = vmul.f32 %v10188_v5, %v2469_v27  ;;  %v1847_v2 = vmax.f32 %v1799_v15, 0.0  ;;  %vm1384_vm2 = vweird.f32 %v8612_v59 }
 0x223   : > { %v1379_v50 = vmul.f32 %v8612_v59, %v1378_v55  ;;  %v1376_v19 = vsel %vm1375_vm0, %v8608_v22, %v1372_v38  ;;  %v1751_v22 = vmul.f32 %v10243_v32, %v1702_v35  ;;  %v946_v10 = vmul.f32 %v10225_v21, %v10225_v21  ;;  %v14955_v38 = vld [vmem:[#allocation2_spill] sm:$0xff]  ;;  %vm1385_vm6 = vmor %vm1383_vm4, %vm1384_vm2 }
 0x224   : > { %v2315_v63 = vsel %vm671_vm3, %v2265_v18, 0.0  ;;  %v1703_v18 = vmul.f32 %v1376_v19, %v14954_v42  ;;  %v2479_v27 = vmul.f32 %v10235_v44, %v10180_v16  ;;  %v2463_v35 = vmul.f32 %v10154_v57, %v2462_v47 }
 0x225   : > { %v1380_v20 = vmul.f32 0.5, %v1379_v50  ;;  %2316 = vadd.xlane.f32.xlu1 %v2315_v63  ;;  %v2302_v55 = vpop.xlane.xlu2 %2301  ;;  %v2768_v50 = vmul.f32 %v2457_v33, %v14955_v38  ;;  %v2471_v63 = vmul.f32 0.5, %v2470_v56  ;;  %v1048_v47 = vsel %vm671_vm3, %v946_v10, 0.0 }
 0x226   : > { %v2388_v29 = vmul.f32 %v2302_v55, %v9282_v58  ;;  %v1752_v13 = vmul.f32 %v10243_v32, %v1703_v18  ;;  %v2480_v18 = vmul.f32 %v10235_v44, %v2479_v27  ;;  %v10287_v27 = vpop.f32.mrf.mxu0  ;;  %vm2485_vm12 = vweird.f32 %v10235_v44 }
 0x227   : > { %v1381_v14 = vsub.f32 1.5, %v1380_v20  ;;  %v2800_v56 = vmul.f32 %v10243_v32, %v2768_v50  ;;  %v2472_v10 = vsub.f32 1.5, %v2471_v63  ;;  %v786_v63 = vsel %vm671_vm3, %v10231_v34, 0.0  ;;  %vm10355_vm14 = vmor %vm2484_vm13, %vm2485_vm12 }
 0x228   : > { %v10252_v20 = vadd.f32 1e-05, %v2388_v29  ;;  %8101 = vmatmul.msk.f32.gmra.mxu1 %vm671_vm3, %v1847_v2  ;;  %8149 = vmatmul.msk.f32.gmra.mxu0 %vm671_vm3, %v1847_v2  ;;  %v14956_v2 = vld [vmem:[#allocation15_spill] sm:$0xff]  ;;  %v10272_v29 = vpop.xlane.xlu1 %769 }
 0x229   : > { %v1382_v15 = vmul.f32 %v8612_v59, %v1381_v14  ;;  %v10263_v14 = vld [vmem:[%s14808_s2 + $0x60] ss:$0 sm:$0xff] }
 0x22a   : > { %v1801_v43 = vadd.f32 %v10263_v14, %v1752_v13  ;;  %8615 = vrsqrt.f32 %v10252_v20  ;;  %v1800_v19 = vadd.f32 %v10263_v14, %v1751_v22  ;;  %v2467_v13 = vsel %vm10277_vm8, %v10154_v57, %v2463_v35  ;;  %v14961_v57 = vld [vmem:[#allocation3_spill] sm:$0xff] }
 0x22b   : > { %v1386_v55 = vsel %vm1385_vm6, %v8612_v59, %v1382_v15  ;;  %v10289_v15 = vpop.f32.mrf.mxu1  ;;  %v2769_v35 = vmul.f32 %v2467_v13, %v14961_v57  ;;  %v14964_v13 = vld [vmem:[#allocation14_spill] sm:$0xff]  ;;  %vm2494_vm5 = vweird.f32 %v10252_v20 }
 0x22c   : > { %v1849_v33 = vmax.f32 %v1801_v43, 0.0  ;;  %v1704_v42 = vmul.f32 %v1386_v55, %v14956_v2  ;;  %14959 = vst [vmem:[#allocation8_spill] sm:$0xff] %v10289_v15  ;;  %v1848_v50 = vmax.f32 %v1800_v19, 0.0  ;;  %v2481_v2 = vmul.f32 0.5, %v2480_v18 }
 0x22d   : > { %v1023_v38 = vpop.xlane.xlu0 %1022  ;;  %1049 = vadd.xlane.f32.xlu1 %v1048_v47  ;;  %v2473_v19 = vmul.f32 %v10188_v5, %v2472_v10  ;;  %v10319_v10 = vadd.f32 %v9756_v0, %v14964_v13  ;;  %v2801_v37 = vmul.f32 %v10243_v32, %v2769_v35  ;;  %v853_v0 = vmul.f32 %v9282_v58, %v10095_v28 }
 0x22e   : > { %8103 = vmatmul.msk.f32.vlgmr.msra.gmra.mxu2 %vm671_vm3, %v1849_v33  ;;  %v1129_v59 = vmul.f32 %v1023_v38, %v9282_v58  ;;  %v1753_v17 = vmul.f32 %v10243_v32, %v1704_v42  ;;  %v10299_v42 = vadd.f32 %v10263_v14, %v2800_v56  ;;  %v2482_v22 = vsub.f32 1.5, %v2481_v2 }
 0x22f   : > { %v2477_v2 = vsel %vm10313_vm11, %v10188_v5, %v2473_v19  ;;  %v14966_v5 = vld [vmem:[#allocation4_spill] sm:$0xff]  ;;  %v2147_v28 = vsel %vm671_vm3, %v10319_v10, 0.0 }
 0x230   : > { %v10291_v43 = vadd.f32 1e-05, %v1129_v59  ;;  %v1802_v55 = vadd.f32 %v10263_v14, %v1753_v17  ;;  %v10294_v47 = vpop.eup %8615  ;;  %8102 = vmatmul.msk.f32.gmra.mxu1 %vm671_vm3, %v1848_v50  ;;  %8150 = vmatmul.msk.f32.gmra.mxu0 %vm671_vm3, %v1848_v50  ;;  %14960 = vst [vmem:[#allocation18_spill] sm:$0xff] %v10299_v42  ;;  %v2483_v35 = vmul.f32 %v10235_v44, %v2482_v22 }
 0x231   : > { %v2489_v18 = vmul.f32 %v10294_v47, %v10252_v20  ;;  %v2770_v19 = vmul.f32 %v2477_v2, %v14966_v5  ;;  %vm2495_vm2 = vweird.f32 %v10294_v47 }
 0x232   : > { %8617 = vrsqrt.f32 %v10291_v43  ;;  %v1850_v38 = vmax.f32 %v1802_v55, 0.0  ;;  %v14828_v55 = vmax.f32 %v10299_v42, 0.0  ;;  %v2487_v2 = vsel %vm10355_vm14, %v10235_v44, %v2483_v35  ;;  %v14972_v35 = vld [vmem:[#allocation10_spill] sm:$0xff]  ;;  %vm10411_vm6 = vmor %vm2494_vm5, %vm2495_vm2 }
 0x233   : > { %v2490_v57 = vmul.f32 %v10294_v47, %v2489_v18  ;;  %v10349_v18 = vadd.f32 %v10263_v14, %v2801_v37  ;;  %vm1393_vm0 = vweird.f32 %v10291_v43 }
 0x234   : > { %8152 = vmatmul.msk.f32.vlgmr.msra.gmra.mxu3 %vm671_vm3, %v1850_v38 }
 0x235   : > { %v10311_v56 = vpop.xlane.xlu0 %766  ;;  %v1026_v59 = vpop.xlane.xlu1 %1025  ;;  %787 = vadd.xlane.f32.xlu1 %v786_v63  ;;  %14967 = vst [vmem:[#allocation5_spill] sm:$0xff] %v10349_v18  ;;  %v2491_v22 = vmul.f32 0.5, %v2490_v57 }
 0x236   : > { %8104 = vmatmul.msk.f32.gmra.mxu2 %vm671_vm3, %v1850_v38  ;;  %v1130_v50 = vmul.f32 %v1026_v59, %v9282_v58  ;;  %v10329_v63 = vpop.f32.mrf.mxu1  ;;  %v10335_v38 = vpop.f32.mrf.mxu0 }
 0x237   : > { %14965 = vst [vmem:[#allocation11_spill] sm:$0xff] %v10329_v63 }
 0x238   : > { %v8618_v15 = vpop.eup %8617  ;;  %v10333_v13 = vadd.f32 1e-05, %v1130_v50  ;;  %8151 = vmatmul.msk.f32.gmra.mxu0 %vm671_vm3, %v1849_v33  ;;  %8183 = vmatmul.msk.f32.vlgmr.msra.gmra.mxu1 %vm671_vm3, %v14828_v55  ;;  %v14968_v50 = vld [vmem:[#allocation9_spill] sm:$0xff] }
 0x239   : > { %v1388_v59 = vmul.f32 %v8618_v15, %v10291_v43  ;;  %v10353_v33 = vsub.f32 %v14968_v50, %v853_v0  ;;  %v14831_v0 = vmax.f32 %v10349_v18, 0.0  ;;  %v2492_v50 = vsub.f32 1.5, %v2491_v22 }
 0x23a   : > { %8619 = vrsqrt.f32 %v10333_v13  ;;  %vm1394_vm15 = vweird.f32 %v8618_v15  ;;  %vm1403_vm8 = vweird.f32 %v10333_v13 }
 0x23b   : > { %v1389_v17 = vmul.f32 %v8618_v15, %v1388_v59  ;;  %v2802_v59 = vmul.f32 %v10243_v32, %v2770_v19  ;;  %vm1395_vm4 = vmor %vm1393_vm0, %vm1394_vm15  ;;  %v2493_v43 = vmul.f32 %v10294_v47, %v2492_v50 }
 0x23d   : > { %v1390_v5 = vmul.f32 0.5, %v1389_v17  ;;  %v1029_v55 = vpop.xlane.xlu2 %1028  ;;  %v2128_v42 = vpop.xlane.xlu0 %2127  ;;  %2148 = vadd.xlane.f32.xlu1 %v2147_v28  ;;  %v2771_v28 = vmul.f32 %v2487_v2, %v14972_v35 }
 0x23e   : > { %v1131_v37 = vmul.f32 %v1029_v55, %v9282_v58  ;;  %v2202_v16 = vmul.f32 %v2128_v42, %v9282_v58  ;;  %v2131_v57 = vpop.xlane.xlu1 %2130  ;;  %v10367_v63 = vpop.f32.mrf.mxu1  ;;  %v949_v55 = vmul.f32 %v10353_v33, %v10353_v33 }
 0x23f   : > { %v1391_v40 = vsub.f32 1.5, %v1390_v5  ;;  %v2203_v11 = vmul.f32 %v2131_v57, %v9282_v58  ;;  %14971 = vst [vmem:[#allocation12_spill] sm:$0xff] %v10367_v63  ;;  %v2803_v35 = vmul.f32 %v10243_v32, %v2771_v28 }
 0x240   : > { %v10369_v44 = vpop.eup %8619  ;;  %v10372_v17 = vadd.f32 1e-05, %v1131_v37  ;;  %v10375_v42 = vsub.f32 %v9760_v25, %v2202_v16  ;;  %8184 = vmatmul.msk.f32.gmra.mxu1 %vm671_vm3, %v14831_v0  ;;  %v1057_v16 = vsel %vm671_vm3, %v949_v55, 0.0  ;;  %v792_v55 = vsel %vm671_vm3, %v10335_v38, 0.0 }
 0x241   : > { %v1392_v19 = vmul.f32 %v8618_v15, %v1391_v40  ;;  %v1398_v22 = vmul.f32 %v10369_v44, %v10333_v13  ;;  %v10383_v5 = vsub.f32 %v9768_v23, %v2203_v11  ;;  %v10393_v40 = vadd.f32 %v10263_v14, %v2802_v59 }
 0x242   : > { %8621 = vrsqrt.f32 %v10372_v17  ;;  %v2266_v25 = vmul.f32 %v10375_v42, %v10375_v42  ;;  %vm1404_vm7 = vweird.f32 %v10369_v44  ;;  %v789_v13 = vsel %vm671_vm3, %v10287_v27, 0.0 }
 0x243   : > { %14973 = vst [vmem:[#allocation2_spill] sm:$0xff] %v10393_v40  ;;  %v1399_v23 = vmul.f32 %v10369_v44, %v1398_v22  ;;  %v2267_v11 = vmul.f32 %v10383_v5, %v10383_v5  ;;  %v1396_v2 = vsel %vm1395_vm4, %v8618_v15, %v1392_v19  ;;  %v855_v15 = vmul.f32 %v9282_v58, %v10272_v29  ;;  %vm1405_vm9 = vmor %vm1403_vm8, %vm1404_vm7 }
 0x244   : > { %v2318_v37 = vsel %vm671_vm3, %v2266_v25, 0.0  ;;  %v1705_v57 = vmul.f32 %v1396_v2, %v9720_v53  ;;  %v14833_v28 = vmax.f32 %v10393_v40, 0.0  ;;  %v2497_v22 = vsel %vm10411_vm6, %v10294_v47, %v2493_v43 }
 0x245   : > { %v1400_v59 = vmul.f32 0.5, %v1399_v23  ;;  %v2305_v0 = vpop.xlane.xlu0 %2304  ;;  %v10404_v63 = vpop.xlane.xlu2 %772  ;;  %2319 = vadd.xlane.f32.xlu2 %v2318_v37  ;;  %v2321_v50 = vsel %vm671_vm3, %v2267_v11, 0.0  ;;  %1058 = vadd.xlane.f32.xlu1 %v1057_v16  ;;  %v10431_v37 = vadd.f32 %v10263_v14, %v2803_v35  ;;  %vm1413_vm11 = vweird.f32 %v10372_v17 }
 0x246   : > { %v2389_v53 = vmul.f32 %v2305_v0, %v9282_v58  ;;  %v1032_v20 = vpop.xlane.xlu1 %1031  ;;  %2322 = vadd.xlane.f32.xlu0 %v2321_v50  ;;  %v1754_v19 = vmul.f32 %v10243_v32, %v1705_v57  ;;  %v854_v0 = vmul.f32 %v9282_v58, %v10311_v56  ;;  %v10439_v57 = vpop.f32.mrf.mxu1  ;;  %v14978_v56 = vld [vmem:[#allocation19_spill] sm:$0xff] }
 0x247   : > { %v1401_v25 = vsub.f32 1.5, %v1400_v59  ;;  %v1132_v29 = vmul.f32 %v1032_v20, %v9282_v58  ;;  %14976 = vst [vmem:[#allocation15_spill] sm:$0xff] %v10431_v37  ;;  %v2772_v59 = vmul.f32 %v2497_v22, %v14978_v56  ;;  %v14979_v20 = vld [vmem:[#allocation13_spill] sm:$0xff] }
 0x248   : > { %v10423_v23 = vpop.eup %8621  ;;  %v10427_v11 = vadd.f32 1e-05, %v2389_v53  ;;  %v1803_v2 = vadd.f32 %v10263_v14, %v1754_v19  ;;  %14977 = vst [vmem:[#allocation3_spill] sm:$0xff] %v10439_v57  ;;  %8185 = vmatmul.msk.f32.gmra.mxu1 %vm671_vm3, %v14833_v28  ;;  %v10454_v19 = vsub.f32 %v14979_v20, %v855_v15  ;;  %v14985_v28 = vld [vmem:[#allocation20_spill] sm:$0xff] }
 0x249   : > { %v1402_v16 = vmul.f32 %v10369_v44, %v1401_v25  ;;  %v1408_v47 = vmul.f32 %v10423_v23, %v10372_v17  ;;  %v10437_v43 = vadd.f32 1e-05, %v1132_v29  ;;  %v10460_v25 = vsub.f32 %v9637_v3, %v854_v0  ;;  %v10503_v17 = vld [vmem:[%s14808_s2 + $0x50] ss:$0 sm:$0xff] }
 0x24a   : > { %8623 = vrsqrt.f32 %v10427_v11  ;;  %v1851_v35 = vmax.f32 %v1803_v2, 0.0  ;;  %14980 = vst [vmem:[#allocation14_spill] sm:$0xff] %v10454_v19  ;;  %vm1414_vm10 = vweird.f32 %v10423_v23  ;;  %vm2504_vm14 = vweird.f32 %v10427_v11 }
 0x24b   : > { %v1409_v50 = vmul.f32 %v10423_v23, %v1408_v47  ;;  %8625 = vrsqrt.f32 %v10437_v43  ;;  %v1406_v53 = vsel %vm1405_vm9, %v10369_v44, %v1402_v16  ;;  %14981 = vst [vmem:[#allocation4_spill] sm:$0xff] %v10460_v25  ;;  %v2804_v16 = vmul.f32 %v10243_v32, %v2772_v59  ;;  %vm1415_vm12 = vmor %vm1413_vm11, %vm1414_vm10 }
 0x24c   : > { %8105 = vmatmul.msk.f32.gmra.mxu2 %vm671_vm3, %v1851_v35  ;;  %8153 = vmatmul.msk.f32.gmra.mxu3 %vm671_vm3, %v1851_v35  ;;  %v1706_v22 = vmul.f32 %v1406_v53, %v9733_v62  ;;  %v14832_v62 = vmax.f32 %v10431_v37, 0.0  ;;  %vm1423_vm2 = vweird.f32 %v10437_v43 }
 0x24d   : > { %v1410_v29 = vmul.f32 0.5, %v1409_v50  ;;  %v1035_v2 = vpop.xlane.xlu2 %1034  ;;  %v10462_v47 = vpop.xlane.xlu0 %775  ;;  %790 = vadd.xlane.f32.xlu2 %v789_v13  ;;  %v951_v50 = vmul.f32 %v10454_v19, %v10454_v19 }
 0x24e   : > { %v2308_v56 = vpop.xlane.xlu1 %2307  ;;  %v1133_v44 = vmul.f32 %v1035_v2, %v9282_v58  ;;  %793 = vadd.xlane.f32.xlu0 %v792_v55  ;;  %v1755_v15 = vmul.f32 %v10243_v32, %v1706_v22 }
 0x24f   : > { %v1411_v20 = vsub.f32 1.5, %v1410_v29  ;;  %v2390_v35 = vmul.f32 %v2308_v56, %v9282_v58  ;;  %v950_v29 = vmul.f32 %v10460_v25, %v10460_v25  ;;  %v10494_v56 = vadd.f32 %v10263_v14, %v2804_v16 }
 0x250   : > { %v10469_v3 = vpop.eup %8623  ;;  %v10472_v0 = vadd.f32 1e-05, %v1133_v44  ;;  %v1804_v13 = vadd.f32 %v10263_v14, %v1755_v15  ;;  %8186 = vmatmul.msk.f32.gmra.mxu1 %vm671_vm3, %v14832_v62  ;;  %v10498_v15 = vpop.f32.mrf.mxu1  ;;  %v10511_v16 = vadd.f32 %v10503_v17, %v14985_v28  ;;  %v1063_v18 = vsel %vm671_vm3, %v951_v50, 0.0 }
 0x251   : > { %v10477_v55 = vpop.eup %8625  ;;  %v1412_v59 = vmul.f32 %v10423_v23, %v1411_v20  ;;  %v2499_v53 = vmul.f32 %v10469_v3, %v10427_v11  ;;  %v10482_v22 = vadd.f32 1e-05, %v2390_v35  ;;  %14982 = vst [vmem:[#allocation9_spill] sm:$0xff] %v10494_v56  ;;  %v14984_v35 = vld [vmem:[#allocation17_spill] sm:$0xff]  ;;  %v14839_v28 = vmax.f32 %v10494_v56, 0.0 }
 0x252   : > { %v1418_v2 = vmul.f32 %v10477_v55, %v10437_v43  ;;  %8627 = vrsqrt.f32 %v10472_v0  ;;  %14983 = vst [vmem:[#allocation10_spill] sm:$0xff] %v10498_v15  ;;  %v1852_v20 = vmax.f32 %v1804_v13, 0.0  ;;  %v10507_v62 = vadd.f32 %v10503_v17, %v14984_v35 }
 0x253   : > { %v2500_v44 = vmul.f32 %v10469_v3, %v2499_v53  ;;  %8629 = vrsqrt.f32 %v10482_v22  ;;  %v1416_v37 = vsel %vm1415_vm12, %v10423_v23, %v1412_v59  ;;  %v1060_v13 = vsel %vm671_vm3, %v950_v29, 0.0 }
 0x254   : > { %v1419_v53 = vmul.f32 %v10477_v55, %v1418_v2  ;;  %8106 = vmatmul.msk.f32.gmra.mxu2 %vm671_vm3, %v1852_v20  ;;  %8154 = vmatmul.msk.f32.gmra.mxu3 %vm671_vm3, %v1852_v20  ;;  %v1707_v35 = vmul.f32 %v1416_v37, %v9773_v60  ;;  %vm2505_vm13 = vweird.f32 %v10469_v3  ;;  %v2150_v37 = vsel %vm671_vm3, %v10507_v62, 0.0 }
 0x255   : > { %v2501_v40 = vmul.f32 0.5, %v2500_v44  ;;  %v2134_v25 = vpop.xlane.xlu2 %2133  ;;  %v1038_v15 = vpop.xlane.xlu0 %1037  ;;  %1061 = vadd.xlane.f32.xlu2 %v1060_v13  ;;  %vm2506_vm15 = vmor %vm2504_vm14, %vm2505_vm13  ;;  %vm1424_vm0 = vweird.f32 %v10477_v55  ;;  %v856_v13 = vmul.f32 %v9282_v58, %v10404_v63  ;;  %vm2514_vm5 = vweird.f32 %v10482_v22 }
 0x256   : > { %v1420_v19 = vmul.f32 0.5, %v1419_v53  ;;  %1064 = vadd.xlane.f32.xlu0 %v1063_v18  ;;  %v2204_v23 = vmul.f32 %v2134_v25, %v9282_v58  ;;  %v1134_v59 = vmul.f32 %v1038_v15, %v9282_v58  ;;  %v10524_v44 = vpop.xlane.xlu1 %778  ;;  %v2153_v18 = vsel %vm671_vm3, %v10511_v16, 0.0  ;;  %vm10563_vm4 = vmor %vm1423_vm2, %vm1424_vm0 }
 0x257   : > { %v2502_v2 = vsub.f32 1.5, %v2501_v40  ;;  %v1756_v11 = vmul.f32 %v10243_v32, %v1707_v35  ;;  %vm1433_vm9 = vweird.f32 %v10472_v0 }
 0x258   : > { %v10526_v29 = vpop.eup %8627  ;;  %v1421_v60 = vsub.f32 1.5, %v1420_v19  ;;  %v10539_v15 = vsub.f32 %v9870_v46, %v2204_v23  ;;  %8187 = vmatmul.msk.f32.gmra.mxu1 %vm671_vm3, %v14839_v28  ;;  %v10551_v53 = vadd.f32 1e-05, %v1134_v59 }
 0x259   : > { %v10533_v40 = vpop.eup %8629  ;;  %v2503_v50 = vmul.f32 %v10469_v3, %v2502_v2  ;;  %v1428_v25 = vmul.f32 %v10526_v29, %v10472_v0  ;;  %v1805_v63 = vadd.f32 %v10263_v14, %v1756_v11  ;;  %vm1434_vm7 = vweird.f32 %v10526_v29 }
 0x25a   : > { %14986 = vst [vmem:[#allocation19_spill] sm:$0xff] %v10539_v15  ;;  %v1422_v19 = vmul.f32 %v10477_v55, %v1421_v60  ;;  %v2509_v20 = vmul.f32 %v10533_v40, %v10482_v22  ;;  %v857_v60 = vmul.f32 %v9282_v58, %v10462_v47  ;;  %8631 = vrsqrt.f32 %v10551_v53  ;;  %vm10620_vm10 = vmor %vm1433_vm9, %vm1434_vm7 }
 0x25b   : > { %v2507_v46 = vsel %vm2506_vm15, %v10469_v3, %v2503_v50  ;;  %v1429_v35 = vmul.f32 %v10526_v29, %v1428_v25  ;;  %v10568_v3 = vpop.f32.mrf.mxu1  ;;  %vm2515_vm6 = vweird.f32 %v10533_v40  ;;  %v1853_v28 = vmax.f32 %v1805_v63, 0.0 }
 0x25c   : > { %v2773_v2 = vmul.f32 %v2507_v46, %v9794_v41  ;;  %v2510_v23 = vmul.f32 %v10533_v40, %v2509_v20  ;;  %14989 = vst [vmem:[#allocation13_spill] sm:$0xff] %v10568_v3  ;;  %v2268_v41 = vmul.f32 %v10539_v15, %v10539_v15  ;;  %v1426_v20 = vsel %vm10563_vm4, %v10477_v55, %v1422_v19  ;;  %vm2516_vm8 = vmor %vm2514_vm5, %vm2515_vm6 }
 0x25d   : > { %v1430_v43 = vmul.f32 0.5, %v1429_v35  ;;  %v2311_v47 = vpop.xlane.xlu2 %2310  ;;  %v2137_v25 = vpop.xlane.xlu0 %2136  ;;  %2151 = vadd.xlane.f32.xlu2 %v2150_v37  ;;  %v1708_v37 = vmul.f32 %v1426_v20, %v9800_v12  ;;  %8107 = vmatmul.msk.f32.gmra.mxu2 %vm671_vm3, %v1853_v28  ;;  %v10629_v63 = vsub.f32 %v9804_v49, %v856_v13  ;;  %vm1443_vm12 = vweird.f32 %v10551_v53 }
 0x25e   : > { %v2511_v50 = vmul.f32 0.5, %v2510_v23  ;;  %2154 = vadd.xlane.f32.xlu0 %v2153_v18  ;;  %v2805_v46 = vmul.f32 %v10243_v32, %v2773_v2  ;;  %v2391_v11 = vmul.f32 %v2311_v47, %v9282_v58  ;;  %v2205_v56 = vmul.f32 %v2137_v25, %v9282_v58  ;;  %v1041_v15 = vpop.xlane.xlu1 %1040  ;;  %8155 = vmatmul.msk.f32.gmra.mxu3 %vm671_vm3, %v1853_v28 }
 0x25f   : > { %v1431_v35 = vsub.f32 1.5, %v1430_v43  ;;  %v1135_v3 = vmul.f32 %v1041_v15, %v9282_v58  ;;  %v2324_v57 = vsel %vm671_vm3, %v2268_v41, 0.0  ;;  %v1757_v43 = vmul.f32 %v10243_v32, %v1708_v37 }
 0x260   : > { %v2512_v23 = vsub.f32 1.5, %v2511_v50  ;;  %v10586_v55 = vadd.f32 1e-05, %v2391_v11  ;;  %v10589_v18 = vsub.f32 %v9908_v1, %v2205_v56  ;;  %v10592_v19 = vadd.f32 %v10263_v14, %v2805_v46  ;;  %v10594_v2 = vpop.eup %8631  ;;  %2325 = vadd.xlane.f32.xlu1 %v2324_v57 }
 0x261   : > { %v1432_v12 = vmul.f32 %v10526_v29, %v1431_v35  ;;  %v10598_v59 = vadd.f32 1e-05, %v1135_v3  ;;  %v10606_v1 = vsub.f32 %v9837_v26, %v857_v60  ;;  %v1438_v56 = vmul.f32 %v10594_v2, %v10551_v53  ;;  %v10615_v3 = vpop.f32.mrf.mxu0 }
 0x262   : > { %14990 = vst [vmem:[#allocation17_spill] sm:$0xff] %v10592_v19  ;;  %v2513_v15 = vmul.f32 %v10533_v40, %v2512_v23  ;;  %8633 = vrsqrt.f32 %v10586_v55  ;;  %v1806_v57 = vadd.f32 %v10263_v14, %v1757_v43  ;;  %v2269_v0 = vmul.f32 %v10589_v18, %v10589_v18 }
 0x263   : > { %8635 = vrsqrt.f32 %v10598_v59  ;;  %v1439_v60 = vmul.f32 %v10594_v2, %v1438_v56  ;;  %v1436_v25 = vsel %vm10620_vm10, %v10526_v29, %v1432_v12  ;;  %v10636_v46 = vpop.f32.mrf.mxu1  ;;  %v858_v23 = vmul.f32 %v9282_v58, %v10524_v44 }
 0x264   : > { %v2517_v28 = vsel %vm2516_vm8, %v10533_v40, %v2513_v15  ;;  %v14845_v40 = vmax.f32 %v10592_v19, 0.0  ;;  %v1854_v41 = vmax.f32 %v1806_v57, 0.0  ;;  %v2327_v11 = vsel %vm671_vm3, %v2269_v0, 0.0  ;;  %v14993_v0 = vld [vmem:[#allocation21_spill] sm:$0xff] }
 0x265   : > { %v2774_v22 = vmul.f32 %v2517_v28, %v9829_v36  ;;  %v1044_v50 = vpop.xlane.xlu2 %1043  ;;  %v2314_v47 = vpop.xlane.xlu0 %2313  ;;  %v795_v36 = vsel %vm671_vm3, %v10615_v3, 0.0  ;;  %v1440_v20 = vmul.f32 0.5, %v1439_v60  ;;  %2328 = vadd.xlane.f32.xlu2 %v2327_v11  ;;  %v1709_v29 = vmul.f32 %v1436_v25, %v9821_v31 }
 0x266   : > { %8188 = vmatmul.msk.f32.gmra.mxu1 %vm671_vm3, %v14845_v40  ;;  %v1136_v49 = vmul.f32 %v1044_v50, %v9282_v58  ;;  %v2392_v13 = vmul.f32 %v2314_v47, %v9282_v58  ;;  %v2140_v35 = vpop.xlane.xlu1 %2139  ;;  %v953_v15 = vmul.f32 %v10606_v1, %v10606_v1  ;;  %8108 = vmatmul.msk.f32.gmra.mxu2 %vm671_vm3, %v1854_v41  ;;  %vm1444_vm11 = vweird.f32 %v10594_v2 }
 0x267   : > { %v2206_v37 = vmul.f32 %v2140_v35, %v9282_v58  ;;  %v1441_v43 = vsub.f32 1.5, %v1440_v20  ;;  %8156 = vmatmul.msk.f32.gmra.mxu3 %vm671_vm3, %v1854_v41  ;;  %v2806_v44 = vmul.f32 %v10243_v32, %v2774_v22  ;;  %v1758_v60 = vmul.f32 %v10243_v32, %v1709_v29  ;;  %vm10681_vm13 = vmor %vm1443_vm12, %vm1444_vm11 }
 0x268   : > { %v10650_v12 = vpop.eup %8633  ;;  %v10654_v56 = vadd.f32 1e-05, %v1136_v49  ;;  %v10656_v28 = vadd.f32 1e-05, %v2392_v13  ;;  %796 = vadd.xlane.f32.xlu1 %v795_v36  ;;  %v10670_v41 = vadd.f32 %v10503_v17, %v14993_v0  ;;  %v10693_v13 = vsub.f32 %v9886_v51, %v858_v23 }
 0x269   : > { %v10659_v57 = vpop.eup %8635  ;;  %v2519_v31 = vmul.f32 %v10650_v12, %v10586_v55  ;;  %v10665_v26 = vsub.f32 %v9948_v8, %v2206_v37  ;;  %v1442_v50 = vmul.f32 %v10594_v2, %v1441_v43  ;;  %v952_v8 = vmul.f32 %v10629_v63, %v10629_v63 }
 0x26a   : > { %v1448_v22 = vmul.f32 %v10659_v57, %v10598_v59  ;;  %8637 = vrsqrt.f32 %v10654_v56  ;;  %v1807_v20 = vadd.f32 %v10263_v14, %v1758_v60  ;;  %v10688_v49 = vadd.f32 %v10263_v14, %v2806_v44 }
 0x26b   : > { %v2520_v47 = vmul.f32 %v10650_v12, %v2519_v31  ;;  %8639 = vrsqrt.f32 %v10656_v28  ;;  %v2270_v53 = vmul.f32 %v10665_v26, %v10665_v26  ;;  %v1069_v29 = vsel %vm671_vm3, %v953_v15, 0.0 }
 0x26c   : > { %v1449_v25 = vmul.f32 %v10659_v57, %v1448_v22  ;;  %14996 = vst [vmem:[#allocation20_spill] sm:$0xff] %v10688_v49  ;;  %v1446_v43 = vsel %vm10681_vm13, %v10594_v2, %v1442_v50  ;;  %v1855_v60 = vmax.f32 %v1807_v20, 0.0  ;;  %v14842_v44 = vmax.f32 %v10688_v49, 0.0 }
 0x26d   : > { %v2521_v35 = vmul.f32 0.5, %v2520_v47  ;;  %v1047_v11 = vpop.xlane.xlu0 %1046  ;;  %v10695_v37 = vpop.xlane.xlu2 %781  ;;  %vm2525_vm14 = vweird.f32 %v10650_v12  ;;  %1070 = vadd.xlane.f32.xlu2 %v1069_v29  ;;  %v2330_v23 = vsel %vm671_vm3, %v2270_v53, 0.0  ;;  %v1710_v15 = vmul.f32 %v1446_v43, %v9860_v4 }
 0x26e   : > { %v1450_v31 = vmul.f32 0.5, %v1449_v25  ;;  %v1137_v0 = vmul.f32 %v1047_v11, %v9282_v58  ;;  %v10703_v22 = vpop.f32.mrf.mxu1  ;;  %vm1454_vm15 = vweird.f32 %v10659_v57  ;;  %8109 = vmatmul.msk.f32.gmra.mxu2 %vm671_vm3, %v1855_v60  ;;  %v1066_v50 = vsel %vm671_vm3, %v952_v8, 0.0  ;;  %8189 = vmatmul.msk.f32.gmra.mxu1 %vm671_vm3, %v14842_v44  ;;  %v10738_v11 = vpop.f32.mrf.mxu0 }
 0x26f   : > { %14997 = vst [vmem:[#allocation21_spill] sm:$0xff] %v10703_v22  ;;  %v2522_v51 = vsub.f32 1.5, %v2521_v35  ;;  %8157 = vmatmul.msk.f32.gmra.mxu3 %vm671_vm3, %v1855_v60  ;;  %vm2524_vm0 = vweird.f32 %v10586_v55  ;;  %2331 = vadd.xlane.f32.xlu0 %v2330_v23  ;;  %v954_v53 = vmul.f32 %v10693_v13, %v10693_v13  ;;  %vm1453_vm4 = vweird.f32 %v10598_v59 }
 0x270   : > { %v10708_v47 = vpop.eup %8637  ;;  %v1451_v36 = vsub.f32 1.5, %v1450_v31  ;;  %v10713_v2 = vadd.f32 1e-05, %v1137_v0  ;;  %vm2526_vm2 = vmor %vm2524_vm0, %vm2525_vm14  ;;  %1067 = vadd.xlane.f32.xlu1 %v1066_v50  ;;  %v10736_v35 = vadd.f32 %v10503_v17, %v9748_v39  ;;  %v1759_v59 = vmul.f32 %v10243_v32, %v1710_v15  ;;  %v14998_v31 = vld [vmem:[#allocation25_spill] sm:$0xff] }
 0x271   : > { %v10716_v25 = vpop.eup %8639  ;;  %v2523_v20 = vmul.f32 %v10650_v12, %v2522_v51  ;;  %v1458_v4 = vmul.f32 %v10708_v47, %v10654_v56  ;;  %vm1455_vm5 = vmor %vm1453_vm4, %vm1454_vm15  ;;  %v798_v51 = vsel %vm671_vm3, %v10738_v11, 0.0  ;;  %vm1464_vm6 = vweird.f32 %v10708_v47 }
 0x272   : > { %v1452_v8 = vmul.f32 %v10659_v57, %v1451_v36  ;;  %v2529_v55 = vmul.f32 %v10716_v25, %v10656_v28  ;;  %8641 = vrsqrt.f32 %v10713_v2  ;;  %v1808_v36 = vadd.f32 %v10263_v14, %v1759_v59 }
 0x273   : > { %v2527_v29 = vsel %vm2526_vm2, %v10650_v12, %v2523_v20  ;;  %v1459_v43 = vmul.f32 %v10708_v47, %v1458_v4  ;;  %v1072_v20 = vsel %vm671_vm3, %v954_v53, 0.0  ;;  %vm2535_vm7 = vweird.f32 %v10716_v25 }
 0x274   : > { %v2775_v60 = vmul.f32 %v2527_v29, %v14998_v31  ;;  %v2530_v0 = vmul.f32 %v10716_v25, %v2529_v55  ;;  %v1456_v39 = vsel %vm1455_vm5, %v10659_v57, %v1452_v8  ;;  %v2156_v55 = vsel %vm671_vm3, %v10670_v41, 0.0 }
 0x275   : > { %v1460_v23 = vmul.f32 0.5, %v1459_v43  ;;  %v2143_v12 = vpop.xlane.xlu2 %2142  ;;  %v785_v50 = vpop.xlane.xlu0 %784  ;;  %v1711_v4 = vmul.f32 %v1456_v39, %v9903_v45  ;;  %v1856_v8 = vmax.f32 %v1808_v36, 0.0  ;;  %799 = vadd.xlane.f32.xlu2 %v798_v51  ;;  %vm1463_vm8 = vweird.f32 %v10654_v56 }
 0x276   : > { %v2531_v44 = vmul.f32 0.5, %v2530_v0  ;;  %v2207_v15 = vmul.f32 %v2143_v12, %v9282_v58  ;;  %v10756_v29 = vpop.f32.mrf.mxu1  ;;  %v2807_v31 = vmul.f32 %v10243_v32, %v2775_v60  ;;  %vm2534_vm9 = vweird.f32 %v10656_v28  ;;  %vm1465_vm10 = vmor %vm1463_vm8, %vm1464_vm6 }
 0x277   : > { %14999 = vst [vmem:[#allocation25_spill] sm:$0xff] %v10756_v29  ;;  %v1461_v57 = vsub.f32 1.5, %v1460_v23  ;;  %v1760_v43 = vmul.f32 %v10243_v32, %v1711_v4  ;;  %8110 = vmatmul.msk.f32.gmra.mxu2 %vm671_vm3, %v1856_v8  ;;  %8158 = vmatmul.msk.f32.gmra.mxu3 %vm671_vm3, %v1856_v8  ;;  %vm2536_vm11 = vmor %vm2534_vm9, %vm2535_vm7  ;;  %vm1473_vm13 = vweird.f32 %v10713_v2 }
 0x278   : > { %v8642_v53 = vpop.eup %8641  ;;  %v2532_v59 = vsub.f32 1.5, %v2531_v44  ;;  %v10763_v45 = vsub.f32 %v10009_v48, %v2207_v15  ;;  %v10766_v0 = vadd.f32 %v10263_v14, %v2807_v31  ;;  %v860_v44 = vmul.f32 %v9282_v58, %v785_v50  ;;  %1073 = vadd.xlane.f32.xlu0 %v1072_v20  ;;  %2157 = vadd.xlane.f32.xlu1 %v2156_v55  ;;  %v10794_v15 = vpop.f32.mrf.mxu0 }
 0x279   : > { %v1462_v39 = vmul.f32 %v10708_v47, %v1461_v57  ;;  %v1468_v60 = vmul.f32 %v8642_v53, %v10713_v2  ;;  %v1809_v51 = vadd.f32 %v10263_v14, %v1760_v43  ;;  %v859_v50 = vmul.f32 %v9282_v58, %v10695_v37 }
 0x27a   : > { %15000 = vst [vmem:[#allocation31_spill] sm:$0xff] %v10766_v0  ;;  %v2533_v48 = vmul.f32 %v10716_v25, %v2532_v59  ;;  %v14844_v56 = vmax.f32 %v10766_v0, 0.0  ;;  %v2271_v23 = vmul.f32 %v10763_v45, %v10763_v45  ;;  %v2159_v20 = vsel %vm671_vm3, %v10736_v35, 0.0 }
 0x27b   : > { %v1469_v28 = vmul.f32 %v8642_v53, %v1468_v60  ;;  %v1466_v36 = vsel %vm1465_vm10, %v10708_v47, %v1462_v39  ;;  %v1857_v47 = vmax.f32 %v1809_v51, 0.0  ;;  %v801_v37 = vsel %vm671_vm3, %v10794_v15, 0.0  ;;  %v15002_v51 = vld [vmem:[#allocation22_spill] sm:$0xff] }
 0x27c   : > { %v2537_v12 = vsel %vm2536_vm11, %v10716_v25, %v2533_v48  ;;  %8190 = vmatmul.msk.f32.gmra.mxu1 %vm671_vm3, %v14844_v56  ;;  %v1712_v4 = vmul.f32 %v1466_v36, %v9933_v6  ;;  %v10798_v25 = vsub.f32 %v10028_v61, %v860_v44  ;;  %vm1474_vm12 = vweird.f32 %v8642_v53 }
 0x27d   : > { %v2776_v55 = vmul.f32 %v2537_v12, %v9929_v9  ;;  %v1470_v31 = vmul.f32 0.5, %v1469_v28  ;;  %v2146_v59 = vpop.xlane.xlu0 %2145  ;;  %v2333_v6 = vsel %vm671_vm3, %v2271_v23, 0.0  ;;  %2160 = vadd.xlane.f32.xlu2 %v2159_v20  ;;  %v10808_v39 = vsub.f32 %v9988_v52, %v859_v50  ;;  %vm1475_vm14 = vmor %vm1473_vm13, %vm1474_vm12 }
 0x27e   : > { %v10802_v57 = vpop.f32.mrf.mxu1  ;;  %v1761_v8 = vmul.f32 %v10243_v32, %v1712_v4  ;;  %v2208_v44 = vmul.f32 %v2146_v59, %v9282_v58  ;;  %v956_v52 = vmul.f32 %v10798_v25, %v10798_v25  ;;  %v10822_v2 = vadd.f32 %v10503_v17, %v15002_v51 }
 0x27f   : > { %v1471_v43 = vsub.f32 1.5, %v1470_v31  ;;  %v2808_v9 = vmul.f32 %v10243_v32, %v2776_v55  ;;  %8111 = vmatmul.msk.f32.gmra.mxu2 %vm671_vm3, %v1857_v47  ;;  %8159 = vmatmul.msk.f32.gmra.mxu3 %vm671_vm3, %v1857_v47  ;;  %v955_v50 = vmul.f32 %v10808_v39, %v10808_v39 }
 0x280   : > { %v1810_v60 = vadd.f32 %v10263_v14, %v1761_v8  ;;  %2334 = vadd.xlane.f32.xlu1 %v2333_v6  ;;  %802 = vadd.xlane.f32.xlu0 %v801_v37  ;;  %v10832_v20 = vsub.f32 %v10051_v7, %v2208_v44  ;;  %v1078_v4 = vsel %vm671_vm3, %v956_v52, 0.0 }
 0x281   : > { %v1472_v61 = vmul.f32 %v8642_v53, %v1471_v43  ;;  %v10815_v48 = vadd.f32 %v10263_v14, %v2808_v9  ;;  %v1075_v47 = vsel %vm671_vm3, %v955_v50, 0.0 }
 0x282   : > { %v1858_v12 = vmax.f32 %v1810_v60, 0.0  ;;  %v2272_v37 = vmul.f32 %v10832_v20, %v10832_v20 }
 0x283   : > { %15001 = vst [vmem:[#allocation32_spill] sm:$0xff] %v10815_v48  ;;  %v14843_v28 = vmax.f32 %v10815_v48, 0.0  ;;  %v1476_v23 = vsel %vm1475_vm14, %v8642_v53, %v1472_v61  ;;  %v10840_v53 = vpop.f32.mrf.mxu0 }
 0x284   : > { %v1713_v36 = vmul.f32 %v1476_v23, %v9974_v24  ;;  %v2162_v24 = vsel %vm671_vm3, %v10822_v2, 0.0  ;;  %v2336_v43 = vsel %vm671_vm3, %v2272_v37, 0.0  ;;  %v804_v9 = vsel %vm671_vm3, %v10840_v53, 0.0 }
 0x285   : > { %8191 = vmatmul.msk.f32.gmra.mxu1 %vm671_vm3, %v14843_v28  ;;  %1079 = vadd.xlane.f32.xlu2 %v1078_v4  ;;  %v1056_v51 = vpop.xlane.xlu0 %1055 }
 0x286   : > { %v10835_v55 = vpop.f32.mrf.mxu1  ;;  %v1762_v31 = vmul.f32 %v10243_v32, %v1713_v36  ;;  %v1053_v32 = vpop.xlane.xlu2 %1052  ;;  %v1140_v50 = vmul.f32 %v1056_v51, %v9282_v58 }
 0x287   : > { %8112 = vmatmul.msk.f32.gmra.mxu2 %vm671_vm3, %v1858_v12  ;;  %8160 = vmatmul.msk.f32.gmra.mxu3 %vm671_vm3, %v1858_v12  ;;  %v1139_v6 = vmul.f32 %v1053_v32, %v9282_v58 }
 0x288   : > { %v1811_v7 = vadd.f32 %v10263_v14, %v1762_v31  ;;  %1076 = vadd.xlane.f32.xlu1 %v1075_v47  ;;  %2163 = vadd.xlane.f32.xlu0 %v2162_v24  ;;  %v15003_v14 = vld [vmem:[#allocation23_spill] sm:$0xff]  ;;  %v10873_v24 = vadd.f32 1e-05, %v1140_v50 }
 0x289   : > { %v10858_v61 = vadd.f32 %v10503_v17, %v15003_v14  ;;  %v10862_v44 = vadd.f32 1e-05, %v1139_v6 }
 0x28a   : > { %v1859_v8 = vmax.f32 %v1811_v7, 0.0  ;;  %vm1503_vm11 = vweird.f32 %v10873_v24 }
 0x28b   : > { %v10860_v60 = vpop.f32.mrf.mxu0  ;;  %8643 = vrsqrt.f32 %v10862_v44  ;;  %v2165_v36 = vsel %vm671_vm3, %v10858_v61, 0.0  ;;  %vm1493_vm6 = vweird.f32 %v10862_v44 }
 0x28c   : > { %v807_v52 = vsel %vm671_vm3, %v10860_v60, 0.0 }
 0x28d   : > { %2337 = vadd.xlane.f32.xlu2 %v2336_v43 }
 0x28e   : > { %v10849_v59 = vpop.f32.mrf.mxu1 }
 0x28f   : > { %8113 = vmatmul.msk.f32.gmra.mxu2 %vm671_vm3, %v1859_v8  ;;  %8161 = vmatmul.msk.f32.gmra.mxu3 %vm671_vm3, %v1859_v8 }
 0x290   : > { %805 = vadd.xlane.f32.xlu1 %v804_v9 }
 0x291   : > { %v10875_v47 = vpop.eup %8643 }
 0x292   : > { %v1488_v32 = vmul.f32 %v10875_v47, %v10862_v44  ;;  %vm1494_vm4 = vweird.f32 %v10875_v47 }
 0x293   : > { %vm1495_vm7 = vmor %vm1493_vm6, %vm1494_vm4 }
 0x294   : > { %v1489_v14 = vmul.f32 %v10875_v47, %v1488_v32 }
 0x295   : > { %808 = vadd.xlane.f32.xlu2 %v807_v52 }
 0x296   : > { %v10866_v23 = vpop.f32.mrf.mxu1 }
 0x297   : > { %15004 = vst [vmem:[#allocation22_spill] sm:$0xff] %v10866_v23 }
 0x298   : > { %v2317_v12 = vpop.xlane.xlu1 %2316  ;;  %2166 = vadd.xlane.f32.xlu1 %v2165_v36 }
 0x299   : > { %v2393_v4 = vmul.f32 %v2317_v12, %v9282_v58 }
 0x29b   : > { %v2425_v31 = vadd.f32 1e-05, %v2393_v4  ;;  %v1490_v4 = vmul.f32 0.5, %v1489_v14 }
 0x29d   : > { %8645 = vrsqrt.f32 %v2425_v31  ;;  %vm2544_vm0 = vweird.f32 %v2425_v31  ;;  %v1491_v48 = vsub.f32 1.5, %v1490_v4 }
 0x29e   : > { %v10877_v7 = vpop.f32.mrf.mxu1  ;;  %8647 = vrsqrt.f32 %v10873_v24 }
 0x29f   : > { %15005 = vst [vmem:[#allocation23_spill] sm:$0xff] %v10877_v7 }
 0x2a0   : > { %v1050_v37 = vpop.xlane.xlu1 %1049 }
 0x2a1   : > { %v1138_v8 = vmul.f32 %v1050_v37, %v9282_v58 }
 0x2a3   : > { %v8646_v43 = vpop.eup %8645  ;;  %v1186_v6 = vadd.f32 1e-05, %v1138_v8 }
 0x2a4   : > { %v2539_v9 = vmul.f32 %v8646_v43, %v2425_v31  ;;  %v10884_v51 = vpop.eup %8647  ;;  %vm2545_vm15 = vweird.f32 %v8646_v43  ;;  %v1492_v31 = vmul.f32 %v10875_v47, %v1491_v48  ;;  %v10917_v48 = vld [vmem:[%s14808_s2 + $0x60] ss:$0 sm:$0xff] }
 0x2a5   : > { %8649 = vrsqrt.f32 %v1186_v6  ;;  %v1498_v56 = vmul.f32 %v10884_v51, %v10873_v24  ;;  %vm2546_vm2 = vmor %vm2544_vm0, %vm2545_vm15  ;;  %vm1483_vm8 = vweird.f32 %v1186_v6  ;;  %vm1504_vm10 = vweird.f32 %v10884_v51 }
 0x2a6   : > { %v2540_v52 = vmul.f32 %v8646_v43, %v2539_v9  ;;  %v10886_v36 = vpop.f32.mrf.mxu1  ;;  %vm10947_vm12 = vmor %vm1503_vm11, %vm1504_vm10 }
 0x2a7   : > { %15006 = vst [vmem:[#allocation33_spill] sm:$0xff] %v10886_v36  ;;  %v1499_v14 = vmul.f32 %v10884_v51, %v1498_v56  ;;  %v10907_v56 = vld [vmem:[%s14808_s2 + $0x58] ss:$0 sm:$0xff] }
 0x2a8   : > { %v2541_v12 = vmul.f32 0.5, %v2540_v52  ;;  %v788_v50 = vpop.xlane.xlu1 %787 }
 0x2a9   : > { %v861_v28 = vmul.f32 %v9282_v58, %v788_v50 }
 0x2aa   : > { %v2542_v37 = vsub.f32 1.5, %v2541_v12 }
 0x2ab   : > { %v8650_v8 = vpop.eup %8649  ;;  %v10892_v40 = vsub.f32 %v10231_v34, %v861_v28 }
 0x2ac   : > { %v2543_v32 = vmul.f32 %v8646_v43, %v2542_v37  ;;  %v1478_v9 = vmul.f32 %v8650_v8, %v1186_v6  ;;  %vm1484_vm5 = vweird.f32 %v8650_v8 }
 0x2ad   : > { %v957_v52 = vmul.f32 %v10892_v40, %v10892_v40  ;;  %vm1485_vm9 = vmor %vm1483_vm8, %vm1484_vm5 }
 0x2ae   : > { %v2547_v50 = vsel %vm2546_vm2, %v8646_v43, %v2543_v32  ;;  %v1479_v36 = vmul.f32 %v8650_v8, %v1478_v9  ;;  %v10898_v12 = vpop.f32.mrf.mxu1  ;;  %v1500_v43 = vmul.f32 0.5, %v1499_v14 }
 0x2af   : > { %v2777_v7 = vmul.f32 %v2547_v50, %v10203_v54  ;;  %v1081_v0 = vsel %vm671_vm3, %v957_v52, 0.0 }
 0x2b0   : > { %v1480_v34 = vmul.f32 0.5, %v1479_v36  ;;  %v2149_v28 = vpop.xlane.xlu1 %2148  ;;  %1082 = vadd.xlane.f32.xlu0 %v1081_v0  ;;  %v1501_v9 = vsub.f32 1.5, %v1500_v43 }
 0x2b1   : > { %v2209_v4 = vmul.f32 %v2149_v28, %v9282_v58  ;;  %v2809_v54 = vmul.f32 %v10907_v56, %v2777_v7 }
 0x2b2   : > { %v1481_v37 = vsub.f32 1.5, %v1480_v34 }
 0x2b3   : > { %v10912_v0 = vsub.f32 %v10319_v10, %v2209_v4  ;;  %v10920_v36 = vadd.f32 %v10917_v48, %v2809_v54  ;;  %v1496_v10 = vsel %vm1495_vm7, %v10875_v47, %v1492_v31 }
 0x2b4   : > { %v1482_v32 = vmul.f32 %v8650_v8, %v1481_v37  ;;  %v1715_v28 = vmul.f32 %v1496_v10, %v10040_v30 }
 0x2b5   : > { %15007 = vst [vmem:[#allocation34_spill] sm:$0xff] %v10920_v36  ;;  %v14848_v7 = vmax.f32 %v10920_v36, 0.0  ;;  %v2273_v44 = vmul.f32 %v10912_v0, %v10912_v0 }
 0x2b6   : > { %v1486_v52 = vsel %vm1485_vm9, %v8650_v8, %v1482_v32  ;;  %v3493_v14 = vpop.f32.mrf.mxu1  ;;  %v1502_v8 = vmul.f32 %v10884_v51, %v1501_v9  ;;  %v1764_v10 = vmul.f32 %v10907_v56, %v1715_v28 }
 0x2b7   : > { %8192 = vmatmul.msk.f32.gmra.mxu1 %vm671_vm3, %v14848_v7  ;;  %v2339_v50 = vsel %vm671_vm3, %v2273_v44, 0.0  ;;  %v1714_v34 = vmul.f32 %v1486_v52, %v10225_v21  ;;  %v10941_v44 = vpop.f32.mrf.mxu0 }
 0x2b8   : > { %v2320_v6 = vpop.xlane.xlu2 %2319  ;;  %2340 = vadd.xlane.f32.xlu0 %v2339_v50  ;;  %v1059_v43 = vpop.xlane.xlu1 %1058  ;;  %v1506_v24 = vsel %vm10947_vm12, %v10884_v51, %v1502_v8 }
 0x2b9   : > { %v2394_v4 = vmul.f32 %v2320_v6, %v9282_v58  ;;  %v2323_v54 = vpop.xlane.xlu0 %2322  ;;  %v1763_v47 = vmul.f32 %v10907_v56, %v1714_v34  ;;  %v1141_v21 = vmul.f32 %v1059_v43, %v9282_v58  ;;  %v810_v34 = vsel %vm671_vm3, %v10941_v44, 0.0 }
 0x2ba   : > { %v2395_v31 = vmul.f32 %v2323_v54, %v9282_v58 }
 0x2bb   : > { %v10937_v37 = vadd.f32 1e-05, %v2394_v4  ;;  %v1812_v32 = vadd.f32 %v10917_v48, %v1763_v47  ;;  %v10952_v52 = vadd.f32 1e-05, %v1141_v21  ;;  %v1813_v47 = vadd.f32 %v10917_v48, %v1764_v10 }
 0x2bc   : > { %v10944_v30 = vadd.f32 1e-05, %v2395_v31  ;;  %v15010_v31 = vld [vmem:[#allocation30_spill] sm:$0xff] }
 0x2bd   : > { %8651 = vrsqrt.f32 %v10937_v37  ;;  %v1860_v50 = vmax.f32 %v1812_v32, 0.0  ;;  %v1716_v43 = vmul.f32 %v1506_v24, %v15010_v31  ;;  %v1861_v10 = vmax.f32 %v1813_v47, 0.0 }
 0x2be   : > { %8653 = vrsqrt.f32 %v10944_v30  ;;  %v3496_v6 = vpop.f32.mrf.mxu1  ;;  %vm2554_vm14 = vweird.f32 %v10937_v37  ;;  %vm2564_vm4 = vweird.f32 %v10944_v30  ;;  %vm1513_vm6 = vweird.f32 %v10952_v52 }
 0x2bf   : > { %8655 = vrsqrt.f32 %v10952_v52  ;;  %8114 = vmatmul.msk.f32.gmra.mxu2 %vm671_vm3, %v1860_v50  ;;  %8162 = vmatmul.msk.f32.gmra.mxu3 %vm671_vm3, %v1860_v50 }
 0x2c0   : > { %8247 = vmatpush.xpose.msk.msrb.mxu3 %vm671_vm3, %v3496_v6  ;;  %v791_v28 = vpop.xlane.xlu2 %790  ;;  %811 = vadd.xlane.f32.xlu0 %v810_v34 }
 0x2c1   : > { %v862_v4 = vmul.f32 %v9282_v58, %v791_v28  ;;  %v794_v54 = vpop.xlane.xlu0 %793  ;;  %v1765_v28 = vmul.f32 %v10907_v56, %v1716_v43  ;;  %v15011_v43 = vld [vmem:[#allocation24_spill] sm:$0xff] }
 0x2c2   : > { %v863_v51 = vmul.f32 %v9282_v58, %v794_v54 }
 0x2c3   : > { %v8652_v8 = vpop.eup %8651  ;;  %v10969_v21 = vsub.f32 %v10287_v27, %v862_v4  ;;  %v1814_v49 = vadd.f32 %v10917_v48, %v1765_v28 }
 0x2c4   : > { %v8654_v32 = vpop.eup %8653  ;;  %v2549_v9 = vmul.f32 %v8652_v8, %v10937_v37  ;;  %v10973_v50 = vsub.f32 %v10335_v38, %v863_v51  ;;  %8248 = vmatpush.xpose.msk.msrb.mxu3 %vm671_vm3, %v3493_v14  ;;  %vm2555_vm13 = vweird.f32 %v8652_v8 }
 0x2c5   : > { %v8656_v34 = vpop.eup %8655  ;;  %v2559_v6 = vmul.f32 %v8654_v32, %v10944_v30  ;;  %v958_v24 = vmul.f32 %v10969_v21, %v10969_v21  ;;  %vm2565_vm15 = vweird.f32 %v8654_v32  ;;  %vm2556_vm2 = vmor %vm2554_vm14, %vm2555_vm13  ;;  %v1862_v28 = vmax.f32 %v1814_v49, 0.0 }
 0x2c6   : > { %v2550_v54 = vmul.f32 %v8652_v8, %v2549_v9  ;;  %v1508_v27 = vmul.f32 %v8656_v34, %v10952_v52  ;;  %v959_v4 = vmul.f32 %v10973_v50, %v10973_v50  ;;  %v3499_v38 = vpop.f32.mrf.mxu1  ;;  %v10989_v9 = vadd.f32 %v10503_v17, %v15011_v43  ;;  %vm2566_vm5 = vmor %vm2564_vm4, %vm2565_vm15 }
 0x2c7   : > { %v2560_v31 = vmul.f32 %v8654_v32, %v2559_v6  ;;  %8115 = vmatmul.msk.f32.gmra.mxu2 %vm671_vm3, %v1861_v10  ;;  %8163 = vmatmul.msk.f32.gmra.mxu3 %vm671_vm3, %v1861_v10  ;;  %v1084_v14 = vsel %vm671_vm3, %v958_v24, 0.0  ;;  %vm1514_vm0 = vweird.f32 %v8656_v34 }
 0x2c8   : > { %v2551_v47 = vmul.f32 0.5, %v2550_v54  ;;  %v1509_v51 = vmul.f32 %v8656_v34, %v1508_v27  ;;  %1085 = vadd.xlane.f32.xlu1 %v1084_v14  ;;  %v1087_v7 = vsel %vm671_vm3, %v959_v4, 0.0  ;;  %v1062_v23 = vpop.xlane.xlu2 %1061  ;;  %vm1515_vm7 = vmor %vm1513_vm6, %vm1514_vm0 }
 0x2c9   : > { %v2561_v36 = vmul.f32 0.5, %v2560_v31  ;;  %v1065_v6 = vpop.xlane.xlu0 %1064  ;;  %1088 = vadd.xlane.f32.xlu2 %v1087_v7  ;;  %v1142_v24 = vmul.f32 %v1062_v23, %v9282_v58  ;;  %v2168_v23 = vsel %vm671_vm3, %v10989_v9, 0.0 }
 0x2ca   : > { %v2552_v29 = vsub.f32 1.5, %v2551_v47  ;;  %v1510_v10 = vmul.f32 0.5, %v1509_v51  ;;  %v1143_v54 = vmul.f32 %v1065_v6, %v9282_v58 }
 0x2cb   : > { %v2562_v27 = vsub.f32 1.5, %v2561_v36  ;;  %v10995_v14 = vadd.f32 1e-05, %v1142_v24 }
 0x2cc   : > { %v2553_v17 = vmul.f32 %v8652_v8, %v2552_v29  ;;  %v1511_v4 = vsub.f32 1.5, %v1510_v10  ;;  %v10997_v31 = vadd.f32 1e-05, %v1143_v54 }
 0x2cd   : > { %v2563_v7 = vmul.f32 %v8654_v32, %v2562_v27  ;;  %8657 = vrsqrt.f32 %v10995_v14  ;;  %vm1523_vm9 = vweird.f32 %v10995_v14 }
 0x2ce   : > { %v2557_v47 = vsel %vm2556_vm2, %v8652_v8, %v2553_v17  ;;  %v1512_v36 = vmul.f32 %v8656_v34, %v1511_v4  ;;  %8659 = vrsqrt.f32 %v10997_v31  ;;  %v3502_v51 = vpop.f32.mrf.mxu1  ;;  %vm1533_vm12 = vweird.f32 %v10997_v31 }
 0x2cf   : > { %v2778_v29 = vmul.f32 %v2557_v47, %v10375_v42  ;;  %v2567_v37 = vsel %vm2566_vm5, %v8654_v32, %v2563_v7  ;;  %8116 = vmatmul.msk.f32.gmra.mxu2 %vm671_vm3, %v1862_v28  ;;  %8164 = vmatmul.msk.f32.gmra.mxu3 %vm671_vm3, %v1862_v28 }
 0x2d0   : > { %8252 = vmatpush.xpose.msk.msra.mxu0 %vm671_vm3, %v3502_v51  ;;  %v1516_v49 = vsel %vm1515_vm7, %v8656_v34, %v1512_v36  ;;  %v2779_v30 = vmul.f32 %v2567_v37, %v10383_v5  ;;  %v2152_v52 = vpop.xlane.xlu2 %2151  ;;  %v15013_v36 = vld [vmem:[#allocation3_spill] sm:$0xff] }
 0x2d1   : > { %v2155_v8 = vpop.xlane.xlu0 %2154  ;;  %2169 = vadd.xlane.f32.xlu2 %v2168_v23  ;;  %v1717_v42 = vmul.f32 %v1516_v49, %v10353_v33  ;;  %v2810_v32 = vmul.f32 %v10907_v56, %v2778_v29  ;;  %v2210_v43 = vmul.f32 %v2152_v52, %v9282_v58 }
 0x2d2   : > { %v2211_v6 = vmul.f32 %v2155_v8, %v9282_v58  ;;  %v2811_v28 = vmul.f32 %v10907_v56, %v2779_v30 }
 0x2d3   : > { %v1766_v10 = vmul.f32 %v10907_v56, %v1717_v42  ;;  %v11018_v24 = vadd.f32 %v10917_v48, %v2810_v32  ;;  %v8658_v54 = vpop.eup %8657  ;;  %v11021_v34 = vsub.f32 %v10507_v62, %v2210_v43  ;;  %v2326_v17 = vpop.xlane.xlu1 %2325 }
 0x2d4   : > { %v11024_v5 = vsub.f32 %v10511_v16, %v2211_v6  ;;  %8253 = vmatpush.xpose.msk.msra.mxu0 %vm671_vm3, %v3499_v38  ;;  %v8660_v33 = vpop.eup %8659  ;;  %v1518_v27 = vmul.f32 %v8658_v54, %v10995_v14  ;;  %v2396_v62 = vmul.f32 %v2326_v17, %v9282_v58  ;;  %v11049_v8 = vadd.f32 %v10917_v48, %v2811_v28 }
 0x2d5   : > { %15012 = vst [vmem:[#allocation30_spill] sm:$0xff] %v11018_v24  ;;  %v1815_v4 = vadd.f32 %v10917_v48, %v1766_v10  ;;  %v14852_v7 = vmax.f32 %v11018_v24, 0.0  ;;  %v1528_v23 = vmul.f32 %v8660_v33, %v10997_v31  ;;  %v2274_v16 = vmul.f32 %v11021_v34, %v11021_v34  ;;  %v15016_v31 = vld [vmem:[#allocation4_spill] sm:$0xff] }
 0x2d6   : > { %v1519_v47 = vmul.f32 %v8658_v54, %v1518_v27  ;;  %v2275_v29 = vmul.f32 %v11024_v5, %v11024_v5  ;;  %v11042_v51 = vadd.f32 1e-05, %v2396_v62  ;;  %15014 = vst [vmem:[#allocation24_spill] sm:$0xff] %v11049_v8  ;;  %vm1524_vm8 = vweird.f32 %v8658_v54  ;;  %v3505_v17 = vpop.f32.mrf.mxu1 }
 0x2d7   : > { %8254 = vmatmul.msk.f32.vlgmr.msra.gmra.mxu0 %vm671_vm3, %v15013_v36  ;;  %v1863_v38 = vmax.f32 %v1815_v4, 0.0  ;;  %8193 = vmatmul.msk.f32.gmra.mxu1 %vm671_vm3, %v14852_v7  ;;  %v1529_v37 = vmul.f32 %v8660_v33, %v1528_v23  ;;  %v2342_v49 = vsel %vm671_vm3, %v2274_v16, 0.0  ;;  %vm1534_vm10 = vweird.f32 %v8660_v33  ;;  %v11055_v23 = vpop.f32.mrf.mxu0  ;;  %vm1525_vm11 = vmor %vm1523_vm9, %vm1524_vm8  ;;  %v15015_v36 = vld [vmem:[#allocation10_spill] sm:$0xff] }
 0x2d8   : > { %v1520_v30 = vmul.f32 0.5, %v1519_v47  ;;  %v2345_v52 = vsel %vm671_vm3, %v2275_v29, 0.0  ;;  %8661 = vrsqrt.f32 %v11042_v51  ;;  %2343 = vadd.xlane.f32.xlu1 %v2342_v49  ;;  %v2329_v43 = vpop.xlane.xlu2 %2328  ;;  %v14851_v28 = vmax.f32 %v11049_v8, 0.0  ;;  %vm1535_vm13 = vmor %vm1533_vm12, %vm1534_vm10 }
 0x2d9   : > { %8117 = vmatmul.msk.f32.gmra.mxu2 %vm671_vm3, %v1863_v38  ;;  %8165 = vmatmul.msk.f32.gmra.mxu3 %vm671_vm3, %v1863_v38  ;;  %v1530_v42 = vmul.f32 0.5, %v1529_v37  ;;  %v2397_v10 = vmul.f32 %v2329_v43, %v9282_v58  ;;  %v813_v14 = vsel %vm671_vm3, %v11055_v23, 0.0  ;;  %vm2574_vm15 = vweird.f32 %v11042_v51 }
 0x2da   : > { %2346 = vadd.xlane.f32.xlu2 %v2345_v52  ;;  %v1521_v32 = vsub.f32 1.5, %v1520_v30 }
 0x2db   : > { %v1531_v6 = vsub.f32 1.5, %v1530_v42  ;;  %v797_v4 = vpop.xlane.xlu1 %796  ;;  %v11057_v16 = vadd.f32 1e-05, %v2397_v10 }
 0x2dc   : > { %v1522_v27 = vmul.f32 %v8658_v54, %v1521_v32  ;;  %v864_v47 = vmul.f32 %v9282_v58, %v797_v4 }
 0x2dd   : > { %v1532_v62 = vmul.f32 %v8660_v33, %v1531_v6  ;;  %8663 = vrsqrt.f32 %v11057_v16  ;;  %vm2584_vm4 = vweird.f32 %v11057_v16 }
 0x2de   : > { %v1526_v38 = vsel %vm1525_vm11, %v8658_v54, %v1522_v27  ;;  %v8662_v29 = vpop.eup %8661  ;;  %v11071_v37 = vsub.f32 %v10615_v3, %v864_v47  ;;  %v15017_v54 = vld [vmem:[#allocation14_spill] sm:$0xff] }
 0x2df   : > { %8255 = vmatmul.msk.f32.gmra.mxu0 %vm671_vm3, %v15015_v36  ;;  %8194 = vmatmul.msk.f32.gmra.mxu1 %vm671_vm3, %v14851_v28  ;;  %v1718_v49 = vmul.f32 %v1526_v38, %v15016_v31  ;;  %v2569_v30 = vmul.f32 %v8662_v29, %v11042_v51  ;;  %v1536_v52 = vsel %vm1535_vm13, %v8660_v33, %v1532_v62  ;;  %v11085_v33 = vld [vmem:[%s14808_s2 + $0x50] ss:$0 sm:$0xff]  ;;  %v15018_v62 = vld [vmem:[#allocation26_spill] sm:$0xff]  ;;  %vm2575_vm14 = vweird.f32 %v8662_v29  ;;  %v15021_v51 = vld [vmem:[#allocation19_spill] sm:$0xff] }
 0x2e0   : > { %v960_v42 = vmul.f32 %v11071_v37, %v11071_v37  ;;  %814 = vadd.xlane.f32.xlu1 %v813_v14  ;;  %v1719_v43 = vmul.f32 %v1536_v52, %v15017_v54  ;;  %v1071_v10 = vpop.xlane.xlu2 %1070  ;;  %v11089_v47 = vadd.f32 %v11085_v33, %v15018_v62  ;;  %v15019_v62 = vld [vmem:[#allocation13_spill] sm:$0xff]  ;;  %vm2576_vm0 = vmor %vm2574_vm15, %vm2575_vm14 }
 0x2e1   : > { %v1767_v32 = vmul.f32 %v10907_v56, %v1718_v49  ;;  %v2570_v6 = vmul.f32 %v8662_v29, %v2569_v30  ;;  %v1145_v27 = vmul.f32 %v1071_v10, %v9282_v58 }
 0x2e2   : > { %v1090_v3 = vsel %vm671_vm3, %v960_v42, 0.0  ;;  %v2332_v14 = vpop.xlane.xlu0 %2331 }
 0x2e3   : > { %v1816_v4 = vadd.f32 %v10917_v48, %v1767_v32  ;;  %v2571_v36 = vmul.f32 0.5, %v2570_v6  ;;  %1091 = vadd.xlane.f32.xlu0 %v1090_v3  ;;  %v3508_v38 = vpop.f32.mrf.mxu1  ;;  %v8664_v31 = vpop.eup %8663  ;;  %v11091_v49 = vadd.f32 1e-05, %v1145_v27  ;;  %v2398_v30 = vmul.f32 %v2332_v14, %v9282_v58 }
 0x2e4   : > { %v1068_v52 = vpop.xlane.xlu1 %1067  ;;  %8257 = vmatpush.xpose.msk.msra.mxu3 %vm671_vm3, %v3508_v38  ;;  %v1768_v32 = vmul.f32 %v10907_v56, %v1719_v43  ;;  %v2579_v10 = vmul.f32 %v8664_v31, %v11057_v16  ;;  %vm2585_vm2 = vweird.f32 %v8664_v31 }
 0x2e5   : > { %v1864_v42 = vmax.f32 %v1816_v4, 0.0  ;;  %v2572_v54 = vsub.f32 1.5, %v2571_v36  ;;  %8665 = vrsqrt.f32 %v11091_v49  ;;  %v11100_v6 = vadd.f32 1e-05, %v2398_v30  ;;  %vm2586_vm5 = vmor %vm2584_vm4, %vm2585_vm2 }
 0x2e6   : > { %v1144_v27 = vmul.f32 %v1068_v52, %v9282_v58  ;;  %v2580_v43 = vmul.f32 %v8664_v31, %v2579_v10  ;;  %v2171_v36 = vsel %vm671_vm3, %v11089_v47, 0.0  ;;  %v1817_v14 = vadd.f32 %v10917_v48, %v1768_v32 }
 0x2e7   : > { %8256 = vmatmul.msk.f32.gmra.mxu0 %vm671_vm3, %v15019_v62  ;;  %8118 = vmatmul.msk.f32.gmra.mxu2 %vm671_vm3, %v1864_v42  ;;  %v2573_v3 = vmul.f32 %v8662_v29, %v2572_v54  ;;  %8667 = vrsqrt.f32 %v11100_v6  ;;  %vm2594_vm6 = vweird.f32 %v11100_v6  ;;  %vm1553_vm10 = vweird.f32 %v11091_v49 }
 0x2e8   : > { %8166 = vmatmul.msk.f32.gmra.mxu3 %vm671_vm3, %v1864_v42  ;;  %v11107_v4 = vadd.f32 1e-05, %v1144_v27  ;;  %v2581_v30 = vmul.f32 0.5, %v2580_v43  ;;  %v800_v52 = vpop.xlane.xlu2 %799  ;;  %v15020_v42 = vld [vmem:[#allocation27_spill] sm:$0xff] }
 0x2e9   : > { %8258 = vmatpush.xpose.msk.msra.mxu3 %vm671_vm3, %v3505_v17  ;;  %v2577_v38 = vsel %vm2576_vm0, %v8662_v29, %v2573_v3  ;;  %v11115_v54 = vadd.f32 %v11085_v33, %v15020_v42  ;;  %v865_v62 = vmul.f32 %v9282_v58, %v800_v52  ;;  %v1865_v3 = vmax.f32 %v1817_v14, 0.0 }
 0x2ea   : > { %v2780_v10 = vmul.f32 %v2577_v38, %v15021_v51  ;;  %8669 = vrsqrt.f32 %v11107_v4  ;;  %v2582_v27 = vsub.f32 1.5, %v2581_v30  ;;  %vm1543_vm13 = vweird.f32 %v11107_v4 }
 0x2eb   : > { %2172 = vadd.xlane.f32.xlu0 %v2171_v36  ;;  %v11120_v17 = vpop.eup %8665  ;;  %v1074_v28 = vpop.xlane.xlu0 %1073  ;;  %v11123_v29 = vsub.f32 %v10738_v11, %v865_v62  ;;  %v2174_v16 = vsel %vm671_vm3, %v11115_v54, 0.0 }
 0x2ec   : > { %v2158_v32 = vpop.xlane.xlu1 %2157  ;;  %v2812_v43 = vmul.f32 %v10907_v56, %v2780_v10  ;;  %v2583_v42 = vmul.f32 %v8664_v31, %v2582_v27  ;;  %v1548_v38 = vmul.f32 %v11120_v17, %v11091_v49  ;;  %v1146_v30 = vmul.f32 %v1074_v28, %v9282_v58 }
 0x2ed   : > { %v11130_v52 = vpop.eup %8667  ;;  %v2212_v36 = vmul.f32 %v2158_v32, %v9282_v58  ;;  %v961_v10 = vmul.f32 %v11123_v29, %v11123_v29  ;;  %vm1554_vm7 = vweird.f32 %v11120_v17 }
 0x2ee   : > { %v11136_v11 = vadd.f32 %v10917_v48, %v2812_v43  ;;  %v2587_v14 = vsel %vm2586_vm5, %v8664_v31, %v2583_v42  ;;  %v1549_v51 = vmul.f32 %v11120_v17, %v1548_v38  ;;  %v2589_v28 = vmul.f32 %v11130_v52, %v11100_v6  ;;  %v11153_v43 = vpop.f32.mrf.mxu1  ;;  %v15023_v42 = vld [vmem:[#allocation28_spill] sm:$0xff]  ;;  %vm11205_vm12 = vmor %vm1553_vm10, %vm1554_vm7 }
 0x2ef   : > { %8119 = vmatmul.msk.f32.gmra.mxu2 %vm671_vm3, %v1865_v3  ;;  %v2781_v27 = vmul.f32 %v2587_v14, %v10589_v18  ;;  %v11148_v32 = vadd.f32 1e-05, %v1146_v30  ;;  %v11158_v38 = vadd.f32 %v11085_v33, %v15023_v42  ;;  %vm2595_vm8 = vweird.f32 %v11130_v52 }
 0x2f0   : > { %8167 = vmatmul.msk.f32.gmra.mxu3 %vm671_vm3, %v1865_v3  ;;  %15022 = vst [vmem:[#allocation3_spill] sm:$0xff] %v11136_v11  ;;  %v11145_v62 = vpop.eup %8669  ;;  %v11151_v3 = vsub.f32 %v10670_v41, %v2212_v36  ;;  %v14857_v31 = vmax.f32 %v11136_v11, 0.0  ;;  %v1550_v7 = vmul.f32 0.5, %v1549_v51  ;;  %v2590_v8 = vmul.f32 %v11130_v52, %v2589_v28  ;;  %v2161_v18 = vpop.xlane.xlu2 %2160  ;;  %vm2596_vm11 = vmor %vm2594_vm6, %vm2595_vm8 }
 0x2f1   : > { %v1538_v24 = vmul.f32 %v11145_v62, %v11107_v4  ;;  %8671 = vrsqrt.f32 %v11148_v32  ;;  %v2213_v41 = vmul.f32 %v2161_v18, %v9282_v58  ;;  %v1093_v28 = vsel %vm671_vm3, %v961_v10, 0.0 }
 0x2f2   : > { %8195 = vmatmul.msk.f32.gmra.mxu1 %vm671_vm3, %v14857_v31  ;;  %v2276_v30 = vmul.f32 %v11151_v3, %v11151_v3  ;;  %v1551_v36 = vsub.f32 1.5, %v1550_v7  ;;  %v2591_v14 = vmul.f32 0.5, %v2590_v8  ;;  %1094 = vadd.xlane.f32.xlu1 %v1093_v28  ;;  %v2813_v18 = vmul.f32 %v10907_v56, %v2781_v27 }
 0x2f3   : > { %v1539_v51 = vmul.f32 %v11145_v62, %v1538_v24  ;;  %2175 = vadd.xlane.f32.xlu0 %v2174_v16  ;;  %v11175_v19 = vsub.f32 %v10736_v35, %v2213_v41  ;;  %v803_v11 = vpop.xlane.xlu0 %802  ;;  %vm1544_vm9 = vweird.f32 %v11145_v62  ;;  %vm1563_vm0 = vweird.f32 %v11148_v32 }
 0x2f4   : > { %v2335_v42 = vpop.xlane.xlu1 %2334  ;;  %v2348_v31 = vsel %vm671_vm3, %v2276_v30, 0.0  ;;  %v2592_v22 = vsub.f32 1.5, %v2591_v14  ;;  %v866_v8 = vmul.f32 %v9282_v58, %v803_v11  ;;  %v11184_v35 = vadd.f32 %v10917_v48, %v2813_v18  ;;  %vm1545_vm14 = vmor %vm1543_vm13, %vm1544_vm9 }
 0x2f5   : > { %v1540_v7 = vmul.f32 0.5, %v1539_v51  ;;  %v2399_v24 = vmul.f32 %v2335_v42, %v9282_v58  ;;  %2349 = vadd.xlane.f32.xlu2 %v2348_v31  ;;  %v2277_v16 = vmul.f32 %v11175_v19, %v11175_v19  ;;  %v1552_v10 = vmul.f32 %v11120_v17, %v1551_v36 }
 0x2f6   : > { %v2593_v27 = vmul.f32 %v11130_v52, %v2592_v22  ;;  %v11198_v11 = vsub.f32 %v10794_v15, %v866_v8  ;;  %v14865_v31 = vmax.f32 %v11184_v35, 0.0  ;;  %v2177_v36 = vsel %vm671_vm3, %v11158_v38, 0.0 }
 0x2f7   : > { %v1541_v41 = vsub.f32 1.5, %v1540_v7  ;;  %v11190_v30 = vadd.f32 1e-05, %v2399_v24  ;;  %v11192_v14 = vpop.eup %8671  ;;  %v2351_v4 = vsel %vm671_vm3, %v2277_v16, 0.0  ;;  %v1556_v24 = vsel %vm11205_vm12, %v11120_v17, %v1552_v10 }
 0x2f8   : > { %v2597_v49 = vsel %vm2596_vm11, %v11130_v52, %v2593_v27  ;;  %v1558_v15 = vmul.f32 %v11192_v14, %v11148_v32  ;;  %v1080_v28 = vpop.xlane.xlu2 %1079  ;;  %v962_v7 = vmul.f32 %v11198_v11, %v11198_v11  ;;  %vm1564_vm15 = vweird.f32 %v11192_v14 }
 0x2f9   : > { %v3514_v51 = vpop.f32.mrf.mxu1  ;;  %v1542_v6 = vmul.f32 %v11145_v62, %v1541_v41  ;;  %v2782_v42 = vmul.f32 %v2597_v49, %v10665_v26  ;;  %8673 = vrsqrt.f32 %v11190_v30  ;;  %v1148_v52 = vmul.f32 %v1080_v28, %v9282_v58  ;;  %vm11261_vm2 = vmor %vm1563_vm0, %vm1564_vm15 }
 0x2fa   : > { %8262 = vmatpush.xpose.msk.msrb.mxu0 %vm671_vm3, %v3514_v51  ;;  %8196 = vmatmul.msk.f32.gmra.mxu1 %vm671_vm3, %v14865_v31  ;;  %v1559_v18 = vmul.f32 %v11192_v14, %v1558_v15  ;;  %v1721_v17 = vmul.f32 %v1556_v24, %v10606_v1  ;;  %vm2604_vm5 = vweird.f32 %v11190_v30 }
 0x2fb   : > { %2178 = vadd.xlane.f32.xlu0 %v2177_v36  ;;  %v1546_v26 = vsel %vm1545_vm14, %v11145_v62, %v1542_v6  ;;  %v11231_v27 = vadd.f32 1e-05, %v1148_v52  ;;  %v2164_v41 = vpop.xlane.xlu0 %2163  ;;  %v2814_v16 = vmul.f32 %v10907_v56, %v2782_v42  ;;  %v1096_v62 = vsel %vm671_vm3, %v962_v7, 0.0 }
 0x2fc   : > { %v1077_v8 = vpop.xlane.xlu1 %1076  ;;  %v1720_v51 = vmul.f32 %v1546_v26, %v10629_v63  ;;  %v1560_v49 = vmul.f32 0.5, %v1559_v18  ;;  %v2214_v15 = vmul.f32 %v2164_v41, %v9282_v58  ;;  %1097 = vadd.xlane.f32.xlu1 %v1096_v62  ;;  %v1770_v26 = vmul.f32 %v10907_v56, %v1721_v17 }
 0x2fd   : > { %v1147_v36 = vmul.f32 %v1077_v8, %v9282_v58  ;;  %2352 = vadd.xlane.f32.xlu2 %v2351_v4  ;;  %8675 = vrsqrt.f32 %v11231_v27  ;;  %v11250_v28 = vadd.f32 %v10917_v48, %v2814_v16  ;;  %vm1583_vm11 = vweird.f32 %v11231_v27 }
 0x2fe   : > { %8263 = vmatpush.xpose.msk.msrb.mxu0 %vm671_vm3, %v11153_v43  ;;  %v1769_v63 = vmul.f32 %v10907_v56, %v1720_v51  ;;  %v1561_v10 = vsub.f32 1.5, %v1560_v49  ;;  %v11247_v6 = vsub.f32 %v10822_v2, %v2214_v15  ;;  %v1819_v62 = vadd.f32 %v10917_v48, %v1770_v26 }
 0x2ff   : > { %v11244_v22 = vadd.f32 1e-05, %v1147_v36  ;;  %v8674_v42 = vpop.eup %8673  ;;  %v14863_v7 = vmax.f32 %v11250_v28, 0.0 }
 0x300   : > { %v1818_v43 = vadd.f32 %v10917_v48, %v1769_v63  ;;  %v1562_v52 = vmul.f32 %v11192_v14, %v1561_v10  ;;  %v2599_v1 = vmul.f32 %v8674_v42, %v11190_v30  ;;  %v2338_v4 = vpop.xlane.xlu2 %2337  ;;  %v2278_v32 = vmul.f32 %v11247_v6, %v11247_v6 }
 0x301   : > { %8264 = vmatmul.msk.f32.vlgmr.msrb.gmra.mxu0 %vm671_vm3, %v10802_v57  ;;  %8677 = vrsqrt.f32 %v11244_v22  ;;  %v2400_v57 = vmul.f32 %v2338_v4, %v9282_v58  ;;  %vm2605_vm4 = vweird.f32 %v8674_v42  ;;  %v1867_v26 = vmax.f32 %v1819_v62, 0.0 }
 0x302   : > { %v1866_v18 = vmax.f32 %v1818_v43, 0.0  ;;  %v2600_v24 = vmul.f32 %v8674_v42, %v2599_v1  ;;  %v1566_v8 = vsel %vm11261_vm2, %v11192_v14, %v1562_v52  ;;  %8197 = vmatmul.msk.f32.gmra.mxu1 %vm671_vm3, %v14863_v7  ;;  %v2354_v14 = vsel %vm671_vm3, %v2278_v32, 0.0  ;;  %vm2606_vm6 = vmor %vm2604_vm5, %vm2605_vm4 }
 0x303   : > { %v11273_v41 = vpop.eup %8675  ;;  %v11277_v51 = vadd.f32 1e-05, %v2400_v57  ;;  %v1722_v63 = vmul.f32 %v1566_v8, %v10693_v13  ;;  %vm1573_vm9 = vweird.f32 %v11244_v22 }
 0x304   : > { %8120 = vmatmul.msk.f32.gmra.mxu2 %vm671_vm3, %v1866_v18  ;;  %8168 = vmatmul.msk.f32.gmra.mxu3 %vm671_vm3, %v1866_v18  ;;  %v806_v16 = vpop.xlane.xlu1 %805  ;;  %v2601_v49 = vmul.f32 0.5, %v2600_v24  ;;  %v1578_v36 = vmul.f32 %v11273_v41, %v11231_v27  ;;  %vm1584_vm8 = vweird.f32 %v11273_v41 }
 0x305   : > { %v867_v15 = vmul.f32 %v9282_v58, %v806_v16  ;;  %8679 = vrsqrt.f32 %v11277_v51  ;;  %2355 = vadd.xlane.f32.xlu2 %v2354_v14  ;;  %v1771_v24 = vmul.f32 %v10907_v56, %v1722_v63  ;;  %vm11330_vm12 = vmor %vm1583_vm11, %vm1584_vm8  ;;  %vm2614_vm14 = vweird.f32 %v11277_v51 }
 0x306   : > { %v2602_v10 = vsub.f32 1.5, %v2601_v49  ;;  %v1579_v43 = vmul.f32 %v11273_v41, %v1578_v36 }
 0x307   : > { %v8678_v17 = vpop.eup %8677  ;;  %v11291_v52 = vsub.f32 %v10840_v53, %v867_v15  ;;  %v1820_v63 = vadd.f32 %v10917_v48, %v1771_v24 }
 0x308   : > { %v1568_v1 = vmul.f32 %v8678_v17, %v11244_v22  ;;  %v2603_v4 = vmul.f32 %v8674_v42, %v2602_v10  ;;  %v1580_v2 = vmul.f32 0.5, %v1579_v43  ;;  %v809_v18 = vpop.xlane.xlu2 %808  ;;  %vm1574_vm7 = vweird.f32 %v8678_v17 }
 0x309   : > { %8265 = vmatmul.msk.f32.gmra.mxu0 %vm671_vm3, %v10835_v55  ;;  %v963_v13 = vmul.f32 %v11291_v52, %v11291_v52  ;;  %v868_v53 = vmul.f32 %v9282_v58, %v809_v18  ;;  %vm1575_vm10 = vmor %vm1573_vm9, %vm1574_vm7  ;;  %v1868_v22 = vmax.f32 %v1820_v63, 0.0 }
 0x30a   : > { %v1569_v57 = vmul.f32 %v8678_v17, %v1568_v1  ;;  %v2607_v32 = vsel %vm2606_vm6, %v8674_v42, %v2603_v4  ;;  %v1581_v8 = vsub.f32 1.5, %v1580_v2 }
 0x30b   : > { %v1099_v16 = vsel %vm671_vm3, %v963_v13, 0.0  ;;  %v8680_v55 = vpop.eup %8679  ;;  %v2783_v49 = vmul.f32 %v2607_v32, %v10763_v45  ;;  %v11306_v15 = vsub.f32 %v10860_v60, %v868_v53 }
 0x30c   : > { %v1570_v30 = vmul.f32 0.5, %v1569_v57  ;;  %8121 = vmatmul.msk.f32.gmra.mxu2 %vm671_vm3, %v1867_v26  ;;  %8169 = vmatmul.msk.f32.gmra.mxu3 %vm671_vm3, %v1867_v26  ;;  %v2167_v36 = vpop.xlane.xlu1 %2166  ;;  %v2609_v14 = vmul.f32 %v8680_v55, %v11277_v51  ;;  %v1582_v43 = vmul.f32 %v11273_v41, %v1581_v8  ;;  %vm2615_vm13 = vweird.f32 %v8680_v55 }
 0x30d   : > { %v2215_v42 = vmul.f32 %v2167_v36, %v9282_v58  ;;  %1100 = vadd.xlane.f32.xlu1 %v1099_v16  ;;  %v2815_v45 = vmul.f32 %v10907_v56, %v2783_v49  ;;  %v964_v10 = vmul.f32 %v11306_v15, %v11306_v15  ;;  %vm2616_vm15 = vmor %vm2614_vm14, %vm2615_vm13 }
 0x30e   : > { %v1571_v62 = vsub.f32 1.5, %v1570_v30  ;;  %v2610_v60 = vmul.f32 %v8680_v55, %v2609_v14  ;;  %v1586_v27 = vsel %vm11330_vm12, %v11273_v41, %v1582_v43 }
 0x30f   : > { %v11317_v1 = vsub.f32 %v10858_v61, %v2215_v42  ;;  %v11321_v2 = vadd.f32 %v10917_v48, %v2815_v45  ;;  %v1102_v18 = vsel %vm671_vm3, %v964_v10, 0.0 }
 0x310   : > { %v1572_v4 = vmul.f32 %v8678_v17, %v1571_v62  ;;  %v2611_v13 = vmul.f32 0.5, %v2610_v60  ;;  %1103 = vadd.xlane.f32.xlu0 %v1102_v18 }
 0x311   : > { %8266 = vmatmul.msk.f32.gmra.mxu0 %vm671_vm3, %v10849_v59  ;;  %v2279_v61 = vmul.f32 %v11317_v1, %v11317_v1  ;;  %v14862_v26 = vmax.f32 %v11321_v2, 0.0 }
 0x312   : > { %v1576_v53 = vsel %vm1575_vm10, %v8678_v17, %v1572_v4  ;;  %v2612_v24 = vsub.f32 1.5, %v2611_v13 }
 0x313   : > { %v2357_v59 = vsel %vm671_vm3, %v2279_v61, 0.0  ;;  %v1723_v32 = vmul.f32 %v1576_v53, %v10808_v39  ;;  %8198 = vmatmul.msk.f32.gmra.mxu1 %vm671_vm3, %v14862_v26  ;;  %v1724_v39 = vmul.f32 %v1586_v27, %v10798_v25 }
 0x314   : > { %8122 = vmatmul.msk.f32.gmra.mxu2 %vm671_vm3, %v1868_v22  ;;  %8170 = vmatmul.msk.f32.gmra.mxu3 %vm671_vm3, %v1868_v22  ;;  %v2613_v8 = vmul.f32 %v8680_v55, %v2612_v24 }
 0x315   : > { %2358 = vadd.xlane.f32.xlu1 %v2357_v59  ;;  %v1772_v17 = vmul.f32 %v10907_v56, %v1723_v32  ;;  %v1773_v36 = vmul.f32 %v10907_v56, %v1724_v39 }
 0x316   : > { %v2617_v16 = vsel %vm2616_vm15, %v8680_v55, %v2613_v8 }
 0x317   : > { %v1821_v41 = vadd.f32 %v10917_v48, %v1772_v17  ;;  %v2784_v49 = vmul.f32 %v2617_v16, %v10832_v20  ;;  %v1822_v42 = vadd.f32 %v10917_v48, %v1773_v36 }
 0x319   : > { %v1869_v30 = vmax.f32 %v1821_v41, 0.0  ;;  %v2816_v51 = vmul.f32 %v10907_v56, %v2784_v49  ;;  %v1870_v55 = vmax.f32 %v1822_v42, 0.0 }
 0x31b   : > { %v11356_v14 = vadd.f32 %v10917_v48, %v2816_v51 }
 0x31c   : > { %8123 = vmatmul.msk.f32.gmra.mxu2 %vm671_vm3, %v1869_v30  ;;  %8171 = vmatmul.msk.f32.gmra.mxu3 %vm671_vm3, %v1869_v30 }
 0x31d   : > { %v14861_v25 = vmax.f32 %v11356_v14, 0.0 }
 0x31f   : > { %8199 = vmatmul.msk.f32.gmra.mxu1 %vm671_vm3, %v14861_v25  ;;  %v15039_v25 = vld [vmem:[#allocation16_spill] sm:$0xff] }
 0x323   : > { %v1083_v20 = vpop.xlane.xlu0 %1082 }
 0x324   : > { %v1149_v62 = vmul.f32 %v1083_v20, %v9282_v58  ;;  %8124 = vmatmul.msk.f32.gmra.mxu2 %vm671_vm3, %v1870_v55  ;;  %8172 = vmatmul.msk.f32.gmra.mxu3 %vm671_vm3, %v1870_v55 }
 0x326   : > { %v1197_v63 = vadd.f32 1e-05, %v1149_v62 }
 0x328   : > { %8681 = vrsqrt.f32 %v1197_v63  ;;  %vm1593_vm2 = vweird.f32 %v1197_v63 }
 0x32b   : > { %v2341_v45 = vpop.xlane.xlu0 %2340 }
 0x32c   : > { %v2401_v10 = vmul.f32 %v2341_v45, %v9282_v58 }
 0x32e   : > { %v8682_v43 = vpop.eup %8681  ;;  %v2433_v60 = vadd.f32 1e-05, %v2401_v10 }
 0x32f   : > { %v1588_v4 = vmul.f32 %v8682_v43, %v1197_v63  ;;  %vm1594_vm0 = vweird.f32 %v8682_v43 }
 0x330   : > { %8683 = vrsqrt.f32 %v2433_v60  ;;  %vm1595_vm4 = vmor %vm1593_vm2, %vm1594_vm0  ;;  %vm2624_vm6 = vweird.f32 %v2433_v60 }
 0x331   : > { %v1589_v18 = vmul.f32 %v8682_v43, %v1588_v4 }
 0x333   : > { %v1590_v13 = vmul.f32 0.5, %v1589_v18  ;;  %v812_v61 = vpop.xlane.xlu0 %811 }
 0x334   : > { %v869_v57 = vmul.f32 %v9282_v58, %v812_v61 }
 0x335   : > { %v1591_v22 = vsub.f32 1.5, %v1590_v13 }
 0x336   : > { %v8684_v53 = vpop.eup %8683  ;;  %v11369_v24 = vsub.f32 %v10941_v44, %v869_v57 }
 0x337   : > { %v1592_v59 = vmul.f32 %v8682_v43, %v1591_v22  ;;  %v2619_v32 = vmul.f32 %v8684_v53, %v2433_v60  ;;  %vm2625_vm5 = vweird.f32 %v8684_v53 }
 0x338   : > { %v965_v27 = vmul.f32 %v11369_v24, %v11369_v24  ;;  %vm2626_vm7 = vmor %vm2624_vm6, %vm2625_vm5 }
 0x339   : > { %v2620_v8 = vmul.f32 %v8684_v53, %v2619_v32  ;;  %v1596_v17 = vsel %vm1595_vm4, %v8682_v43, %v1592_v59  ;;  %v11382_v43 = vpop.f32.mrf.mxu1 }
 0x33a   : > { %v1105_v39 = vsel %vm671_vm3, %v965_v27, 0.0  ;;  %v1725_v16 = vmul.f32 %v1596_v17, %v10892_v40 }
 0x33b   : > { %v2621_v41 = vmul.f32 0.5, %v2620_v8  ;;  %v1086_v49 = vpop.xlane.xlu1 %1085  ;;  %1106 = vadd.xlane.f32.xlu2 %v1105_v39 }
 0x33c   : > { %v1150_v30 = vmul.f32 %v1086_v49, %v9282_v58  ;;  %v1089_v44 = vpop.xlane.xlu2 %1088  ;;  %v1774_v36 = vmul.f32 %v10907_v56, %v1725_v16 }
 0x33d   : > { %v2622_v51 = vsub.f32 1.5, %v2621_v41  ;;  %v1151_v42 = vmul.f32 %v1089_v44, %v9282_v58 }
 0x33e   : > { %v1198_v20 = vadd.f32 1e-05, %v1150_v30  ;;  %v1823_v55 = vadd.f32 %v10917_v48, %v1774_v36 }
 0x33f   : > { %v2623_v62 = vmul.f32 %v8684_v53, %v2622_v51  ;;  %v1199_v63 = vadd.f32 1e-05, %v1151_v42 }
 0x340   : > { %8685 = vrsqrt.f32 %v1198_v20  ;;  %v1871_v40 = vmax.f32 %v1823_v55, 0.0  ;;  %vm1603_vm10 = vweird.f32 %v1198_v20 }
 0x341   : > { %v2627_v45 = vsel %vm2626_vm7, %v8684_v53, %v2623_v62  ;;  %8687 = vrsqrt.f32 %v1199_v63  ;;  %v11399_v17 = vpop.f32.mrf.mxu1  ;;  %vm1613_vm12 = vweird.f32 %v1199_v63  ;;  %v11403_v62 = vpop.f32.mrf.mxu2 }
 0x342   : > { %v2785_v10 = vmul.f32 %v2627_v45, %v10912_v0  ;;  %8125 = vmatmul.msk.f32.gmra.mxu2 %vm671_vm3, %v1871_v40  ;;  %8173 = vmatmul.msk.f32.gmra.mxu3 %vm671_vm3, %v1871_v40 }
 0x344   : > { %v2170_v4 = vpop.xlane.xlu2 %2169  ;;  %v2817_v18 = vmul.f32 %v10907_v56, %v2785_v10 }
 0x345   : > { %v2216_v13 = vmul.f32 %v2170_v4, %v9282_v58 }
 0x346   : > { %v8686_v60 = vpop.eup %8685  ;;  %v11387_v61 = vadd.f32 %v10917_v48, %v2817_v18 }
 0x347   : > { %v8688_v57 = vpop.eup %8687  ;;  %v1598_v22 = vmul.f32 %v8686_v60, %v1198_v20  ;;  %v11390_v53 = vsub.f32 %v10989_v9, %v2216_v13  ;;  %vm1604_vm8 = vweird.f32 %v8686_v60  ;;  %v11410_v20 = vld [vmem:[%s14808_s2 + $0x58] ss:$0 sm:$0xff] }
 0x348   : > { %v1608_v0 = vmul.f32 %v8688_v57, %v1199_v63  ;;  %v14860_v59 = vmax.f32 %v11387_v61, 0.0  ;;  %vm1614_vm9 = vweird.f32 %v8688_v57  ;;  %vm1605_vm11 = vmor %vm1603_vm10, %vm1604_vm8 }
 0x349   : > { %v1599_v32 = vmul.f32 %v8686_v60, %v1598_v22  ;;  %v2280_v27 = vmul.f32 %v11390_v53, %v11390_v53  ;;  %vm1615_vm13 = vmor %vm1613_vm12, %vm1614_vm9 }
 0x34a   : > { %v1609_v8 = vmul.f32 %v8688_v57, %v1608_v0  ;;  %8200 = vmatmul.msk.f32.gmra.mxu1 %vm671_vm3, %v14860_v59 }
 0x34b   : > { %v1600_v56 = vmul.f32 0.5, %v1599_v32  ;;  %v2360_v48 = vsel %vm671_vm3, %v2280_v27, 0.0  ;;  %v2344_v16 = vpop.xlane.xlu1 %2343 }
 0x34c   : > { %v1610_v39 = vmul.f32 0.5, %v1609_v8  ;;  %2361 = vadd.xlane.f32.xlu0 %v2360_v48  ;;  %v2402_v30 = vmul.f32 %v2344_v16, %v9282_v58  ;;  %v11427_v16 = vpop.f32.mrf.mxu2 }
 0x34d   : > { %v1601_v9 = vsub.f32 1.5, %v1600_v56  ;;  %v2347_v41 = vpop.xlane.xlu2 %2346 }
 0x34e   : > { %v1611_v49 = vsub.f32 1.5, %v1610_v39  ;;  %v2403_v44 = vmul.f32 %v2347_v41, %v9282_v58  ;;  %v2434_v42 = vadd.f32 1e-05, %v2402_v30  ;;  %v11429_v41 = vpop.f32.mrf.mxu3 }
 0x34f   : > { %v1602_v36 = vmul.f32 %v8686_v60, %v1601_v9  ;;  %15030 = vst [vmem:[#allocation10_spill] sm:$0xff] %v11429_v41 }
 0x350   : > { %v1612_v51 = vmul.f32 %v8688_v57, %v1611_v49  ;;  %v2435_v55 = vadd.f32 1e-05, %v2403_v44  ;;  %8689 = vrsqrt.f32 %v2434_v42  ;;  %vm2634_vm0 = vweird.f32 %v2434_v42 }
 0x351   : > { %v1606_v40 = vsel %vm1605_vm11, %v8686_v60, %v1602_v36  ;;  %v11417_v60 = vld [vmem:[%s14808_s2 + $0x60] ss:$0 sm:$0xff] }
 0x352   : > { %v1616_v45 = vsel %vm1615_vm13, %v8688_v57, %v1612_v51  ;;  %8691 = vrsqrt.f32 %v2435_v55  ;;  %v1726_v10 = vmul.f32 %v1606_v40, %v10969_v21  ;;  %vm2644_vm4 = vweird.f32 %v2435_v55 }
 0x353   : > { %v1727_v18 = vmul.f32 %v1616_v45, %v10973_v50  ;;  %v815_v13 = vpop.xlane.xlu1 %814 }
 0x354   : > { %v3523_v4 = vpop.f32.mrf.mxu1  ;;  %v1775_v63 = vmul.f32 %v11410_v20, %v1726_v10  ;;  %v870_v22 = vmul.f32 %v9282_v58, %v815_v13 }
 0x355   : > { %v1776_v48 = vmul.f32 %v11410_v20, %v1727_v18 }
 0x356   : > { %v1824_v21 = vadd.f32 %v11417_v60, %v1775_v63  ;;  %v8690_v57 = vpop.eup %8689  ;;  %v1092_v0 = vpop.xlane.xlu0 %1091  ;;  %v11421_v50 = vsub.f32 %v11055_v23, %v870_v22 }
 0x357   : > { %v2629_v27 = vmul.f32 %v8690_v57, %v2434_v42  ;;  %v1152_v8 = vmul.f32 %v1092_v0, %v9282_v58  ;;  %v1825_v40 = vadd.f32 %v11417_v60, %v1776_v48  ;;  %vm2635_vm14 = vweird.f32 %v8690_v57 }
 0x358   : > { %v8692_v32 = vpop.eup %8691  ;;  %v1872_v56 = vmax.f32 %v1824_v21, 0.0  ;;  %v966_v9 = vmul.f32 %v11421_v50, %v11421_v50  ;;  %vm2636_vm2 = vmor %vm2634_vm0, %vm2635_vm14 }
 0x359   : > { %v2639_v39 = vmul.f32 %v8692_v32, %v2435_v55  ;;  %v2630_v49 = vmul.f32 %v8690_v57, %v2629_v27  ;;  %v11431_v30 = vadd.f32 1e-05, %v1152_v8  ;;  %vm2645_vm15 = vweird.f32 %v8692_v32  ;;  %v11441_v8 = vpop.f32.mrf.mxu2 }
 0x35a   : > { %8126 = vmatmul.msk.f32.gmra.mxu2 %vm671_vm3, %v1872_v56  ;;  %8174 = vmatmul.msk.f32.gmra.mxu3 %vm671_vm3, %v1872_v56  ;;  %v1108_v44 = vsel %vm671_vm3, %v966_v9, 0.0  ;;  %v1873_v21 = vmax.f32 %v1825_v40, 0.0  ;;  %v11443_v56 = vpop.f32.mrf.mxu3  ;;  %vm2646_vm5 = vmor %vm2644_vm4, %vm2645_vm15 }
 0x35b   : > { %v2640_v23 = vmul.f32 %v8692_v32, %v2639_v39  ;;  %v2631_v36 = vmul.f32 0.5, %v2630_v49  ;;  %8693 = vrsqrt.f32 %v11431_v30  ;;  %1109 = vadd.xlane.f32.xlu1 %v1108_v44  ;;  %15031 = vst [vmem:[#allocation4_spill] sm:$0xff] %v11443_v56  ;;  %vm1623_vm7 = vweird.f32 %v11431_v30 }
 0x35c   : > { %v3526_v51 = vpop.f32.mrf.mxu1 }
 0x35d   : > { %v2641_v45 = vmul.f32 0.5, %v2640_v23  ;;  %8272 = vmatpush.xpose.msk.msra.mxu0 %vm671_vm3, %v3526_v51  ;;  %v2632_v10 = vsub.f32 1.5, %v2631_v36 }
 0x35e   : > { %v2173_v13 = vpop.xlane.xlu0 %2172 }
 0x35f   : > { %v2642_v18 = vsub.f32 1.5, %v2641_v45  ;;  %v2633_v63 = vmul.f32 %v8690_v57, %v2632_v10  ;;  %v2217_v22 = vmul.f32 %v2173_v13, %v9282_v58 }
 0x361   : > { %v2643_v0 = vmul.f32 %v8692_v32, %v2642_v18  ;;  %8273 = vmatpush.xpose.msk.msra.mxu0 %vm671_vm3, %v3523_v4  ;;  %v8694_v27 = vpop.eup %8693  ;;  %v2637_v48 = vsel %vm2636_vm2, %v8690_v57, %v2633_v63  ;;  %v11446_v39 = vsub.f32 %v11089_v47, %v2217_v22  ;;  %v15032_v18 = vld [vmem:[#allocation29_spill] sm:$0xff] }
 0x362   : > { %8127 = vmatmul.msk.f32.gmra.mxu2 %vm671_vm3, %v1873_v21  ;;  %8175 = vmatmul.msk.f32.gmra.mxu3 %vm671_vm3, %v1873_v21  ;;  %v2786_v42 = vmul.f32 %v2637_v48, %v11021_v34  ;;  %v1618_v55 = vmul.f32 %v8694_v27, %v11431_v30  ;;  %vm1624_vm6 = vweird.f32 %v8694_v27  ;;  %v11468_v13 = vadd.f32 %v11085_v33, %v15032_v18  ;;  %v11474_v21 = vpop.f32.mrf.mxu0 }
 0x363   : > { %v2647_v9 = vsel %vm2646_vm5, %v8692_v32, %v2643_v0  ;;  %v2281_v4 = vmul.f32 %v11446_v39, %v11446_v39  ;;  %15033 = vst [vmem:[#allocation14_spill] sm:$0xff] %v11474_v21  ;;  %vm1625_vm8 = vmor %vm1623_vm7, %vm1624_vm6 }
 0x364   : > { %8274 = vmatmul.msk.f32.vlgmr.msra.gmra.mxu0 %vm671_vm3, %v10898_v12  ;;  %v2787_v57 = vmul.f32 %v2647_v9, %v11024_v5  ;;  %v1619_v49 = vmul.f32 %v8694_v27, %v1618_v55  ;;  %v2818_v47 = vmul.f32 %v11410_v20, %v2786_v42  ;;  %v11482_v42 = vpop.f32.mrf.mxu2  ;;  %v11484_v9 = vpop.f32.mrf.mxu3 }
 0x365   : > { %v2363_v23 = vsel %vm671_vm3, %v2281_v4, 0.0  ;;  %v1095_v51 = vpop.xlane.xlu1 %1094  ;;  %15034 = vst [vmem:[#allocation26_spill] sm:$0xff] %v11484_v9 }
 0x366   : > { %v1620_v44 = vmul.f32 0.5, %v1619_v49  ;;  %2364 = vadd.xlane.f32.xlu2 %v2363_v23  ;;  %v2176_v36 = vpop.xlane.xlu0 %2175  ;;  %v11460_v34 = vadd.f32 %v11417_v60, %v2818_v47  ;;  %v1153_v12 = vmul.f32 %v1095_v51, %v9282_v58  ;;  %v2819_v10 = vmul.f32 %v11410_v20, %v2787_v57  ;;  %v15036_v51 = vld [vmem:[#allocation7_spill] sm:$0xff] }
 0x367   : > { %v2218_v32 = vmul.f32 %v2176_v36, %v9282_v58  ;;  %v2180_v49 = vsel %vm671_vm3, %v11468_v13, 0.0 }
 0x368   : > { %v1621_v40 = vsub.f32 1.5, %v1620_v44  ;;  %v2350_v45 = vpop.xlane.xlu2 %2349  ;;  %v14859_v5 = vmax.f32 %v11460_v34, 0.0  ;;  %v11477_v48 = vadd.f32 1e-05, %v1153_v12  ;;  %v11495_v4 = vadd.f32 %v11417_v60, %v2819_v10  ;;  %v15035_v44 = vld [vmem:[#allocation6_spill] sm:$0xff] }
 0x369   : > { %v2404_v63 = vmul.f32 %v2350_v45, %v9282_v58  ;;  %v11472_v22 = vsub.f32 %v11115_v54, %v2218_v32  ;;  %v11506_v36 = vadd.f32 %v11085_v33, %v15035_v44 }
 0x36a   : > { %v1622_v0 = vmul.f32 %v8694_v27, %v1621_v40  ;;  %8201 = vmatmul.msk.f32.gmra.mxu1 %vm671_vm3, %v14859_v5  ;;  %8695 = vrsqrt.f32 %v11477_v48  ;;  %v11511_v40 = vadd.f32 %v11085_v33, %v15036_v51  ;;  %vm1633_vm11 = vweird.f32 %v11477_v48 }
 0x36b   : > { %v11487_v55 = vadd.f32 1e-05, %v2404_v63  ;;  %v2282_v54 = vmul.f32 %v11472_v22, %v11472_v22 }
 0x36c   : > { %8275 = vmatmul.msk.f32.gmra.mxu0 %vm671_vm3, %v11403_v62  ;;  %v1626_v30 = vsel %vm1625_vm8, %v8694_v27, %v1622_v0  ;;  %v11536_v44 = vpop.f32.mrf.mxu3 }
 0x36d   : > { %v1728_v57 = vmul.f32 %v1626_v30, %v11071_v37  ;;  %8697 = vrsqrt.f32 %v11487_v55  ;;  %v2366_v47 = vsel %vm671_vm3, %v2282_v54, 0.0  ;;  %v14858_v37 = vmax.f32 %v11495_v4, 0.0  ;;  %v11522_v30 = vpop.f32.mrf.mxu0  ;;  %15038 = vst [vmem:[#allocation27_spill] sm:$0xff] %v11536_v44 }
 0x36e   : > { %2181 = vadd.xlane.f32.xlu2 %v2180_v49  ;;  %2367 = vadd.xlane.f32.xlu0 %v2366_v47  ;;  %v2179_v23 = vpop.xlane.xlu0 %2178  ;;  %15037 = vst [vmem:[#allocation13_spill] sm:$0xff] %v11522_v30  ;;  %vm2654_vm12 = vweird.f32 %v11487_v55 }
 0x36f   : > { %v2219_v62 = vmul.f32 %v2179_v23, %v9282_v58  ;;  %v1777_v27 = vmul.f32 %v11410_v20, %v1728_v57  ;;  %v1098_v10 = vpop.xlane.xlu1 %1097 }
 0x370   : > { %v2353_v32 = vpop.xlane.xlu2 %2352  ;;  %v8696_v63 = vpop.eup %8695  ;;  %v1154_v0 = vmul.f32 %v1098_v10, %v9282_v58 }
 0x371   : > { %v2405_v45 = vmul.f32 %v2353_v32, %v9282_v58  ;;  %v11515_v12 = vsub.f32 %v11158_v38, %v2219_v62  ;;  %v1826_v18 = vadd.f32 %v11417_v60, %v1777_v27  ;;  %v1628_v57 = vmul.f32 %v8696_v63, %v11477_v48  ;;  %v11534_v27 = vpop.f32.mrf.mxu2  ;;  %v11546_v10 = vpop.f32.mrf.mxu1 }
 0x372   : > { %8202 = vmatmul.msk.f32.gmra.mxu1 %vm671_vm3, %v14858_v37  ;;  %v11530_v23 = vadd.f32 1e-05, %v1154_v0  ;;  %v2183_v62 = vsel %vm671_vm3, %v11506_v36, 0.0  ;;  %vm1634_vm9 = vweird.f32 %v8696_v63 }
 0x373   : > { %v8698_v54 = vpop.eup %8697  ;;  %v11525_v49 = vadd.f32 1e-05, %v2405_v45  ;;  %v1874_v47 = vmax.f32 %v1826_v18, 0.0  ;;  %v1629_v32 = vmul.f32 %v8696_v63, %v1628_v57  ;;  %v2283_v51 = vmul.f32 %v11515_v12, %v11515_v12  ;;  %vm1635_vm13 = vmor %vm1633_vm11, %vm1634_vm9 }
 0x374   : > { %8276 = vmatmul.msk.f32.gmra.mxu0 %vm671_vm3, %v11427_v16  ;;  %v2649_v38 = vmul.f32 %v8698_v54, %v11487_v55  ;;  %v2189_v16 = vsel %vm671_vm3, %v11511_v40, 0.0  ;;  %vm2655_vm10 = vweird.f32 %v8698_v54  ;;  %vm1643_vm5 = vweird.f32 %v11530_v23 }
 0x375   : > { %8699 = vrsqrt.f32 %v11525_v49  ;;  %8128 = vmatmul.msk.f32.gmra.mxu2 %vm671_vm3, %v1874_v47  ;;  %8176 = vmatmul.msk.f32.gmra.mxu3 %vm671_vm3, %v1874_v47  ;;  %v1630_v18 = vmul.f32 0.5, %v1629_v32  ;;  %v2369_v0 = vsel %vm671_vm3, %v2283_v51, 0.0  ;;  %vm2656_vm14 = vmor %vm2654_vm12, %vm2655_vm10  ;;  %vm2664_vm2 = vweird.f32 %v11525_v49 }
 0x376   : > { %v2650_v45 = vmul.f32 %v8698_v54, %v2649_v38  ;;  %8701 = vrsqrt.f32 %v11530_v23  ;;  %2190 = vadd.xlane.f32.xlu2 %v2189_v16  ;;  %2184 = vadd.xlane.f32.xlu0 %v2183_v62  ;;  %v11551_v38 = vadd.f32 %v11085_v33, %v15039_v25 }
 0x377   : > { %2370 = vadd.xlane.f32.xlu1 %v2369_v0  ;;  %v1631_v37 = vsub.f32 1.5, %v1630_v18 }
 0x378   : > { %v2651_v57 = vmul.f32 0.5, %v2650_v45  ;;  %v2356_v5 = vpop.xlane.xlu2 %2355 }
 0x379   : > { %v1632_v26 = vmul.f32 %v8696_v63, %v1631_v37  ;;  %v2406_v62 = vmul.f32 %v2356_v5, %v9282_v58  ;;  %v11561_v48 = vpop.f32.mrf.mxu2  ;;  %v11563_v5 = vpop.f32.mrf.mxu3 }
 0x37a   : > { %v2652_v47 = vsub.f32 1.5, %v2651_v57  ;;  %15040 = vst [vmem:[#allocation19_spill] sm:$0xff] %v11563_v5 }
 0x37b   : > { %v8700_v59 = vpop.eup %8699  ;;  %v1636_v45 = vsel %vm1635_vm13, %v8696_v63, %v1632_v26  ;;  %v11558_v0 = vadd.f32 1e-05, %v2406_v62  ;;  %v2186_v26 = vsel %vm671_vm3, %v11551_v38, 0.0 }
 0x37c   : > { %v8702_v32 = vpop.eup %8701  ;;  %v2653_v16 = vmul.f32 %v8698_v54, %v2652_v47  ;;  %v2659_v51 = vmul.f32 %v8700_v59, %v11525_v49  ;;  %v1729_v25 = vmul.f32 %v1636_v45, %v11123_v29  ;;  %v11569_v47 = vpop.f32.mrf.mxu1  ;;  %vm2665_vm15 = vweird.f32 %v8700_v59 }
 0x37d   : > { %v1638_v18 = vmul.f32 %v8702_v32, %v11530_v23  ;;  %8703 = vrsqrt.f32 %v11558_v0  ;;  %vm1644_vm0 = vweird.f32 %v8702_v32  ;;  %vm2666_vm4 = vmor %vm2664_vm2, %vm2665_vm15  ;;  %vm2674_vm8 = vweird.f32 %v11558_v0 }
 0x37e   : > { %v2657_v33 = vsel %vm2656_vm14, %v8698_v54, %v2653_v16  ;;  %v2660_v37 = vmul.f32 %v8700_v59, %v2659_v51  ;;  %v1778_v29 = vmul.f32 %v11410_v20, %v1729_v25  ;;  %vm1645_vm6 = vmor %vm1643_vm5, %vm1644_vm0 }
 0x37f   : > { %v2788_v57 = vmul.f32 %v2657_v33, %v11151_v3  ;;  %v1639_v55 = vmul.f32 %v8702_v32, %v1638_v18  ;;  %2187 = vadd.xlane.f32.xlu1 %v2186_v26 }
 0x380   : > { %v2661_v63 = vmul.f32 0.5, %v2660_v37  ;;  %v1101_v54 = vpop.xlane.xlu1 %1100  ;;  %v1827_v3 = vadd.f32 %v11417_v60, %v1778_v29 }
 0x381   : > { %v1640_v62 = vmul.f32 0.5, %v1639_v55  ;;  %v1155_v16 = vmul.f32 %v1101_v54, %v9282_v58  ;;  %v2820_v51 = vmul.f32 %v11410_v20, %v2788_v57 }
 0x382   : > { %v2662_v45 = vsub.f32 1.5, %v2661_v63  ;;  %v1875_v25 = vmax.f32 %v1827_v3, 0.0  ;;  %v11593_v3 = vpop.f32.mrf.mxu2 }
 0x383   : > { %v1641_v18 = vsub.f32 1.5, %v1640_v62  ;;  %v11575_v33 = vadd.f32 1e-05, %v1155_v16  ;;  %v11578_v37 = vadd.f32 %v11417_v60, %v2820_v51  ;;  %v1104_v55 = vpop.xlane.xlu0 %1103  ;;  %v8704_v7 = vpop.eup %8703 }
 0x384   : > { %v2663_v26 = vmul.f32 %v8700_v59, %v2662_v45  ;;  %v2669_v29 = vmul.f32 %v8704_v7, %v11558_v0  ;;  %8129 = vmatmul.msk.f32.gmra.mxu2 %vm671_vm3, %v1875_v25  ;;  %8177 = vmatmul.msk.f32.gmra.mxu3 %vm671_vm3, %v1875_v25  ;;  %v1156_v49 = vmul.f32 %v1104_v55, %v9282_v58  ;;  %v11597_v25 = vpop.f32.mrf.mxu3  ;;  %vm2675_vm7 = vweird.f32 %v8704_v7 }
 0x385   : > { %v1642_v54 = vmul.f32 %v8702_v32, %v1641_v18  ;;  %8705 = vrsqrt.f32 %v11575_v33  ;;  %v14864_v57 = vmax.f32 %v11578_v37, 0.0  ;;  %15041 = vst [vmem:[#allocation28_spill] sm:$0xff] %v11597_v25  ;;  %vm2676_vm9 = vmor %vm2674_vm8, %vm2675_vm7  ;;  %vm1653_vm11 = vweird.f32 %v11575_v33 }
 0x386   : > { %v2667_v63 = vsel %vm2666_vm4, %v8700_v59, %v2663_v26  ;;  %v2670_v51 = vmul.f32 %v8704_v7, %v2669_v29  ;;  %v1204_v59 = vadd.f32 1e-05, %v1156_v49 }
 0x387   : > { %v2789_v62 = vmul.f32 %v2667_v63, %v11175_v19  ;;  %v1646_v16 = vsel %vm1645_vm6, %v8702_v32, %v1642_v54  ;;  %8203 = vmatmul.msk.f32.gmra.mxu1 %vm671_vm3, %v14864_v57  ;;  %v3535_v19 = vpop.f32.mrf.mxu1 }
 0x388   : > { %v1730_v23 = vmul.f32 %v1646_v16, %v11198_v11  ;;  %v2359_v45 = vpop.xlane.xlu1 %2358  ;;  %v2671_v55 = vmul.f32 0.5, %v2670_v51  ;;  %8707 = vrsqrt.f32 %v1204_v59  ;;  %vm1663_vm14 = vweird.f32 %v1204_v59 }
 0x389   : > { %v2407_v18 = vmul.f32 %v2359_v45, %v9282_v58  ;;  %v2821_v26 = vmul.f32 %v11410_v20, %v2789_v62 }
 0x38a   : > { %v1779_v32 = vmul.f32 %v11410_v20, %v1730_v23  ;;  %v2672_v29 = vsub.f32 1.5, %v2671_v55  ;;  %v11612_v55 = vpop.f32.mrf.mxu0  ;;  %v3144_v31 = vpop.f32.mrf.mxu2 }
 0x38b   : > { %v8706_v54 = vpop.eup %8705  ;;  %v2439_v63 = vadd.f32 1e-05, %v2407_v18  ;;  %v11601_v11 = vadd.f32 %v11417_v60, %v2821_v26  ;;  %15042 = vst [vmem:[#allocation29_spill] sm:$0xff] %v11612_v55 }
 0x38c   : > { %v1648_v49 = vmul.f32 %v8706_v54, %v11575_v33  ;;  %v1828_v16 = vadd.f32 %v11417_v60, %v1779_v32  ;;  %v2673_v45 = vmul.f32 %v8704_v7, %v2672_v29  ;;  %vm1654_vm10 = vweird.f32 %v8706_v54 }
 0x38d   : > { %8709 = vrsqrt.f32 %v2439_v63  ;;  %v14866_v62 = vmax.f32 %v11601_v11, 0.0  ;;  %vm1655_vm12 = vmor %vm1653_vm11, %vm1654_vm10  ;;  %vm2684_vm2 = vweird.f32 %v2439_v63 }
 0x38e   : > { %v1649_v51 = vmul.f32 %v8706_v54, %v1648_v49  ;;  %v1876_v57 = vmax.f32 %v1828_v16, 0.0  ;;  %v8708_v23 = vpop.eup %8707  ;;  %v2677_v18 = vsel %vm2676_vm9, %v8704_v7, %v2673_v45  ;;  %v11617_v45 = vpop.f32.mrf.mxu3 }
 0x38f   : > { %8204 = vmatmul.msk.f32.gmra.mxu1 %vm671_vm3, %v14866_v62  ;;  %v2790_v32 = vmul.f32 %v2677_v18, %v11247_v6  ;;  %v1658_v29 = vmul.f32 %v8708_v23, %v1204_v59  ;;  %15043 = vst [vmem:[#allocation6_spill] sm:$0xff] %v11617_v45  ;;  %vm1664_vm13 = vweird.f32 %v8708_v23 }
 0x390   : > { %v1650_v26 = vmul.f32 0.5, %v1649_v51  ;;  %8130 = vmatmul.msk.f32.gmra.mxu2 %vm671_vm3, %v1876_v57  ;;  %8178 = vmatmul.msk.f32.gmra.mxu3 %vm671_vm3, %v1876_v57  ;;  %v3538_v49 = vpop.f32.mrf.mxu1  ;;  %vm1665_vm15 = vmor %vm1663_vm14, %vm1664_vm13 }
 0x391   : > { %v1659_v25 = vmul.f32 %v8708_v23, %v1658_v29  ;;  %8282 = vmatpush.xpose.msk.msrb.mxu0 %vm671_vm3, %v3538_v49  ;;  %v2822_v7 = vmul.f32 %v11410_v20, %v2790_v32 }
 0x392   : > { %v1651_v0 = vsub.f32 1.5, %v1650_v26 }
 0x393   : > { %v8710_v16 = vpop.eup %8709  ;;  %v1660_v62 = vmul.f32 0.5, %v1659_v25  ;;  %v11621_v6 = vadd.f32 %v11417_v60, %v2822_v7  ;;  %v11636_v7 = vpop.f32.mrf.mxu2 }
 0x394   : > { %v1652_v51 = vmul.f32 %v8706_v54, %v1651_v0  ;;  %v2679_v57 = vmul.f32 %v8710_v16, %v2439_v63  ;;  %vm2685_vm0 = vweird.f32 %v8710_v16 }
 0x395   : > { %v1661_v29 = vsub.f32 1.5, %v1660_v62  ;;  %8283 = vmatpush.xpose.msk.msrb.mxu0 %vm671_vm3, %v3535_v19  ;;  %v14868_v32 = vmax.f32 %v11621_v6, 0.0  ;;  %vm2686_vm4 = vmor %vm2684_vm2, %vm2685_vm0 }
 0x396   : > { %v1656_v18 = vsel %vm1655_vm12, %v8706_v54, %v1652_v51  ;;  %v2680_v26 = vmul.f32 %v8710_v16, %v2679_v57 }
 0x397   : > { %v1731_v5 = vmul.f32 %v1656_v18, %v11291_v52  ;;  %v1662_v0 = vmul.f32 %v8708_v23, %v1661_v29  ;;  %8205 = vmatmul.msk.f32.gmra.mxu1 %vm671_vm3, %v14868_v32  ;;  %v11632_v52 = vpop.f32.mrf.mxu0 }
 0x398   : > { %v2681_v49 = vmul.f32 0.5, %v2680_v26  ;;  %8284 = vmatmul.msk.f32.vlgmr.msrb.gmra.mxu0 %vm671_vm3, %v11561_v48  ;;  %15044 = vst [vmem:[#allocation7_spill] sm:$0xff] %v11632_v52 }
 0x399   : > { %v1780_v33 = vmul.f32 %v11410_v20, %v1731_v5  ;;  %v1666_v19 = vsel %vm1665_vm15, %v8708_v23, %v1662_v0  ;;  %v11638_v5 = vpop.f32.mrf.mxu3 }
 0x39a   : > { %v2682_v25 = vsub.f32 1.5, %v2681_v49  ;;  %v1732_v62 = vmul.f32 %v1666_v19, %v11306_v15  ;;  %15045 = vst [vmem:[#allocation16_spill] sm:$0xff] %v11638_v5 }
 0x39b   : > { %v1829_v54 = vadd.f32 %v11417_v60, %v1780_v33 }
 0x39c   : > { %v2683_v59 = vmul.f32 %v8710_v16, %v2682_v25  ;;  %v1781_v18 = vmul.f32 %v11410_v20, %v1732_v62 }
 0x39d   : > { %v1877_v51 = vmax.f32 %v1829_v54, 0.0 }
 0x39e   : > { %v2687_v57 = vsel %vm2686_vm4, %v8710_v16, %v2683_v59  ;;  %v1830_v23 = vadd.f32 %v11417_v60, %v1781_v18 }
 0x39f   : > { %v2791_v48 = vmul.f32 %v2687_v57, %v11317_v1  ;;  %8131 = vmatmul.msk.f32.gmra.mxu2 %vm671_vm3, %v1877_v51  ;;  %8179 = vmatmul.msk.f32.gmra.mxu3 %vm671_vm3, %v1877_v51  ;;  %v11651_v16 = vpop.f32.mrf.mxu0  ;;  %v11654_v1 = vpop.f32.mrf.mxu2 }
 0x3a0   : > { %8285 = vmatmul.msk.f32.gmra.mxu0 %vm671_vm3, %v11593_v3  ;;  %v1878_v63 = vmax.f32 %v1830_v23, 0.0  ;;  %15046 = vst [vmem:[#allocation35_spill] sm:$0xff] %v11651_v16 }
 0x3a1   : > { %v2823_v15 = vmul.f32 %v11410_v20, %v2791_v48  ;;  %v11658_v49 = vpop.f32.mrf.mxu3 }
 0x3a2   : > { %15047 = vst [vmem:[#allocation36_spill] sm:$0xff] %v11658_v49 }
 0x3a3   : > { %v11649_v26 = vadd.f32 %v11417_v60, %v2823_v15 }
 0x3a5   : > { %v14867_v29 = vmax.f32 %v11649_v26, 0.0 }
 0x3a7   : > { %8132 = vmatmul.msk.f32.gmra.mxu2 %vm671_vm3, %v1878_v63  ;;  %8180 = vmatmul.msk.f32.gmra.mxu3 %vm671_vm3, %v1878_v63  ;;  %v11665_v33 = vpop.f32.mrf.mxu0  ;;  %v11667_v19 = vpop.f32.mrf.mxu2 }
 0x3a8   : > { %8206 = vmatmul.msk.f32.gmra.mxu1 %vm671_vm3, %v14867_v29  ;;  %8286 = vmatmul.msk.f32.gmra.mxu0 %vm671_vm3, %v3144_v31  ;;  %15048 = vst [vmem:[#allocation37_spill] sm:$0xff] %v11665_v33 }
 0x3a9   : > { %v11669_v54 = vpop.f32.mrf.mxu3 }
 0x3aa   : > { %15049 = vst [vmem:[#allocation38_spill] sm:$0xff] %v11669_v54 }
 0x3ae   : > { %v1107_v3 = vpop.xlane.xlu2 %1106 }
 0x3af   : > { %v1157_v0 = vmul.f32 %v1107_v3, %v9282_v58  ;;  %v11671_v51 = vpop.f32.mrf.mxu0  ;;  %v11673_v57 = vpop.f32.mrf.mxu2 }
 0x3b0   : > { %15050 = vst [vmem:[#allocation39_spill] sm:$0xff] %v11671_v51 }
 0x3b1   : > { %v1205_v25 = vadd.f32 1e-05, %v1157_v0  ;;  %v11675_v18 = vpop.f32.mrf.mxu3 }
 0x3b2   : > { %15051 = vst [vmem:[#allocation40_spill] sm:$0xff] %v11675_v18 }
 0x3b3   : > { %8711 = vrsqrt.f32 %v1205_v25  ;;  %vm1673_vm6 = vweird.f32 %v1205_v25 }
 0x3b7   : > { %v11678_v29 = vpop.f32.mrf.mxu0  ;;  %v11680_v54 = vpop.f32.mrf.mxu2 }
 0x3b8   : > { %15052 = vst [vmem:[#allocation41_spill] sm:$0xff] %v11678_v29 }
 0x3b9   : > { %v8712_v62 = vpop.eup %8711  ;;  %v11683_v18 = vpop.f32.mrf.mxu3 }
 0x3ba   : > { %v1668_v59 = vmul.f32 %v8712_v62, %v1205_v25  ;;  %vm1674_vm5 = vweird.f32 %v8712_v62  ;;  %15053 = vst [vmem:[#allocation42_spill] sm:$0xff] %v11683_v18 }
 0x3bb   : > { %vm1675_vm7 = vmor %vm1673_vm6, %vm1674_vm5 }
 0x3bc   : > { %v1669_v31 = vmul.f32 %v8712_v62, %v1668_v59 }
 0x3be   : > { %v1670_v48 = vmul.f32 0.5, %v1669_v31 }
 0x3bf   : > { %v2362_v23 = vpop.xlane.xlu0 %2361  ;;  %v11687_v25 = vpop.f32.mrf.mxu0 }
 0x3c0   : > { %v1671_v15 = vsub.f32 1.5, %v1670_v48  ;;  %v2408_v63 = vmul.f32 %v2362_v23, %v9282_v58  ;;  %15054 = vst [vmem:[#allocation43_spill] sm:$0xff] %v11687_v25 }
 0x3c2   : > { %v1672_v3 = vmul.f32 %v8712_v62, %v1671_v15  ;;  %v2440_v0 = vadd.f32 1e-05, %v2408_v63 }
 0x3c4   : > { %v1676_v32 = vsel %vm1675_vm7, %v8712_v62, %v1672_v3  ;;  %8713 = vrsqrt.f32 %v2440_v0  ;;  %v11691_v62 = vpop.f32.mrf.mxu2  ;;  %vm2694_vm9 = vweird.f32 %v2440_v0 }
 0x3c5   : > { %v1733_v49 = vmul.f32 %v1676_v32, %v11369_v24  ;;  %v11693_v24 = vpop.f32.mrf.mxu3 }
 0x3c6   : > { %15055 = vst [vmem:[#allocation44_spill] sm:$0xff] %v11693_v24 }
 0x3c7   : > { %v1782_v59 = vmul.f32 %v11410_v20, %v1733_v49  ;;  %v11697_v45 = vpop.f32.mrf.mxu0 }
 0x3c8   : > { %15056 = vst [vmem:[#allocation45_spill] sm:$0xff] %v11697_v45 }
 0x3c9   : > { %v1831_v31 = vadd.f32 %v11417_v60, %v1782_v59 }
 0x3ca   : > { %v8714_v48 = vpop.eup %8713 }
 0x3cb   : > { %v2689_v23 = vmul.f32 %v8714_v48, %v2440_v0  ;;  %v1879_v15 = vmax.f32 %v1831_v31, 0.0  ;;  %vm2695_vm8 = vweird.f32 %v8714_v48 }
 0x3cc   : > { %vm2696_vm10 = vmor %vm2694_vm9, %vm2695_vm8  ;;  %v11702_v24 = vpop.f32.mrf.mxu2 }
 0x3cd   : > { %v2690_v63 = vmul.f32 %v8714_v48, %v2689_v23  ;;  %8133 = vmatmul.msk.f32.gmra.mxu2 %vm671_vm3, %v1879_v15  ;;  %8181 = vmatmul.msk.f32.gmra.mxu3 %vm671_vm3, %v1879_v15 }
 0x3ce   : > { %v1110_v32 = vpop.xlane.xlu1 %1109 }
 0x3cf   : > { %v2691_v3 = vmul.f32 0.5, %v2690_v63  ;;  %v1158_v49 = vmul.f32 %v1110_v32, %v9282_v58  ;;  %v11700_v63 = vpop.f32.mrf.mxu1  ;;  %v11714_v44 = vpop.f32.mrf.mxu0 }
 0x3d0   : > { %15058 = vst [vmem:[#allocation47_spill] sm:$0xff] %v11714_v44 }
 0x3d1   : > { %v2692_v18 = vsub.f32 1.5, %v2691_v3  ;;  %v1206_v31 = vadd.f32 1e-05, %v1158_v49  ;;  %v11704_v3 = vpop.f32.mrf.mxu3 }
 0x3d2   : > { %15057 = vst [vmem:[#allocation46_spill] sm:$0xff] %v11704_v3 }
 0x3d3   : > { %v2693_v59 = vmul.f32 %v8714_v48, %v2692_v18  ;;  %8715 = vrsqrt.f32 %v1206_v31  ;;  %vm1683_vm12 = vweird.f32 %v1206_v31 }
 0x3d5   : > { %v2697_v5 = vsel %vm2696_vm10, %v8714_v48, %v2693_v59 }
 0x3d6   : > { %v2792_v23 = vmul.f32 %v2697_v5, %v11390_v53 }
 0x3d7   : > { %v11716_v3 = vpop.f32.mrf.mxu1 }
 0x3d8   : > { %v2824_v15 = vmul.f32 %v11410_v20, %v2792_v23 }
 0x3d9   : > { %v8716_v18 = vpop.eup %8715  ;;  %v2365_v0 = vpop.xlane.xlu2 %2364 }
 0x3da   : > { %v11707_v32 = vadd.f32 %v11417_v60, %v2824_v15  ;;  %v1678_v49 = vmul.f32 %v8716_v18, %v1206_v31  ;;  %v2409_v48 = vmul.f32 %v2365_v0, %v9282_v58  ;;  %v11718_v15 = vpop.f32.mrf.mxu2  ;;  %v11720_v9 = vpop.f32.mrf.mxu3  ;;  %vm1684_vm11 = vweird.f32 %v8716_v18 }
 0x3db   : > { %15059 = vst [vmem:[#allocation48_spill] sm:$0xff] %v11720_v9  ;;  %vm1685_vm13 = vmor %vm1683_vm12, %vm1684_vm11 }
 0x3dc   : > { %v14874_v53 = vmax.f32 %v11707_v32, 0.0  ;;  %v1679_v5 = vmul.f32 %v8716_v18, %v1678_v49  ;;  %v2441_v59 = vadd.f32 1e-05, %v2409_v48 }
 0x3de   : > { %8207 = vmatmul.msk.f32.gmra.mxu1 %vm671_vm3, %v14874_v53  ;;  %v1680_v23 = vmul.f32 0.5, %v1679_v5  ;;  %8717 = vrsqrt.f32 %v2441_v59  ;;  %vm2704_vm15 = vweird.f32 %v2441_v59 }
 0x3e0   : > { %v1681_v56 = vsub.f32 1.5, %v1680_v23 }
 0x3e1   : > { %v2182_v0 = vpop.xlane.xlu2 %2181  ;;  %v2368_v41 = vpop.xlane.xlu0 %2367 }
 0x3e2   : > { %v1682_v49 = vmul.f32 %v8716_v18, %v1681_v56  ;;  %v2220_v48 = vmul.f32 %v2182_v0, %v9282_v58  ;;  %v2410_v53 = vmul.f32 %v2368_v41, %v9282_v58 }
 0x3e4   : > { %v8718_v5 = vpop.eup %8717  ;;  %v1686_v45 = vsel %vm1685_vm13, %v8716_v18, %v1682_v49  ;;  %v11725_v44 = vsub.f32 %v11468_v13, %v2220_v48  ;;  %v2442_v25 = vadd.f32 1e-05, %v2410_v53  ;;  %v11733_v53 = vpop.f32.mrf.mxu2 }
 0x3e5   : > { %v1734_v29 = vmul.f32 %v1686_v45, %v11421_v50  ;;  %v2699_v9 = vmul.f32 %v8718_v5, %v2441_v59  ;;  %v11735_v50 = vpop.f32.mrf.mxu3  ;;  %vm2705_vm14 = vweird.f32 %v8718_v5 }
 0x3e6   : > { %8719 = vrsqrt.f32 %v2442_v25  ;;  %v2284_v23 = vmul.f32 %v11725_v44, %v11725_v44  ;;  %15060 = vst [vmem:[#allocation49_spill] sm:$0xff] %v11735_v50  ;;  %vm2706_vm0 = vmor %vm2704_vm15, %vm2705_vm14  ;;  %vm2714_vm4 = vweird.f32 %v2442_v25  ;;  %vm4411_vm14 = vcmask 130048  }
 0x3e7   : > { %v2700_v56 = vmul.f32 %v8718_v5, %v2699_v9  ;;  %v3547_v31 = vpop.f32.mrf.mxu1  ;;  %v1783_v0 = vmul.f32 %v11410_v20, %v1734_v29  ;;  %v11739_v9 = vpop.f32.mrf.mxu0 }
 0x3e8   : > { %v2372_v41 = vsel %vm671_vm3, %v2284_v23, 0.0  ;;  %15061 = vst [vmem:[#allocation50_spill] sm:$0xff] %v11739_v9  ;;  %v15120_v9 = vmax.f32 %v11356_v14, 0.0  ;;  %v12012_v14 = vld [vmem:[%s14808_s2 + $0x60] ss:$0 sm:$0xff] }
 0x3e9   : > { %v2701_v51 = vmul.f32 0.5, %v2700_v56  ;;  %v2191_v33 = vpop.xlane.xlu2 %2190  ;;  %2373 = vadd.xlane.f32.xlu0 %v2372_v41  ;;  %v2185_v18 = vpop.xlane.xlu0 %2184  ;;  %v1832_v13 = vadd.f32 %v11417_v60, %v1783_v0 }
 0x3ea   : > { %v2223_v45 = vmul.f32 %v2191_v33, %v9282_v58  ;;  %v2221_v49 = vmul.f32 %v2185_v18, %v9282_v58  ;;  %v2371_v29 = vpop.xlane.xlu1 %2370 }
 0x3eb   : > { %v2702_v48 = vsub.f32 1.5, %v2701_v51  ;;  %v1880_v23 = vmax.f32 %v1832_v13, 0.0  ;;  %v2411_v16 = vmul.f32 %v2371_v29, %v9282_v58 }
 0x3ec   : > { %v8720_v56 = vpop.eup %8719  ;;  %v11742_v41 = vsub.f32 %v11511_v40, %v2223_v45  ;;  %v11745_v0 = vsub.f32 %v11506_v36, %v2221_v49  ;;  %v11758_v29 = vpop.f32.mrf.mxu2 }
 0x3ed   : > { %v2703_v50 = vmul.f32 %v8718_v5, %v2702_v48  ;;  %v2709_v33 = vmul.f32 %v8720_v56, %v2442_v25  ;;  %8134 = vmatmul.msk.f32.gmra.mxu2 %vm671_vm3, %v1880_v23  ;;  %8182 = vmatmul.msk.f32.gmra.mxu3 %vm671_vm3, %v1880_v23  ;;  %v2443_v51 = vadd.f32 1e-05, %v2411_v16  ;;  %v11760_v23 = vpop.f32.mrf.mxu3  ;;  %vm2715_vm2 = vweird.f32 %v8720_v56 }
 0x3ee   : > { %v2287_v18 = vmul.f32 %v11742_v41, %v11742_v41  ;;  %v2285_v40 = vmul.f32 %v11745_v0, %v11745_v0  ;;  %15062 = vst [vmem:[#allocation51_spill] sm:$0xff] %v11760_v23  ;;  %vm2716_vm5 = vmor %vm2714_vm4, %vm2715_vm2 }
 0x3ef   : > { %v2707_v13 = vsel %vm2706_vm0, %v8718_v5, %v2703_v50  ;;  %v2710_v36 = vmul.f32 %v8720_v56, %v2709_v33  ;;  %v3550_v45 = vpop.f32.mrf.mxu1  ;;  %8721 = vrsqrt.f32 %v2443_v51  ;;  %vm2724_vm7 = vweird.f32 %v2443_v51 }
 0x3f0   : > { %v2793_v49 = vmul.f32 %v2707_v13, %v11446_v39  ;;  %v2381_v59 = vsel %vm671_vm3, %v2287_v18, 0.0  ;;  %8292 = vmatpush.xpose.msk.msra.mxu0 %vm671_vm3, %v3550_v45  ;;  %v2375_v16 = vsel %vm671_vm3, %v2285_v40, 0.0  ;;  %v11768_v13 = vpop.f32.mrf.mxu0 }
 0x3f1   : > { %v2711_v48 = vmul.f32 0.5, %v2710_v36  ;;  %2382 = vadd.xlane.f32.xlu0 %v2381_v59  ;;  %2376 = vadd.xlane.f32.xlu1 %v2375_v16  ;;  %15063 = vst [vmem:[#allocation52_spill] sm:$0xff] %v11768_v13  ;;  %v15064_v36 = vld [vmem:[#allocation18_spill] sm:$0xff]  ;;  %v15066_v59 = vld [vmem:[#allocation8_spill] sm:$0xff] }
 0x3f2   : > { %v2825_v5 = vmul.f32 %v11410_v20, %v2793_v49  ;;  %v2188_v33 = vpop.xlane.xlu1 %2187  ;;  %v15065_v45 = vmax.f32 %v15064_v36, 0.0  ;;  %v15068_v36 = vld [vmem:[#allocation5_spill] sm:$0xff] }
 0x3f3   : > { %v2712_v50 = vsub.f32 1.5, %v2711_v48  ;;  %v2222_v39 = vmul.f32 %v2188_v33, %v9282_v58 }
 0x3f4   : > { %8293 = vmatpush.xpose.msk.msra.mxu0 %vm671_vm3, %v3547_v31  ;;  %v11766_v18 = vadd.f32 %v11417_v60, %v2825_v5 }
 0x3f5   : > { %v2713_v40 = vmul.f32 %v8720_v56, %v2712_v50  ;;  %8215 = vmatmul.msk.f32.vlgmr.msrb.gmra.mxu2 %vm671_vm3, %v15065_v45  ;;  %8249 = vmatmul.msk.f32.vlgmr.msrb.gmra.mxu3 %vm671_vm3, %v15066_v59  ;;  %v8722_v49 = vpop.eup %8721  ;;  %v11776_v48 = vsub.f32 %v11551_v38, %v2222_v39  ;;  %v11793_v39 = vpop.f32.mrf.mxu3  ;;  %v15069_v45 = vmax.f32 %v15068_v36, 0.0  ;;  %v15070_v59 = vld [vmem:[#allocation11_spill] sm:$0xff] }
 0x3f6   : > { %v14880_v31 = vmax.f32 %v11766_v18, 0.0  ;;  %8267 = vmatpush.xpose.msk.msrb.mxu3 %vm671_vm3, %v11399_v17  ;;  %v2719_v5 = vmul.f32 %v8722_v49, %v2443_v51  ;;  %15067 = vst [vmem:[#allocation18_spill] sm:$0xff] %v11793_v39  ;;  %vm2725_vm6 = vweird.f32 %v8722_v49  ;;  %v15077_v36 = vld [vmem:[#allocation15_spill] sm:$0xff]  ;;  %v15117_v39 = vmax.f32 %v11321_v2, 0.0 }
 0x3f7   : > { %v2717_v16 = vsel %vm2716_vm5, %v8720_v56, %v2713_v40  ;;  %8294 = vmatmul.msk.f32.vlgmr.msra.gmra.mxu0 %vm671_vm3, %v11673_v57  ;;  %v2286_v38 = vmul.f32 %v11776_v48, %v11776_v48  ;;  %v3177_v57 = vpop.f32.mrf.mxu2  ;;  %vm2726_vm8 = vmor %vm2724_vm7, %vm2725_vm6 }
 0x3f8   : > { %v2794_v25 = vmul.f32 %v2717_v16, %v11472_v22  ;;  %8208 = vmatmul.msk.f32.gmra.mxu1 %vm671_vm3, %v14880_v31  ;;  %v2720_v50 = vmul.f32 %v8722_v49, %v2719_v5  ;;  %v11804_v16 = vpop.f32.mrf.mxu0  ;;  %v15092_v31 = vld [vmem:[#allocation22_spill] sm:$0xff] }
 0x3f9   : > { %v2378_v33 = vsel %vm671_vm3, %v2286_v38, 0.0  ;;  %15071 = vst [vmem:[#allocation8_spill] sm:$0xff] %v11804_v16 }
 0x3fa   : > { %8268 = vmatpush.xpose.msk.msrb.mxu3 %vm671_vm3, %v11382_v43  ;;  %v2826_v17 = vmul.f32 %v11410_v20, %v2794_v25  ;;  %v2721_v56 = vmul.f32 0.5, %v2720_v50  ;;  %2379 = vadd.xlane.f32.xlu2 %v2378_v33  ;;  %v15072_v33 = vld [vmem:[#allocation2_spill] sm:$0xff] }
 0x3fc   : > { %v11796_v22 = vadd.f32 %v11417_v60, %v2826_v17  ;;  %v2722_v40 = vsub.f32 1.5, %v2721_v56  ;;  %v15073_v17 = vmax.f32 %v15072_v33, 0.0  ;;  %v15074_v56 = vld [vmem:[#allocation12_spill] sm:$0xff] }
 0x3fd   : > { %8216 = vmatmul.msk.f32.gmra.mxu2 %vm671_vm3, %v15069_v45  ;;  %8250 = vmatmul.msk.f32.gmra.mxu3 %vm671_vm3, %v15070_v59  ;;  %v15078_v45 = vmax.f32 %v15077_v36, 0.0 }
 0x3fe   : > { %v14879_v43 = vmax.f32 %v11796_v22, 0.0  ;;  %v2723_v5 = vmul.f32 %v8722_v49, %v2722_v40  ;;  %v11818_v40 = vpop.f32.mrf.mxu3 }
 0x3ff   : > { %8295 = vmatmul.msk.f32.gmra.mxu0 %vm671_vm3, %v11680_v54  ;;  %v3180_v51 = vpop.f32.mrf.mxu2  ;;  %15075 = vst [vmem:[#allocation5_spill] sm:$0xff] %v11818_v40 }
 0x400   : > { %8209 = vmatmul.msk.f32.gmra.mxu1 %vm671_vm3, %v14879_v43  ;;  %v2727_v25 = vsel %vm2726_vm8, %v8722_v49, %v2723_v5  ;;  %v11826_v49 = vpop.f32.mrf.mxu0 }
 0x401   : > { %v2795_v38 = vmul.f32 %v2727_v25, %v11515_v12  ;;  %15076 = vst [vmem:[#allocation11_spill] sm:$0xff] %v11826_v49  ;;  %v15081_v25 = vld [vmem:[#allocation9_spill] sm:$0xff] }
 0x403   : > { %v2827_v50 = vmul.f32 %v11410_v20, %v2795_v38  ;;  %v15082_v38 = vmax.f32 %v15081_v25, 0.0 }
 0x404   : > { %v3553_v20 = vpop.f32.mrf.mxu1 }
 0x405   : > { %8217 = vmatmul.msk.f32.gmra.mxu2 %vm671_vm3, %v15073_v17  ;;  %8251 = vmatmul.msk.f32.gmra.mxu3 %vm671_vm3, %v15074_v56  ;;  %v11821_v54 = vadd.f32 %v11417_v60, %v2827_v50  ;;  %v15083_v50 = vld [vmem:[#allocation21_spill] sm:$0xff] }
 0x406   : > { %v15086_v56 = vld [vmem:[#allocation17_spill] sm:$0xff] }
 0x407   : > { %8296 = vmatmul.msk.f32.gmra.mxu0 %vm671_vm3, %v11691_v62  ;;  %v14878_v12 = vmax.f32 %v11821_v54, 0.0  ;;  %v11838_v60 = vpop.f32.mrf.mxu2  ;;  %v11840_v62 = vpop.f32.mrf.mxu3  ;;  %v15087_v36 = vmax.f32 %v15086_v56, 0.0 }
 0x408   : > { %15079 = vst [vmem:[#allocation2_spill] sm:$0xff] %v11840_v62  ;;  %v11844_v59 = vpop.f32.mrf.mxu0  ;;  %v15115_v62 = vmax.f32 %v11250_v28, 0.0 }
 0x409   : > { %8210 = vmatmul.msk.f32.gmra.mxu1 %vm671_vm3, %v14878_v12  ;;  %15080 = vst [vmem:[#allocation12_spill] sm:$0xff] %v11844_v59  ;;  %v15090_v12 = vld [vmem:[#allocation20_spill] sm:$0xff] }
 0x40a   : > { %v15091_v43 = vmax.f32 %v15090_v12, 0.0 }
 0x40c   : > { %v3556_v5 = vpop.f32.mrf.mxu1 }
 0x40d   : > { %8218 = vmatmul.msk.f32.gmra.mxu2 %vm671_vm3, %v15078_v45  ;;  %8259 = vmatmul.msk.f32.vlgmr.msra.gmra.mxu3 %vm671_vm3, %v10636_v46 }
 0x40e   : > { %8277 = vmatpush.xpose.msk.msra.mxu3 %vm671_vm3, %v11569_v47 }
 0x40f   : > { %v11851_v46 = vpop.f32.mrf.mxu2  ;;  %v11853_v47 = vpop.f32.mrf.mxu3 }
 0x410   : > { %15084 = vst [vmem:[#allocation15_spill] sm:$0xff] %v11853_v47  ;;  %v11855_v33 = vpop.f32.mrf.mxu0 }
 0x411   : > { %15085 = vst [vmem:[#allocation9_spill] sm:$0xff] %v11855_v33  ;;  %v4358_v33 = vlaneseq }
 0x412   : > { %8278 = vmatpush.xpose.msk.msra.mxu3 %vm671_vm3, %v11546_v10  ;;  %v15088_v10 = vld [vmem:[#allocation25_spill] sm:$0xff] }
 0x414   : > { %v3559_v17 = vpop.f32.mrf.mxu1 }
 0x415   : > { %8219 = vmatmul.msk.f32.gmra.mxu2 %vm671_vm3, %v15082_v38  ;;  %8260 = vmatmul.msk.f32.gmra.mxu3 %vm671_vm3, %v15083_v50 }
 0x417   : > { %v11862_v45 = vpop.f32.mrf.mxu2  ;;  %v11864_v25 = vpop.f32.mrf.mxu3 }
 0x418   : > { %15089 = vst [vmem:[#allocation21_spill] sm:$0xff] %v11864_v25  ;;  %v11866_v38 = vpop.f32.mrf.mxu0 }
 0x41d   : > { %8220 = vmatmul.msk.f32.gmra.mxu2 %vm671_vm3, %v15087_v36  ;;  %8261 = vmatmul.msk.f32.gmra.mxu3 %vm671_vm3, %v15088_v10 }
 0x41f   : > { %v11876_v56 = vpop.f32.mrf.mxu2  ;;  %v11878_v36 = vpop.f32.mrf.mxu3 }
 0x420   : > { %15093 = vst [vmem:[#allocation17_spill] sm:$0xff] %v11878_v36  ;;  %v15102_v36 = vld [vmem:[#allocation34_spill] sm:$0xff] }
 0x421   : > { %v15103_v25 = vmax.f32 %v15102_v36, 0.0 }
 0x425   : > { %v3562_v50 = vpop.f32.mrf.mxu1  ;;  %8221 = vmatmul.msk.f32.gmra.mxu2 %vm671_vm3, %v15091_v43  ;;  %8269 = vmatmul.msk.f32.vlgmr.msrb.gmra.mxu3 %vm671_vm3, %v15092_v31  ;;  %v15094_v43 = vld [vmem:[#allocation31_spill] sm:$0xff] }
 0x426   : > { %8302 = vmatpush.xpose.msk.msrb.mxu0 %vm671_vm3, %v3562_v50  ;;  %8287 = vmatpush.xpose.msk.msrb.mxu3 %vm671_vm3, %v11716_v3  ;;  %v15095_v12 = vmax.f32 %v15094_v43, 0.0  ;;  %v15096_v31 = vld [vmem:[#allocation23_spill] sm:$0xff]  ;;  %v11890_v3 = vpop.f32.mrf.mxu0 }
 0x427   : > { %v11892_v10 = vpop.f32.mrf.mxu2  ;;  %v11894_v50 = vpop.f32.mrf.mxu3 }
 0x428   : > { %15097 = vst [vmem:[#allocation25_spill] sm:$0xff] %v11894_v50 }
 0x42a   : > { %8303 = vmatpush.xpose.msk.msrb.mxu0 %vm671_vm3, %v3559_v17  ;;  %8288 = vmatpush.xpose.msk.msrb.mxu3 %vm671_vm3, %v11700_v63  ;;  %v15098_v17 = vld [vmem:[#allocation32_spill] sm:$0xff] }
 0x42b   : > { %v15099_v63 = vmax.f32 %v15098_v17, 0.0 }
 0x42d   : > { %8304 = vmatmul.msk.f32.vlgmr.msrb.gmra.mxu0 %vm671_vm3, %v11758_v29  ;;  %8222 = vmatmul.msk.f32.gmra.mxu2 %vm671_vm3, %v15095_v12  ;;  %v15100_v29 = vld [vmem:[#allocation33_spill] sm:$0xff] }
 0x42e   : > { %8270 = vmatmul.msk.f32.gmra.mxu3 %vm671_vm3, %v15096_v31  ;;  %v11902_v43 = vpop.f32.mrf.mxu0 }
 0x42f   : > { %v11904_v12 = vpop.f32.mrf.mxu2  ;;  %v11906_v31 = vpop.f32.mrf.mxu3 }
 0x430   : > { %15101 = vst [vmem:[#allocation20_spill] sm:$0xff] %v11906_v31 }
 0x435   : > { %8305 = vmatmul.msk.f32.gmra.mxu0 %vm671_vm3, %v3177_v57  ;;  %8223 = vmatmul.msk.f32.gmra.mxu2 %vm671_vm3, %v15099_v63 }
 0x436   : > { %8271 = vmatmul.msk.f32.gmra.mxu3 %vm671_vm3, %v15100_v29  ;;  %v11915_v57 = vpop.f32.mrf.mxu0  ;;  %v15105_v29 = vld [vmem:[#allocation30_spill] sm:$0xff] }
 0x437   : > { %v11918_v17 = vpop.f32.mrf.mxu2  ;;  %v11920_v63 = vpop.f32.mrf.mxu3  ;;  %v15106_v31 = vmax.f32 %v15105_v29, 0.0  ;;  %v15110_v29 = vld [vmem:[#allocation3_spill] sm:$0xff] }
 0x438   : > { %15104 = vst [vmem:[#allocation22_spill] sm:$0xff] %v11920_v63 }
 0x43d   : > { %8306 = vmatmul.msk.f32.gmra.mxu0 %vm671_vm3, %v3180_v51  ;;  %8224 = vmatmul.msk.f32.gmra.mxu2 %vm671_vm3, %v15103_v25 }
 0x43e   : > { %8279 = vmatmul.msk.f32.vlgmr.msra.gmra.mxu3 %vm671_vm3, %v11441_v8  ;;  %v11927_v51 = vpop.f32.mrf.mxu0  ;;  %v15107_v8 = vld [vmem:[#allocation24_spill] sm:$0xff] }
 0x43f   : > { %8297 = vmatpush.xpose.msk.msra.mxu3 %vm671_vm3, %v3556_v5  ;;  %v15108_v25 = vmax.f32 %v15107_v8, 0.0  ;;  %v11932_v5 = vpop.f32.mrf.mxu2 }
 0x443   : > { %8298 = vmatpush.xpose.msk.msra.mxu3 %vm671_vm3, %v3553_v20  ;;  %v11934_v20 = vpop.f32.mrf.mxu3 }
 0x444   : > { %15109 = vst [vmem:[#allocation31_spill] sm:$0xff] %v11934_v20 }
 0x445   : > { %8225 = vmatmul.msk.f32.gmra.mxu2 %vm671_vm3, %v15106_v31  ;;  %v15111_v31 = vmax.f32 %v15110_v29, 0.0 }
 0x446   : > { %8280 = vmatmul.msk.f32.gmra.mxu3 %vm671_vm3, %v11482_v42  ;;  %v11938_v36 = vpop.f32.mrf.mxu0 }
 0x447   : > { %v11943_v42 = vpop.f32.mrf.mxu2 }
 0x44b   : > { %v11945_v63 = vpop.f32.mrf.mxu3 }
 0x44c   : > { %15112 = vst [vmem:[#allocation23_spill] sm:$0xff] %v11945_v63 }
 0x44d   : > { %8226 = vmatmul.msk.f32.gmra.mxu2 %vm671_vm3, %v15108_v25 }
 0x44e   : > { %8281 = vmatmul.msk.f32.gmra.mxu3 %vm671_vm3, %v11534_v27  ;;  %v11949_v25 = vpop.f32.mrf.mxu0  ;;  %v15113_v27 = vmax.f32 %v11184_v35, 0.0 }
 0x453   : > { %v11959_v50 = vpop.f32.mrf.mxu3 }
 0x454   : > { %15114 = vst [vmem:[#allocation32_spill] sm:$0xff] %v11959_v50 }
 0x455   : > { %8227 = vmatmul.msk.f32.gmra.mxu2 %vm671_vm3, %v15111_v31  ;;  %v11957_v31 = vpop.f32.mrf.mxu2 }
 0x456   : > { %8289 = vmatmul.msk.f32.vlgmr.msrb.gmra.mxu3 %vm671_vm3, %v11636_v7 }
 0x45b   : > { %v11974_v50 = vpop.f32.mrf.mxu3 }
 0x45c   : > { %v2374_v8 = vpop.xlane.xlu0 %2373  ;;  %15116 = vst [vmem:[#allocation33_spill] sm:$0xff] %v11974_v50 }
 0x45d   : > { %v2412_v20 = vmul.f32 %v2374_v8, %v9282_v58  ;;  %8228 = vmatmul.msk.f32.gmra.mxu2 %vm671_vm3, %v15113_v27  ;;  %v11972_v27 = vpop.f32.mrf.mxu2 }
 0x45e   : > { %8290 = vmatmul.msk.f32.gmra.mxu3 %vm671_vm3, %v11654_v1 }
 0x45f   : > { %v2444_v29 = vadd.f32 1e-05, %v2412_v20  ;;  %v11968_v20 = vpop.f32.mrf.mxu0 }
 0x461   : > { %8723 = vrsqrt.f32 %v2444_v29  ;;  %vm2734_vm10 = vweird.f32 %v2444_v29 }
 0x464   : > { %v2383_v63 = vpop.xlane.xlu0 %2382  ;;  %v2377_v47 = vpop.xlane.xlu1 %2376 }
 0x465   : > { %v2415_v7 = vmul.f32 %v2383_v63, %v9282_v58  ;;  %8229 = vmatmul.msk.f32.gmra.mxu2 %vm671_vm3, %v15115_v62  ;;  %v2413_v35 = vmul.f32 %v2377_v47, %v9282_v58  ;;  %v3565_v47 = vpop.f32.mrf.mxu1 }
 0x466   : > { %8291 = vmatmul.msk.f32.gmra.mxu3 %vm671_vm3, %v11667_v19 }
 0x467   : > { %v8724_v1 = vpop.eup %8723  ;;  %v11970_v8 = vadd.f32 1e-05, %v2415_v7  ;;  %v2445_v40 = vadd.f32 1e-05, %v2413_v35 }
 0x468   : > { %v2729_v63 = vmul.f32 %v8724_v1, %v2444_v29  ;;  %vm2735_vm9 = vweird.f32 %v8724_v1 }
 0x469   : > { %8725 = vrsqrt.f32 %v11970_v8  ;;  %vm2736_vm11 = vmor %vm2734_vm10, %vm2735_vm9  ;;  %vm2744_vm15 = vweird.f32 %v2445_v40  ;;  %vm2764_vm5 = vweird.f32 %v11970_v8 }
 0x46a   : > { %v2730_v28 = vmul.f32 %v8724_v1, %v2729_v63  ;;  %8727 = vrsqrt.f32 %v2445_v40 }
 0x46c   : > { %v2731_v62 = vmul.f32 0.5, %v2730_v28 }
 0x46d   : > { %8230 = vmatmul.msk.f32.gmra.mxu2 %vm671_vm3, %v15117_v39  ;;  %v2380_v7 = vpop.xlane.xlu2 %2379 }
 0x46e   : > { %v2732_v19 = vsub.f32 1.5, %v2731_v62  ;;  %8299 = vmatmul.msk.f32.vlgmr.msra.gmra.mxu3 %vm671_vm3, %v11702_v24  ;;  %v2414_v35 = vmul.f32 %v2380_v7, %v9282_v58  ;;  %v11991_v62 = vpop.f32.mrf.mxu0  ;;  %v11994_v7 = vand.u32 127, %v4358_v33 }
 0x46f   : > { %v11982_v23 = vpop.eup %8725 }
 0x470   : > { %v8728_v50 = vpop.eup %8727  ;;  %v2733_v63 = vmul.f32 %v8724_v1, %v2732_v19  ;;  %v2759_v28 = vmul.f32 %v11982_v23, %v11970_v8  ;;  %v11987_v2 = vpop.f32.mrf.mxu2  ;;  %v2446_v24 = vadd.f32 1e-05, %v2414_v35  ;;  %15119 = vst [vmem:[#allocation30_spill] sm:$0xff] %v11994_v7  ;;  %vm4360_vm13 = vcmp.lt.s32.totalorder %v11994_v7, 10 }
 0x471   : > { %v11989_v39 = vpop.f32.mrf.mxu3  ;;  %v2739_v59 = vmul.f32 %v8728_v50, %v2445_v40  ;;  %vm2745_vm12 = vweird.f32 %v8728_v50  ;;  %vm2765_vm2 = vweird.f32 %v11982_v23 }
 0x472   : > { %15118 = vst [vmem:[#allocation34_spill] sm:$0xff] %v11989_v39  ;;  %v2737_v49 = vsel %vm2736_vm11, %v8724_v1, %v2733_v63  ;;  %8729 = vrsqrt.f32 %v2446_v24  ;;  %v2760_v29 = vmul.f32 %v11982_v23, %v2759_v28  ;;  %v12003_v39 = vld [vmem:[%s14808_s2 + $0x58] ss:$0 sm:$0xff]  ;;  %vm2746_vm0 = vmor %vm2744_vm15, %vm2745_vm12  ;;  %vm2754_vm7 = vweird.f32 %v2446_v24 }
 0x473   : > { %v2796_v16 = vmul.f32 %v2737_v49, %v11725_v44  ;;  %v2740_v58 = vmul.f32 %v8728_v50, %v2739_v59  ;;  %vm2766_vm6 = vmor %vm2764_vm5, %vm2765_vm2 }
 0x474   : > { %v2761_v49 = vmul.f32 0.5, %v2760_v29 }
 0x475   : > { %v2741_v19 = vmul.f32 0.5, %v2740_v58  ;;  %v3568_v13 = vpop.f32.mrf.mxu1  ;;  %8231 = vmatmul.msk.f32.gmra.mxu2 %vm671_vm3, %v15120_v9  ;;  %v2828_v1 = vmul.f32 %v12003_v39, %v2796_v16 }
 0x476   : > { %8307 = vmatpush.xpose.msk.msrb.mxu1 %vm671_vm3, %v3568_v13  ;;  %8300 = vmatmul.msk.f32.gmra.mxu3 %vm671_vm3, %v11718_v15  ;;  %v12020_v33 = vpop.f32.mrf.mxu0  ;;  %v2762_v40 = vsub.f32 1.5, %v2761_v49 }
 0x477   : > { %v2742_v44 = vsub.f32 1.5, %v2741_v19  ;;  %v12015_v9 = vadd.f32 %v12012_v14, %v2828_v1 }
 0x478   : > { %v12018_v59 = vpop.f32.mrf.mxu2  ;;  %v8730_v13 = vpop.eup %8729 }
 0x479   : > { %v3734_v16 = vpop.f32.mrf.mxu3  ;;  %v2743_v15 = vmul.f32 %v8728_v50, %v2742_v44  ;;  %v2892_v35 = vmax.f32 %v12015_v9, 0.0  ;;  %v2749_v28 = vmul.f32 %v8730_v13, %v2446_v24  ;;  %vm2755_vm4 = vweird.f32 %v8730_v13 }
 0x47a   : > { %v12025_v63 = vsel %vm4360_vm13, %v3734_v16, -1e+30  ;;  %8308 = vmatpush.xpose.msk.msrb.mxu1 %vm671_vm3, %v3565_v47  ;;  %v15121_v16 = vmax.f32 %v11387_v61, 0.0  ;;  %v12040_v47 = vsel %vm4360_vm13, %v11866_v38, -1e+30  ;;  %vm2756_vm8 = vmor %vm2754_vm7, %vm2755_vm4  ;;  %v15122_v24 = vmax.f32 %v11460_v34, 0.0 }
 0x47b   : > { %v4412_v58 = vsel %vm4411_vm14, %v12025_v63, -inf  ;;  %v2747_v29 = vsel %vm2746_vm0, %v8728_v50, %v2743_v15  ;;  %8211 = vmatmul.msk.f32.gmra.mxu1 %vm671_vm3, %v2892_v35  ;;  %v2750_v1 = vmul.f32 %v8730_v13, %v2749_v28 }
 0x47c   : > { %4413 = vmax.xlane.f32.xlu1 %v4412_v58  ;;  %v2797_v19 = vmul.f32 %v2747_v29, %v11745_v0  ;;  %v2763_v0 = vmul.f32 %v11982_v23, %v2762_v40 }
 0x47d   : > { %v3571_v44 = vpop.f32.mrf.mxu1  ;;  %8232 = vmatmul.msk.f32.gmra.mxu2 %vm671_vm3, %v15121_v16  ;;  %v2751_v50 = vmul.f32 0.5, %v2750_v1 }
 0x47e   : > { %8301 = vmatmul.msk.f32.gmra.mxu3 %vm671_vm3, %v11733_v53  ;;  %v2829_v15 = vmul.f32 %v12003_v39, %v2797_v19  ;;  %v4421_v53 = vsel %vm4411_vm14, %v12040_v47, -inf  ;;  %v12060_v1 = vpop.f32.mrf.mxu0  ;;  %v2767_v8 = vsel %vm2766_vm6, %v11982_v23, %v2763_v0 }
 0x47f   : > { %v2752_v49 = vsub.f32 1.5, %v2751_v50 }
 0x480   : > { %v12048_v61 = vadd.f32 %v12012_v14, %v2829_v15  ;;  %v3609_v28 = vpop.f32.mrf.mxu2  ;;  %v12073_v15 = vsel %vm4360_vm13, %v11927_v51, -1e+30 }
 0x481   : > { %v3737_v58 = vpop.f32.mrf.mxu3  ;;  %v2753_v29 = vmul.f32 %v8730_v13, %v2752_v49  ;;  %v2799_v49 = vmul.f32 %v2767_v8, %v11742_v41  ;;  %v4442_v41 = vsel %vm4411_vm14, %v12073_v15, -inf }
 0x482   : > { %v12053_v38 = vsel %vm4360_vm13, %v3737_v58, -1e+30  ;;  %v2893_v40 = vmax.f32 %v12048_v61, 0.0 }
 0x483   : > { %v4415_v19 = vsel %vm4411_vm14, %v12053_v38, -inf  ;;  %v2757_v16 = vsel %vm2756_vm8, %v8730_v13, %v2753_v29  ;;  %v12080_v13 = vsel %vm4360_vm13, %v11915_v57, -1e+30 }
 0x484   : > { %4422 = vmax.xlane.f32.xlu1 %v4421_v53  ;;  %4416 = vmax.xlane.f32.xlu2 %v4415_v19  ;;  %v2798_v50 = vmul.f32 %v2757_v16, %v11776_v48  ;;  %v4439_v29 = vsel %vm4411_vm14, %v12080_v13, -inf  ;;  %v2831_v19 = vmul.f32 %v12003_v39, %v2799_v49  ;;  %v15123_v16 = vmax.f32 %v11495_v4, 0.0 }
 0x485   : > { %8212 = vmatmul.msk.f32.gmra.mxu1 %vm671_vm3, %v2893_v40  ;;  %8233 = vmatmul.msk.f32.gmra.mxu2 %vm671_vm3, %v15122_v24 }
 0x486   : > { %v3574_v58 = vpop.f32.mrf.mxu1  ;;  %v2830_v23 = vmul.f32 %v12003_v39, %v2798_v50  ;;  %v12101_v8 = vpop.f32.mrf.mxu0  ;;  %v12112_v50 = vsel %vm4360_vm13, %v11890_v3, -1e+30  ;;  %v12117_v39 = vadd.f32 %v12012_v14, %v2831_v19 }
 0x487   : > { %8312 = vmatpush.xpose.msk.msrb.mxu3 %vm671_vm3, %v3574_v58  ;;  %v4424_v3 = vsel %vm4411_vm14, %v12112_v50, -inf }
 0x488   : > { %v12083_v34 = vpop.f32.mrf.mxu2  ;;  %v12086_v0 = vadd.f32 %v12012_v14, %v2830_v23  ;;  %v2895_v24 = vmax.f32 %v12117_v39, 0.0 }
 0x489   : > { %v3740_v48 = vpop.f32.mrf.mxu3 }
 0x48a   : > { %v12090_v51 = vsel %vm4360_vm13, %v3740_v48, -1e+30  ;;  %v2894_v57 = vmax.f32 %v12086_v0, 0.0 }
 0x48b   : > { %v4418_v53 = vsel %vm4411_vm14, %v12090_v51, -inf  ;;  %8313 = vmatpush.xpose.msk.msrb.mxu3 %vm671_vm3, %v3571_v44  ;;  %v12122_v44 = vsel %vm4360_vm13, %v11902_v43, -1e+30  ;;  %v15124_v43 = vmax.f32 %v11578_v37, 0.0 }
 0x48c   : > { %4443 = vmax.xlane.f32.xlu1 %v4442_v41  ;;  %4419 = vmax.xlane.f32.xlu0 %v4418_v53 }
 0x48d   : > { %4440 = vmax.xlane.f32.xlu2 %v4439_v29  ;;  %8213 = vmatmul.msk.f32.gmra.mxu1 %vm671_vm3, %v2894_v57 }
 0x48e   : > { %8234 = vmatmul.msk.f32.gmra.mxu2 %vm671_vm3, %v15123_v16  ;;  %8314 = vmatmul.msk.f32.vlgmr.msrb.gmra.mxu3 %vm671_vm3, %v11876_v56  ;;  %v4427_v56 = vsel %vm4411_vm14, %v12122_v44, -inf  ;;  %v4103_v14 = vpop.f32.mrf.mxu0 }
 0x48f   : > { %5587 = vmatpush.msra.mxu3 %v3609_v28  ;;  %v12147_v49 = vsel %vm4360_vm13, %v4103_v14, -1e+30 }
 0x490   : > { %v12125_v4 = vpop.f32.mrf.mxu2  ;;  %v4493_v48 = vsel %vm4411_vm14, %v12147_v49, -inf }
 0x491   : > { %5588 = vmatpush.msra.mxu3 %v12018_v59  ;;  %v3816_v28 = vpop.f32.mrf.mxu3  ;;  %v12141_v59 = vsel %vm4360_vm13, %v11938_v36, -1e+30 }
 0x492   : > { %v4445_v37 = vsel %vm4411_vm14, %v12141_v59, -inf  ;;  %v12164_v36 = vsel %vm4360_vm13, %v3816_v28, -1e+30 }
 0x493   : > { %v4430_v29 = vsel %vm4411_vm14, %v12164_v36, -inf }
 0x494   : > { %4425 = vmax.xlane.f32.xlu0 %v4424_v3 }
 0x495   : > { %4428 = vmax.xlane.f32.xlu2 %v4427_v56  ;;  %8214 = vmatmul.msk.f32.gmra.mxu1 %vm671_vm3, %v2895_v24 }
 0x496   : > { %8235 = vmatmul.msk.f32.gmra.mxu2 %vm671_vm3, %v15124_v43  ;;  %8315 = vmatmul.msk.f32.gmra.mxu3 %vm671_vm3, %v11892_v10  ;;  %v15125_v10 = vmax.f32 %v11601_v11, 0.0  ;;  %v15126_v11 = vmax.f32 %v11621_v6, 0.0  ;;  %v4106_v56 = vpop.f32.mrf.mxu0 }
 0x498   : > { %v12149_v58 = vpop.f32.mrf.mxu2 }
 0x499   : > { %v3819_v23 = vpop.f32.mrf.mxu3 }
 0x49c   : > { %4446 = vmax.xlane.f32.xlu0 %v4445_v37 }
 0x49d   : > { %4494 = vmax.xlane.f32.xlu2 %v4493_v48  ;;  %8309 = vmatmul.msk.f32.vlgmr.msrb.gmra.mxu1 %vm671_vm3, %v11838_v60  ;;  %v12177_v60 = vsel %vm4360_vm13, %v3819_v23, -1e+30 }
 0x49e   : > { %8236 = vmatmul.msk.f32.gmra.mxu2 %vm671_vm3, %v15125_v10  ;;  %8316 = vmatmul.msk.f32.gmra.mxu3 %vm671_vm3, %v11904_v12  ;;  %v4433_v16 = vsel %vm4411_vm14, %v12177_v60, -inf  ;;  %v4109_v48 = vpop.f32.mrf.mxu0  ;;  %v15129_v10 = vmax.f32 %v11766_v18, 0.0 }
 0x4a0   : > { %v12166_v41 = vpop.f32.mrf.mxu2 }
 0x4a1   : > { %v3822_v53 = vpop.f32.mrf.mxu3 }
 0x4a2   : > { %v12190_v6 = vsel %vm4360_vm13, %v3822_v53, -1e+30 }
 0x4a3   : > { %v4436_v14 = vsel %vm4411_vm14, %v12190_v6, -inf }
 0x4a5   : > { %4431 = vmax.xlane.f32.xlu2 %v4430_v29  ;;  %8310 = vmatmul.msk.f32.gmra.mxu1 %vm671_vm3, %v11851_v46  ;;  %v15127_v46 = vmax.f32 %v11649_v26, 0.0  ;;  %v12201_v26 = vsel %vm4360_vm13, %v4106_v56, -1e+30 }
 0x4a6   : > { %8237 = vmatmul.msk.f32.gmra.mxu2 %vm671_vm3, %v15126_v11  ;;  %v4496_v37 = vsel %vm4411_vm14, %v12201_v26, -inf }
 0x4a8   : > { %v3624_v12 = vpop.f32.mrf.mxu2 }
 0x4a9   : > { %v12179_v19 = vpop.f32.mrf.mxu3 }
 0x4ad   : > { %4434 = vmax.xlane.f32.xlu2 %v4433_v16  ;;  %8311 = vmatmul.msk.f32.gmra.mxu1 %vm671_vm3, %v11862_v45  ;;  %v15128_v45 = vmax.f32 %v11707_v32, 0.0  ;;  %v12214_v32 = vsel %vm4360_vm13, %v4109_v48, -1e+30 }
 0x4ae   : > { %8238 = vmatmul.msk.f32.gmra.mxu2 %vm671_vm3, %v15127_v46  ;;  %v4499_v11 = vsel %vm4411_vm14, %v12214_v32, -inf  ;;  %v15131_v46 = vmax.f32 %v11821_v54, 0.0 }
 0x4b0   : > { %v3627_v28 = vpop.f32.mrf.mxu2 }
 0x4b1   : > { %v12192_v3 = vpop.f32.mrf.mxu3  ;;  %5692 = vmatpush.msrb.mxu3 %v3627_v28 }
 0x4b3   : > { %5693 = vmatpush.msrb.mxu3 %v3624_v12  ;;  %v15130_v12 = vmax.f32 %v11796_v22, 0.0 }
 0x4b5   : > { %4437 = vmax.xlane.f32.xlu2 %v4436_v14 }
 0x4b6   : > { %8239 = vmatmul.msk.f32.gmra.mxu2 %vm671_vm3, %v15128_v45 }
 0x4b8   : > { %v12203_v43 = vpop.f32.mrf.mxu2 }
 0x4b9   : > { %v12205_v23 = vpop.f32.mrf.mxu3 }
 0x4bd   : > { %4497 = vmax.xlane.f32.xlu2 %v4496_v37 }
 0x4be   : > { %8240 = vmatmul.msk.f32.gmra.mxu2 %vm671_vm3, %v15129_v10 }
 0x4c0   : > { %v3633_v53 = vpop.f32.mrf.mxu2 }
 0x4c1   : > { %v12216_v29 = vpop.f32.mrf.mxu3 }
 0x4c5   : > { %4500 = vmax.xlane.f32.xlu2 %v4499_v11 }
 0x4c6   : > { %8241 = vmatmul.msk.f32.gmra.mxu2 %vm671_vm3, %v15130_v12 }
 0x4c8   : > { %v12223_v16 = vpop.f32.mrf.mxu2 }
 0x4c9   : > { %v12225_v18 = vpop.f32.mrf.mxu3 }
 0x4ce   : > { %8242 = vmatmul.msk.f32.gmra.mxu2 %vm671_vm3, %v15131_v46 }
 0x4d0   : > { %v12230_v28 = vpop.f32.mrf.mxu2 }
 0x4d1   : > { %v12235_v56 = vpop.f32.mrf.mxu3 }
 0x4d6   : > { %8243 = vmatmul.msk.f32.gmra.mxu2 %vm671_vm3, %v2892_v35 }
 0x4d8   : > { %v12237_v14 = vpop.f32.mrf.mxu2 }
 0x4d9   : > { %v12244_v45 = vpop.f32.mrf.mxu3 }
 0x4da   : > { %15132 = vst [vmem:[#allocation24_spill] sm:$0xff] %v12244_v45 }
 0x4de   : > { %8244 = vmatmul.msk.f32.gmra.mxu2 %vm671_vm3, %v2893_v40 }
 0x4e0   : > { %v12242_v22 = vpop.f32.mrf.mxu2 }
 0x4e1   : > { %v12251_v9 = vpop.f32.mrf.mxu3 }
 0x4e2   : > { %15133 = vst [vmem:[#allocation3_spill] sm:$0xff] %v12251_v9 }
 0x4e6   : > { %8245 = vmatmul.msk.f32.gmra.mxu2 %vm671_vm3, %v2894_v57 }
 0x4e8   : > { %v12249_v54 = vpop.f32.mrf.mxu2 }
 0x4e9   : > { %v12258_v40 = vpop.f32.mrf.mxu3 }
 0x4ea   : > { %15134 = vst [vmem:[#allocation53_spill] sm:$0xff] %v12258_v40 }
 0x4ee   : > { %8246 = vmatmul.msk.f32.gmra.mxu2 %vm671_vm3, %v2895_v24 }
 0x4ef   : > { %v4414_v35 = vpop.xlane.xlu1 %4413 }
 0x4f0   : > { %v12256_v61 = vpop.f32.mrf.mxu2  ;;  %v4556_v12 = vsub.f32 %v12025_v63, %v4414_v35 }
 0x4f1   : > { %v12264_v39 = vpop.f32.mrf.mxu3 }
 0x4f2   : > { %v4604_v46 = vmul.f32 1.442695, %v4556_v12  ;;  %15135 = vst [vmem:[#allocation54_spill] sm:$0xff] %v12264_v39 }
 0x4f7   : > { %v4417_v37 = vpop.xlane.xlu2 %4416  ;;  %v4423_v48 = vpop.xlane.xlu1 %4422 }
 0x4f8   : > { %v4559_v10 = vsub.f32 %v12040_v47, %v4423_v48  ;;  %v3577_v0 = vpop.f32.mrf.mxu1  ;;  %v12261_v11 = vpop.f32.mrf.mxu2  ;;  %v4557_v47 = vsub.f32 %v12053_v38, %v4417_v37 }
 0x4f9   : > { %v12281_v38 = vpop.f32.mrf.mxu3 }
 0x4fa   : > { %v4610_v57 = vmul.f32 1.442695, %v4559_v10  ;;  %v4606_v35 = vmul.f32 1.442695, %v4557_v47  ;;  %15136 = vst [vmem:[#allocation55_spill] sm:$0xff] %v12281_v38 }
 0x4fc   : > { %8731 = vpow2.f32 %v4610_v57 }
 0x4fd   : > { %8733 = vpow2.f32 %v4604_v46 }
 0x4ff   : > { %v4420_v10 = vpop.xlane.xlu0 %4419 }
 0x500   : > { %v4441_v24 = vpop.xlane.xlu2 %4440  ;;  %v12267_v55 = vpop.f32.mrf.mxu2  ;;  %v4558_v37 = vsub.f32 %v12090_v51, %v4420_v10 }
 0x501   : > { %v4565_v52 = vsub.f32 %v12080_v13, %v4441_v24 }
 0x502   : > { %v3580_v30 = vpop.f32.mrf.mxu1  ;;  %v12269_v21 = vpop.eup %8731 }
 0x503   : > { %v4622_v48 = vmul.f32 1.442695, %v4565_v52  ;;  %8317 = vmatpush.xpose.msk.msra.mxu0 %vm671_vm3, %v3580_v30  ;;  %v4709_v63 = vsel %vm4411_vm14, %v12269_v21, 0.0  ;;  %v12277_v57 = vpop.eup %8733 }
 0x504   : > { %4710 = vadd.xlane.f32.xlu1 %v4709_v63 }
 0x505   : > { %8735 = vpow2.f32 %v4622_v48  ;;  %v12307_v48 = vpop.f32.mrf.mxu3 }
 0x506   : > { %8737 = vpow2.f32 %v4606_v35  ;;  %15137 = vst [vmem:[#allocation56_spill] sm:$0xff] %v12307_v48  ;;  %v4444_v35 = vpop.xlane.xlu1 %4443 }
 0x507   : > { %8318 = vmatpush.xpose.msk.msra.mxu0 %vm671_vm3, %v3577_v0  ;;  %v4700_v0 = vsel %vm4411_vm14, %v12277_v57, 0.0  ;;  %v4426_v51 = vpop.xlane.xlu0 %4425 }
 0x508   : > { %v4429_v13 = vpop.xlane.xlu2 %4428  ;;  %v12279_v12 = vpop.f32.mrf.mxu2 }
 0x50a   : > { %8319 = vmatmul.msk.f32.vlgmr.msra.gmra.mxu0 %vm671_vm3, %v11918_v17  ;;  %v3583_v52 = vpop.f32.mrf.mxu1  ;;  %v4608_v17 = vmul.f32 1.442695, %v4558_v37  ;;  %v12319_v37 = vsel %vm4360_vm13, %v12225_v18, -1e+30  ;;  %v4561_v18 = vsub.f32 %v12122_v44, %v4429_v13  ;;  %v12343_v44 = vsel %vm4360_vm13, %v12235_v56, -1e+30 }
 0x50b   : > { %5622 = vmatpush.msrb.mxu0 %v12125_v4  ;;  %v12285_v30 = vpop.eup %8735 }
 0x50c   : > { %v4727_v4 = vsel %vm4411_vm14, %v12285_v30, 0.0  ;;  %4701 = vadd.xlane.f32.xlu1 %v4700_v0  ;;  %v12296_v24 = vpop.eup %8737  ;;  %8739 = vpow2.f32 %v4608_v17  ;;  %v4566_v17 = vsub.f32 %v12073_v15, %v4444_v35 }
 0x50d   : > { %5623 = vmatpush.msrb.mxu0 %v12083_v34  ;;  %4728 = vadd.xlane.f32.xlu0 %v4727_v4  ;;  %v12301_v34 = vsel %vm4360_vm13, %v12216_v29, -1e+30  ;;  %v4703_v29 = vsel %vm4411_vm14, %v12296_v24, 0.0 }
 0x50e   : > { %v4466_v63 = vsel %vm4411_vm14, %v12301_v34, -inf  ;;  %v4624_v15 = vmul.f32 1.442695, %v4566_v17 }
 0x50f   : > { %5727 = vmatpush.msra.mxu0 %v3633_v53 }
 0x510   : > { %v12294_v46 = vpop.xlane.xlu2 %4494 }
 0x511   : > { %5728 = vmatpush.msra.mxu0 %v12203_v43  ;;  %v12305_v53 = vpop.f32.mrf.mxu2  ;;  %v4560_v43 = vsub.f32 %v12112_v50, %v4426_v51  ;;  %v4267_v51 = vpop.f32.mrf.mxu3 }
 0x512   : > { %8320 = vmatmul.msk.f32.gmra.mxu0 %vm671_vm3, %v11932_v5  ;;  %v3586_v47 = vpop.f32.mrf.mxu1  ;;  %v12323_v4 = vpop.eup %8739 }
 0x513   : > { %8322 = vmatpush.xpose.msk.msra.mxu1 %vm671_vm3, %v3586_v47  ;;  %v4612_v5 = vmul.f32 1.442695, %v4560_v43  ;;  %v4472_v47 = vsel %vm4411_vm14, %v12343_v44, -inf }
 0x514   : > { %4704 = vadd.xlane.f32.xlu1 %v4703_v29 }
 0x515   : > { %4467 = vmax.xlane.f32.xlu0 %v4466_v63  ;;  %8741 = vpow2.f32 %v4612_v5 }
 0x517   : > { %8323 = vmatpush.xpose.msk.msra.mxu1 %vm671_vm3, %v3583_v52 }
 0x518   : > { %v4432_v10 = vpop.xlane.xlu2 %4431 }
 0x519   : > { %v4562_v50 = vsub.f32 %v12164_v36, %v4432_v10  ;;  %v12327_v0 = vpop.f32.mrf.mxu2  ;;  %v4469_v36 = vsel %vm4411_vm14, %v12319_v37, -inf  ;;  %v4270_v63 = vpop.f32.mrf.mxu3 }
 0x51a   : > { %8321 = vmatmul.msk.f32.gmra.mxu0 %vm671_vm3, %v11943_v42  ;;  %15138 = vst [vmem:[#allocation57_spill] sm:$0xff] %v12327_v0  ;;  %8324 = vmatmul.msk.f32.vlgmr.msra.gmra.mxu1 %vm671_vm3, %v11957_v31  ;;  %v4706_v42 = vsel %vm4411_vm14, %v12323_v4, 0.0  ;;  %v4614_v31 = vmul.f32 1.442695, %v4561_v18 }
 0x51b   : > { %5657 = vmatpush.msrb.mxu1 %v12166_v41  ;;  %v4616_v52 = vmul.f32 1.442695, %v4562_v50  ;;  %v12345_v41 = vpop.eup %8741 }
 0x51c   : > { %4707 = vadd.xlane.f32.xlu1 %v4706_v42  ;;  %v4712_v43 = vsel %vm4411_vm14, %v12345_v41, 0.0  ;;  %v12389_v42 = vpop.f32.mrf.mxu1 }
 0x51d   : > { %5658 = vmatpush.msrb.mxu1 %v12149_v58  ;;  %8743 = vpow2.f32 %v4616_v52  ;;  %4470 = vmax.xlane.f32.xlu0 %v4469_v36  ;;  %v4447_v58 = vpop.xlane.xlu0 %4446  ;;  %v12381_v52 = vsel %vm4360_vm13, %v12179_v19, -1e+30  ;;  %15142 = vst [vmem:[#allocation61_spill] sm:$0xff] %v12389_v42  ;;  %v12396_v19 = vsel %vm4360_vm13, %v12205_v23, -1e+30 }
 0x51e   : > { %8745 = vpow2.f32 %v4624_v15  ;;  %v4448_v36 = vsel %vm4411_vm14, %v12381_v52, -inf }
 0x51f   : > { %5762 = vmatpush.msra.mxu1 %v12230_v28  ;;  %8747 = vpow2.f32 %v4614_v31 }
 0x520   : > { %v4435_v31 = vpop.xlane.xlu2 %4434 }
 0x521   : > { %5763 = vmatpush.msra.mxu1 %v12223_v16  ;;  %v12347_v13 = vpop.f32.mrf.mxu2  ;;  %v4567_v16 = vsub.f32 %v12141_v59, %v4447_v58  ;;  %v12401_v58 = vsel %vm4360_vm13, %v12192_v3, -1e+30 }
 0x522   : > { %15139 = vst [vmem:[#allocation58_spill] sm:$0xff] %v12347_v13  ;;  %8325 = vmatmul.msk.f32.gmra.mxu1 %vm671_vm3, %v11972_v27  ;;  %v12364_v27 = vsel %vm4360_vm13, %v4270_v63, -1e+30 }
 0x523   : > { %v12349_v28 = vpop.eup %8743  ;;  %v4626_v29 = vmul.f32 1.442695, %v4567_v16  ;;  %v4532_v10 = vsel %vm4411_vm14, %v12364_v27, -inf }
 0x524   : > { %v4718_v56 = vsel %vm4411_vm14, %v12349_v28, 0.0  ;;  %4713 = vadd.xlane.f32.xlu1 %v4712_v43  ;;  %v12360_v35 = vpop.eup %8745  ;;  %v4451_v43 = vsel %vm4411_vm14, %v12401_v58, -inf  ;;  %v4229_v63 = vpop.f32.mrf.mxu1 }
 0x525   : > { %4473 = vmax.xlane.f32.xlu0 %v4472_v47  ;;  %4719 = vadd.xlane.f32.xlu2 %v4718_v56  ;;  %v12366_v59 = vpop.eup %8747  ;;  %8749 = vpow2.f32 %v4626_v29  ;;  %v4730_v50 = vsel %vm4411_vm14, %v12360_v35, 0.0  ;;  %v4563_v47 = vsub.f32 %v12177_v60, %v4435_v31  ;;  %v4454_v56 = vsel %vm4411_vm14, %v12396_v19, -inf }
 0x526   : > { %v4715_v17 = vsel %vm4411_vm14, %v12366_v59, 0.0  ;;  %v12412_v29 = vsel %vm4360_vm13, %v4267_v51, -1e+30  ;;  %v12416_v3 = vsel %vm4360_vm13, %v4229_v63, -1e+30 }
 0x527   : > { %v4618_v23 = vmul.f32 1.442695, %v4563_v47  ;;  %v4529_v60 = vsel %vm4411_vm14, %v12412_v29, -inf }
 0x529   : > { %v12368_v5 = vpop.f32.mrf.mxu2  ;;  %8751 = vpow2.f32 %v4618_v23 }
 0x52a   : > { %15140 = vst [vmem:[#allocation59_spill] sm:$0xff] %v12368_v5  ;;  %8326 = vmatmul.msk.f32.gmra.mxu1 %vm671_vm3, %v11987_v2 }
 0x52b   : > { %v12383_v18 = vpop.eup %8749 }
 0x52c   : > { %4716 = vadd.xlane.f32.xlu1 %v4715_v17  ;;  %v4733_v15 = vsel %vm4411_vm14, %v12383_v18, 0.0 }
 0x52d   : > { %4533 = vmax.xlane.f32.xlu2 %v4532_v10  ;;  %4731 = vadd.xlane.f32.xlu0 %v4730_v50  ;;  %v4523_v50 = vsel %vm4411_vm14, %v12416_v3, -inf }
 0x52f   : > { %v12426_v51 = vpop.eup %8751 }
 0x530   : > { %v4721_v17 = vsel %vm4411_vm14, %v12426_v51, 0.0 }
 0x531   : > { %v12385_v2 = vpop.f32.mrf.mxu2 }
 0x532   : > { %15141 = vst [vmem:[#allocation60_spill] sm:$0xff] %v12385_v2 }
 0x534   : > { %4734 = vadd.xlane.f32.xlu1 %v4733_v15 }
 0x535   : > { %4449 = vmax.xlane.f32.xlu0 %v4448_v36  ;;  %v4232_v36 = vpop.f32.mrf.mxu1 }
 0x536   : > { %v12432_v15 = vsel %vm4360_vm13, %v4232_v36, -1e+30 }
 0x537   : > { %v4526_v31 = vsel %vm4411_vm14, %v12432_v15, -inf }
 0x539   : > { %v12403_v16 = vpop.f32.mrf.mxu2 }
 0x53a   : > { %15143 = vst [vmem:[#allocation62_spill] sm:$0xff] %v12403_v16 }
 0x53c   : > { %4452 = vmax.xlane.f32.xlu1 %v4451_v43 }
 0x53d   : > { %4455 = vmax.xlane.f32.xlu0 %v4454_v56  ;;  %v4438_v56 = vpop.xlane.xlu2 %4437 }
 0x541   : > { %v12418_v10 = vpop.f32.mrf.mxu2 }
 0x542   : > { %15144 = vst [vmem:[#allocation63_spill] sm:$0xff] %v12418_v10  ;;  %8554 = vmatpush.msra.mxu2 %v12418_v10 }
 0x544   : > { %8555 = vmatpush.msra.mxu2 %v12403_v16  ;;  %4524 = vmax.xlane.f32.xlu1 %v4523_v50 }
 0x545   : > { %4530 = vmax.xlane.f32.xlu0 %v4529_v60  ;;  %v12436_v48 = vpop.xlane.xlu2 %4497 }
 0x54d   : > { %4722 = vadd.xlane.f32.xlu0 %v4721_v17 }
 0x555   : > { %4527 = vmax.xlane.f32.xlu0 %v4526_v31 }
 0x577   : > { %v4711_v47 = vpop.xlane.xlu1 %4710 }
 0x578   : > { %8753 = vrcp.f32 %v4711_v47  ;;  %v4900_v17 = vand.u32 2147483648, %v4711_v47  ;;  %v4898_v36 = vand.u32 2147483647, %v4711_v47  ;;  %vm4894_vm10 = vweird.f32 %v4711_v47 }
 0x57a   : > { %v4901_v31 = vor.u32 1.1754944e-38, %v4900_v17  ;;  %vm4899_vm12 = vcmp.eq.f32.partialorder %v4898_v36, 8.507059e+37 }
 0x57e   : > { %v8754_v43 = vpop.eup %8753 }
 0x57f   : > { %v4890_v63 = vmul.f32 %v8754_v43, %v4711_v47  ;;  %v4702_v60 = vpop.xlane.xlu1 %4701  ;;  %vm4895_vm9 = vweird.f32 %v8754_v43 }
 0x580   : > { %v4729_v23 = vpop.xlane.xlu0 %4728  ;;  %vm4896_vm11 = vmor %vm4894_vm10, %vm4895_vm9  ;;  %v4855_v45 = vand.u32 2147483648, %v4702_v60  ;;  %vm4849_vm5 = vweird.f32 %v4702_v60 }
 0x581   : > { %8755 = vrcp.f32 %v4729_v23  ;;  %v4891_v50 = vsub.f32 1.0, %v4890_v63  ;;  %v4988_v9 = vand.u32 2147483647, %v4729_v23  ;;  %vm4984_vm2 = vweird.f32 %v4729_v23 }
 0x582   : > { %8757 = vrcp.f32 %v4702_v60 }
 0x583   : > { %v4892_v16 = vmul.f32 %v8754_v43, %v4891_v50  ;;  %vm4989_vm6 = vcmp.eq.f32.partialorder %v4988_v9, 8.507059e+37 }
 0x585   : > { %v4893_v10 = vadd.f32 %v8754_v43, %v4892_v16 }
 0x587   : > { %v8756_v42 = vpop.eup %8755  ;;  %v4897_v5 = vsel %vm4896_vm11, %v8754_v43, %v4893_v10  ;;  %v12438_v0 = vpop.xlane.xlu1 %4704  ;;  %v4564_v10 = vsub.f32 %v12190_v6, %v4438_v56  ;;  %v4990_v43 = vand.u32 2147483648, %v4729_v23 }
 0x588   : > { %v8758_v38 = vpop.eup %8757  ;;  %v4980_v2 = vmul.f32 %v8756_v42, %v4729_v23  ;;  %v4468_v39 = vpop.xlane.xlu0 %4467  ;;  %v4902_v16 = vsel %vm4899_vm12, %v4901_v31, %v4897_v5  ;;  %8759 = vrcp.f32 %v12438_v0  ;;  %vm4985_vm15 = vweird.f32 %v8756_v42 }
 0x589   : > { %v4845_v47 = vmul.f32 %v8758_v38, %v4702_v60  ;;  %v4574_v63 = vsub.f32 %v12301_v34, %v4468_v39  ;;  %v4903_v50 = vmul.f32 %v12269_v21, %v4902_v16  ;;  %vm4850_vm0 = vweird.f32 %v8758_v38  ;;  %vm4986_vm4 = vmor %vm4984_vm2, %vm4985_vm15 }
 0x58a   : > { %v4981_v17 = vsub.f32 1.0, %v4980_v2  ;;  %v4853_v39 = vand.u32 2147483647, %v4702_v60  ;;  %v4620_v6 = vmul.f32 1.442695, %v4564_v10  ;;  %v4991_v34 = vor.u32 1.1754944e-38, %v4990_v43  ;;  %vm4851_vm7 = vmor %vm4849_vm5, %vm4850_vm0 }
 0x58b   : > { %v4846_v36 = vsub.f32 1.0, %v4845_v47  ;;  %v4640_v13 = vmul.f32 1.442695, %v4574_v63  ;;  %6127 = vst.msk [vmem:[%s12445_s6 + $0x18] sm:$0xff] %vm4411_vm14, %v4903_v50  ;;  %8330 = vmatmul.msk.f32.vlgmr.msrb.gmra.mxu0 %vm4411_vm14, %v4903_v50  ;;  %v4583_v31 = vsub.f32 %v12147_v49, %v12294_v46  ;;  %v4868_v10 = vand.u32 2147483647, %v12438_v0 }
 0x58c   : > { %v4982_v40 = vmul.f32 %v8756_v42, %v4981_v17  ;;  %5832 = vmatpush.msrb.mxu0 %v12256_v61  ;;  %vm4854_vm8 = vcmp.eq.f32.partialorder %v4853_v39, 8.507059e+37  ;;  %v4584_v17 = vsub.f32 %v12201_v26, %v12436_v48  ;;  %v4870_v43 = vand.u32 2147483648, %v12438_v0 }
 0x58d   : > { %v4847_v5 = vmul.f32 %v8758_v38, %v4846_v36  ;;  %8761 = vpow2.f32 %v4640_v13  ;;  %v4856_v13 = vor.u32 1.1754944e-38, %v4855_v45  ;;  %v4658_v63 = vmul.f32 1.442695, %v4583_v31 }
 0x58e   : > { %v4983_v21 = vadd.f32 %v8756_v42, %v4982_v40  ;;  %5833 = vmatpush.msrb.mxu0 %v12249_v54  ;;  %v12456_v56 = vpop.eup %8759  ;;  %v12461_v40 = vpop.xlane.xlu2 %4500  ;;  %v12511_v48 = vsel %vm4360_vm13, %v11968_v20, -1e+30  ;;  %vm4864_vm10 = vweird.f32 %v12438_v0  ;;  %v4660_v31 = vmul.f32 1.442695, %v4584_v17 }
 0x58f   : > { %v4848_v2 = vadd.f32 %v8758_v38, %v4847_v5  ;;  %v4860_v54 = vmul.f32 %v12456_v56, %v12438_v0  ;;  %v12465_v60 = vpop.xlane.xlu1 %4707  ;;  %vm4865_vm9 = vweird.f32 %v12456_v56  ;;  %v12527_v0 = vsel %vm4360_vm13, %v11991_v62, -1e+30 }
 0x590   : > { %v4987_v16 = vsel %vm4986_vm4, %v8756_v42, %v4983_v21  ;;  %v4471_v61 = vpop.xlane.xlu0 %4470  ;;  %8763 = vrcp.f32 %v12465_v60  ;;  %vm4866_vm11 = vmor %vm4864_vm10, %vm4865_vm9  ;;  %vm4869_vm12 = vcmp.eq.f32.partialorder %v4868_v10, 8.507059e+37  ;;  %vm4879_vm0 = vweird.f32 %v12465_v60 }
 0x591   : > { %v4992_v23 = vsel %vm4989_vm6, %v4991_v34, %v4987_v16  ;;  %v4852_v47 = vsel %vm4851_vm7, %v8758_v38, %v4848_v2  ;;  %v4575_v46 = vsub.f32 %v12319_v37, %v4471_v61  ;;  %8765 = vpow2.f32 %v4620_v6 }
 0x592   : > { %v12468_v49 = vmul.f32 %v12285_v30, %v4992_v23  ;;  %v4857_v9 = vsel %vm4854_vm8, %v4856_v13, %v4852_v47  ;;  %v4861_v42 = vsub.f32 1.0, %v4860_v54  ;;  %v4871_v16 = vor.u32 1.1754944e-38, %v4870_v43  ;;  %v4273_v13 = vpop.f32.mrf.mxu3 }
 0x593   : > { %v12472_v45 = vpop.eup %8761  ;;  %v4858_v38 = vmul.f32 %v12277_v57, %v4857_v9  ;;  %v4642_v50 = vmul.f32 1.442695, %v4575_v46  ;;  %v12544_v46 = vsel %vm4360_vm13, %v4273_v13, -1e+30 }
 0x594   : > { %6133 = vst.msk [vmem:[%s12445_s6 + $0x48] sm:$0xff] %vm4411_vm14, %v12468_v49  ;;  %v4754_v30 = vsel %vm4411_vm14, %v12472_v45, 0.0  ;;  %v4862_v37 = vmul.f32 %v12456_v56, %v4861_v42 }
 0x595   : > { %6124 = vst.msk [vmem:[%s12445_s6] sm:$0xff] %vm4411_vm14, %v4858_v38  ;;  %8327 = vmatmul.msk.f32.vlgmr.msra.gmra.mxu3 %vm4411_vm14, %v4858_v38  ;;  %4755 = vadd.xlane.f32.xlu2 %v4754_v30  ;;  %8767 = vpow2.f32 %v4642_v50  ;;  %v4883_v50 = vand.u32 2147483647, %v12465_v60  ;;  %v4885_v30 = vand.u32 2147483648, %v12465_v60 }
 0x596   : > { %5797 = vmatpush.msra.mxu3 %v12242_v22  ;;  %v12485_v57 = vpop.eup %8763  ;;  %8769 = vpow2.f32 %v4658_v63  ;;  %v4863_v39 = vadd.f32 %v12456_v56, %v4862_v37  ;;  %v12550_v63 = vsel %vm4411_vm14, %v12527_v0, -inf }
 0x597   : > { %v12492_v5 = vpop.eup %8765  ;;  %v4875_v22 = vmul.f32 %v12485_v57, %v12465_v60  ;;  %v12501_v26 = vpop.xlane.xlu1 %4713  ;;  %vm4880_vm15 = vweird.f32 %v12485_v57  ;;  %vm4884_vm4 = vcmp.eq.f32.partialorder %v4883_v50, 8.507059e+37 }
 0x598   : > { %5798 = vmatpush.msra.mxu3 %v12237_v14  ;;  %v4474_v36 = vpop.xlane.xlu0 %4473  ;;  %v12499_v6 = vpop.xlane.xlu2 %4719  ;;  %v12506_v14 = vsel %vm4360_vm13, %v11949_v25, -1e+30  ;;  %v4585_v25 = vsub.f32 %v12214_v32, %v12461_v40  ;;  %v4724_v20 = vsel %vm4411_vm14, %v12492_v5, 0.0  ;;  %v4867_v61 = vsel %vm4866_vm11, %v12456_v56, %v4863_v39  ;;  %vm12577_vm2 = vmor %vm4879_vm0, %vm4880_vm15 }
 0x599   : > { %v4576_v21 = vsub.f32 %v12343_v44, %v4474_v36  ;;  %8771 = vrcp.f32 %v12499_v6  ;;  %v4876_v34 = vsub.f32 1.0, %v4875_v22  ;;  %v4872_v47 = vsel %vm4869_vm12, %v4871_v16, %v4867_v61 }
 0x59a   : > { %8773 = vrcp.f32 %v12501_v26  ;;  %v4873_v54 = vmul.f32 %v12296_v24, %v4872_v47  ;;  %v4457_v62 = vsel %vm4411_vm14, %v12506_v14, -inf  ;;  %v12540_v56 = vsel %vm4411_vm14, %v12511_v48, -inf }
 0x59b   : > { %v4644_v44 = vmul.f32 1.442695, %v4576_v21  ;;  %v12516_v2 = vpop.eup %8767  ;;  %v4877_v23 = vmul.f32 %v12485_v57, %v4876_v34  ;;  %v4662_v38 = vmul.f32 1.442695, %v4585_v25  ;;  %v4943_v43 = vand.u32 2147483647, %v12499_v6 }
 0x59c   : > { %v4757_v32 = vsel %vm4411_vm14, %v12516_v2, 0.0  ;;  %v12532_v40 = vpop.eup %8769  ;;  %6125 = vst.msk [vmem:[%s12445_s6 + $0x8] sm:$0xff] %vm4411_vm14, %v4873_v54  ;;  %v4945_v22 = vand.u32 2147483648, %v12499_v6  ;;  %v4886_v16 = vor.u32 1.1754944e-38, %v4885_v30  ;;  %vm4939_vm6 = vweird.f32 %v12499_v6 }
 0x59d   : > { %4725 = vadd.xlane.f32.xlu2 %v4724_v20  ;;  %8775 = vpow2.f32 %v4644_v44  ;;  %4758 = vadd.xlane.f32.xlu1 %v4757_v32  ;;  %v4878_v10 = vadd.f32 %v12485_v57, %v4877_v23  ;;  %v4781_v21 = vsel %vm4411_vm14, %v12532_v40, 0.0  ;;  %vm12584_vm7 = vcmp.eq.f32.partialorder %v4943_v43, 8.507059e+37 }
 0x59e   : > { %8777 = vpow2.f32 %v4660_v31  ;;  %8328 = vmatmul.msk.f32.gmra.mxu3 %vm4411_vm14, %v4873_v54  ;;  %v4535_v31 = vsel %vm4411_vm14, %v12544_v46, -inf  ;;  %v4946_v54 = vor.u32 1.1754944e-38, %v4945_v22  ;;  %v4915_v50 = vand.u32 2147483648, %v12501_v26 }
 0x59f   : > { %v8772_v9 = vpop.eup %8771  ;;  %v12561_v17 = vpop.xlane.xlu1 %4716  ;;  %v4882_v32 = vsel %vm12577_vm2, %v12485_v57, %v4878_v10  ;;  %vm4909_vm10 = vweird.f32 %v12501_v26 }
 0x5a0   : > { %v12546_v42 = vpop.xlane.xlu0 %4731  ;;  %v12552_v24 = vpop.eup %8773  ;;  %v4935_v37 = vmul.f32 %v8772_v9, %v12499_v6  ;;  %vm4940_vm5 = vweird.f32 %v8772_v9  ;;  %v4913_v6 = vand.u32 2147483647, %v12501_v26 }
 0x5a1   : > { %8779 = vrcp.f32 %v12546_v42  ;;  %v4905_v36 = vmul.f32 %v12552_v24, %v12501_v26  ;;  %vm4941_vm8 = vmor %vm4939_vm6, %vm4940_vm5  ;;  %vm4910_vm9 = vweird.f32 %v12552_v24  ;;  %v5005_v25 = vand.u32 2147483648, %v12546_v42 }
 0x5a2   : > { %v4936_v39 = vsub.f32 1.0, %v4935_v37  ;;  %8781 = vrcp.f32 %v12561_v17  ;;  %vm12621_vm11 = vmor %vm4909_vm10, %vm4910_vm9  ;;  %v5003_v61 = vand.u32 2147483647, %v12546_v42  ;;  %vm12630_vm15 = vcmp.eq.f32.partialorder %v4913_v6, 8.507059e+37 }
 0x5a3   : > { %v12572_v34 = vpop.eup %8775  ;;  %8783 = vpow2.f32 %v4662_v38  ;;  %v4906_v44 = vsub.f32 1.0, %v4905_v36  ;;  %vm4999_vm0 = vweird.f32 %v12546_v42  ;;  %vm4924_vm6 = vweird.f32 %v12561_v17 }
 0x5a4   : > { %v4937_v20 = vmul.f32 %v8772_v9, %v4936_v39  ;;  %v12581_v13 = vpop.eup %8777  ;;  %v4760_v38 = vsel %vm4411_vm14, %v12572_v34, 0.0  ;;  %vm5004_vm5 = vcmp.eq.f32.partialorder %v5003_v61, 8.507059e+37 }
 0x5a5   : > { %4458 = vmax.xlane.f32.xlu2 %v4457_v62  ;;  %v4907_v60 = vmul.f32 %v12552_v24, %v4906_v44  ;;  %4536 = vmax.xlane.f32.xlu1 %v4535_v31  ;;  %v4887_v62 = vsel %vm4884_vm4, %v4886_v16, %v4882_v32  ;;  %v4916_v32 = vor.u32 1.1754944e-38, %v4915_v50 }
 0x5a6   : > { %v4938_v47 = vadd.f32 %v8772_v9, %v4937_v20  ;;  %v4888_v57 = vmul.f32 %v12323_v4, %v4887_v62  ;;  %4761 = vadd.xlane.f32.xlu0 %v4760_v38  ;;  %v4930_v38 = vand.u32 2147483648, %v12561_v17 }
 0x5a7   : > { %v12592_v23 = vpop.eup %8779  ;;  %v4908_v36 = vadd.f32 %v12552_v24, %v4907_v60  ;;  %v12606_v22 = vpop.xlane.xlu1 %4734 }
 0x5a8   : > { %v4995_v30 = vmul.f32 %v12592_v23, %v12546_v42  ;;  %v4450_v37 = vpop.xlane.xlu0 %4449  ;;  %v12601_v10 = vpop.eup %8781  ;;  %v4942_v43 = vsel %vm4941_vm8, %v8772_v9, %v4938_v47  ;;  %8329 = vmatmul.msk.f32.gmra.mxu3 %vm4411_vm14, %v4888_v57  ;;  %6126 = vst.msk [vmem:[%s12445_s6 + $0x10] sm:$0xff] %vm4411_vm14, %v4888_v57  ;;  %8785 = vrcp.f32 %v12606_v22  ;;  %vm5000_vm12 = vweird.f32 %v12592_v23 }
 0x5a9   : > { %v4568_v39 = vsub.f32 %v12381_v52, %v4450_v37  ;;  %v12608_v44 = vpop.eup %8783  ;;  %v4947_v31 = vsel %vm12584_vm7, %v4946_v54, %v4942_v43  ;;  %v4920_v9 = vmul.f32 %v12601_v10, %v12561_v17  ;;  %v4912_v47 = vsel %vm12621_vm11, %v12552_v24, %v4908_v36  ;;  %vm12646_vm2 = vmor %vm4999_vm0, %vm5000_vm12 }
 0x5aa   : > { %v4996_v4 = vsub.f32 1.0, %v4995_v30  ;;  %v4948_v52 = vmul.f32 %v12349_v28, %v4947_v31  ;;  %v5006_v24 = vor.u32 1.1754944e-38, %v5005_v25  ;;  %vm4925_vm4 = vweird.f32 %v12601_v10 }
 0x5ab   : > { %v4628_v16 = vmul.f32 1.442695, %v4568_v39  ;;  %v4921_v60 = vsub.f32 1.0, %v4920_v9  ;;  %v4917_v42 = vsel %vm12630_vm15, %v4916_v32, %v4912_v47  ;;  %vm12662_vm7 = vmor %vm4924_vm6, %vm4925_vm4  ;;  %v4931_v39 = vor.u32 1.1754944e-38, %v4930_v38 }
 0x5ac   : > { %v4997_v26 = vmul.f32 %v12592_v23, %v4996_v4  ;;  %6130 = vst.msk [vmem:[%s12445_s6 + $0x30] sm:$0xff] %vm4411_vm14, %v4948_v52  ;;  %8333 = vmatmul.msk.f32.vlgmr.msrb.gmra.mxu1 %vm4411_vm14, %v4948_v52  ;;  %v4787_v31 = vsel %vm4411_vm14, %v12608_v44, 0.0  ;;  %v5020_v52 = vand.u32 2147483648, %v12606_v22  ;;  %vm5014_vm10 = vweird.f32 %v12606_v22 }
 0x5ad   : > { %8787 = vpow2.f32 %v4628_v16  ;;  %4782 = vadd.xlane.f32.xlu2 %v4781_v21  ;;  %v4922_v62 = vmul.f32 %v12601_v10, %v4921_v60  ;;  %5867 = vmatpush.msrb.mxu1 %v12267_v55  ;;  %v4928_v21 = vand.u32 2147483647, %v12561_v17  ;;  %v12727_v36 = vsel %vm4360_vm13, %v12020_v33, -1e+30 }
 0x5ae   : > { %v4998_v54 = vadd.f32 %v12592_v23, %v4997_v26  ;;  %4461 = vmax.xlane.f32.xlu1 %v12540_v56  ;;  %v4918_v56 = vmul.f32 %v12345_v41, %v4917_v42  ;;  %4464 = vmax.xlane.f32.xlu0 %v12550_v63  ;;  %v8786_v57 = vpop.eup %8785  ;;  %v5021_v26 = vor.u32 1.1754944e-38, %v5020_v52 }
 0x5af   : > { %v4923_v55 = vadd.f32 %v12601_v10, %v4922_v62  ;;  %5868 = vmatpush.msrb.mxu1 %v12261_v11  ;;  %v4453_v37 = vpop.xlane.xlu1 %4452  ;;  %v5010_v41 = vmul.f32 %v8786_v57, %v12606_v22  ;;  %vm4929_vm8 = vcmp.eq.f32.partialorder %v4928_v21, 8.507059e+37  ;;  %vm5015_vm9 = vweird.f32 %v8786_v57 }
 0x5b0   : > { %v4456_v50 = vpop.xlane.xlu0 %4455  ;;  %v5002_v30 = vsel %vm12646_vm2, %v12592_v23, %v4998_v54  ;;  %8331 = vmatmul.msk.f32.gmra.mxu0 %vm4411_vm14, %v4918_v56  ;;  %6128 = vst.msk [vmem:[%s12445_s6 + $0x20] sm:$0xff] %vm4411_vm14, %v4918_v56  ;;  %8336 = vmatmul.msk.f32.vlgmr.msrb.gmra.mxu3 %vm4411_vm14, %v12468_v49  ;;  %v4569_v11 = vsub.f32 %v12401_v58, %v4453_v37  ;;  %vm5016_vm11 = vmor %vm5014_vm10, %vm5015_vm9 }
 0x5b1   : > { %v5007_v43 = vsel %vm5004_vm5, %v5006_v24, %v5002_v30  ;;  %5902 = vmatpush.msrb.mxu3 %v12305_v53  ;;  %v4927_v17 = vsel %vm12662_vm7, %v12601_v10, %v4923_v55  ;;  %v5011_v4 = vsub.f32 1.0, %v5010_v41  ;;  %v4570_v49 = vsub.f32 %v12396_v19, %v4456_v50 }
 0x5b2   : > { %v5008_v23 = vmul.f32 %v12360_v35, %v5007_v43  ;;  %v4630_v9 = vmul.f32 1.442695, %v4569_v11  ;;  %v4932_v58 = vsel %vm4929_vm8, %v4931_v39, %v4927_v17  ;;  %v4784_v35 = vsel %vm4411_vm14, %v12581_v13, 0.0 }
 0x5b3   : > { %v12673_v63 = vpop.eup %8787  ;;  %5903 = vmatpush.msrb.mxu3 %v12279_v12  ;;  %v4933_v53 = vmul.f32 %v12366_v59, %v4932_v58  ;;  %v5012_v25 = vmul.f32 %v8786_v57, %v5011_v4  ;;  %v5018_v19 = vand.u32 2147483647, %v12606_v22  ;;  %v4534_v12 = vpop.xlane.xlu2 %4533  ;;  %v4632_v59 = vmul.f32 1.442695, %v4570_v49 }
 0x5b4   : > { %6134 = vst.msk [vmem:[%s12445_s6 + $0x50] sm:$0xff] %vm4411_vm14, %v5008_v23  ;;  %v4736_v10 = vsel %vm4411_vm14, %v12673_v63, 0.0  ;;  %8789 = vpow2.f32 %v4630_v9  ;;  %v4596_v47 = vsub.f32 %v12364_v27, %v4534_v12 }
 0x5b5   : > { %4788 = vadd.xlane.f32.xlu2 %v4787_v31  ;;  %6129 = vst.msk [vmem:[%s12445_s6 + $0x28] sm:$0xff] %vm4411_vm14, %v4933_v53  ;;  %v5013_v16 = vadd.f32 %v8786_v57, %v5012_v25  ;;  %vm5019_vm12 = vcmp.eq.f32.partialorder %v5018_v19, 8.507059e+37  ;;  %8791 = vpow2.f32 %v4632_v59  ;;  %v3684_v59 = vpop.f32.mrf.mxu2 }
 0x5b6   : > { %4785 = vadd.xlane.f32.xlu1 %v4784_v35  ;;  %4737 = vadd.xlane.f32.xlu0 %v4736_v10  ;;  %v12744_v35 = vsel %vm4360_vm13, %v12060_v1, -1e+30 }
 0x5b7   : > { %v4525_v60 = vpop.xlane.xlu1 %4524  ;;  %v5017_v32 = vsel %vm5016_vm11, %v8786_v57, %v5013_v16  ;;  %v4478_v10 = vsel %vm4411_vm14, %v12744_v35, -inf }
 0x5b8   : > { %v4531_v20 = vpop.xlane.xlu0 %4530  ;;  %8332 = vmatmul.msk.f32.gmra.mxu0 %vm4411_vm14, %v4933_v53  ;;  %8337 = vmatmul.msk.f32.gmra.mxu3 %vm4411_vm14, %v5008_v23  ;;  %v4593_v28 = vsub.f32 %v12416_v3, %v4525_v60  ;;  %v5022_v54 = vsel %vm5019_vm12, %v5021_v26, %v5017_v32  ;;  %v4684_v3 = vmul.f32 1.442695, %v4596_v47 }
 0x5b9   : > { %v4595_v61 = vsub.f32 %v12412_v29, %v4531_v20  ;;  %v5023_v29 = vmul.f32 %v12383_v18, %v5022_v54 }
 0x5ba   : > { %v12701_v62 = vpop.eup %8789  ;;  %v4678_v38 = vmul.f32 1.442695, %v4593_v28 }
 0x5bb   : > { %v4682_v22 = vmul.f32 1.442695, %v4595_v61  ;;  %v4739_v6 = vsel %vm4411_vm14, %v12701_v62, 0.0  ;;  %6135 = vst.msk [vmem:[%s12445_s6 + $0x58] sm:$0xff] %vm4411_vm14, %v5023_v29  ;;  %v12708_v27 = vpop.eup %8791 }
 0x5bc   : > { %v4742_v55 = vsel %vm4411_vm14, %v12708_v27, 0.0 }
 0x5bd   : > { %8793 = vpow2.f32 %v4682_v22  ;;  %4740 = vadd.xlane.f32.xlu2 %v4739_v6 }
 0x5be   : > { %8795 = vpow2.f32 %v4678_v38 }
 0x5c0   : > { %v4723_v24 = vpop.xlane.xlu0 %4722  ;;  %8338 = vmatmul.msk.f32.gmra.mxu3 %vm4411_vm14, %v5023_v29 }
 0x5c1   : > { %8797 = vrcp.f32 %v4723_v24  ;;  %v4960_v41 = vand.u32 2147483648, %v4723_v24  ;;  %v4958_v23 = vand.u32 2147483647, %v4723_v24  ;;  %vm4954_vm0 = vweird.f32 %v4723_v24 }
 0x5c2   : > { %8799 = vpow2.f32 %v4684_v3 }
 0x5c3   : > { %v12711_v21 = vpop.eup %8793  ;;  %v4961_v33 = vor.u32 1.1754944e-38, %v4960_v41  ;;  %vm4959_vm4 = vcmp.eq.f32.partialorder %v4958_v23, 8.507059e+37 }
 0x5c4   : > { %v12713_v42 = vpop.eup %8795  ;;  %v4817_v18 = vsel %vm4411_vm14, %v12711_v21, 0.0 }
 0x5c5   : > { %4818 = vadd.xlane.f32.xlu1 %v4817_v18  ;;  %v4811_v56 = vsel %vm4411_vm14, %v12713_v42, 0.0  ;;  %4743 = vadd.xlane.f32.xlu2 %v4742_v55 }
 0x5c6   : > { %4812 = vadd.xlane.f32.xlu0 %v4811_v56 }
 0x5c7   : > { %v8798_v50 = vpop.eup %8797 }
 0x5c8   : > { %v4950_v30 = vmul.f32 %v8798_v50, %v4723_v24  ;;  %v4528_v57 = vpop.xlane.xlu0 %4527  ;;  %v12721_v37 = vpop.eup %8799  ;;  %vm4955_vm15 = vweird.f32 %v8798_v50 }
 0x5c9   : > { %v4594_v43 = vsub.f32 %v12432_v15, %v4528_v57  ;;  %v4820_v31 = vsel %vm4411_vm14, %v12721_v37, 0.0  ;;  %v4475_v15 = vsel %vm4411_vm14, %v12727_v36, -inf  ;;  %vm4956_vm2 = vmor %vm4954_vm0, %vm4955_vm15 }
 0x5ca   : > { %v4951_v39 = vsub.f32 1.0, %v4950_v30 }
 0x5cb   : > { %v4680_v11 = vmul.f32 1.442695, %v4594_v43  ;;  %v3687_v43 = vpop.f32.mrf.mxu2 }
 0x5cc   : > { %v4952_v17 = vmul.f32 %v8798_v50, %v4951_v39 }
 0x5cd   : > { %8801 = vpow2.f32 %v4680_v11  ;;  %4821 = vadd.xlane.f32.xlu1 %v4820_v31 }
 0x5ce   : > { %v4953_v4 = vadd.f32 %v8798_v50, %v4952_v17  ;;  %4476 = vmax.xlane.f32.xlu0 %v4475_v15 }
 0x5d0   : > { %v4957_v49 = vsel %vm4956_vm2, %v8798_v50, %v4953_v4 }
 0x5d1   : > { %v4962_v9 = vsel %vm4959_vm4, %v4961_v33, %v4957_v49 }
 0x5d2   : > { %v4963_v58 = vmul.f32 %v12426_v51, %v4962_v9  ;;  %v15163_v9 = vld [vmem:[#allocation24_spill] sm:$0xff] }
 0x5d3   : > { %v12734_v52 = vpop.eup %8801 }
 0x5d4   : > { %8334 = vmatmul.msk.f32.gmra.mxu1 %vm4411_vm14, %v4963_v58  ;;  %6131 = vst.msk [vmem:[%s12445_s6 + $0x38] sm:$0xff] %vm4411_vm14, %v4963_v58  ;;  %v4814_v53 = vsel %vm4411_vm14, %v12734_v52, 0.0 }
 0x5d5   : > { %4815 = vadd.xlane.f32.xlu1 %v4814_v53 }
 0x5dd   : > { %4479 = vmax.xlane.f32.xlu1 %v4478_v10 }
 0x608   : > { %v4756_v51 = vpop.xlane.xlu2 %4755 }
 0x609   : > { %8803 = vrcp.f32 %v4756_v51  ;;  %v5125_v26 = vand.u32 2147483648, %v4756_v51  ;;  %v5123_v1 = vand.u32 2147483647, %v4756_v51  ;;  %vm5119_vm6 = vweird.f32 %v4756_v51 }
 0x60b   : > { %v5126_v32 = vor.u32 1.1754944e-38, %v5125_v26  ;;  %vm5124_vm8 = vcmp.eq.f32.partialorder %v5123_v1, 8.507059e+37 }
 0x60f   : > { %v8804_v25 = vpop.eup %8803 }
 0x610   : > { %v5115_v19 = vmul.f32 %v8804_v25, %v4756_v51  ;;  %v4726_v12 = vpop.xlane.xlu2 %4725  ;;  %v12748_v16 = vpop.xlane.xlu1 %4758  ;;  %vm5120_vm5 = vweird.f32 %v8804_v25 }
 0x611   : > { %8805 = vrcp.f32 %v4726_v12  ;;  %vm5121_vm7 = vmor %vm5119_vm6, %vm5120_vm5  ;;  %v4975_v41 = vand.u32 2147483648, %v4726_v12  ;;  %vm4969_vm10 = vweird.f32 %v4726_v12  ;;  %v5140_v17 = vand.u32 2147483648, %v12748_v16 }
 0x612   : > { %v5116_v20 = vsub.f32 1.0, %v5115_v19  ;;  %8807 = vrcp.f32 %v12748_v16  ;;  %v5138_v15 = vand.u32 2147483647, %v12748_v16  ;;  %vm5134_vm15 = vweird.f32 %v12748_v16 }
 0x613   : > { %v4976_v4 = vor.u32 1.1754944e-38, %v4975_v41  ;;  %v5141_v10 = vor.u32 1.1754944e-38, %v5140_v17 }
 0x614   : > { %v5117_v61 = vmul.f32 %v8804_v25, %v5116_v20  ;;  %vm5139_vm4 = vcmp.eq.f32.partialorder %v5138_v15, 8.507059e+37 }
 0x616   : > { %v5118_v60 = vadd.f32 %v8804_v25, %v5117_v61 }
 0x617   : > { %v8806_v28 = vpop.eup %8805 }
 0x618   : > { %v8808_v47 = vpop.eup %8807  ;;  %v5122_v22 = vsel %vm5121_vm7, %v8804_v25, %v5118_v60  ;;  %v4965_v54 = vmul.f32 %v8806_v28, %v4726_v12  ;;  %v4459_v38 = vpop.xlane.xlu2 %4458  ;;  %vm4970_vm9 = vweird.f32 %v8806_v28 }
 0x619   : > { %v5127_v29 = vsel %vm5124_vm8, %v5126_v32, %v5122_v22  ;;  %v5130_v6 = vmul.f32 %v8808_v47, %v12748_v16  ;;  %v4571_v3 = vsub.f32 %v12506_v14, %v4459_v38  ;;  %v4537_v24 = vpop.xlane.xlu1 %4536  ;;  %v12755_v57 = vpop.xlane.xlu0 %4761  ;;  %v4973_v14 = vand.u32 2147483647, %v4726_v12  ;;  %vm12762_vm12 = vmor %vm4969_vm10, %vm4970_vm9 }
 0x61a   : > { %v5128_v18 = vmul.f32 %v12472_v45, %v5127_v29  ;;  %v4966_v55 = vsub.f32 1.0, %v4965_v54  ;;  %v4597_v56 = vsub.f32 %v12544_v46, %v4537_v24  ;;  %8809 = vrcp.f32 %v12755_v57 }
 0x61b   : > { %v5131_v50 = vsub.f32 1.0, %v5130_v6  ;;  %v4634_v30 = vmul.f32 1.442695, %v4571_v3  ;;  %vm5135_vm11 = vweird.f32 %v8808_v47  ;;  %vm4974_vm0 = vcmp.eq.f32.partialorder %v4973_v14, 8.507059e+37 }
 0x61c   : > { %6142 = vst.msk [vmem:[%s12445_s6 + $0x90] sm:$0xff] %vm4411_vm14, %v5128_v18  ;;  %v4967_v39 = vmul.f32 %v8806_v28, %v4966_v55  ;;  %8345 = vmatmul.msk.f32.vlgmr.msra.gmra.mxu3 %vm4411_vm14, %v5128_v18  ;;  %v4686_v45 = vmul.f32 1.442695, %v4597_v56  ;;  %vm12772_vm2 = vmor %vm5134_vm15, %vm5135_vm11  ;;  %v5155_v54 = vand.u32 2147483648, %v12755_v57  ;;  %vm5149_vm6 = vweird.f32 %v12755_v57 }
 0x61d   : > { %v5132_v11 = vmul.f32 %v8808_v47, %v5131_v50  ;;  %8811 = vpow2.f32 %v4634_v30  ;;  %6042 = vmatpush.msra.mxu3 %v3687_v43  ;;  %v5153_v6 = vand.u32 2147483647, %v12755_v57  ;;  %v12810_v24 = vsel %vm4360_vm13, %v12101_v8, -1e+30 }
 0x61e   : > { %v4968_v46 = vadd.f32 %v8806_v28, %v4967_v39  ;;  %8813 = vpow2.f32 %v4686_v45  ;;  %v5156_v56 = vor.u32 1.1754944e-38, %v5155_v54  ;;  %v4481_v41 = vsel %vm4411_vm14, %v12810_v24, -inf }
 0x61f   : > { %v5133_v31 = vadd.f32 %v8808_v47, %v5132_v11  ;;  %6043 = vmatpush.msra.mxu3 %v3684_v59  ;;  %vm5154_vm9 = vcmp.eq.f32.partialorder %v5153_v6, 8.507059e+37 }
 0x620   : > { %v12768_v33 = vpop.xlane.xlu2 %4782  ;;  %v4972_v49 = vsel %vm12762_vm12, %v8806_v28, %v4968_v46  ;;  %v8810_v53 = vpop.eup %8809 }
 0x621   : > { %8815 = vrcp.f32 %v12768_v33  ;;  %v4462_v58 = vpop.xlane.xlu1 %4461  ;;  %v4977_v25 = vsel %vm4974_vm0, %v4976_v4, %v4972_v49  ;;  %v5137_v19 = vsel %vm12772_vm2, %v8808_v47, %v5133_v31  ;;  %v5145_v16 = vmul.f32 %v8810_v53, %v12755_v57  ;;  %v4465_v59 = vpop.xlane.xlu0 %4464 }
 0x622   : > { %v4572_v51 = vsub.f32 %v12511_v48, %v4462_v58  ;;  %v4573_v20 = vsub.f32 %v12527_v0, %v4465_v59  ;;  %v4978_v61 = vmul.f32 %v12492_v5, %v4977_v25  ;;  %v5142_v1 = vsel %vm5139_vm4, %v5141_v10, %v5137_v19 }
 0x623   : > { %v12780_v12 = vpop.eup %8811  ;;  %v5146_v48 = vsub.f32 1.0, %v5145_v16  ;;  %v5143_v28 = vmul.f32 %v12516_v2, %v5142_v1  ;;  %vm5150_vm5 = vweird.f32 %v8810_v53  ;;  %v5260_v50 = vand.u32 2147483648, %v12768_v33  ;;  %v15165_v16 = vld [vmem:[#allocation53_spill] sm:$0xff] }
 0x624   : > { %v4636_v26 = vmul.f32 1.442695, %v4572_v51  ;;  %v12785_v60 = vpop.eup %8813  ;;  %v4745_v32 = vsel %vm4411_vm14, %v12780_v12, 0.0  ;;  %v4638_v47 = vmul.f32 1.442695, %v4573_v20  ;;  %8335 = vmatmul.msk.f32.gmra.mxu1 %vm4411_vm14, %v4978_v61  ;;  %6132 = vst.msk [vmem:[%s12445_s6 + $0x40] sm:$0xff] %vm4411_vm14, %v4978_v61  ;;  %vm12812_vm7 = vmor %vm5149_vm6, %vm5150_vm5  ;;  %vm5254_vm10 = vweird.f32 %v12768_v33 }
 0x625   : > { %4746 = vadd.xlane.f32.xlu0 %v4745_v32  ;;  %v4823_v5 = vsel %vm4411_vm14, %v12785_v60, 0.0  ;;  %v5147_v22 = vmul.f32 %v8810_v53, %v5146_v48  ;;  %8346 = vmatmul.msk.f32.gmra.mxu3 %vm4411_vm14, %v5143_v28  ;;  %6143 = vst.msk [vmem:[%s12445_s6 + $0x98] sm:$0xff] %vm4411_vm14, %v5143_v28  ;;  %v5258_v8 = vand.u32 2147483647, %v12768_v33  ;;  %v5261_v23 = vor.u32 1.1754944e-38, %v5260_v50 }
 0x626   : > { %8817 = vpow2.f32 %v4636_v26  ;;  %4824 = vadd.xlane.f32.xlu2 %v4823_v5  ;;  %v12845_v58 = vsel %vm4360_vm13, %v15163_v9, -1e+30  ;;  %v12862_v59 = vsel %vm4360_vm13, %v15165_v16, -1e+30 }
 0x627   : > { %v8816_v0 = vpop.eup %8815  ;;  %8819 = vpow2.f32 %v4638_v47  ;;  %v5148_v29 = vadd.f32 %v8810_v53, %v5147_v22  ;;  %vm5259_vm12 = vcmp.eq.f32.partialorder %v5258_v8, 8.507059e+37  ;;  %v4484_v32 = vsel %vm4411_vm14, %v12845_v58, -inf }
 0x628   : > { %v5250_v2 = vmul.f32 %v8816_v0, %v12768_v33  ;;  %v12800_v38 = vpop.xlane.xlu2 %4788  ;;  %vm5255_vm8 = vweird.f32 %v8816_v0 }
 0x629   : > { %8821 = vrcp.f32 %v12800_v38  ;;  %v12805_v3 = vpop.xlane.xlu1 %4785  ;;  %v12818_v30 = vpop.xlane.xlu0 %4737  ;;  %v5152_v57 = vsel %vm12812_vm7, %v8810_v53, %v5148_v29  ;;  %vm5256_vm11 = vmor %vm5254_vm10, %vm5255_vm8  ;;  %v15164_v53 = vld [vmem:[#allocation3_spill] sm:$0xff]  ;;  %vm5284_vm15 = vweird.f32 %v12800_v38  ;;  %v5288_v22 = vand.u32 2147483647, %v12800_v38 }
 0x62a   : > { %v5251_v55 = vsub.f32 1.0, %v5250_v2  ;;  %8823 = vrcp.f32 %v12805_v3  ;;  %v5157_v45 = vsel %vm5154_vm9, %v5156_v56, %v5152_v57  ;;  %v5033_v48 = vand.u32 2147483647, %v12818_v30 }
 0x62b   : > { %8825 = vrcp.f32 %v12818_v30  ;;  %v5158_v31 = vmul.f32 %v12572_v34, %v5157_v45  ;;  %v12850_v34 = vsel %vm4360_vm13, %v15164_v53, -1e+30  ;;  %v5035_v28 = vand.u32 2147483648, %v12818_v30  ;;  %v6183_v53 = vld [vmem:[%s14809_s3 + $0xb8] sm:$0xff] }
 0x62c   : > { %v12822_v43 = vpop.eup %8817  ;;  %v5252_v39 = vmul.f32 %v8816_v0, %v5251_v55  ;;  %v4487_v5 = vsel %vm4411_vm14, %v12850_v34, -inf  ;;  %v5290_v54 = vand.u32 2147483648, %v12800_v38  ;;  %v5273_v2 = vand.u32 2147483647, %v12805_v3  ;;  %6338 = vmatpush.msrb.mxu2 %v6183_v53 }
 0x62d   : > { %v12828_v14 = vpop.eup %8819  ;;  %4482 = vmax.xlane.f32.xlu0 %v4481_v41  ;;  %v4748_v46 = vsel %vm4411_vm14, %v12822_v43, 0.0  ;;  %8347 = vmatmul.msk.f32.gmra.mxu3 %vm4411_vm14, %v5158_v31  ;;  %6144 = vst.msk [vmem:[%s12445_s6 + $0xa0] sm:$0xff] %vm4411_vm14, %v5158_v31  ;;  %v5275_v18 = vand.u32 2147483648, %v12805_v3  ;;  %vm5029_vm4 = vweird.f32 %v12818_v30  ;;  %vm12888_vm5 = vcmp.eq.f32.partialorder %v5033_v48, 8.507059e+37 }
 0x62e   : > { %v5253_v11 = vadd.f32 %v8816_v0, %v5252_v39  ;;  %v4751_v15 = vsel %vm4411_vm14, %v12828_v14, 0.0  ;;  %4749 = vadd.xlane.f32.xlu2 %v4748_v46  ;;  %v5036_v50 = vor.u32 1.1754944e-38, %v5035_v28  ;;  %vm12912_vm8 = vcmp.eq.f32.partialorder %v5288_v22, 8.507059e+37 }
 0x62f   : > { %v12833_v17 = vpop.eup %8821  ;;  %4752 = vadd.xlane.f32.xlu1 %v4751_v15  ;;  %vm5269_vm9 = vweird.f32 %v12805_v3  ;;  %v5276_v16 = vor.u32 1.1754944e-38, %v5275_v18 }
 0x630   : > { %v12838_v4 = vpop.eup %8823  ;;  %v5257_v49 = vsel %vm5256_vm11, %v8816_v0, %v5253_v11  ;;  %v5280_v33 = vmul.f32 %v12833_v17, %v12800_v38  ;;  %v12857_v25 = vpop.xlane.xlu2 %4740  ;;  %vm5285_vm2 = vweird.f32 %v12833_v17  ;;  %vm12931_vm11 = vcmp.eq.f32.partialorder %v5273_v2, 8.507059e+37 }
 0x631   : > { %v5262_v10 = vsel %vm5259_vm12, %v5261_v23, %v5257_v49  ;;  %v5265_v51 = vmul.f32 %v12838_v4, %v12805_v3  ;;  %v8826_v19 = vpop.eup %8825  ;;  %8827 = vrcp.f32 %v12857_v25  ;;  %vm5270_vm6 = vweird.f32 %v12838_v4  ;;  %vm12926_vm10 = vmor %vm5284_vm15, %vm5285_vm2 }
 0x632   : > { %v5263_v20 = vmul.f32 %v12532_v40, %v5262_v10  ;;  %v5281_v26 = vsub.f32 1.0, %v5280_v33  ;;  %v5025_v61 = vmul.f32 %v8826_v19, %v12818_v30  ;;  %v4490_v40 = vsel %vm4411_vm14, %v12862_v59, -inf  ;;  %vm12941_vm12 = vmor %vm5269_vm9, %vm5270_vm6 }
 0x633   : > { %v5266_v1 = vsub.f32 1.0, %v5265_v51  ;;  %vm5030_vm0 = vweird.f32 %v8826_v19  ;;  %v5048_v45 = vand.u32 2147483647, %v12857_v25  ;;  %v5050_v46 = vand.u32 2147483648, %v12857_v25 }
 0x634   : > { %6151 = vst.msk [vmem:[%s12445_s6 + $0xd8] sm:$0xff] %vm4411_vm14, %v5263_v20  ;;  %v5026_v47 = vsub.f32 1.0, %v5025_v61  ;;  %v5282_v0 = vmul.f32 %v12833_v17, %v5281_v26  ;;  %vm5031_vm7 = vmor %vm5029_vm4, %vm5030_vm0  ;;  %v5291_v33 = vor.u32 1.1754944e-38, %v5290_v54  ;;  %vm5044_vm15 = vweird.f32 %v12857_v25  ;;  %v15178_v54 = vld [vmem:[#allocation58_spill] sm:$0xff] }
 0x635   : > { %4488 = vmax.xlane.f32.xlu0 %v4487_v5  ;;  %v5267_v6 = vmul.f32 %v12838_v4, %v5266_v1  ;;  %8354 = vmatmul.msk.f32.vlgmr.msrb.gmra.mxu3 %vm4411_vm14, %v5263_v20  ;;  %v6182_v20 = vld [vmem:[%s14809_s3 + $0xb0] sm:$0xff]  ;;  %vm12946_vm0 = vcmp.eq.f32.partialorder %v5048_v45, 8.507059e+37  ;;  %v5051_v26 = vor.u32 1.1754944e-38, %v5050_v46  ;;  %v15179_v46 = vld [vmem:[#allocation57_spill] sm:$0xff] }
 0x636   : > { %v5027_v29 = vmul.f32 %v8826_v19, %v5026_v47  ;;  %4485 = vmax.xlane.f32.xlu2 %v4484_v32  ;;  %v12904_v30 = vadd.f32 %v12833_v17, %v5282_v0  ;;  %6339 = vmatpush.msrb.mxu2 %v6182_v20 }
 0x637   : > { %v12884_v55 = vpop.eup %8827  ;;  %4491 = vmax.xlane.f32.xlu1 %v4490_v40  ;;  %v5268_v31 = vadd.f32 %v12838_v4, %v5267_v6 }
 0x638   : > { %v12892_v57 = vpop.xlane.xlu1 %4818  ;;  %v5028_v39 = vadd.f32 %v8826_v19, %v5027_v29  ;;  %v5040_v8 = vmul.f32 %v12884_v55, %v12857_v25  ;;  %v12898_v41 = vpop.xlane.xlu2 %4743  ;;  %v5287_v61 = vsel %vm12926_vm10, %v12833_v17, %v12904_v30  ;;  %vm5045_vm2 = vweird.f32 %v12884_v55  ;;  %v6181_v17 = vld [vmem:[%s14809_s3 + $0xa8] sm:$0xff]  ;;  %v6179_v25 = vld [vmem:[%s14809_s3 + $0x98] sm:$0xff] }
 0x639   : > { %v12900_v11 = vpop.xlane.xlu0 %4812  ;;  %8829 = vrcp.f32 %v12892_v57  ;;  %v5063_v48 = vand.u32 2147483647, %v12898_v41  ;;  %v5065_v28 = vand.u32 2147483648, %v12898_v41  ;;  %v5272_v32 = vsel %vm12941_vm12, %v12838_v4, %v5268_v31  ;;  %v12981_v29 = vpop.f32.mrf.mxu0  ;;  %6340 = vmatpush.msrb.mxu2 %v6181_v17 }
 0x63a   : > { %8831 = vrcp.f32 %v12898_v41  ;;  %v5032_v23 = vsel %vm5031_vm7, %v8826_v19, %v5028_v39  ;;  %v5041_v15 = vsub.f32 1.0, %v5040_v8  ;;  %vm5404_vm4 = vweird.f32 %v12900_v11  ;;  %v6180_v39 = vld [vmem:[%s14809_s3 + $0xa0] sm:$0xff]  ;;  %vm13002_vm7 = vmor %vm5044_vm15, %vm5045_vm2 }
 0x63b   : > { %8833 = vrcp.f32 %v12900_v11  ;;  %v5037_v9 = vsel %vm12888_vm5, %v5036_v50, %v5032_v23  ;;  %v5408_v5 = vand.u32 2147483647, %v12900_v11  ;;  %v5410_v0 = vand.u32 2147483648, %v12900_v11  ;;  %6341 = vmatpush.msrb.mxu2 %v6180_v39 }
 0x63c   : > { %v5038_v51 = vmul.f32 %v12673_v63, %v5037_v9  ;;  %v5042_v3 = vmul.f32 %v12884_v55, %v5041_v15  ;;  %vm5059_vm5 = vweird.f32 %v12898_v41  ;;  %v5440_v18 = vand.u32 2147483648, %v12892_v57  ;;  %v15186_v15 = vld [vmem:[#allocation54_spill] sm:$0xff] }
 0x63d   : > { %v5277_v56 = vsel %vm12931_vm11, %v5276_v16, %v5272_v32  ;;  %vm5434_vm6 = vweird.f32 %v12892_v57  ;;  %vm13006_vm9 = vcmp.eq.f32.partialorder %v5063_v48, 8.507059e+37  ;;  %v5438_v9 = vand.u32 2147483647, %v12892_v57  ;;  %6342 = vmatpush.msrb.mxu2 %v6179_v25 }
 0x63e   : > { %6136 = vst.msk [vmem:[%s12445_s6 + $0x60] sm:$0xff] %vm4411_vm14, %v5038_v51  ;;  %8339 = vmatmul.msk.f32.vlgmr.msra.gmra.mxu0 %vm4411_vm14, %v5038_v51  ;;  %v5043_v40 = vadd.f32 %v12884_v55, %v5042_v3  ;;  %v5278_v45 = vmul.f32 %v12581_v13, %v5277_v56  ;;  %v5292_v53 = vsel %vm12912_vm8, %v5291_v33, %v5287_v61  ;;  %v5441_v33 = vor.u32 1.1754944e-38, %v5440_v18  ;;  %v6178_v3 = vld [vmem:[%s14809_s3 + $0x90] sm:$0xff] }
 0x63f   : > { %v12954_v1 = vpop.eup %8829  ;;  %5937 = vmatpush.msra.mxu0 %v15178_v54  ;;  %vm5439_vm15 = vcmp.eq.f32.partialorder %v5438_v9, 8.507059e+37  ;;  %6343 = vmatpush.msrb.mxu2 %v6178_v3  ;;  %v13102_v9 = vsel %vm4360_vm13, %v15186_v15, -1e+30 }
 0x640   : > { %v12968_v47 = vpop.eup %8831  ;;  %v5430_v22 = vmul.f32 %v12954_v1, %v12892_v57  ;;  %v12977_v4 = vpop.xlane.xlu1 %4821  ;;  %vm5435_vm10 = vweird.f32 %v12954_v1  ;;  %8355 = vmatmul.msk.f32.gmra.mxu3 %vm4411_vm14, %v5278_v45  ;;  %6152 = vst.msk [vmem:[%s12445_s6 + $0xe0] sm:$0xff] %vm4411_vm14, %v5278_v45  ;;  %v5066_v57 = vor.u32 1.1754944e-38, %v5065_v28 }
 0x641   : > { %v12979_v2 = vpop.eup %8833  ;;  %v5055_v6 = vmul.f32 %v12968_v47, %v12898_v41  ;;  %v4477_v50 = vpop.xlane.xlu0 %4476  ;;  %8835 = vrcp.f32 %v12977_v4  ;;  %5938 = vmatpush.msra.mxu0 %v15179_v46  ;;  %vm5060_vm8 = vweird.f32 %v12968_v47  ;;  %vm5436_vm12 = vmor %vm5434_vm6, %vm5435_vm10  ;;  %v5453_v41 = vand.u32 2147483647, %v12977_v4 }
 0x642   : > { %v5400_v8 = vmul.f32 %v12979_v2, %v12900_v11  ;;  %v5431_v30 = vsub.f32 1.0, %v5430_v22  ;;  %v4577_v13 = vsub.f32 %v12727_v36, %v4477_v50  ;;  %v5047_v36 = vsel %vm13002_vm7, %v12884_v55, %v5043_v40  ;;  %vm13061_vm2 = vmor %vm5059_vm5, %vm5060_vm8  ;;  %v13071_v54 = vpop.f32.mrf.mxu0 }
 0x643   : > { %v5056_v31 = vsub.f32 1.0, %v5055_v6  ;;  %v5052_v16 = vsel %vm12946_vm0, %v5051_v26, %v5047_v36  ;;  %vm5405_vm11 = vweird.f32 %v12979_v2  ;;  %v5293_v26 = vmul.f32 %v12608_v44, %v5292_v53 }
 0x644   : > { %v5401_v10 = vsub.f32 1.0, %v5400_v8  ;;  %v5432_v51 = vmul.f32 %v12954_v1, %v5431_v30  ;;  %v4646_v19 = vmul.f32 1.442695, %v4577_v13  ;;  %v5053_v63 = vmul.f32 %v12701_v62, %v5052_v16  ;;  %vm5406_vm0 = vmor %vm5404_vm4, %vm5405_vm11 }
 0x645   : > { %v5057_v49 = vmul.f32 %v12968_v47, %v5056_v31  ;;  %v5411_v44 = vor.u32 1.1754944e-38, %v5410_v0  ;;  %vm5409_vm4 = vcmp.eq.f32.partialorder %v5408_v5, 8.507059e+37  ;;  %6153 = vst.msk [vmem:[%s12445_s6 + $0xe8] sm:$0xff] %vm4411_vm14, %v5293_v26  ;;  %v5455_v18 = vand.u32 2147483648, %v12977_v4 }
 0x646   : > { %v5402_v20 = vmul.f32 %v12979_v2, %v5401_v10  ;;  %v5433_v55 = vadd.f32 %v12954_v1, %v5432_v51  ;;  %8837 = vpow2.f32 %v4646_v19  ;;  %8340 = vmatmul.msk.f32.gmra.mxu0 %vm4411_vm14, %v5053_v63  ;;  %6137 = vst.msk [vmem:[%s12445_s6 + $0x68] sm:$0xff] %vm4411_vm14, %v5053_v63  ;;  %vm5449_vm6 = vweird.f32 %v12977_v4 }
 0x647   : > { %v8836_v38 = vpop.eup %8835  ;;  %v5058_v61 = vadd.f32 %v12968_v47, %v5057_v49  ;;  %v5456_v8 = vor.u32 1.1754944e-38, %v5455_v18  ;;  %v4502_v51 = vsel %vm4411_vm14, %v13102_v9, -inf }
 0x648   : > { %v5403_v48 = vadd.f32 %v12979_v2, %v5402_v20  ;;  %v5437_v32 = vsel %vm5436_vm12, %v12954_v1, %v5433_v55  ;;  %v5445_v17 = vmul.f32 %v8836_v38, %v12977_v4  ;;  %v13045_v40 = vpop.xlane.xlu1 %4815  ;;  %vm5450_vm5 = vweird.f32 %v8836_v38  ;;  %8356 = vmatmul.msk.f32.gmra.mxu3 %vm4411_vm14, %v5293_v26  ;;  %v5590_v55 = vpop.f32.mrf.mxu3 }
 0x649   : > { %v5442_v62 = vsel %vm5439_vm15, %v5441_v33, %v5437_v32  ;;  %8839 = vrcp.f32 %v13045_v40  ;;  %vm5451_vm7 = vmor %vm5449_vm6, %vm5450_vm5  ;;  %v5425_v13 = vand.u32 2147483648, %v13045_v40  ;;  %v5423_v10 = vand.u32 2147483647, %v13045_v40  ;;  %v13135_v26 = vpop.f32.mrf.mxu1 }
 0x64a   : > { %v5407_v28 = vsel %vm5406_vm0, %v12979_v2, %v5403_v48  ;;  %v5443_v0 = vmul.f32 %v12711_v21, %v5442_v62  ;;  %v5446_v22 = vsub.f32 1.0, %v5445_v17  ;;  %v5062_v2 = vsel %vm13061_vm2, %v12968_v47, %v5058_v61  ;;  %v6176_v62 = vld [vmem:[%s14809_s3 + $0x80] sm:$0xff] }
 0x64b   : > { %v5412_v6 = vsel %vm5409_vm4, %v5411_v44, %v5407_v28  ;;  %v5067_v5 = vsel %vm13006_vm9, %v5066_v57, %v5062_v2  ;;  %vm5454_vm9 = vcmp.eq.f32.partialorder %v5453_v41, 8.507059e+37  ;;  %vm5419_vm8 = vweird.f32 %v13045_v40  ;;  %v6177_v44 = vld [vmem:[%s14809_s3 + $0x88] sm:$0xff]  ;;  %v6175_v28 = vld [vmem:[%s14809_s3 + $0x78] sm:$0xff]  ;;  %v6172_v41 = vld [vmem:[%s14809_s3 + $0x60] sm:$0xff] }
 0x64c   : > { %v5413_v11 = vmul.f32 %v12713_v42, %v5412_v6  ;;  %6163 = vst.msk [vmem:[%s12445_s6 + $0x138] sm:$0xff] %vm4411_vm14, %v5443_v0  ;;  %v5447_v21 = vmul.f32 %v8836_v38, %v5446_v22  ;;  %v13084_v56 = vpop.eup %8837  ;;  %v5068_v50 = vmul.f32 %v12708_v27, %v5067_v5  ;;  %v5426_v36 = vor.u32 1.1754944e-38, %v5425_v13  ;;  %6643 = vmatpush.msrb.mxu3 %v6177_v44  ;;  %v6173_v22 = vld [vmem:[%s14809_s3 + $0x68] sm:$0xff] }
 0x64d   : > { %v4763_v42 = vsel %vm4411_vm14, %v13084_v56, 0.0  ;;  %vm5424_vm12 = vcmp.eq.f32.partialorder %v5423_v10, 8.507059e+37 }
 0x64e   : > { %6161 = vst.msk [vmem:[%s12445_s6 + $0x128] sm:$0xff] %vm4411_vm14, %v5413_v11  ;;  %v5448_v39 = vadd.f32 %v8836_v38, %v5447_v21  ;;  %8364 = vmatmul.msk.f32.vlgmr.msra.gmra.mxu2 %vm4411_vm14, %v5413_v11  ;;  %4764 = vadd.xlane.f32.xlu2 %v4763_v42 }
 0x64f   : > { %v8840_v47 = vpop.eup %8839  ;;  %6138 = vst.msk [vmem:[%s12445_s6 + $0x70] sm:$0xff] %vm4411_vm14, %v5068_v50  ;;  %8341 = vmatmul.msk.f32.gmra.mxu0 %vm4411_vm14, %v5068_v50  ;;  %6644 = vmatpush.msrb.mxu3 %v6176_v62 }
 0x650   : > { %v5415_v27 = vmul.f32 %v8840_v47, %v13045_v40  ;;  %v4480_v30 = vpop.xlane.xlu1 %4479  ;;  %v5452_v45 = vsel %vm5451_vm7, %v8836_v38, %v5448_v39  ;;  %vm5420_vm10 = vweird.f32 %v8840_v47  ;;  %8366 = vmatmul.msk.f32.vlgmr.msra.gmra.mxu3 %vm4411_vm14, %v5443_v0  ;;  %v6174_v0 = vld [vmem:[%s14809_s3 + $0x70] sm:$0xff] }
 0x651   : > { %v4578_v4 = vsub.f32 %v12744_v35, %v4480_v30  ;;  %v5457_v46 = vsel %vm5454_vm9, %v5456_v8, %v5452_v45  ;;  %v13109_v35 = vpop.f32.mrf.mxu0  ;;  %vm5421_vm11 = vmor %vm5419_vm8, %vm5420_vm10  ;;  %v13138_v32 = vpop.f32.mrf.mxu1  ;;  %6645 = vmatpush.msrb.mxu3 %v6175_v28  ;;  %v15196_v28 = vld [vmem:[#allocation13_spill] sm:$0xff] }
 0x652   : > { %v5416_v23 = vsub.f32 1.0, %v5415_v27  ;;  %v5458_v31 = vmul.f32 %v12721_v37, %v5457_v46 }
 0x653   : > { %v4648_v53 = vmul.f32 1.442695, %v4578_v4  ;;  %6646 = vmatpush.msrb.mxu3 %v6174_v0 }
 0x654   : > { %v5417_v25 = vmul.f32 %v8840_v47, %v5416_v23  ;;  %6164 = vst.msk [vmem:[%s12445_s6 + $0x140] sm:$0xff] %vm4411_vm14, %v5458_v31 }
 0x655   : > { %8841 = vpow2.f32 %v4648_v53  ;;  %6647 = vmatpush.msrb.mxu3 %v6173_v22 }
 0x656   : > { %v5418_v37 = vadd.f32 %v8840_v47, %v5417_v25  ;;  %4503 = vmax.xlane.f32.xlu2 %v4502_v51 }
 0x657   : > { %6648 = vmatpush.msrb.mxu3 %v6172_v41 }
 0x658   : > { %v5422_v49 = vsel %vm5421_vm11, %v8840_v47, %v5418_v37  ;;  %8367 = vmatmul.msk.f32.gmra.mxu3 %vm4411_vm14, %v5458_v31 }
 0x659   : > { %v5427_v33 = vsel %vm5424_vm12, %v5426_v36, %v5422_v49  ;;  %v13123_v20 = vpop.f32.mrf.mxu0  ;;  %v13141_v40 = vpop.f32.mrf.mxu1 }
 0x65a   : > { %v5428_v19 = vmul.f32 %v12734_v52, %v5427_v33  ;;  %v5593_v52 = vpop.f32.mrf.mxu3 }
 0x65b   : > { %v13115_v16 = vpop.eup %8841 }
 0x65c   : > { %8365 = vmatmul.msk.f32.gmra.mxu2 %vm4411_vm14, %v5428_v19  ;;  %6162 = vst.msk [vmem:[%s12445_s6 + $0x130] sm:$0xff] %vm4411_vm14, %v5428_v19  ;;  %v4766_v3 = vsel %vm4411_vm14, %v13115_v16, 0.0 }
 0x65d   : > { %4767 = vadd.xlane.f32.xlu0 %v4766_v3 }
 0x661   : > { %v13126_v38 = vpop.f32.mrf.mxu0  ;;  %v5660_v1 = vpop.f32.mrf.mxu1 }
 0x662   : > { %v13131_v63 = vpop.f32.mrf.mxu3 }
 0x664   : > { %8375 = vmatmul.msk.f32.vlgmr.msrb.gmra.mxu2 %vm671_vm3, %v5590_v55 }
 0x669   : > { %v13129_v61 = vpop.f32.mrf.mxu0  ;;  %v5663_v2 = vpop.f32.mrf.mxu1 }
 0x66a   : > { %v5695_v53 = vpop.f32.mrf.mxu3 }
 0x66c   : > { %8376 = vmatmul.msk.f32.gmra.mxu2 %vm671_vm3, %v5593_v52 }
 0x671   : > { %v5625_v48 = vpop.f32.mrf.mxu0 }
 0x674   : > { %8377 = vmatmul.msk.f32.gmra.mxu2 %vm671_vm3, %v13131_v63 }
 0x679   : > { %v5628_v17 = vpop.f32.mrf.mxu0 }
 0x67c   : > { %8378 = vmatmul.msk.f32.gmra.mxu2 %vm671_vm3, %v5625_v48 }
 0x681   : > { %v13143_v57 = vpop.f32.mrf.mxu0 }
 0x684   : > { %8379 = vmatmul.msk.f32.gmra.mxu2 %vm671_vm3, %v5628_v17 }
 0x68c   : > { %8380 = vmatmul.msk.f32.gmra.mxu2 %vm671_vm3, %v13143_v57 }
 0x694   : > { %8381 = vmatmul.msk.f32.gmra.mxu2 %vm671_vm3, %v5660_v1 }
 0x698   : > { %v4747_v6 = vpop.xlane.xlu0 %4746 }
 0x699   : > { %8843 = vrcp.f32 %v4747_v6  ;;  %v4825_v18 = vpop.xlane.xlu2 %4824  ;;  %v5078_v27 = vand.u32 2147483647, %v4747_v6  ;;  %v5080_v4 = vand.u32 2147483648, %v4747_v6  ;;  %vm5074_vm0 = vweird.f32 %v4747_v6 }
 0x69a   : > { %8845 = vrcp.f32 %v4825_v18  ;;  %v5470_v15 = vand.u32 2147483648, %v4825_v18  ;;  %vm5464_vm2 = vweird.f32 %v4825_v18 }
 0x69b   : > { %vm5079_vm5 = vcmp.eq.f32.partialorder %v5078_v27, 8.507059e+37  ;;  %v5081_v10 = vor.u32 1.1754944e-38, %v5080_v4 }
 0x69c   : > { %8382 = vmatmul.msk.f32.gmra.mxu2 %vm671_vm3, %v5663_v2  ;;  %v5471_v33 = vor.u32 1.1754944e-38, %v5470_v15  ;;  %v15193_v15 = vld [vmem:[#allocation55_spill] sm:$0xff] }
 0x69f   : > { %v8844_v11 = vpop.eup %8843 }
 0x6a0   : > { %v8846_v21 = vpop.eup %8845  ;;  %v5070_v5 = vmul.f32 %v8844_v11, %v4747_v6  ;;  %v4483_v50 = vpop.xlane.xlu0 %4482  ;;  %vm5075_vm15 = vweird.f32 %v8844_v11 }
 0x6a1   : > { %v5460_v39 = vmul.f32 %v8846_v21, %v4825_v18  ;;  %v4579_v42 = vsub.f32 %v12810_v24, %v4483_v50  ;;  %v13168_v47 = vpop.xlane.xlu2 %4749  ;;  %v13173_v45 = vpop.f32.mrf.mxu1  ;;  %v5468_v24 = vand.u32 2147483647, %v4825_v18  ;;  %vm5076_vm4 = vmor %vm5074_vm0, %vm5075_vm15  ;;  %vm5465_vm6 = vweird.f32 %v8846_v21 }
 0x6a2   : > { %v5071_v8 = vsub.f32 1.0, %v5070_v5  ;;  %8847 = vrcp.f32 %v13168_v47  ;;  %v13171_v30 = vpop.xlane.xlu1 %4752  ;;  %v5093_v19 = vand.u32 2147483647, %v13168_v47  ;;  %v5095_v17 = vand.u32 2147483648, %v13168_v47  ;;  %vm13188_vm9 = vmor %vm5464_vm2, %vm5465_vm6 }
 0x6a3   : > { %v5461_v46 = vsub.f32 1.0, %v5460_v39  ;;  %v4650_v23 = vmul.f32 1.442695, %v4579_v42  ;;  %8849 = vrcp.f32 %v13171_v30  ;;  %vm13178_vm7 = vcmp.eq.f32.partialorder %v5468_v24, 8.507059e+37 }
 0x6a4   : > { %8383 = vmatmul.msk.f32.gmra.mxu2 %vm671_vm3, %v13173_v45  ;;  %v5072_v31 = vmul.f32 %v8844_v11, %v5071_v8  ;;  %v5110_v22 = vand.u32 2147483648, %v13171_v30  ;;  %v5108_v27 = vand.u32 2147483647, %v13171_v30  ;;  %vm5089_vm11 = vweird.f32 %v13168_v47 }
 0x6a5   : > { %v5462_v13 = vmul.f32 %v8846_v21, %v5461_v46  ;;  %8851 = vpow2.f32 %v4650_v23  ;;  %v15192_v23 = vld [vmem:[#allocation59_spill] sm:$0xff]  ;;  %vm5104_vm15 = vweird.f32 %v13171_v30  ;;  %vm5094_vm0 = vcmp.eq.f32.partialorder %v5093_v19, 8.507059e+37 }
 0x6a6   : > { %v5073_v25 = vadd.f32 %v8844_v11, %v5072_v31  ;;  %v5698_v31 = vpop.f32.mrf.mxu3 }
 0x6a7   : > { %v5463_v37 = vadd.f32 %v8846_v21, %v5462_v13  ;;  %v13221_v13 = vsel %vm4360_vm13, %v15193_v15, -1e+30 }
 0x6a8   : > { %v8848_v51 = vpop.eup %8847  ;;  %v5077_v36 = vsel %vm5076_vm4, %v8844_v11, %v5073_v25  ;;  %v4489_v3 = vpop.xlane.xlu0 %4488  ;;  %vm5109_vm4 = vcmp.eq.f32.partialorder %v5108_v27, 8.507059e+37 }
 0x6a9   : > { %v8850_v55 = vpop.eup %8849  ;;  %v5082_v52 = vsel %vm5079_vm5, %v5081_v10, %v5077_v36  ;;  %v5085_v48 = vmul.f32 %v8848_v51, %v13168_v47  ;;  %v4581_v44 = vsub.f32 %v12850_v34, %v4489_v3  ;;  %v4486_v62 = vpop.xlane.xlu2 %4485  ;;  %vm5090_vm10 = vweird.f32 %v8848_v51  ;;  %v15194_v3 = vld [vmem:[#allocation14_spill] sm:$0xff] }
 0x6aa   : > { %v5083_v1 = vmul.f32 %v12780_v12, %v5082_v52  ;;  %v5100_v0 = vmul.f32 %v8850_v55, %v13171_v30  ;;  %v4580_v6 = vsub.f32 %v12845_v58, %v4486_v62  ;;  %v4492_v41 = vpop.xlane.xlu1 %4491  ;;  %v5467_v12 = vsel %vm13188_vm9, %v8846_v21, %v5463_v37  ;;  %vm5091_vm12 = vmor %vm5089_vm11, %vm5090_vm10  ;;  %v15195_v52 = vld [vmem:[#allocation56_spill] sm:$0xff] }
 0x6ab   : > { %v13195_v2 = vpop.eup %8851  ;;  %v5086_v11 = vsub.f32 1.0, %v5085_v48  ;;  %v4654_v5 = vmul.f32 1.442695, %v4581_v44  ;;  %v4582_v34 = vsub.f32 %v12862_v59, %v4492_v41  ;;  %v5472_v58 = vsel %vm13178_vm7, %v5471_v33, %v5467_v12  ;;  %v15191_v59 = vld [vmem:[#allocation60_spill] sm:$0xff]  ;;  %v15197_v41 = vld [vmem:[#allocation61_spill] sm:$0xff] }
 0x6ac   : > { %8384 = vmatmul.msk.f32.gmra.mxu2 %vm671_vm3, %v5695_v53  ;;  %6139 = vst.msk [vmem:[%s12445_s6 + $0x78] sm:$0xff] %vm4411_vm14, %v5083_v1  ;;  %v5101_v18 = vsub.f32 1.0, %v5100_v0  ;;  %v4652_v50 = vmul.f32 1.442695, %v4580_v6  ;;  %8342 = vmatmul.msk.f32.vlgmr.msra.gmra.mxu1 %vm4411_vm14, %v5083_v1  ;;  %v4769_v39 = vsel %vm4411_vm14, %v13195_v2, 0.0  ;;  %v5473_v21 = vmul.f32 %v12785_v60, %v5472_v58 }
 0x6ad   : > { %v5087_v42 = vmul.f32 %v8848_v51, %v5086_v11  ;;  %8853 = vpow2.f32 %v4654_v5  ;;  %5972 = vmatpush.msra.mxu1 %v15191_v59  ;;  %4770 = vadd.xlane.f32.xlu1 %v4769_v39  ;;  %vm5105_vm8 = vweird.f32 %v8850_v55  ;;  %v4656_v46 = vmul.f32 1.442695, %v4582_v34 }
 0x6ae   : > { %v5102_v8 = vmul.f32 %v8850_v55, %v5101_v18  ;;  %8855 = vpow2.f32 %v4652_v50  ;;  %8368 = vmatmul.msk.f32.gmra.mxu3 %vm4411_vm14, %v5473_v21  ;;  %6165 = vst.msk [vmem:[%s12445_s6 + $0x148] sm:$0xff] %vm4411_vm14, %v5473_v21  ;;  %v5096_v60 = vor.u32 1.1754944e-38, %v5095_v17  ;;  %vm5106_vm2 = vmor %vm5104_vm15, %vm5105_vm8  ;;  %v5111_v47 = vor.u32 1.1754944e-38, %v5110_v22  ;;  %v13256_v17 = vpop.f32.mrf.mxu3 }
 0x6af   : > { %v5088_v4 = vadd.f32 %v8848_v51, %v5087_v42  ;;  %5973 = vmatpush.msra.mxu1 %v15192_v23  ;;  %8857 = vpow2.f32 %v4656_v46  ;;  %v4505_v33 = vsel %vm4411_vm14, %v13221_v13, -inf  ;;  %v13254_v48 = vsel %vm4360_vm13, %v15195_v52, -1e+30  ;;  %v3690_v42 = vpop.f32.mrf.mxu2  ;;  %v15199_v23 = vld [vmem:[#allocation7_spill] sm:$0xff] }
 0x6b0   : > { %v5103_v24 = vadd.f32 %v8850_v55, %v5102_v8  ;;  %v13272_v0 = vsel %vm4360_vm13, %v13109_v35, -1e+30  ;;  %v13277_v6 = vsel %vm4360_vm13, %v13071_v54, -1e+30  ;;  %v13282_v11 = vsel %vm4360_vm13, %v15197_v41, -1e+30 }
 0x6b1   : > { %v5092_v53 = vsel %vm5091_vm12, %v8848_v51, %v5088_v4  ;;  %v4517_v5 = vsel %vm4411_vm14, %v13272_v0, -inf  ;;  %v4520_v35 = vsel %vm4411_vm14, %v13282_v11, -inf  ;;  %v4514_v34 = vsel %vm4411_vm14, %v13277_v6, -inf  ;;  %v15198_v54 = vld [vmem:[#allocation29_spill] sm:$0xff] }
 0x6b2   : > { %v5097_v25 = vsel %vm5094_vm0, %v5096_v60, %v5092_v53  ;;  %v5107_v10 = vsel %vm5106_vm2, %v8850_v55, %v5103_v24 }
 0x6b3   : > { %v13224_v37 = vpop.eup %8853  ;;  %v5098_v30 = vmul.f32 %v12822_v43, %v5097_v25  ;;  %v5112_v36 = vsel %vm5109_vm4, %v5111_v47, %v5107_v10 }
 0x6b4   : > { %8385 = vmatmul.msk.f32.gmra.mxu2 %vm671_vm3, %v5698_v31  ;;  %v13228_v49 = vpop.eup %8855  ;;  %v4775_v51 = vsel %vm4411_vm14, %v13224_v37, 0.0  ;;  %v5113_v19 = vmul.f32 %v12828_v14, %v5112_v36  ;;  %v13249_v14 = vsel %vm4360_vm13, %v12981_v29, -1e+30  ;;  %v4508_v29 = vsel %vm4411_vm14, %v13254_v48, -inf }
 0x6b5   : > { %8343 = vmatmul.msk.f32.gmra.mxu1 %vm4411_vm14, %v5098_v30  ;;  %6140 = vst.msk [vmem:[%s12445_s6 + $0x80] sm:$0xff] %vm4411_vm14, %v5098_v30  ;;  %4506 = vmax.xlane.f32.xlu1 %v4505_v33  ;;  %v4772_v43 = vsel %vm4411_vm14, %v13228_v49, 0.0  ;;  %v13244_v55 = vpop.eup %8857  ;;  %v4511_v62 = vsel %vm4411_vm14, %v13249_v14, -inf  ;;  %v15200_v33 = vld [vmem:[#allocation35_spill] sm:$0xff] }
 0x6b6   : > { %4776 = vadd.xlane.f32.xlu2 %v4775_v51  ;;  %4773 = vadd.xlane.f32.xlu0 %v4772_v43  ;;  %6141 = vst.msk [vmem:[%s12445_s6 + $0x88] sm:$0xff] %vm4411_vm14, %v5113_v19  ;;  %v4778_v44 = vsel %vm4411_vm14, %v13244_v55, 0.0 }
 0x6b7   : > { %8423 = vmatmul.msk.f32.vlgmr.msrb.gmra.mxu3 %vm671_vm3, %v15194_v3  ;;  %v3693_v25 = vpop.f32.mrf.mxu2 }
 0x6bb   : > { %v5730_v1 = vpop.f32.mrf.mxu0 }
 0x6bc   : > { %8386 = vmatmul.msk.f32.gmra.mxu2 %vm671_vm3, %v13256_v17 }
 0x6bd   : > { %8344 = vmatmul.msk.f32.gmra.mxu1 %vm4411_vm14, %v5113_v19  ;;  %4779 = vadd.xlane.f32.xlu1 %v4778_v44  ;;  %v15201_v44 = vld [vmem:[#allocation37_spill] sm:$0xff] }
 0x6be   : > { %4512 = vmax.xlane.f32.xlu2 %v4511_v62  ;;  %4509 = vmax.xlane.f32.xlu0 %v4508_v29 }
 0x6bf   : > { %8424 = vmatmul.msk.f32.gmra.mxu3 %vm671_vm3, %v15196_v28  ;;  %v13317_v28 = vpop.f32.mrf.mxu3 }
 0x6c1   : > { %v4765_v22 = vpop.xlane.xlu2 %4764 }
 0x6c2   : > { %8859 = vrcp.f32 %v4765_v22  ;;  %v5170_v21 = vand.u32 2147483648, %v4765_v22  ;;  %v5168_v4 = vand.u32 2147483647, %v4765_v22  ;;  %vm5164_vm6 = vweird.f32 %v4765_v22 }
 0x6c3   : > { %v5733_v18 = vpop.f32.mrf.mxu0 }
 0x6c4   : > { %8387 = vmatmul.msk.f32.gmra.mxu2 %vm671_vm3, %v5730_v1  ;;  %v5171_v60 = vor.u32 1.1754944e-38, %v5170_v21  ;;  %vm5169_vm9 = vcmp.eq.f32.partialorder %v5168_v4, 8.507059e+37  ;;  %v15208_v21 = vld [vmem:[#allocation52_spill] sm:$0xff] }
 0x6c5   : > { %4518 = vmax.xlane.f32.xlu1 %v4517_v5  ;;  %v15203_v5 = vld [vmem:[#allocation41_spill] sm:$0xff] }
 0x6c6   : > { %4521 = vmax.xlane.f32.xlu2 %v4520_v35  ;;  %4515 = vmax.xlane.f32.xlu0 %v4514_v34  ;;  %v15204_v35 = vld [vmem:[#allocation43_spill] sm:$0xff] }
 0x6c7   : > { %8425 = vmatmul.msk.f32.gmra.mxu3 %vm671_vm3, %v15198_v54  ;;  %v13321_v41 = vpop.f32.mrf.mxu3 }
 0x6c8   : > { %v8860_v12 = vpop.eup %8859 }
 0x6c9   : > { %v5160_v50 = vmul.f32 %v8860_v12, %v4765_v22  ;;  %v4504_v58 = vpop.xlane.xlu2 %4503  ;;  %vm5165_vm5 = vweird.f32 %v8860_v12  ;;  %v15202_v22 = vld [vmem:[#allocation39_spill] sm:$0xff] }
 0x6ca   : > { %v4586_v39 = vsub.f32 %v13102_v9, %v4504_v58  ;;  %vm5166_vm7 = vmor %vm5164_vm6, %vm5165_vm5 }
 0x6cb   : > { %v5161_v59 = vsub.f32 1.0, %v5160_v50  ;;  %v13335_v50 = vpop.f32.mrf.mxu2 }
 0x6cc   : > { %8388 = vmatmul.msk.f32.gmra.mxu2 %vm671_vm3, %v5733_v18  ;;  %v4664_v8 = vmul.f32 1.442695, %v4586_v39  ;;  %v13297_v15 = vpop.f32.mrf.mxu0  ;;  %v15206_v18 = vld [vmem:[#allocation47_spill] sm:$0xff]  ;;  %v15207_v39 = vld [vmem:[#allocation50_spill] sm:$0xff] }
 0x6cd   : > { %v5162_v27 = vmul.f32 %v8860_v12, %v5161_v59 }
 0x6ce   : > { %8861 = vpow2.f32 %v4664_v8 }
 0x6cf   : > { %v5163_v46 = vadd.f32 %v8860_v12, %v5162_v27  ;;  %8426 = vmatmul.msk.f32.gmra.mxu3 %vm671_vm3, %v15199_v23  ;;  %v13327_v34 = vpop.f32.mrf.mxu3  ;;  %v15210_v27 = vld [vmem:[#allocation8_spill] sm:$0xff] }
 0x6d0   : > { %v4768_v31 = vpop.xlane.xlu0 %4767 }
 0x6d1   : > { %8863 = vrcp.f32 %v4768_v31  ;;  %v5167_v9 = vsel %vm5166_vm7, %v8860_v12, %v5163_v46  ;;  %v5185_v51 = vand.u32 2147483648, %v4768_v31  ;;  %v5183_v43 = vand.u32 2147483647, %v4768_v31 }
 0x6d2   : > { %v5172_v24 = vsel %vm5169_vm9, %v5171_v60, %v5167_v9  ;;  %vm5179_vm8 = vweird.f32 %v4768_v31  ;;  %v15213_v60 = vld [vmem:[#allocation11_spill] sm:$0xff] }
 0x6d3   : > { %v5173_v47 = vmul.f32 %v13084_v56, %v5172_v24  ;;  %v5186_v52 = vor.u32 1.1754944e-38, %v5185_v51  ;;  %vm5184_vm12 = vcmp.eq.f32.partialorder %v5183_v43, 8.507059e+37 }
 0x6d4   : > { %8389 = vmatmul.msk.f32.gmra.mxu2 %vm671_vm3, %v13297_v15  ;;  %v13302_v53 = vpop.eup %8861 }
 0x6d5   : > { %6145 = vst.msk [vmem:[%s12445_s6 + $0xa8] sm:$0xff] %vm4411_vm14, %v5173_v47  ;;  %8348 = vmatmul.msk.f32.vlgmr.msrb.gmra.mxu0 %vm4411_vm14, %v5173_v47  ;;  %v4790_v10 = vsel %vm4411_vm14, %v13302_v53, 0.0 }
 0x6d6   : > { %6077 = vmatpush.msrb.mxu0 %v3693_v25  ;;  %4791 = vadd.xlane.f32.xlu0 %v4790_v10 }
 0x6d7   : > { %v8864_v30 = vpop.eup %8863  ;;  %8427 = vmatmul.msk.f32.gmra.mxu3 %vm671_vm3, %v15200_v33  ;;  %v13331_v12 = vpop.f32.mrf.mxu3 }
 0x6d8   : > { %v5175_v36 = vmul.f32 %v8864_v30, %v4768_v31  ;;  %6078 = vmatpush.msrb.mxu0 %v3690_v42  ;;  %vm5180_vm10 = vweird.f32 %v8864_v30  ;;  %v13341_v42 = vpop.f32.mrf.mxu2 }
 0x6d9   : > { %vm5181_vm11 = vmor %vm5179_vm8, %vm5180_vm10 }
 0x6da   : > { %v5176_v56 = vsub.f32 1.0, %v5175_v36 }
 0x6dc   : > { %v5177_v19 = vmul.f32 %v8864_v30, %v5176_v56 }
 0x6de   : > { %v5178_v3 = vadd.f32 %v8864_v30, %v5177_v19 }
 0x6df   : > { %8428 = vmatmul.msk.f32.gmra.mxu3 %vm671_vm3, %v15201_v44  ;;  %v13337_v58 = vpop.f32.mrf.mxu3 }
 0x6e0   : > { %v5182_v62 = vsel %vm5181_vm11, %v8864_v30, %v5178_v3  ;;  %v13347_v8 = vpop.f32.mrf.mxu2 }
 0x6e1   : > { %v5187_v29 = vsel %vm5184_vm12, %v5186_v52, %v5182_v62  ;;  %15209 = vst [vmem:[#allocation24_spill] sm:$0xff] %v13347_v8 }
 0x6e2   : > { %v5188_v1 = vmul.f32 %v13115_v16, %v5187_v29  ;;  %v15205_v16 = vld [vmem:[#allocation45_spill] sm:$0xff] }
 0x6e4   : > { %8349 = vmatmul.msk.f32.gmra.mxu0 %vm4411_vm14, %v5188_v1  ;;  %6146 = vst.msk [vmem:[%s12445_s6 + $0xb0] sm:$0xff] %vm4411_vm14, %v5188_v1 }
 0x6e7   : > { %8429 = vmatmul.msk.f32.gmra.mxu3 %vm671_vm3, %v15202_v22  ;;  %v13343_v59 = vpop.f32.mrf.mxu3 }
 0x6e8   : > { %v13353_v23 = vpop.f32.mrf.mxu2 }
 0x6e9   : > { %15212 = vst [vmem:[#allocation53_spill] sm:$0xff] %v13353_v23 }
 0x6ef   : > { %8430 = vmatmul.msk.f32.gmra.mxu3 %vm671_vm3, %v15203_v5  ;;  %v13351_v4 = vpop.f32.mrf.mxu3 }
 0x6f0   : > { %15211 = vst [vmem:[#allocation3_spill] sm:$0xff] %v13351_v4  ;;  %v13367_v56 = vpop.f32.mrf.mxu2 }
 0x6f7   : > { %8431 = vmatmul.msk.f32.gmra.mxu3 %vm671_vm3, %v15204_v35  ;;  %v13362_v30 = vpop.f32.mrf.mxu3 }
 0x6f8   : > { %15214 = vst [vmem:[#allocation58_spill] sm:$0xff] %v13362_v30 }
 0x6ff   : > { %8432 = vmatmul.msk.f32.gmra.mxu3 %vm671_vm3, %v15205_v16 }
 0x707   : > { %8433 = vmatmul.msk.f32.gmra.mxu3 %vm671_vm3, %v15206_v18 }
 0x70f   : > { %8434 = vmatmul.msk.f32.gmra.mxu3 %vm671_vm3, %v15207_v39 }
 0x717   : > { %8435 = vmatmul.msk.f32.gmra.mxu3 %vm671_vm3, %v15208_v21 }
 0x71f   : > { %8436 = vmatmul.msk.f32.gmra.mxu3 %vm671_vm3, %v15210_v27 }
 0x720   : > { %v4771_v46 = vpop.xlane.xlu1 %4770 }
 0x721   : > { %8865 = vrcp.f32 %v4771_v46  ;;  %v5198_v43 = vand.u32 2147483647, %v4771_v46  ;;  %v5200_v52 = vand.u32 2147483648, %v4771_v46  ;;  %vm5194_vm0 = vweird.f32 %v4771_v46 }
 0x723   : > { %vm13379_vm4 = vcmp.eq.f32.partialorder %v5198_v43, 8.507059e+37 }
 0x727   : > { %v8866_v31 = vpop.eup %8865  ;;  %8437 = vmatmul.msk.f32.gmra.mxu3 %vm671_vm3, %v15213_v60 }
 0x728   : > { %v5190_v9 = vmul.f32 %v8866_v31, %v4771_v46  ;;  %v4507_v24 = vpop.xlane.xlu1 %4506  ;;  %vm5195_vm15 = vweird.f32 %v8866_v31  ;;  %v5201_v46 = vor.u32 1.1754944e-38, %v5200_v52 }
 0x729   : > { %v13357_v47 = vpop.xlane.xlu2 %4776  ;;  %v13359_v25 = vpop.xlane.xlu0 %4773  ;;  %v4587_v10 = vsub.f32 %v13221_v13, %v4507_v24  ;;  %v15215_v13 = vld [vmem:[#allocation12_spill] sm:$0xff]  ;;  %vm13373_vm2 = vmor %vm5194_vm0, %vm5195_vm15 }
 0x72a   : > { %v5191_v36 = vsub.f32 1.0, %v5190_v9  ;;  %8867 = vrcp.f32 %v13357_v47  ;;  %v5765_v33 = vpop.f32.mrf.mxu1  ;;  %v5230_v43 = vand.u32 2147483648, %v13357_v47  ;;  %vm5224_vm7 = vweird.f32 %v13357_v47 }
 0x72b   : > { %8869 = vrcp.f32 %v13359_v25  ;;  %8390 = vmatmul.msk.f32.gmra.mxu2 %vm671_vm3, %v5765_v33  ;;  %v4666_v19 = vmul.f32 1.442695, %v4587_v10  ;;  %vm5209_vm8 = vweird.f32 %v13359_v25 }
 0x72c   : > { %v5192_v51 = vmul.f32 %v8866_v31, %v5191_v36 }
 0x72d   : > { %8871 = vpow2.f32 %v4666_v19  ;;  %v5228_v19 = vand.u32 2147483647, %v13357_v47 }
 0x72e   : > { %v5193_v3 = vadd.f32 %v8866_v31, %v5192_v51 }
 0x72f   : > { %8438 = vmatmul.msk.f32.gmra.mxu3 %vm671_vm3, %v15215_v13  ;;  %v5213_v13 = vand.u32 2147483647, %v13359_v25  ;;  %vm13424_vm10 = vcmp.eq.f32.partialorder %v5228_v19, 8.507059e+37 }
 0x730   : > { %v13371_v62 = vpop.eup %8867  ;;  %v13377_v1 = vpop.xlane.xlu1 %4779  ;;  %v5197_v27 = vsel %vm13373_vm2, %v8866_v31, %v5193_v3 }
 0x731   : > { %v8870_v22 = vpop.eup %8869  ;;  %v5220_v16 = vmul.f32 %v13371_v62, %v13357_v47  ;;  %v4513_v18 = vpop.xlane.xlu2 %4512  ;;  %8873 = vrcp.f32 %v13377_v1  ;;  %vm5225_vm5 = vweird.f32 %v13371_v62  ;;  %vm5214_vm12 = vcmp.eq.f32.partialorder %v5213_v13, 8.507059e+37 }
 0x732   : > { %v4510_v21 = vpop.xlane.xlu0 %4509  ;;  %v5205_v9 = vmul.f32 %v8870_v22, %v13359_v25  ;;  %v13389_v24 = vpop.f32.mrf.mxu3  ;;  %v4589_v10 = vsub.f32 %v13249_v14, %v4513_v18  ;;  %v5202_v14 = vsel %vm13379_vm4, %v5201_v46, %v5197_v27  ;;  %vm5210_vm6 = vweird.f32 %v8870_v22  ;;  %vm13420_vm9 = vmor %vm5224_vm7, %vm5225_vm5  ;;  %v15226_v46 = vld [vmem:[#allocation63_spill] sm:$0xff] }
 0x733   : > { %15220 = vst [vmem:[#allocation57_spill] sm:$0xff] %v13389_v24  ;;  %v4588_v36 = vsub.f32 %v13254_v48, %v4510_v21  ;;  %v5768_v33 = vpop.f32.mrf.mxu1  ;;  %v5221_v51 = vsub.f32 1.0, %v5220_v16  ;;  %v13397_v31 = vpop.eup %8871  ;;  %v5215_v16 = vand.u32 2147483648, %v13359_v25  ;;  %v5203_v18 = vmul.f32 %v13195_v2, %v5202_v14  ;;  %v15221_v2 = vld [vmem:[#allocation9_spill] sm:$0xff]  ;;  %vm5211_vm11 = vmor %vm5209_vm8, %vm5210_vm6 }
 0x734   : > { %8391 = vmatmul.msk.f32.gmra.mxu2 %vm671_vm3, %v5768_v33  ;;  %v5206_v3 = vsub.f32 1.0, %v5205_v9  ;;  %v4670_v52 = vmul.f32 1.442695, %v4589_v10  ;;  %v13405_v21 = vpop.f32.mrf.mxu2  ;;  %v4793_v9 = vsel %vm4411_vm14, %v13397_v31, 0.0  ;;  %v5243_v13 = vand.u32 2147483647, %v13377_v1 }
 0x735   : > { %v4668_v29 = vmul.f32 1.442695, %v4588_v36  ;;  %v5222_v48 = vmul.f32 %v13371_v62, %v5221_v51  ;;  %8350 = vmatmul.msk.f32.gmra.mxu0 %vm4411_vm14, %v5203_v18  ;;  %6147 = vst.msk [vmem:[%s12445_s6 + $0xb8] sm:$0xff] %vm4411_vm14, %v5203_v18  ;;  %4794 = vadd.xlane.f32.xlu1 %v4793_v9  ;;  %vm5239_vm0 = vweird.f32 %v13377_v1 }
 0x736   : > { %v5207_v33 = vmul.f32 %v8870_v22, %v5206_v3  ;;  %8875 = vpow2.f32 %v4670_v52  ;;  %v5231_v3 = vor.u32 1.1754944e-38, %v5230_v43  ;;  %v5216_v52 = vor.u32 1.1754944e-38, %v5215_v16 }
 0x737   : > { %v13409_v10 = vpop.eup %8873  ;;  %v5223_v5 = vadd.f32 %v13371_v62, %v5222_v48  ;;  %8877 = vpow2.f32 %v4668_v29  ;;  %8439 = vmatmul.msk.f32.gmra.mxu3 %vm671_vm3, %v15221_v2  ;;  %v5245_v16 = vand.u32 2147483648, %v13377_v1  ;;  %vm5244_vm4 = vcmp.eq.f32.partialorder %v5243_v13, 8.507059e+37 }
 0x738   : > { %v5208_v36 = vadd.f32 %v8870_v22, %v5207_v33  ;;  %v5235_v47 = vmul.f32 %v13409_v10, %v13377_v1  ;;  %v4519_v51 = vpop.xlane.xlu1 %4518  ;;  %vm5240_vm15 = vweird.f32 %v13409_v10  ;;  %v13502_v13 = vsel %vm4360_vm13, %v13135_v26, -1e+30 }
 0x739   : > { %v4522_v29 = vpop.xlane.xlu2 %4521  ;;  %v4591_v19 = vsub.f32 %v13272_v0, %v4519_v51  ;;  %v5227_v43 = vsel %vm13420_vm9, %v13371_v62, %v5223_v5  ;;  %vm5241_vm2 = vmor %vm5239_vm0, %vm5240_vm15  ;;  %v5246_v51 = vor.u32 1.1754944e-38, %v5245_v16 }
 0x73a   : > { %v4516_v14 = vpop.xlane.xlu0 %4515  ;;  %v5212_v48 = vsel %vm5211_vm11, %v8870_v22, %v5208_v36  ;;  %v5236_v18 = vsub.f32 1.0, %v5235_v47  ;;  %v13433_v2 = vpop.f32.mrf.mxu3  ;;  %v4592_v5 = vsub.f32 %v13282_v11, %v4522_v29  ;;  %v5232_v47 = vsel %vm13424_vm10, %v5231_v3, %v5227_v43  ;;  %v15227_v3 = vld [vmem:[#allocation10_spill] sm:$0xff] }
 0x73b   : > { %v4590_v25 = vsub.f32 %v13277_v6, %v4516_v14  ;;  %v13436_v33 = vpop.f32.mrf.mxu1  ;;  %v5217_v9 = vsel %vm5214_vm12, %v5216_v52, %v5212_v48  ;;  %v4674_v24 = vmul.f32 1.442695, %v4591_v19  ;;  %v15228_v14 = vld [vmem:[#allocation62_spill] sm:$0xff]  ;;  %v13477_v19 = vsel %vm4360_vm13, %v13123_v20, -1e+30 }
 0x73c   : > { %8392 = vmatmul.msk.f32.gmra.mxu2 %vm671_vm3, %v13436_v33  ;;  %v13445_v0 = vpop.eup %8875  ;;  %v5218_v6 = vmul.f32 %v13228_v49, %v5217_v9  ;;  %v5237_v22 = vmul.f32 %v13409_v10, %v5236_v18  ;;  %v13468_v52 = vpop.f32.mrf.mxu2  ;;  %v4676_v29 = vmul.f32 1.442695, %v4592_v5  ;;  %v4538_v43 = vsel %vm4411_vm14, %v13477_v19, -inf  ;;  %v15229_v9 = vld [vmem:[#allocation4_spill] sm:$0xff] }
 0x73d   : > { %v4672_v27 = vmul.f32 1.442695, %v4590_v25  ;;  %v13450_v62 = vpop.eup %8877  ;;  %8879 = vpow2.f32 %v4674_v24  ;;  %v4799_v36 = vsel %vm4411_vm14, %v13445_v0, 0.0  ;;  %v5233_v24 = vmul.f32 %v13224_v37, %v5232_v47 }
 0x73e   : > { %6148 = vst.msk [vmem:[%s12445_s6 + $0xc0] sm:$0xff] %vm4411_vm14, %v5218_v6  ;;  %v5238_v49 = vadd.f32 %v13409_v10, %v5237_v22  ;;  %8351 = vmatmul.msk.f32.vlgmr.msrb.gmra.mxu1 %vm4411_vm14, %v5218_v6  ;;  %4800 = vadd.xlane.f32.xlu0 %v4799_v36  ;;  %v4796_v11 = vsel %vm4411_vm14, %v13450_v62, 0.0  ;;  %v4547_v5 = vsel %vm4411_vm14, %v13502_v13, -inf  ;;  %v15230_v36 = vld [vmem:[#allocation26_spill] sm:$0xff] }
 0x73f   : > { %8881 = vpow2.f32 %v4672_v27  ;;  %6007 = vmatpush.msrb.mxu1 %v15226_v46  ;;  %8440 = vmatmul.msk.f32.gmra.mxu3 %vm671_vm3, %v15227_v3  ;;  %6149 = vst.msk [vmem:[%s12445_s6 + $0xc8] sm:$0xff] %vm4411_vm14, %v5233_v24  ;;  %v13515_v27 = vsel %vm4360_vm13, %v13126_v38, -1e+30  ;;  %v13543_v46 = vsel %vm4360_vm13, %v13138_v32, -1e+30 }
 0x740   : > { %4797 = vadd.xlane.f32.xlu2 %v4796_v11  ;;  %v5242_v1 = vsel %vm5241_vm2, %v13409_v10, %v5238_v49  ;;  %8883 = vpow2.f32 %v4676_v29  ;;  %v13529_v49 = vsel %vm4360_vm13, %v13141_v40, -1e+30  ;;  %v4550_v32 = vsel %vm4411_vm14, %v13543_v46, -inf }
 0x741   : > { %6008 = vmatpush.msrb.mxu1 %v15228_v14  ;;  %v5247_v37 = vsel %vm5244_vm4, %v5246_v51, %v5242_v1 }
 0x742   : > { %v13479_v48 = vpop.f32.mrf.mxu3  ;;  %v5248_v18 = vmul.f32 %v13244_v55, %v5247_v37  ;;  %v4553_v37 = vsel %vm4411_vm14, %v13529_v49, -inf }
 0x743   : > { %v13482_v25 = vpop.eup %8879 }
 0x744   : > { %8393 = vmatmul.msk.f32.gmra.mxu2 %vm671_vm3, %v13317_v28  ;;  %6150 = vst.msk [vmem:[%s12445_s6 + $0xd0] sm:$0xff] %vm4411_vm14, %v5248_v18  ;;  %v4805_v20 = vsel %vm4411_vm14, %v13482_v25, 0.0  ;;  %v13504_v16 = vpop.f32.mrf.mxu2 }
 0x745   : > { %v13488_v10 = vpop.eup %8881 }
 0x746   : > { %8352 = vmatmul.msk.f32.gmra.mxu1 %vm4411_vm14, %v5233_v24  ;;  %4539 = vmax.xlane.f32.xlu0 %v4538_v43  ;;  %v4802_v55 = vsel %vm4411_vm14, %v13488_v10, 0.0  ;;  %v13508_v22 = vpop.eup %8883  ;;  %v13536_v24 = vsel %vm4360_vm13, %v13129_v61, -1e+30  ;;  %v15231_v43 = vld [vmem:[#allocation27_spill] sm:$0xff] }
 0x747   : > { %8441 = vmatmul.msk.f32.gmra.mxu3 %vm671_vm3, %v15229_v9  ;;  %4803 = vadd.xlane.f32.xlu1 %v4802_v55  ;;  %v4808_v26 = vsel %vm4411_vm14, %v13508_v22, 0.0  ;;  %v4544_v61 = vsel %vm4411_vm14, %v13536_v24, -inf }
 0x748   : > { %4806 = vadd.xlane.f32.xlu2 %v4805_v20 }
 0x749   : > { %v4792_v28 = vpop.xlane.xlu0 %4791 }
 0x74a   : > { %v13506_v6 = vpop.f32.mrf.mxu3  ;;  %8885 = vrcp.f32 %v4792_v28  ;;  %v5305_v40 = vand.u32 2147483648, %v4792_v28  ;;  %v5303_v14 = vand.u32 2147483647, %v4792_v28  ;;  %vm5299_vm6 = vweird.f32 %v4792_v28 }
 0x74c   : > { %8394 = vmatmul.msk.f32.gmra.mxu2 %vm671_vm3, %v13321_v41  ;;  %v4541_v41 = vsel %vm4411_vm14, %v13515_v27, -inf  ;;  %v13545_v1 = vpop.f32.mrf.mxu2  ;;  %v5306_v20 = vor.u32 1.1754944e-38, %v5305_v40  ;;  %vm5304_vm7 = vcmp.eq.f32.partialorder %v5303_v14, 8.507059e+37 }
 0x74e   : > { %8353 = vmatmul.msk.f32.gmra.mxu1 %vm4411_vm14, %v5248_v18  ;;  %4548 = vmax.xlane.f32.xlu0 %v4547_v5 }
 0x74f   : > { %8442 = vmatmul.msk.f32.gmra.mxu3 %vm671_vm3, %v15230_v36  ;;  %4809 = vadd.xlane.f32.xlu1 %v4808_v26 }
 0x750   : > { %v8886_v47 = vpop.eup %8885  ;;  %4542 = vmax.xlane.f32.xlu2 %v4541_v41  ;;  %v15232_v41 = vld [vmem:[#allocation19_spill] sm:$0xff] }
 0x751   : > { %v5295_v38 = vmul.f32 %v8886_v47, %v4792_v28  ;;  %vm5300_vm5 = vweird.f32 %v8886_v47 }
 0x752   : > { %v13531_v11 = vpop.f32.mrf.mxu3  ;;  %vm5301_vm13 = vmor %vm5299_vm6, %vm5300_vm5  ;;  %v5835_v55 = vpop.f32.mrf.mxu0 }
 0x753   : > { %v5296_v51 = vsub.f32 1.0, %v5295_v38 }
 0x754   : > { %8395 = vmatmul.msk.f32.gmra.mxu2 %vm671_vm3, %v13327_v34  ;;  %v13562_v28 = vpop.f32.mrf.mxu2 }
 0x755   : > { %v5297_v29 = vmul.f32 %v8886_v47, %v5296_v51 }
 0x756   : > { %4554 = vmax.xlane.f32.xlu0 %v4553_v37 }
 0x757   : > { %v5298_v18 = vadd.f32 %v8886_v47, %v5297_v29  ;;  %8443 = vmatmul.msk.f32.gmra.mxu3 %vm671_vm3, %v15231_v43  ;;  %4545 = vmax.xlane.f32.xlu1 %v4544_v61  ;;  %v15236_v29 = vld [vmem:[#allocation6_spill] sm:$0xff] }
 0x758   : > { %4551 = vmax.xlane.f32.xlu2 %v4550_v32  ;;  %v15239_v32 = vld [vmem:[#allocation36_spill] sm:$0xff] }
 0x759   : > { %v5302_v9 = vsel %vm5301_vm13, %v8886_v47, %v5298_v18  ;;  %v15233_v47 = vld [vmem:[#allocation28_spill] sm:$0xff] }
 0x75a   : > { %v5307_v5 = vsel %vm5304_vm7, %v5306_v20, %v5302_v9  ;;  %v13555_v26 = vpop.f32.mrf.mxu3  ;;  %v15238_v18 = vld [vmem:[#allocation16_spill] sm:$0xff]  ;;  %v15240_v20 = vld [vmem:[#allocation38_spill] sm:$0xff] }
 0x75b   : > { %v5308_v36 = vmul.f32 %v13302_v53, %v5307_v5  ;;  %v15242_v9 = vld [vmem:[#allocation42_spill] sm:$0xff] }
 0x75c   : > { %8396 = vmatmul.msk.f32.gmra.mxu2 %vm671_vm3, %v5835_v55  ;;  %v13571_v53 = vpop.f32.mrf.mxu2  ;;  %v15241_v55 = vld [vmem:[#allocation40_spill] sm:$0xff] }
 0x75d   : > { %6154 = vst.msk [vmem:[%s12445_s6 + $0xf0] sm:$0xff] %vm4411_vm14, %v5308_v36  ;;  %8357 = vmatmul.msk.f32.vlgmr.msra.gmra.mxu0 %vm4411_vm14, %v5308_v36  ;;  %v15244_v36 = vld [vmem:[#allocation44_spill] sm:$0xff] }
 0x75e   : > { %15234 = vst [vmem:[#allocation54_spill] sm:$0xff] %v13571_v53 }
 0x75f   : > { %8444 = vmatmul.msk.f32.gmra.mxu3 %vm671_vm3, %v15232_v41 }
 0x761   : > { %v5838_v38 = vpop.f32.mrf.mxu0 }
 0x762   : > { %v13566_v51 = vpop.f32.mrf.mxu3 }
 0x764   : > { %8397 = vmatmul.msk.f32.gmra.mxu2 %vm671_vm3, %v5838_v38  ;;  %v6366_v14 = vpop.f32.mrf.mxu2 }
 0x767   : > { %8445 = vmatmul.msk.f32.gmra.mxu3 %vm671_vm3, %v15233_v47  ;;  %v15247_v47 = vld [vmem:[#allocation46_spill] sm:$0xff] }
 0x76a   : > { %v13573_v40 = vpop.f32.mrf.mxu3 }
 0x76b   : > { %15235 = vst [vmem:[#allocation60_spill] sm:$0xff] %v13573_v40 }
 0x76c   : > { %v13595_v38 = vpop.f32.mrf.mxu2 }
 0x76d   : > { %15246 = vst [vmem:[#allocation56_spill] sm:$0xff] %v13595_v38 }
 0x76f   : > { %8446 = vmatmul.msk.f32.gmra.mxu3 %vm671_vm3, %v15236_v29 }
 0x772   : > { %v6671_v37 = vpop.f32.mrf.mxu3 }
 0x773   : > { %v13577_v61 = vadd.f32 %v6671_v37, %v6366_v14 }
 0x775   : > { %15237 = vst [vmem:[#allocation59_spill] sm:$0xff] %v13577_v61 }
 0x777   : > { %8447 = vmatmul.msk.f32.gmra.mxu3 %vm671_vm3, %v15238_v18  ;;  %v15249_v18 = vld [vmem:[#allocation48_spill] sm:$0xff] }
 0x77a   : > { %v13589_v5 = vpop.f32.mrf.mxu3 }
 0x77b   : > { %15243 = vst [vmem:[#allocation55_spill] sm:$0xff] %v13589_v5 }
 0x77f   : > { %8448 = vmatmul.msk.f32.gmra.mxu3 %vm671_vm3, %v15239_v32  ;;  %v13603_v32 = vpop.f32.mrf.mxu2 }
 0x780   : > { %15250 = vst [vmem:[#allocation61_spill] sm:$0xff] %v13603_v32 }
 0x782   : > { %v13593_v41 = vpop.f32.mrf.mxu3 }
 0x783   : > { %15245 = vst [vmem:[#allocation14_spill] sm:$0xff] %v13593_v41  ;;  %v15252_v41 = vld [vmem:[#allocation49_spill] sm:$0xff] }
 0x787   : > { %8449 = vmatmul.msk.f32.gmra.mxu3 %vm671_vm3, %v15240_v20  ;;  %v13618_v53 = vpop.f32.mrf.mxu2 }
 0x788   : > { %15253 = vst [vmem:[#allocation35_spill] sm:$0xff] %v13618_v53 }
 0x78a   : > { %v13599_v37 = vpop.f32.mrf.mxu3 }
 0x78b   : > { %15248 = vst [vmem:[#allocation13_spill] sm:$0xff] %v13599_v37 }
 0x78f   : > { %8450 = vmatmul.msk.f32.gmra.mxu3 %vm671_vm3, %v15241_v55 }
 0x792   : > { %v13612_v23 = vpop.f32.mrf.mxu3 }
 0x793   : > { %15251 = vst [vmem:[#allocation7_spill] sm:$0xff] %v13612_v23 }
 0x797   : > { %8451 = vmatmul.msk.f32.gmra.mxu3 %vm671_vm3, %v15242_v9 }
 0x79f   : > { %8452 = vmatmul.msk.f32.gmra.mxu3 %vm671_vm3, %v15244_v36 }
 0x7a7   : > { %8453 = vmatmul.msk.f32.gmra.mxu3 %vm671_vm3, %v15247_v47 }
 0x7a8   : > { %v4795_v14 = vpop.xlane.xlu1 %4794 }
 0x7a9   : > { %8887 = vrcp.f32 %v4795_v14  ;;  %v5318_v20 = vand.u32 2147483647, %v4795_v14  ;;  %v5320_v61 = vand.u32 2147483648, %v4795_v14  ;;  %vm5314_vm8 = vweird.f32 %v4795_v14 }
 0x7ab   : > { %vm5319_vm15 = vcmp.eq.f32.partialorder %v5318_v20, 8.507059e+37 }
 0x7af   : > { %8454 = vmatmul.msk.f32.gmra.mxu3 %vm671_vm3, %v15249_v18  ;;  %v8888_v9 = vpop.eup %8887 }
 0x7b0   : > { %v5310_v7 = vmul.f32 %v8888_v9, %v4795_v14  ;;  %vm5315_vm9 = vweird.f32 %v8888_v9 }
 0x7b1   : > { %v4801_v55 = vpop.xlane.xlu0 %4800  ;;  %vm13633_vm11 = vmor %vm5314_vm8, %vm5315_vm9 }
 0x7b2   : > { %8889 = vrcp.f32 %v4801_v55  ;;  %v13608_v4 = vpop.f32.mrf.mxu0  ;;  %v5311_v47 = vsub.f32 1.0, %v5310_v7  ;;  %v5348_v36 = vand.u32 2147483647, %v4801_v55  ;;  %v5350_v43 = vand.u32 2147483648, %v4801_v55 }
 0x7b3   : > { %v13605_v30 = vpop.xlane.xlu2 %4797  ;;  %8398 = vmatmul.msk.f32.gmra.mxu2 %vm671_vm3, %v13608_v4  ;;  %vm5344_vm12 = vweird.f32 %v4801_v55 }
 0x7b4   : > { %8891 = vrcp.f32 %v13605_v30  ;;  %v5312_v32 = vmul.f32 %v8888_v9, %v5311_v47  ;;  %v5333_v3 = vand.u32 2147483647, %v13605_v30  ;;  %vm5329_vm0 = vweird.f32 %v13605_v30 }
 0x7b5   : > { %vm5349_vm5 = vcmp.eq.f32.partialorder %v5348_v36, 8.507059e+37 }
 0x7b6   : > { %v5313_v38 = vadd.f32 %v8888_v9, %v5312_v32  ;;  %vm13646_vm4 = vcmp.eq.f32.partialorder %v5333_v3, 8.507059e+37 }
 0x7b7   : > { %8455 = vmatmul.msk.f32.gmra.mxu3 %vm671_vm3, %v15252_v41 }
 0x7b8   : > { %v8890_v18 = vpop.eup %8889 }
 0x7b9   : > { %v5340_v37 = vmul.f32 %v8890_v18, %v4801_v55  ;;  %v4540_v8 = vpop.xlane.xlu0 %4539  ;;  %vm5345_vm10 = vweird.f32 %v8890_v18 }
 0x7ba   : > { %v13616_v40 = vpop.eup %8891  ;;  %v4598_v7 = vsub.f32 %v13477_v19, %v4540_v8  ;;  %v13621_v29 = vpop.xlane.xlu1 %4803  ;;  %v5335_v8 = vand.u32 2147483648, %v13605_v30  ;;  %vm5346_vm2 = vmor %vm5344_vm12, %vm5345_vm10 }
 0x7bb   : > { %v5325_v23 = vmul.f32 %v13616_v40, %v13605_v30  ;;  %v5341_v41 = vsub.f32 1.0, %v5340_v37  ;;  %v13625_v47 = vpop.xlane.xlu2 %4806  ;;  %v5870_v5 = vpop.f32.mrf.mxu1  ;;  %v5321_v37 = vor.u32 1.1754944e-38, %v5320_v61  ;;  %vm5330_vm6 = vweird.f32 %v13616_v40 }
 0x7bc   : > { %v4688_v53 = vmul.f32 1.442695, %v4598_v7  ;;  %8893 = vrcp.f32 %v13625_v47  ;;  %8399 = vmatmul.msk.f32.gmra.mxu2 %vm671_vm3, %v5870_v5  ;;  %v5317_v5 = vsel %vm13633_vm11, %v8888_v9, %v5313_v38  ;;  %vm5374_vm13 = vweird.f32 %v13625_v47  ;;  %vm5331_vm7 = vmor %vm5329_vm0, %vm5330_vm6 }
 0x7bd   : > { %v5326_v54 = vsub.f32 1.0, %v5325_v23  ;;  %v5342_v60 = vmul.f32 %v8890_v18, %v5341_v41  ;;  %8895 = vrcp.f32 %v13621_v29  ;;  %v15256_v23 = vld [vmem:[#allocation51_spill] sm:$0xff]  ;;  %v13640_v41 = vpop.f32.mrf.mxu3  ;;  %vm5359_vm11 = vweird.f32 %v13621_v29 }
 0x7be   : > { %8897 = vpow2.f32 %v4688_v53  ;;  %15257 = vst [vmem:[#allocation37_spill] sm:$0xff] %v13640_v41  ;;  %v5351_v53 = vor.u32 1.1754944e-38, %v5350_v43 }
 0x7bf   : > { %v5327_v32 = vmul.f32 %v13616_v40, %v5326_v54  ;;  %v5343_v7 = vadd.f32 %v8890_v18, %v5342_v60  ;;  %8456 = vmatmul.msk.f32.gmra.mxu3 %vm671_vm3, %v15256_v23  ;;  %v5322_v60 = vsel %vm5319_vm15, %v5321_v37, %v5317_v5  ;;  %v5336_v23 = vor.u32 1.1754944e-38, %v5335_v8 }
 0x7c0   : > { %v5323_v41 = vmul.f32 %v13397_v31, %v5322_v60  ;;  %v13665_v31 = vpop.f32.mrf.mxu2  ;;  %v5365_v60 = vand.u32 2147483648, %v13621_v29 }
 0x7c1   : > { %v5347_v54 = vsel %vm5346_vm2, %v8890_v18, %v5343_v7  ;;  %v4549_v14 = vpop.xlane.xlu0 %4548  ;;  %v5328_v38 = vadd.f32 %v13616_v40, %v5327_v32  ;;  %v5378_v7 = vand.u32 2147483647, %v13625_v47 }
 0x7c2   : > { %v13650_v55 = vpop.eup %8893  ;;  %v5352_v20 = vsel %vm5349_vm5, %v5351_v53, %v5347_v54  ;;  %v4601_v43 = vsub.f32 %v13502_v13, %v4549_v14  ;;  %v13654_v39 = vpop.xlane.xlu1 %4809  ;;  %8358 = vmatmul.msk.f32.gmra.mxu0 %vm4411_vm14, %v5323_v41  ;;  %6155 = vst.msk [vmem:[%s12445_s6 + $0xf8] sm:$0xff] %vm4411_vm14, %v5323_v41  ;;  %v5380_v53 = vand.u32 2147483648, %v13625_v47 }
 0x7c3   : > { %v13656_v3 = vpop.eup %8895  ;;  %v5353_v36 = vmul.f32 %v13445_v0, %v5352_v20  ;;  %v5370_v9 = vmul.f32 %v13650_v55, %v13625_v47  ;;  %v4543_v18 = vpop.xlane.xlu2 %4542  ;;  %8899 = vrcp.f32 %v13654_v39  ;;  %v5332_v14 = vsel %vm5331_vm7, %v13616_v40, %v5328_v38  ;;  %v15260_v20 = vld [vmem:[#allocation18_spill] sm:$0xff] }
 0x7c4   : > { %v5873_v8 = vpop.f32.mrf.mxu1  ;;  %v13663_v19 = vpop.eup %8897  ;;  %v5355_v13 = vmul.f32 %v13656_v3, %v13621_v29  ;;  %v4694_v37 = vmul.f32 1.442695, %v4601_v43  ;;  %v4599_v0 = vsub.f32 %v13515_v27, %v4543_v18  ;;  %v5363_v27 = vand.u32 2147483647, %v13621_v29 }
 0x7c5   : > { %6157 = vst.msk [vmem:[%s12445_s6 + $0x108] sm:$0xff] %vm4411_vm14, %v5353_v36  ;;  %v5371_v32 = vsub.f32 1.0, %v5370_v9  ;;  %8400 = vmatmul.msk.f32.gmra.mxu2 %vm671_vm3, %v5873_v8  ;;  %8360 = vmatmul.msk.f32.vlgmr.msra.gmra.mxu1 %vm4411_vm14, %v5353_v36  ;;  %v4826_v30 = vsel %vm4411_vm14, %v13663_v19, 0.0  ;;  %vm5375_vm9 = vweird.f32 %v13650_v55  ;;  %vm13700_vm10 = vcmp.eq.f32.partialorder %v5378_v7, 8.507059e+37  ;;  %v13706_v18 = vpop.f32.mrf.mxu3 }
 0x7c6   : > { %v5356_v41 = vsub.f32 1.0, %v5355_v13  ;;  %8901 = vpow2.f32 %v4694_v37  ;;  %v4690_v5 = vmul.f32 1.442695, %v4599_v0  ;;  %6112 = vmatpush.msra.mxu1 %v13341_v42  ;;  %v5337_v42 = vsel %vm13646_vm4, %v5336_v23, %v5332_v14  ;;  %4827 = vadd.xlane.f32.xlu1 %v4826_v30  ;;  %15263 = vst [vmem:[#allocation39_spill] sm:$0xff] %v13706_v18  ;;  %vm13715_vm12 = vmor %vm5374_vm13, %vm5375_vm9 }
 0x7c7   : > { %v5372_v54 = vmul.f32 %v13650_v55, %v5371_v32  ;;  %8457 = vmatmul.msk.f32.gmra.mxu3 %vm671_vm3, %v15260_v20  ;;  %vm5360_vm8 = vweird.f32 %v13656_v3  ;;  %v5338_v38 = vmul.f32 %v13450_v62, %v5337_v42  ;;  %v5381_v8 = vor.u32 1.1754944e-38, %v5380_v53 }
 0x7c8   : > { %v5357_v43 = vmul.f32 %v13656_v3, %v5356_v41  ;;  %8903 = vpow2.f32 %v4690_v5  ;;  %6113 = vmatpush.msra.mxu1 %v13335_v50  ;;  %vm13719_vm15 = vcmp.eq.f32.partialorder %v5363_v27, 8.507059e+37  ;;  %v5366_v0 = vor.u32 1.1754944e-38, %v5365_v60  ;;  %vm13733_vm0 = vmor %vm5359_vm11, %vm5360_vm8 }
 0x7c9   : > { %v5373_v36 = vadd.f32 %v13650_v55, %v5372_v54  ;;  %v4555_v9 = vpop.xlane.xlu0 %4554  ;;  %v8900_v13 = vpop.eup %8899  ;;  %v5393_v32 = vand.u32 2147483647, %v13654_v39  ;;  %6156 = vst.msk [vmem:[%s12445_s6 + $0x100] sm:$0xff] %vm4411_vm14, %v5338_v38  ;;  %v5395_v54 = vand.u32 2147483648, %v13654_v39  ;;  %vm5389_vm4 = vweird.f32 %v13654_v39 }
 0x7ca   : > { %v5358_v61 = vadd.f32 %v13656_v3, %v5357_v43  ;;  %v4603_v50 = vsub.f32 %v13529_v49, %v4555_v9  ;;  %v4546_v23 = vpop.xlane.xlu1 %4545  ;;  %v5385_v41 = vmul.f32 %v8900_v13, %v13654_v39  ;;  %8359 = vmatmul.msk.f32.gmra.mxu0 %vm4411_vm14, %v5338_v38  ;;  %vm5390_vm2 = vweird.f32 %v8900_v13 }
 0x7cb   : > { %v4552_v49 = vpop.xlane.xlu2 %4551  ;;  %v4600_v29 = vsub.f32 %v13536_v24, %v4546_v23  ;;  %v5377_v24 = vsel %vm13715_vm12, %v13650_v55, %v5373_v36  ;;  %vm5391_vm5 = vmor %vm5389_vm4, %vm5390_vm2  ;;  %v5396_v23 = vor.u32 1.1754944e-38, %v5395_v54  ;;  %vm5394_vm6 = vcmp.eq.f32.partialorder %v5393_v32, 8.507059e+37  ;;  %v15272_v32 = vld [vmem:[#allocation2_spill] sm:$0xff]  ;;  %v15278_v54 = vld [vmem:[#allocation17_spill] sm:$0xff] }
 0x7cc   : > { %v13727_v7 = vpop.f32.mrf.mxu1  ;;  %v13729_v53 = vpop.eup %8901  ;;  %v4698_v27 = vmul.f32 1.442695, %v4603_v50  ;;  %v4602_v5 = vsub.f32 %v13543_v46, %v4552_v49  ;;  %v5362_v14 = vsel %vm13733_vm0, %v13656_v3, %v5358_v61  ;;  %v5386_v43 = vsub.f32 1.0, %v5385_v41  ;;  %v15271_v3 = vld [vmem:[#allocation5_spill] sm:$0xff] }
 0x7cd   : > { %v4692_v60 = vmul.f32 1.442695, %v4600_v29  ;;  %8401 = vmatmul.msk.f32.gmra.mxu2 %vm671_vm3, %v13727_v7  ;;  %v4835_v20 = vsel %vm4411_vm14, %v13729_v53, 0.0  ;;  %v13753_v46 = vpop.f32.mrf.mxu2  ;;  %v5367_v42 = vsel %vm13719_vm15, %v5366_v0, %v5362_v14  ;;  %v5382_v9 = vsel %vm13700_vm10, %v5381_v8, %v5377_v24  ;;  %v13775_v62 = vpop.f32.mrf.mxu3 }
 0x7ce   : > { %v13751_v30 = vpop.eup %8903  ;;  %15270 = vst [vmem:[#allocation41_spill] sm:$0xff] %v13753_v46  ;;  %8905 = vpow2.f32 %v4698_v27  ;;  %v4696_v55 = vmul.f32 1.442695, %v4602_v5  ;;  %4836 = vadd.xlane.f32.xlu0 %v4835_v20  ;;  %v5368_v36 = vmul.f32 %v13488_v10, %v5367_v42  ;;  %v5387_v61 = vmul.f32 %v8900_v13, %v5386_v43  ;;  %v15275_v27 = vld [vmem:[#allocation21_spill] sm:$0xff]  ;;  %v15282_v42 = vld [vmem:[#allocation20_spill] sm:$0xff] }
 0x7cf   : > { %8907 = vpow2.f32 %v4692_v60  ;;  %8458 = vmatmul.msk.f32.gmra.mxu3 %vm671_vm3, %v15271_v3  ;;  %v4829_v38 = vsel %vm4411_vm14, %v13751_v30, 0.0  ;;  %v5383_v50 = vmul.f32 %v13482_v25, %v5382_v9  ;;  %v15280_v20 = vld [vmem:[#allocation25_spill] sm:$0xff]  ;;  %vm6939_vm10 = vcmask 785408  }
 0x7d0   : > { %8909 = vpow2.f32 %v4696_v55  ;;  %4830 = vadd.xlane.f32.xlu2 %v4829_v38  ;;  %8361 = vmatmul.msk.f32.gmra.mxu1 %vm4411_vm14, %v5368_v36  ;;  %6158 = vst.msk [vmem:[%s12445_s6 + $0x110] sm:$0xff] %vm4411_vm14, %v5368_v36  ;;  %v5388_v10 = vadd.f32 %v8900_v13, %v5387_v61  ;;  %v15284_v38 = vld [vmem:[#allocation22_spill] sm:$0xff]  ;;  %v15286_v61 = vld [vmem:[#allocation31_spill] sm:$0xff] }
 0x7d1   : > { %6159 = vst.msk [vmem:[%s12445_s6 + $0x118] sm:$0xff] %vm4411_vm14, %v5383_v50 }
 0x7d2   : > { %v5392_v40 = vsel %vm5391_vm5, %v8900_v13, %v5388_v10 }
 0x7d3   : > { %v5397_v25 = vsel %vm5394_vm6, %v5396_v23, %v5392_v40  ;;  %v15289_v23 = vld [vmem:[#allocation23_spill] sm:$0xff] }
 0x7d4   : > { %v13771_v37 = vpop.eup %8905  ;;  %v5398_v49 = vmul.f32 %v13508_v22, %v5397_v25  ;;  %v15274_v22 = vld [vmem:[#allocation15_spill] sm:$0xff] }
 0x7d5   : > { %v13773_v8 = vpop.eup %8907  ;;  %8402 = vmatmul.msk.f32.gmra.mxu2 %vm671_vm3, %v13331_v12  ;;  %v4841_v39 = vsel %vm4411_vm14, %v13771_v37, 0.0  ;;  %v13790_v47 = vpop.f32.mrf.mxu2 }
 0x7d6   : > { %v13781_v0 = vpop.eup %8909  ;;  %4842 = vadd.xlane.f32.xlu0 %v4841_v39  ;;  %v4832_v13 = vsel %vm4411_vm14, %v13773_v8, 0.0  ;;  %6160 = vst.msk [vmem:[%s12445_s6 + $0x120] sm:$0xff] %vm4411_vm14, %v5398_v49  ;;  %v13797_v12 = vpop.f32.mrf.mxu3  ;;  %v15292_v39 = vld [vmem:[#allocation32_spill] sm:$0xff] }
 0x7d7   : > { %8459 = vmatmul.msk.f32.gmra.mxu3 %vm671_vm3, %v15272_v32  ;;  %v4838_v29 = vsel %vm4411_vm14, %v13781_v0, 0.0  ;;  %4833 = vadd.xlane.f32.xlu1 %v4832_v13  ;;  %15273 = vst [vmem:[#allocation43_spill] sm:$0xff] %v13797_v12  ;;  %v15295_v32 = vld [vmem:[#allocation33_spill] sm:$0xff] }
 0x7d8   : > { %4839 = vadd.xlane.f32.xlu2 %v4838_v29  ;;  %8362 = vmatmul.msk.f32.gmra.mxu1 %vm4411_vm14, %v5383_v50  ;;  %v6805_v29 = vld [vmem:[%s14809_s3 + $0x58] sm:$0xff] }
 0x7d9   : > { %6855 = vmatpush.msra.mxu0 %v6805_v29  ;;  %v6800_v29 = vld [vmem:[%s14809_s3 + $0x30] sm:$0xff] }
 0x7dd   : > { %8403 = vmatmul.msk.f32.gmra.mxu2 %vm671_vm3, %v13337_v58  ;;  %v13802_v41 = vpop.f32.mrf.mxu2  ;;  %v5940_v58 = vpop.f32.mrf.mxu0 }
 0x7de   : > { %v13808_v5 = vpop.f32.mrf.mxu3 }
 0x7df   : > { %8460 = vmatmul.msk.f32.gmra.mxu3 %vm671_vm3, %v15274_v22  ;;  %15276 = vst [vmem:[#allocation45_spill] sm:$0xff] %v13808_v5 }
 0x7e0   : > { %8363 = vmatmul.msk.f32.vlgmr.msrb.gmra.mxu1 %vm4411_vm14, %v5398_v49 }
 0x7e5   : > { %8404 = vmatmul.msk.f32.gmra.mxu2 %vm671_vm3, %v13343_v59  ;;  %v13810_v24 = vpop.f32.mrf.mxu2 }
 0x7e6   : > { %15277 = vst [vmem:[#allocation47_spill] sm:$0xff] %v13810_v24  ;;  %v13815_v60 = vpop.f32.mrf.mxu3 }
 0x7e7   : > { %8461 = vmatmul.msk.f32.gmra.mxu3 %vm671_vm3, %v15275_v27 }
 0x7ed   : > { %8405 = vmatmul.msk.f32.gmra.mxu2 %vm671_vm3, %v5940_v58  ;;  %v13817_v14 = vpop.f32.mrf.mxu2  ;;  %v15297_v58 = vld [vmem:[#allocation34_spill] sm:$0xff] }
 0x7ee   : > { %15279 = vst [vmem:[#allocation52_spill] sm:$0xff] %v13817_v14  ;;  %v13821_v43 = vpop.f32.mrf.mxu3 }
 0x7ef   : > { %8462 = vmatmul.msk.f32.gmra.mxu3 %vm671_vm3, %v15278_v54  ;;  %15281 = vst [vmem:[#allocation8_spill] sm:$0xff] %v13821_v43  ;;  %v6804_v54 = vld [vmem:[%s14809_s3 + $0x50] sm:$0xff] }
 0x7f0   : > { %6856 = vmatpush.msra.mxu0 %v6804_v54  ;;  %v6798_v54 = vld [vmem:[%s14809_s3 + $0x20] sm:$0xff] }
 0x7f5   : > { %v13823_v55 = vpop.f32.mrf.mxu2 }
 0x7f6   : > { %v13827_v36 = vpop.f32.mrf.mxu3 }
 0x7f7   : > { %8463 = vmatmul.msk.f32.gmra.mxu3 %vm671_vm3, %v15280_v20  ;;  %15283 = vst [vmem:[#allocation12_spill] sm:$0xff] %v13827_v36 }
 0x7fd   : > { %v13831_v9 = vpop.f32.mrf.mxu2 }
 0x7fe   : > { %15285 = vst [vmem:[#allocation9_spill] sm:$0xff] %v13831_v9  ;;  %v13835_v50 = vpop.f32.mrf.mxu3 }
 0x7ff   : > { %8464 = vmatmul.msk.f32.gmra.mxu3 %vm671_vm3, %v15282_v42  ;;  %15287 = vst [vmem:[#allocation63_spill] sm:$0xff] %v13835_v50 }
 0x805   : > { %v13837_v10 = vpop.f32.mrf.mxu2 }
 0x806   : > { %15288 = vst [vmem:[#allocation62_spill] sm:$0xff] %v13837_v10  ;;  %v13841_v40 = vpop.f32.mrf.mxu3 }
 0x807   : > { %8465 = vmatmul.msk.f32.gmra.mxu3 %vm671_vm3, %v15284_v38  ;;  %15290 = vst [vmem:[#allocation4_spill] sm:$0xff] %v13841_v40  ;;  %v6803_v38 = vld [vmem:[%s14809_s3 + $0x48] sm:$0xff] }
 0x808   : > { %6857 = vmatpush.msra.mxu0 %v6803_v38 }
 0x80d   : > { %v13843_v25 = vpop.f32.mrf.mxu2 }
 0x80e   : > { %15291 = vst [vmem:[#allocation26_spill] sm:$0xff] %v13843_v25  ;;  %v13847_v49 = vpop.f32.mrf.mxu3 }
 0x80f   : > { %8466 = vmatmul.msk.f32.gmra.mxu3 %vm671_vm3, %v15286_v61  ;;  %15293 = vst [vmem:[#allocation19_spill] sm:$0xff] %v13847_v49  ;;  %v6802_v61 = vld [vmem:[%s14809_s3 + $0x40] sm:$0xff] }
 0x810   : > { %6858 = vmatpush.msra.mxu0 %v6802_v61  ;;  %v6797_v61 = vld [vmem:[%s14809_s3 + $0x18] sm:$0xff] }
 0x815   : > { %v13849_v13 = vpop.f32.mrf.mxu2 }
 0x816   : > { %15294 = vst [vmem:[#allocation28_spill] sm:$0xff] %v13849_v13  ;;  %v13856_v22 = vpop.f32.mrf.mxu3 }
 0x817   : > { %8467 = vmatmul.msk.f32.gmra.mxu3 %vm671_vm3, %v15289_v23  ;;  %15296 = vst [vmem:[#allocation16_spill] sm:$0xff] %v13856_v22 }
 0x81d   : > { %v13863_v20 = vpop.f32.mrf.mxu2 }
 0x81e   : > { %15298 = vst [vmem:[#allocation36_spill] sm:$0xff] %v13863_v20 }
 0x81f   : > { %8468 = vmatmul.msk.f32.gmra.mxu3 %vm671_vm3, %v15292_v39  ;;  %v6801_v39 = vld [vmem:[%s14809_s3 + $0x38] sm:$0xff] }
 0x820   : > { %6859 = vmatpush.msra.mxu0 %v6801_v39  ;;  %v6796_v39 = vld [vmem:[%s14809_s3 + $0x10] sm:$0xff] }
 0x822   : > { %6860 = vmatpush.msra.mxu0 %v6800_v29  ;;  %v6794_v29 = vld [vmem:[%s14809_s3] sm:$0xff] }
 0x827   : > { %8469 = vmatmul.msk.f32.gmra.mxu3 %vm671_vm3, %v15295_v32  ;;  %v6799_v32 = vld [vmem:[%s14809_s3 + $0x28] sm:$0xff] }
 0x828   : > { %6910 = vmatpush.msrb.mxu1 %v6799_v32  ;;  %v6795_v32 = vld [vmem:[%s14809_s3 + $0x8] sm:$0xff] }
 0x82a   : > { %6911 = vmatpush.msrb.mxu1 %v6798_v54  ;;  %v6722_v54 = vpop.f32.mrf.mxu3 }
 0x82c   : > { %6912 = vmatpush.msrb.mxu1 %v6797_v61 }
 0x82e   : > { %6913 = vmatpush.msrb.mxu1 %v6796_v39 }
 0x82f   : > { %8470 = vmatmul.msk.f32.gmra.mxu3 %vm671_vm3, %v15297_v58 }
 0x830   : > { %6914 = vmatpush.msrb.mxu1 %v6795_v32 }
 0x832   : > { %6915 = vmatpush.msrb.mxu1 %v6794_v29  ;;  %v6725_v32 = vpop.f32.mrf.mxu3 }
 0x836   : > { %v13883_v38 = vpop.f32.mrf.mxu2 }
 0x837   : > { %15299 = vst [vmem:[#allocation40_spill] sm:$0xff] %v13883_v38 }
 0x839   : > { %v4828_v40 = vpop.xlane.xlu1 %4827 }
 0x83a   : > { %8911 = vrcp.f32 %v4828_v40  ;;  %v5485_v10 = vand.u32 2147483648, %v4828_v40  ;;  %v5483_v38 = vand.u32 2147483647, %v4828_v40  ;;  %vm5479_vm7 = vweird.f32 %v4828_v40 }
 0x83c   : > { %v5486_v24 = vor.u32 1.1754944e-38, %v5485_v10  ;;  %vm5484_vm8 = vcmp.eq.f32.partialorder %v5483_v38, 8.507059e+37 }
 0x83f   : > { %v6417_v13 = vpop.f32.mrf.mxu2  ;;  %v5943_v61 = vpop.f32.mrf.mxu0 }
 0x840   : > { %v13897_v43 = vadd.f32 %v6722_v54, %v6417_v13  ;;  %v8912_v49 = vpop.eup %8911  ;;  %8406 = vmatmul.msk.f32.gmra.mxu2 %vm671_vm3, %v5943_v61 }
 0x841   : > { %v4837_v9 = vpop.xlane.xlu0 %4836  ;;  %v5475_v39 = vmul.f32 %v8912_v49, %v4828_v40  ;;  %vm5480_vm13 = vweird.f32 %v8912_v49 }
 0x842   : > { %15300 = vst [vmem:[#allocation42_spill] sm:$0xff] %v13897_v43  ;;  %8913 = vrcp.f32 %v4837_v9  ;;  %vm5481_vm9 = vmor %vm5479_vm7, %vm5480_vm13  ;;  %vm5524_vm12 = vweird.f32 %v4837_v9 }
 0x843   : > { %v4831_v20 = vpop.xlane.xlu2 %4830  ;;  %v5476_v36 = vsub.f32 1.0, %v5475_v39  ;;  %v5975_v39 = vpop.f32.mrf.mxu1 }
 0x844   : > { %8915 = vrcp.f32 %v4831_v20  ;;  %v5498_v38 = vand.u32 2147483647, %v4831_v20  ;;  %vm5494_vm4 = vweird.f32 %v4831_v20 }
 0x845   : > { %v5477_v22 = vmul.f32 %v8912_v49, %v5476_v36 }
 0x846   : > { %vm5499_vm6 = vcmp.eq.f32.partialorder %v5498_v38, 8.507059e+37 }
 0x847   : > { %v5478_v29 = vadd.f32 %v8912_v49, %v5477_v22  ;;  %v13900_v54 = vpop.f32.mrf.mxu0 }
 0x848   : > { %v8914_v50 = vpop.eup %8913  ;;  %v6420_v25 = vpop.f32.mrf.mxu2  ;;  %8407 = vmatmul.msk.f32.gmra.mxu2 %vm671_vm3, %v13900_v54 }
 0x849   : > { %v5520_v13 = vmul.f32 %v8914_v50, %v4837_v9  ;;  %v13902_v43 = vadd.f32 %v6725_v32, %v6420_v25  ;;  %v13904_v61 = vpop.xlane.xlu0 %4842  ;;  %v5482_v36 = vsel %vm5481_vm9, %v8912_v49, %v5478_v29  ;;  %vm5525_vm11 = vweird.f32 %v8914_v50 }
 0x84a   : > { %v8916_v12 = vpop.eup %8915  ;;  %8917 = vrcp.f32 %v13904_v61  ;;  %v5487_v25 = vsel %vm5484_vm8, %v5486_v24, %v5482_v36  ;;  %v5528_v32 = vand.u32 2147483647, %v4837_v9  ;;  %v13911_v5 = vpop.xlane.xlu1 %4833  ;;  %v6657_v49 = vadd.f32 %v13506_v6, %v13468_v52  ;;  %vm5526_vm0 = vmor %vm5524_vm12, %vm5525_vm11 }
 0x84b   : > { %15301 = vst [vmem:[#allocation46_spill] sm:$0xff] %v13902_v43  ;;  %v5521_v22 = vsub.f32 1.0, %v5520_v13  ;;  %v5490_v40 = vmul.f32 %v8916_v12, %v4831_v20  ;;  %v13909_v46 = vpop.xlane.xlu2 %4839  ;;  %v5530_v43 = vand.u32 2147483648, %v4837_v9  ;;  %v5488_v10 = vmul.f32 %v13663_v19, %v5487_v25 }
 0x84c   : > { %8919 = vrcp.f32 %v13909_v46  ;;  %v5500_v29 = vand.u32 2147483648, %v4831_v20  ;;  %vm5495_vm15 = vweird.f32 %v8916_v12  ;;  %v6806_v36 = vrot.slane %v13143_v57, 7 }
 0x84d   : > { %v5522_v14 = vmul.f32 %v8914_v50, %v5521_v22  ;;  %v5491_v18 = vsub.f32 1.0, %v5490_v40  ;;  %6166 = vst.msk [vmem:[%s12445_s6 + $0x150] sm:$0xff] %vm4411_vm14, %v5488_v10  ;;  %8921 = vrcp.f32 %v13911_v5  ;;  %8369 = vmatmul.msk.f32.vlgmr.msrb.gmra.mxu0 %vm4411_vm14, %v5488_v10  ;;  %vm5529_vm2 = vcmp.eq.f32.partialorder %v5528_v32, 8.507059e+37  ;;  %vm5496_vm5 = vmor %vm5494_vm4, %vm5495_vm15 }
 0x84e   : > { %v5531_v52 = vor.u32 1.1754944e-38, %v5530_v43  ;;  %8475 = vmatpush.xpose.msk.msrb.mxu0 %vm6939_vm10, %v6657_v49  ;;  %v5501_v40 = vor.u32 1.1754944e-38, %v5500_v29  ;;  %v5558_v20 = vand.u32 2147483647, %v13904_v61  ;;  %v6809_v10 = vrot.slane %v13173_v45, 6 }
 0x84f   : > { %v5523_v24 = vadd.f32 %v8914_v50, %v5522_v14  ;;  %v5492_v13 = vmul.f32 %v8916_v12, %v5491_v18  ;;  %v6654_v14 = vadd.f32 %v13479_v48, %v13405_v21  ;;  %v6666_v21 = vadd.f32 %v13566_v51, %v13562_v28 }
 0x850   : > { %v13921_v19 = vpop.eup %8917  ;;  %8408 = vmatmul.msk.f32.gmra.mxu2 %vm671_vm3, %v5975_v39  ;;  %v6651_v28 = vadd.f32 %v13433_v2, %v13367_v56  ;;  %v6663_v51 = vadd.f32 %v13555_v26, %v13545_v1  ;;  %vm5554_vm7 = vweird.f32 %v13904_v61  ;;  %vm13954_vm9 = vcmp.eq.f32.partialorder %v5558_v20, 8.507059e+37  ;;  %v15312_v56 = vld [vmem:[#allocation27_spill] sm:$0xff] }
 0x851   : > { %v5527_v6 = vsel %vm5526_vm0, %v8914_v50, %v5523_v24  ;;  %v5493_v9 = vadd.f32 %v8916_v12, %v5492_v13  ;;  %v5550_v18 = vmul.f32 %v13921_v19, %v13904_v61  ;;  %vm5555_vm13 = vweird.f32 %v13921_v19 }
 0x852   : > { %v5532_v22 = vsel %vm5529_vm2, %v5531_v52, %v5527_v6  ;;  %v8920_v43 = vpop.eup %8919  ;;  %8476 = vmatpush.xpose.msk.msrb.mxu0 %vm6939_vm10, %v6654_v14  ;;  %vm13964_vm8 = vmor %vm5554_vm7, %vm5555_vm13  ;;  %v5543_v1 = vand.u32 2147483647, %v13909_v46  ;;  %vm5539_vm12 = vweird.f32 %v13909_v46  ;;  %vm5509_vm2 = vweird.f32 %v13911_v5 }
 0x853   : > { %v5533_v25 = vmul.f32 %v13729_v53, %v5532_v22  ;;  %v5551_v50 = vsub.f32 1.0, %v5550_v18  ;;  %v5497_v32 = vsel %vm5496_vm5, %v8916_v12, %v5493_v9  ;;  %v5535_v48 = vmul.f32 %v8920_v43, %v13909_v46  ;;  %v8922_v38 = vpop.eup %8921  ;;  %v5978_v12 = vpop.f32.mrf.mxu1 }
 0x854   : > { %v5502_v49 = vsel %vm5499_vm6, %v5501_v40, %v5497_v32  ;;  %v5560_v53 = vand.u32 2147483648, %v13904_v61  ;;  %v5505_v13 = vmul.f32 %v8922_v38, %v13911_v5  ;;  %vm5540_vm11 = vweird.f32 %v8920_v43 }
 0x855   : > { %6169 = vst.msk [vmem:[%s12445_s6 + $0x168] sm:$0xff] %vm4411_vm14, %v5533_v25  ;;  %v5552_v39 = vmul.f32 %v13921_v19, %v5551_v50  ;;  %v5503_v29 = vmul.f32 %v13751_v30, %v5502_v49  ;;  %8372 = vmatmul.msk.f32.vlgmr.msra.gmra.mxu1 %vm4411_vm14, %v5533_v25  ;;  %v5536_v24 = vsub.f32 1.0, %v5535_v48  ;;  %v5545_v30 = vand.u32 2147483648, %v13909_v46  ;;  %vm5541_vm0 = vmor %vm5539_vm12, %vm5540_vm11 }
 0x856   : > { %8479 = vmatpush.xpose.msk.msra.mxu1 %vm6939_vm10, %v6666_v21  ;;  %v5506_v26 = vsub.f32 1.0, %v5505_v13  ;;  %8477 = vmatpush.xpose.msk.msrb.mxu0 %vm6939_vm10, %v6651_v28  ;;  %v5561_v61 = vor.u32 1.1754944e-38, %v5560_v53  ;;  %v5515_v9 = vand.u32 2147483648, %v13911_v5  ;;  %vm5510_vm15 = vweird.f32 %v8922_v38 }
 0x857   : > { %v5553_v52 = vadd.f32 %v13921_v19, %v5552_v39  ;;  %8370 = vmatmul.msk.f32.gmra.mxu0 %vm4411_vm14, %v5503_v29  ;;  %6167 = vst.msk [vmem:[%s12445_s6 + $0x158] sm:$0xff] %vm4411_vm14, %v5503_v29  ;;  %v5537_v2 = vmul.f32 %v8920_v43, %v5536_v24  ;;  %v5513_v40 = vand.u32 2147483647, %v13911_v5  ;;  %v6660_v25 = vadd.f32 %v13531_v11, %v13504_v16  ;;  %vm5511_vm5 = vmor %vm5509_vm2, %vm5510_vm15  ;;  %v15309_v24 = vld [vmem:[#allocation10_spill] sm:$0xff] }
 0x858   : > { %v5507_v22 = vmul.f32 %v8922_v38, %v5506_v26  ;;  %8409 = vmatmul.msk.f32.gmra.mxu2 %vm671_vm3, %v5978_v12  ;;  %v5546_v46 = vor.u32 1.1754944e-38, %v5545_v30  ;;  %vm5544_vm4 = vcmp.eq.f32.partialorder %v5543_v1, 8.507059e+37  ;;  %v5516_v21 = vor.u32 1.1754944e-38, %v5515_v9  ;;  %v15307_v12 = vld [vmem:[#allocation11_spill] sm:$0xff]  ;;  %v15313_v26 = vld [vmem:[#allocation6_spill] sm:$0xff] }
 0x859   : > { %v5557_v18 = vsel %vm13964_vm8, %v13921_v19, %v5553_v52  ;;  %v5538_v14 = vadd.f32 %v8920_v43, %v5537_v2  ;;  %vm6807_vm6 = vcmask 1041409   ;;  %vm5514_vm13 = vcmp.eq.f32.partialorder %v5513_v40, 8.507059e+37  ;;  %v15311_v52 = vld [vmem:[#allocation55_spill] sm:$0xff] }
 0x85a   : > { %8480 = vmatpush.xpose.msk.msra.mxu1 %vm6939_vm10, %v6663_v51  ;;  %v5562_v19 = vsel %vm13954_vm9, %v5561_v61, %v5557_v18  ;;  %v5508_v50 = vadd.f32 %v8922_v38, %v5507_v22  ;;  %vm6810_vm7 = vcmask 1042434   ;;  %v6812_v39 = vrot.slane %v13256_v17, 5  ;;  %v15308_v51 = vld [vmem:[#allocation29_spill] sm:$0xff] }
 0x85b   : > { %v5542_v20 = vsel %vm5541_vm0, %v8920_v43, %v5538_v14  ;;  %v5563_v32 = vmul.f32 %v13771_v37, %v5562_v19  ;;  %v6808_v37 = vsel %vm6807_vm6, %v6806_v36, %v13131_v63  ;;  %v13993_v5 = vpop.f32.mrf.mxu1  ;;  %v6818_v57 = vrot.slane %v13436_v33, 3  ;;  %v15314_v14 = vld [vmem:[#allocation44_spill] sm:$0xff] }
 0x85c   : > { %v5547_v48 = vsel %vm5544_vm4, %v5546_v46, %v5542_v20  ;;  %v5512_v16 = vsel %vm5511_vm5, %v8922_v38, %v5508_v50  ;;  %v6811_v49 = vsel %vm6810_vm7, %v6809_v10, %v6808_v37  ;;  %vm14898_vm9 = vcmask 1043459   ;;  %v15306_v10 = vld [vmem:[#allocation50_spill] sm:$0xff]  ;;  %v15316_v20 = vld [vmem:[#allocation7_spill] sm:$0xff] }
 0x85d   : > { %v5548_v11 = vmul.f32 %v13781_v0, %v5547_v48  ;;  %6171 = vst.msk [vmem:[%s12445_s6 + $0x178] sm:$0xff] %vm4411_vm14, %v5563_v32  ;;  %v5517_v43 = vsel %vm5514_vm13, %v5516_v21, %v5512_v16  ;;  %v6815_v0 = vrot.slane %v13297_v15, 4  ;;  %vm14897_vm8 = vcmask 1044484   ;;  %v15317_v21 = vld [vmem:[#allocation59_spill] sm:$0xff]  ;;  %v15318_v16 = vld [vmem:[#allocation38_spill] sm:$0xff] }
 0x85e   : > { %8481 = vmatpush.xpose.msk.msra.mxu1 %vm6939_vm10, %v6660_v25  ;;  %v5518_v38 = vmul.f32 %v13773_v8, %v5517_v43  ;;  %v6814_v63 = vsel %vm14898_vm9, %v6812_v39, %v6811_v49  ;;  %vm14896_vm11 = vcmask 1045509   ;;  %v6868_v15 = vrot.slane %v15201_v44, 7  ;;  %v15315_v25 = vld [vmem:[#allocation49_spill] sm:$0xff]  ;;  %v15319_v43 = vld [vmem:[#allocation54_spill] sm:$0xff]  ;;  %v15320_v49 = vld [vmem:[#allocation60_spill] sm:$0xff] }
 0x85f   : > { %8373 = vmatmul.msk.f32.gmra.mxu1 %vm4411_vm14, %v5548_v11  ;;  %6170 = vst.msk [vmem:[%s12445_s6 + $0x170] sm:$0xff] %vm4411_vm14, %v5548_v11  ;;  %v6817_v45 = vsel %vm14897_vm8, %v6815_v0, %v6814_v63  ;;  %v6824_v33 = vrot.slane %v13608_v4, 1  ;;  %v6870_v8 = vrot.slane %v15204_v35, 6  ;;  %v6821_v36 = vrot.slane %v13327_v34, 2  ;;  %v15310_v4 = vld [vmem:[#allocation56_spill] sm:$0xff]  ;;  %v15323_v63 = vld [vmem:[#allocation13_spill] sm:$0xff] }
 0x860   : > { %8410 = vmatmul.msk.f32.gmra.mxu2 %vm671_vm3, %v13993_v5  ;;  %8371 = vmatmul.msk.f32.gmra.mxu0 %vm4411_vm14, %v5518_v38  ;;  %6168 = vst.msk [vmem:[%s12445_s6 + $0x160] sm:$0xff] %vm4411_vm14, %v5518_v38  ;;  %v6820_v17 = vsel %vm14896_vm11, %v6818_v57, %v6817_v45  ;;  %v6872_v53 = vrot.slane %v15306_v10, 5  ;;  %vm6822_vm12 = vcmask 1046534   ;;  %v6874_v29 = vrot.slane %v15307_v12, 4  ;;  %v15321_v38 = vld [vmem:[#allocation24_spill] sm:$0xff]  ;;  %v15322_v57 = vld [vmem:[#allocation35_spill] sm:$0xff] }
 0x861   : > { %vm6825_vm15 = vcmask 1047559   ;;  %v6823_v28 = vsel %vm6822_vm12, %v6821_v36, %v6820_v17  ;;  %v6869_v44 = vsel %vm6807_vm6, %v6868_v15, %v15308_v51  ;;  %v6876_v13 = vrot.slane %v15309_v24, 3  ;;  %v15324_v17 = vld [vmem:[#allocation61_spill] sm:$0xff]  ;;  %v15327_v10 = vld [vmem:[#allocation3_spill] sm:$0xff]  ;;  %v15328_v12 = vld [vmem:[#allocation58_spill] sm:$0xff]  ;;  %v14083_v51 = vpop.f32.mrf.mxu2  ;;  %s14676_s6 = sshll.u32 %s7992_s19, 1 }
 0x862   : > { %v6675_v35 = vadd.f32 %v15311_v52, %v15310_v4  ;;  %v6826_v34 = vsel %vm6825_vm15, %v6824_v33, %v6823_v28  ;;  %v6871_v30 = vsel %vm6810_vm7, %v6870_v8, %v6869_v44  ;;  %v6878_v2 = vrot.slane %v15312_v56, 2  ;;  %v15325_v33 = vld [vmem:[#allocation14_spill] sm:$0xff]  ;;  %v15329_v28 = vld [vmem:[#allocation57_spill] sm:$0xff]  ;;  %p260_p4 = scmp.lt.s32.totalorder %s14676_s6, 3 }
 0x863   : > { %v6010_v6 = vpop.f32.mrf.mxu1  ;;  %v6873_v1 = vsel %vm14898_vm9, %v6872_v53, %v6871_v30  ;;  %v6880_v61 = vrot.slane %v15313_v26, 1  ;;  %v6882_v22 = vrot.slane %v15314_v14, 7  ;;  %v6884_v46 = vrot.slane %v15315_v25, 6  ;;  %v14075_v53 = vpop.f32.mrf.mxu3 }
 0x864   : > { %v6875_v9 = vsel %vm14897_vm8, %v6874_v29, %v6873_v1  ;;  %v6886_v50 = vrot.slane %v15271_v3, 5  ;;  %v6888_v48 = vrot.slane %v15275_v27, 4  ;;  %v6890_v37 = vrot.slane %v15282_v42, 3  ;;  %s15392_s6 = smov (!%p260_p4, %s14676_s6), 3 }
 0x865   : > { %v6877_v18 = vsel %vm14896_vm11, %v6876_v13, %v6875_v9  ;;  %v6883_v11 = vsel %vm6807_vm6, %v6882_v22, %v15318_v16  ;;  %v6669_v0 = vadd.f32 %v15320_v49, %v15319_v43  ;;  %v6894_v39 = vrot.slane %v15297_v58, 1  ;;  %v15326_v58 = vld [vmem:[#allocation53_spill] sm:$0xff]  ;;  %s8003_s19 = sshll.u32 %s15392_s6, 3 }
 0x866   : > { %v6879_v40 = vsel %vm6822_vm12, %v6878_v2, %v6877_v18  ;;  %v6885_v3 = vsel %vm6810_vm7, %v6884_v46, %v6883_v11  ;;  %v6681_v45 = vadd.f32 %v15323_v63, %v15322_v57  ;;  %v6678_v8 = vadd.f32 %v15325_v33, %v15324_v17  ;;  %v15332_v17 = vld [vmem:[#allocation45_spill] sm:$0xff]  ;;  %s14770_s11 = scalar_lea.vmem %s14810_s4, %s8003_s19 }
 0x867   : > { %8374 = vmatmul.msk.f32.gmra.mxu1 %vm4411_vm14, %v5563_v32  ;;  %v6881_v19 = vsel %vm6825_vm15, %v6880_v61, %v6879_v40  ;;  %v6684_v32 = vadd.f32 %v15316_v20, %v13665_v31  ;;  %v6892_v31 = vrot.slane %v15289_v23, 2  ;;  %v6887_v27 = vsel %vm14898_vm9, %v6886_v50, %v6885_v3 }
 0x868   : > { %8411 = vmatmul.msk.f32.gmra.mxu2 %vm671_vm3, %v6010_v6  ;;  %8471 = vmatmul.msk.f32.vlgmr.msra.gmra.mxu0 %vm671_vm3, %v6826_v34  ;;  %v6889_v42 = vsel %vm14897_vm8, %v6888_v48, %v6887_v27  ;;  %v6829_v22 = vrot.slane %v13900_v54, 6  ;;  %v6827_v40 = vrot.slane %v13343_v59, 7  ;;  %v6831_v25 = vrot.slane %v13993_v5, 5 }
 0x869   : > { %8483 = vmatpush.xpose.msk.msra.mxu0 %vm6939_vm10, %v6675_v35  ;;  %v6891_v15 = vsel %vm14896_vm11, %v6890_v37, %v6889_v42  ;;  %v14087_v24 = vpop.f32.mrf.mxu2  ;;  %v6833_v48 = vrot.slane %v15326_v58, 4  ;;  %v6835_v16 = vrot.slane %v15329_v28, 3  ;;  %v6693_v57 = vadd.f32 %v13775_v62, %v13802_v41  ;;  %v15330_v42 = vld [vmem:[#allocation39_spill] sm:$0xff] }
 0x86a   : > { %v6893_v23 = vsel %vm6822_vm12, %v6892_v31, %v6891_v15  ;;  %v6828_v50 = vsel %vm6807_vm6, %v6827_v40, %v13727_v7  ;;  %v6690_v15 = vadd.f32 %v15330_v42, %v13790_v47  ;;  %v15336_v47 = vld [vmem:[#allocation43_spill] sm:$0xff]  ;;  %v15340_v40 = vld [vmem:[#allocation16_spill] sm:$0xff]  ;;  %vm7455_vm14 = vcmask 188416  }
 0x86b   : > { %v6895_v36 = vsel %vm6825_vm15, %v6894_v39, %v6893_v23  ;;  %v14079_v29 = vpop.f32.mrf.mxu3  ;;  %v6830_v20 = vsel %vm6810_vm7, %v6829_v22, %v6828_v50  ;;  %v15331_v23 = vld [vmem:[#allocation52_spill] sm:$0xff] }
 0x86c   : > { %v6699_v62 = vadd.f32 %v15332_v17, %v15331_v23  ;;  %v15339_v22 = vld [vmem:[#allocation40_spill] sm:$0xff] }
 0x86d   : > { %8484 = vmatpush.xpose.msk.msra.mxu0 %vm6939_vm10, %v15317_v21  ;;  %v6832_v21 = vsel %vm14898_vm9, %v6831_v25, %v6830_v20  ;;  %v6720_v25 = vadd.f32 %v15340_v40, %v15339_v22  ;;  %v15342_v50 = vld [vmem:[#allocation12_spill] sm:$0xff] }
 0x86e   : > { %v6834_v59 = vsel %vm14897_vm8, %v6833_v48, %v6832_v21  ;;  %v15344_v21 = vld [vmem:[#allocation19_spill] sm:$0xff] }
 0x86f   : > { %8473 = vmatmul.msk.f32.vlgmr.msrb.gmra.mxu1 %vm671_vm3, %v6881_v19  ;;  %v6836_v43 = vsel %vm14896_vm11, %v6835_v16, %v6834_v59  ;;  %v15345_v16 = vld [vmem:[#allocation9_spill] sm:$0xff] }
 0x870   : > { %8487 = vmatpush.xpose.msk.msrb.mxu1 %vm6939_vm10, %v6684_v32  ;;  %8412 = vmatmul.msk.f32.gmra.mxu2 %vm671_vm3, %v15321_v38 }
 0x871   : > { %8485 = vmatpush.xpose.msk.msra.mxu0 %vm6939_vm10, %v6669_v0  ;;  %v14091_v4 = vpop.f32.mrf.mxu2 }
 0x873   : > { %v14085_v44 = vpop.f32.mrf.mxu3 }
 0x874   : > { %8488 = vmatpush.xpose.msk.msrb.mxu1 %vm6939_vm10, %v6681_v45  ;;  %v6702_v45 = vadd.f32 %v13815_v60, %v13823_v55  ;;  %v15333_v55 = vld [vmem:[#allocation41_spill] sm:$0xff] }
 0x877   : > { %8474 = vmatmul.msk.f32.gmra.mxu1 %vm671_vm3, %v6895_v36  ;;  %v15334_v36 = vld [vmem:[#allocation37_spill] sm:$0xff] }
 0x878   : > { %8489 = vmatpush.xpose.msk.msrb.mxu1 %vm6939_vm10, %v6678_v8  ;;  %8413 = vmatmul.msk.f32.gmra.mxu2 %vm671_vm3, %v15326_v58  ;;  %v6687_v58 = vadd.f32 %v15334_v36, %v15333_v55 }
 0x879   : > { %v14095_v35 = vpop.f32.mrf.mxu2 }
 0x87b   : > { %v14089_v13 = vpop.f32.mrf.mxu3 }
 0x880   : > { %8414 = vmatmul.msk.f32.gmra.mxu2 %vm671_vm3, %v15327_v10 }
 0x881   : > { %v14099_v6 = vpop.f32.mrf.mxu2 }
 0x883   : > { %v14093_v52 = vpop.f32.mrf.mxu3 }
 0x888   : > { %8415 = vmatmul.msk.f32.gmra.mxu2 %vm671_vm3, %v15328_v12  ;;  %v15335_v12 = vld [vmem:[#allocation47_spill] sm:$0xff] }
 0x88b   : > { %v14097_v34 = vpop.f32.mrf.mxu3 }
 0x890   : > { %8416 = vmatmul.msk.f32.gmra.mxu2 %vm671_vm3, %v15329_v28  ;;  %v6696_v28 = vadd.f32 %v15336_v47, %v15335_v12 }
 0x893   : > { %v14101_v30 = vpop.f32.mrf.mxu3 }
 0x89b   : > { %v14105_v1 = vpop.f32.mrf.mxu3 }
 0x8a3   : > { %v14113_v14 = vpop.f32.mrf.mxu3 }
 0x8ab   : > { %v14126_v54 = vpop.f32.mrf.mxu3 }
 0x8b3   : > { %v14137_v3 = vpop.f32.mrf.mxu3 }
 0x8bb   : > { %v6761_v41 = vpop.f32.mrf.mxu3 }
 0x8c3   : > { %v14103_v56 = vpop.f32.mrf.mxu2 }
 0x8ca   : > { %v6080_v2 = vpop.f32.mrf.mxu0 }
 0x8cb   : > { %v14107_v26 = vpop.f32.mrf.mxu2  ;;  %8417 = vmatmul.msk.f32.gmra.mxu2 %vm671_vm3, %v6080_v2  ;;  %v15337_v2 = vld [vmem:[#allocation26_spill] sm:$0xff] }
 0x8d2   : > { %v6115_v61 = vpop.f32.mrf.mxu1 }
 0x8d3   : > { %v14110_v18 = vpop.f32.mrf.mxu2 }
 0x8d4   : > { %v6083_v9 = vpop.f32.mrf.mxu0 }
 0x8d5   : > { %8418 = vmatmul.msk.f32.gmra.mxu2 %vm671_vm3, %v6083_v9 }
 0x8db   : > { %v14118_v46 = vpop.f32.mrf.mxu2 }
 0x8dc   : > { %v6118_v19 = vpop.f32.mrf.mxu1 }
 0x8dd   : > { %v6086_v32 = vpop.f32.mrf.mxu0 }
 0x8de   : > { %8419 = vmatmul.msk.f32.gmra.mxu2 %vm671_vm3, %v6086_v32  ;;  %v6837_v5 = vrot.slane %v6086_v32, 2  ;;  %v15343_v32 = vld [vmem:[#allocation36_spill] sm:$0xff] }
 0x8df   : > { %v6717_v48 = vadd.f32 %v15344_v21, %v15343_v32 }
 0x8e0   : > { %v6838_v49 = vsel %vm6822_vm12, %v6837_v5, %v6836_v43  ;;  %v15347_v43 = vld [vmem:[#allocation28_spill] sm:$0xff] }
 0x8e3   : > { %v14130_v11 = vpop.f32.mrf.mxu2 }
 0x8e4   : > { %v6121_v37 = vpop.f32.mrf.mxu1 }
 0x8e5   : > { %v6839_v7 = vrot.slane %v6121_v37, 1  ;;  %v6862_v31 = vpop.f32.mrf.mxu0 }
 0x8e6   : > { %8420 = vmatmul.msk.f32.gmra.mxu2 %vm671_vm3, %v6115_v61  ;;  %v15338_v61 = vld [vmem:[#allocation63_spill] sm:$0xff] }
 0x8e7   : > { %v6840_v0 = vsel %vm6825_vm15, %v6839_v7, %v6838_v49  ;;  %v6711_v9 = vadd.f32 %v15338_v61, %v15337_v2  ;;  %v15348_v49 = vld [vmem:[#allocation4_spill] sm:$0xff] }
 0x8e8   : > { %8472 = vmatmul.msk.f32.gmra.mxu0 %vm671_vm3, %v6840_v0  ;;  %v6714_v0 = vadd.f32 %v15348_v49, %v15347_v43 }
 0x8eb   : > { %v14139_v38 = vpop.f32.mrf.mxu2 }
 0x8ec   : > { %v6917_v27 = vpop.f32.mrf.mxu1  ;;  %v6759_v61 = vadd.f32 %v14137_v3, %v14139_v38 }
 0x8ed   : > { %v6918_v39 = vadd.f32 %v6917_v27, %v6862_v31  ;;  %v6729_v31 = vadd.f32 %v14075_v53, %v14083_v51  ;;  %v6738_v27 = vadd.f32 %v14089_v13, %v14095_v35  ;;  %v6732_v51 = vadd.f32 %v14079_v29, %v14087_v24 }
 0x8ee   : > { %8421 = vmatmul.msk.f32.gmra.mxu2 %vm671_vm3, %v6118_v19  ;;  %v15341_v19 = vld [vmem:[#allocation62_spill] sm:$0xff]  ;;  %v6747_v13 = vadd.f32 %v14101_v30, %v14107_v26  ;;  %v6744_v35 = vadd.f32 %v14097_v34, %v14103_v56  ;;  %v6753_v29 = vadd.f32 %v14113_v14, %v14118_v46  ;;  %v6741_v24 = vadd.f32 %v14093_v52, %v14099_v6  ;;  %v6764_v26 = vpop.f32.mrf.mxu3 }
 0x8ef   : > { %v6925_v63 = vrot.slane %v6918_v39, 1  ;;  %v6926_v60 = vrot.slane %v6918_v39, 2  ;;  %v6927_v10 = vrot.slane %v6918_v39, 3  ;;  %v6708_v20 = vadd.f32 %v15342_v50, %v15341_v19 }
 0x8f0   : > { %8478 = vmatmul.msk.f32.vlgmr.msrb.gmra.mxu0 %vm6939_vm10, %v6918_v39  ;;  %v6928_v59 = vrot.slane %v6918_v39, 4  ;;  %v6929_v5 = vrot.slane %v6918_v39, 5  ;;  %v6931_v53 = vrot.slane %v6918_v39, 7  ;;  %v6750_v30 = vadd.f32 %v14105_v1, %v14110_v18 }
 0x8f1   : > { %8491 = vmatpush.xpose.msk.msrb.mxu0 %vm6939_vm10, %v6693_v57  ;;  %8482 = vmatmul.msk.f32.vlgmr.msra.gmra.mxu1 %vm6939_vm10, %v6925_v63  ;;  %v6735_v57 = vadd.f32 %v14085_v44, %v14091_v4  ;;  %v6930_v63 = vrot.slane %v6918_v39, 6  ;;  %v6756_v44 = vadd.f32 %v14126_v54, %v14130_v11  ;;  %v15350_v4 = vld [vmem:[#allocation42_spill] sm:$0xff] }
 0x8f2   : > { %8495 = vmatpush.xpose.msk.msra.mxu1 %vm6939_vm10, %v6702_v45  ;;  %v15349_v45 = vld [vmem:[#allocation46_spill] sm:$0xff] }
 0x8f3   : > { %v6456_v33 = vpop.f32.mrf.mxu2 }
 0x8f4   : > { %v14154_v8 = vadd.f32 %v6761_v41, %v6456_v33 }
 0x8f5   : > { %8492 = vmatpush.xpose.msk.msrb.mxu0 %vm6939_vm10, %v6690_v15 }
 0x8f6   : > { %8496 = vmatpush.xpose.msk.msra.mxu1 %vm6939_vm10, %v6699_v62  ;;  %8422 = vmatmul.msk.f32.gmra.mxu2 %vm671_vm3, %v6121_v37  ;;  %v15346_v37 = vld [vmem:[#allocation8_spill] sm:$0xff]  ;;  %v6767_v34 = vpop.f32.mrf.mxu3  ;;  %v6920_v62 = vpop.f32.mrf.mxu1 }
 0x8f7   : > { %v6705_v7 = vadd.f32 %v15346_v37, %v15345_v16 }
 0x8f8   : > { %8486 = vmatmul.msk.f32.vlgmr.msra.gmra.mxu0 %vm6939_vm10, %v6926_v60 }
 0x8f9   : > { %8493 = vmatpush.xpose.msk.msrb.mxu0 %vm6939_vm10, %v6687_v58  ;;  %8490 = vmatmul.msk.f32.vlgmr.msrb.gmra.mxu1 %vm6939_vm10, %v6927_v10  ;;  %v15351_v58 = vld [vmem:[#allocation30_spill] sm:$0xff] }
 0x8fa   : > { %8497 = vmatpush.xpose.msk.msra.mxu1 %vm6939_vm10, %v6696_v28  ;;  %vm7436_vm3 = vcmp.lt.s32.totalorder %v15351_v58, 11 }
 0x8fb   : > { %v6459_v54 = vpop.f32.mrf.mxu2 }
 0x8fc   : > { %v6765_v33 = vadd.f32 %v6764_v26, %v6459_v54 }
 0x8fd   : > { %8499 = vmatpush.xpose.msk.msra.mxu0 %vm6939_vm10, %v6711_v9 }
 0x8fe   : > { %8503 = vmatpush.xpose.msk.msrb.mxu1 %vm6939_vm10, %v6720_v25  ;;  %v6770_v11 = vpop.f32.mrf.mxu3 }
 0x900   : > { %8494 = vmatmul.msk.f32.vlgmr.msrb.gmra.mxu0 %vm6939_vm10, %v6928_v59 }
 0x901   : > { %8500 = vmatpush.xpose.msk.msra.mxu0 %vm6939_vm10, %v6708_v20  ;;  %8498 = vmatmul.msk.f32.vlgmr.msra.gmra.mxu1 %vm6939_vm10, %v6929_v5 }
 0x902   : > { %8504 = vmatpush.xpose.msk.msrb.mxu1 %vm6939_vm10, %v6717_v48 }
 0x903   : > { %v6462_v56 = vpop.f32.mrf.mxu2 }
 0x904   : > { %v6768_v25 = vadd.f32 %v6767_v34, %v6462_v56 }
 0x905   : > { %8501 = vmatpush.xpose.msk.msra.mxu0 %vm6939_vm10, %v6705_v7 }
 0x906   : > { %8505 = vmatpush.xpose.msk.msrb.mxu1 %vm6939_vm10, %v6714_v0  ;;  %v6773_v46 = vpop.f32.mrf.mxu3 }
 0x908   : > { %8502 = vmatmul.msk.f32.vlgmr.msra.gmra.mxu0 %vm6939_vm10, %v6930_v63 }
 0x909   : > { %8507 = vmatpush.xpose.msk.msrb.mxu0 %vm6939_vm10, %v6729_v31  ;;  %8506 = vmatmul.msk.f32.vlgmr.msrb.gmra.mxu1 %vm6939_vm10, %v6931_v53 }
 0x90a   : > { %8511 = vmatpush.xpose.msk.msra.mxu1 %vm6939_vm10, %v6738_v27 }
 0x90b   : > { %v6465_v14 = vpop.f32.mrf.mxu2 }
 0x90c   : > { %v6771_v10 = vadd.f32 %v6770_v11, %v6465_v14 }
 0x90d   : > { %8508 = vmatpush.xpose.msk.msrb.mxu0 %vm6939_vm10, %v15349_v45 }
 0x90e   : > { %8512 = vmatpush.xpose.msk.msra.mxu1 %vm6939_vm10, %v6735_v57  ;;  %v6776_v42 = vpop.f32.mrf.mxu3 }
 0x911   : > { %8509 = vmatpush.xpose.msk.msrb.mxu0 %vm6939_vm10, %v15350_v4 }
 0x912   : > { %8513 = vmatpush.xpose.msk.msra.mxu1 %vm6939_vm10, %v6732_v51 }
 0x913   : > { %v6468_v39 = vpop.f32.mrf.mxu2 }
 0x914   : > { %v6774_v55 = vadd.f32 %v6773_v46, %v6468_v39 }
 0x915   : > { %8515 = vmatpush.xpose.msk.msra.mxu0 %vm6939_vm10, %v6747_v13 }
 0x916   : > { %8519 = vmatpush.xpose.msk.msrb.mxu1 %vm6939_vm10, %v6756_v44  ;;  %v6779_v23 = vpop.f32.mrf.mxu3 }
 0x919   : > { %8516 = vmatpush.xpose.msk.msra.mxu0 %vm6939_vm10, %v6744_v35 }
 0x91a   : > { %8520 = vmatpush.xpose.msk.msrb.mxu1 %vm6939_vm10, %v6753_v29 }
 0x91d   : > { %8517 = vmatpush.xpose.msk.msra.mxu0 %vm6939_vm10, %v6741_v24 }
 0x91e   : > { %8521 = vmatpush.xpose.msk.msrb.mxu1 %vm6939_vm10, %v6750_v30  ;;  %v6782_v52 = vpop.f32.mrf.mxu3 }
 0x926   : > { %v14223_v18 = vpop.f32.mrf.mxu3 }
 0x92e   : > { %v6788_v22 = vpop.f32.mrf.mxu3 }
 0x936   : > { %v6791_v37 = vpop.f32.mrf.mxu3 }
 0x94e   : > { %v6471_v15 = vpop.f32.mrf.mxu2 }
 0x94f   : > { %v6777_v5 = vadd.f32 %v6776_v42, %v6471_v15 }
 0x958   : > { %v6474_v17 = vpop.f32.mrf.mxu2 }
 0x959   : > { %v6780_v3 = vadd.f32 %v6779_v23, %v6474_v17 }
 0x961   : > { %v6477_v6 = vpop.f32.mrf.mxu2 }
 0x962   : > { %v6783_v40 = vadd.f32 %v6782_v52, %v6477_v6 }
 0x965   : > { %v6865_v1 = vpop.f32.mrf.mxu0 }
 0x966   : > { %v14225_v41 = vadd.f32 %v6920_v62, %v6865_v1 }
 0x968   : > { %8510 = vmatmul.msk.f32.vlgmr.msrb.gmra.mxu0 %vm6939_vm10, %v14225_v41  ;;  %v6932_v60 = vrot.slane %v14225_v41, 1  ;;  %v6933_v2 = vrot.slane %v14225_v41, 2  ;;  %v6935_v59 = vrot.slane %v14225_v41, 4  ;;  %v6936_v16 = vrot.slane %v14225_v41, 5 }
 0x969   : > { %8523 = vmatpush.xpose.msk.msrb.mxu0 %vm6939_vm10, %v6765_v33  ;;  %v6480_v36 = vpop.f32.mrf.mxu2  ;;  %v6937_v45 = vrot.slane %v14225_v41, 6  ;;  %v6938_v35 = vrot.slane %v14225_v41, 7 }
 0x96a   : > { %8514 = vmatmul.msk.f32.vlgmr.msra.gmra.mxu1 %vm6939_vm10, %v6932_v60  ;;  %v6786_v51 = vadd.f32 %v14223_v18, %v6480_v36 }
 0x96b   : > { %8527 = vmatpush.xpose.msk.msra.mxu1 %vm6939_vm10, %v6774_v55 }
 0x96d   : > { %8524 = vmatpush.xpose.msk.msrb.mxu0 %vm6939_vm10, %v14154_v8  ;;  %v6968_v12 = vpop.f32.mrf.mxu0  ;;  %v6934_v8 = vrot.slane %v14225_v41, 3 }
 0x96e   : > { %v14238_v47 = vsel %vm7436_vm3, %v6968_v12, -1e+30  ;;  %v6999_v28 = vpop.f32.mrf.mxu1 }
 0x96f   : > { %v7456_v9 = vsel %vm7455_vm14, %v14238_v47, -inf  ;;  %8528 = vmatpush.xpose.msk.msra.mxu1 %vm6939_vm10, %v6771_v10  ;;  %v14254_v38 = vsel %vm7436_vm3, %v6999_v28, -1e+30 }
 0x970   : > { %7457 = vmax.xlane.f32.xlu1 %v7456_v9  ;;  %8518 = vmatmul.msk.f32.vlgmr.msra.gmra.mxu0 %vm6939_vm10, %v6933_v2  ;;  %v7459_v32 = vsel %vm7455_vm14, %v14254_v38, -inf }
 0x971   : > { %8525 = vmatpush.xpose.msk.msrb.mxu0 %vm6939_vm10, %v6759_v61  ;;  %v6483_v19 = vpop.f32.mrf.mxu2 }
 0x972   : > { %8522 = vmatmul.msk.f32.vlgmr.msrb.gmra.mxu1 %vm6939_vm10, %v6934_v8  ;;  %v6789_v27 = vadd.f32 %v6788_v22, %v6483_v19 }
 0x973   : > { %8529 = vmatpush.xpose.msk.msra.mxu1 %vm6939_vm10, %v6768_v25 }
 0x975   : > { %8531 = vmatpush.xpose.msk.msra.mxu0 %vm6939_vm10, %v6783_v40  ;;  %v7030_v50 = vpop.f32.mrf.mxu0 }
 0x976   : > { %v14258_v20 = vsel %vm7436_vm3, %v7030_v50, -1e+30  ;;  %v7061_v48 = vpop.f32.mrf.mxu1 }
 0x977   : > { %v7462_v21 = vsel %vm7455_vm14, %v14258_v20, -inf  ;;  %v14272_v49 = vsel %vm7436_vm3, %v7061_v48, -1e+30 }
 0x978   : > { %7460 = vmax.xlane.f32.xlu1 %v7459_v32  ;;  %7463 = vmax.xlane.f32.xlu2 %v7462_v21  ;;  %v7465_v57 = vsel %vm7455_vm14, %v14272_v49, -inf }
 0x979   : > { %8532 = vmatpush.xpose.msk.msra.mxu0 %vm6939_vm10, %v6780_v3  ;;  %v6486_v7 = vpop.f32.mrf.mxu2 }
 0x97a   : > { %8526 = vmatmul.msk.f32.vlgmr.msrb.gmra.mxu0 %vm6939_vm10, %v6935_v59  ;;  %8530 = vmatmul.msk.f32.vlgmr.msra.gmra.mxu1 %vm6939_vm10, %v6936_v16  ;;  %v6792_v43 = vadd.f32 %v6791_v37, %v6486_v7 }
 0x97c   : > { %8535 = vmatpush.xpose.msk.msrb.mxu1 %vm6939_vm10, %v6792_v43 }
 0x97d   : > { %8533 = vmatpush.xpose.msk.msra.mxu0 %vm6939_vm10, %v6777_v5  ;;  %v7092_v0 = vpop.f32.mrf.mxu0 }
 0x97e   : > { %v14277_v31 = vsel %vm7436_vm3, %v7092_v0, -1e+30  ;;  %v7123_v53 = vpop.f32.mrf.mxu1 }
 0x97f   : > { %v7468_v63 = vsel %vm7455_vm14, %v14277_v31, -inf  ;;  %v14289_v13 = vsel %vm7436_vm3, %v7123_v53, -1e+30 }
 0x980   : > { %7466 = vmax.xlane.f32.xlu2 %v7465_v57  ;;  %7469 = vmax.xlane.f32.xlu1 %v7468_v63  ;;  %v7471_v29 = vsel %vm7455_vm14, %v14289_v13, -inf }
 0x981   : > { %8536 = vmatpush.xpose.msk.msrb.mxu1 %vm6939_vm10, %v6789_v27 }
 0x982   : > { %8534 = vmatmul.msk.f32.vlgmr.msra.gmra.mxu0 %vm6939_vm10, %v6937_v45 }
 0x985   : > { %8537 = vmatpush.xpose.msk.msrb.mxu1 %vm6939_vm10, %v6786_v51  ;;  %v7154_v44 = vpop.f32.mrf.mxu0 }
 0x986   : > { %v14294_v4 = vsel %vm7436_vm3, %v7154_v44, -1e+30  ;;  %v7185_v30 = vpop.f32.mrf.mxu1 }
 0x987   : > { %v7474_v24 = vsel %vm7455_vm14, %v14294_v4, -inf  ;;  %v14342_v2 = vsel %vm7436_vm3, %v7185_v30, -1e+30 }
 0x988   : > { %8538 = vmatmul.msk.f32.vlgmr.msrb.gmra.mxu1 %vm6939_vm10, %v6938_v35  ;;  %7472 = vmax.xlane.f32.xlu1 %v7471_v29  ;;  %v7477_v8 = vsel %vm7455_vm14, %v14342_v2, -inf }
 0x989   : > { %7475 = vmax.xlane.f32.xlu0 %v7474_v24 }
 0x9e3   : > { %v7458_v46 = vpop.xlane.xlu1 %7457 }
 0x9e4   : > { %v7504_v22 = vsub.f32 %v14238_v47, %v7458_v46 }
 0x9e5   : > { %v7216_v26 = vpop.f32.mrf.mxu0 }
 0x9e6   : > { %v14304_v54 = vsel %vm7436_vm3, %v7216_v26, -1e+30 }
 0x9e7   : > { %v7480_v34 = vsel %vm7455_vm14, %v14304_v54, -inf  ;;  %v7247_v56 = vpop.f32.mrf.mxu1 }
 0x9e8   : > { %v14310_v11 = vsel %vm7436_vm3, %v7247_v56, -1e+30  ;;  %7481 = vmax.xlane.f32.xlu2 %v7480_v34 }
 0x9e9   : > { %v7483_v14 = vsel %vm7455_vm14, %v14310_v11, -inf }
 0x9ea   : > { %7484 = vmax.xlane.f32.xlu0 %v7483_v14 }
 0x9eb   : > { %v7464_v17 = vpop.xlane.xlu2 %7463  ;;  %v7461_v52 = vpop.xlane.xlu1 %7460 }
 0x9ec   : > { %v7505_v1 = vsub.f32 %v14254_v38, %v7461_v52  ;;  %v7506_v33 = vsub.f32 %v14258_v20, %v7464_v17  ;;  %v7520_v38 = vmul.f32 1.442695, %v7504_v22 }
 0x9ed   : > { %v7278_v39 = vpop.f32.mrf.mxu0 }
 0x9ee   : > { %v14316_v42 = vsel %vm7436_vm3, %v7278_v39, -1e+30  ;;  %v7522_v12 = vmul.f32 1.442695, %v7505_v1  ;;  %v7524_v28 = vmul.f32 1.442695, %v7506_v33 }
 0x9ef   : > { %v7309_v15 = vpop.f32.mrf.mxu1  ;;  %v7486_v23 = vsel %vm7455_vm14, %v14316_v42, -inf }
 0x9f0   : > { %v14322_v6 = vsel %vm7436_vm3, %v7309_v15, -1e+30  ;;  %8923 = vpow2.f32 %v7522_v12 }
 0x9f1   : > { %v7489_v36 = vsel %vm7455_vm14, %v14322_v6, -inf  ;;  %8925 = vpow2.f32 %v7524_v28 }
 0x9f2   : > { %7487 = vmax.xlane.f32.xlu0 %v7486_v23  ;;  %8927 = vpow2.f32 %v7520_v38 }
 0x9f3   : > { %v7467_v61 = vpop.xlane.xlu2 %7466  ;;  %v7470_v3 = vpop.xlane.xlu1 %7469 }
 0x9f4   : > { %v7507_v25 = vsub.f32 %v14272_v49, %v7467_v61  ;;  %v7508_v48 = vsub.f32 %v14277_v31, %v7470_v3 }
 0x9f6   : > { %v7526_v50 = vmul.f32 1.442695, %v7507_v25  ;;  %v14354_v47 = vpop.eup %8923  ;;  %v7528_v37 = vmul.f32 1.442695, %v7508_v48 }
 0x9f7   : > { %v7340_v62 = vpop.f32.mrf.mxu0  ;;  %v7371_v41 = vpop.f32.mrf.mxu1  ;;  %v7555_v5 = vsel %vm7455_vm14, %v14354_v47, 0.0 }
 0x9f8   : > { %v14327_v18 = vsel %vm7436_vm3, %v7340_v62, -1e+30  ;;  %v14334_v55 = vsel %vm7436_vm3, %v7371_v41, -1e+30  ;;  %v14356_v32 = vpop.eup %8925  ;;  %8929 = vpow2.f32 %v7526_v50 }
 0x9f9   : > { %v7492_v60 = vsel %vm7455_vm14, %v14327_v18, -inf  ;;  %v7495_v10 = vsel %vm7455_vm14, %v14334_v55, -inf  ;;  %v7558_v16 = vsel %vm7455_vm14, %v14356_v32, 0.0  ;;  %v14369_v7 = vpop.eup %8927  ;;  %8931 = vpow2.f32 %v7528_v37 }
 0x9fa   : > { %7493 = vmax.xlane.f32.xlu2 %v7492_v60  ;;  %7490 = vmax.xlane.f32.xlu0 %v7489_v36  ;;  %v7552_v0 = vsel %vm7455_vm14, %v14369_v7, 0.0 }
 0x9fb   : > { %7496 = vmax.xlane.f32.xlu1 %v7495_v10  ;;  %v7473_v58 = vpop.xlane.xlu1 %7472 }
 0x9fc   : > { %v7509_v49 = vsub.f32 %v14289_v13, %v7473_v58  ;;  %v7476_v51 = vpop.xlane.xlu0 %7475 }
 0x9fd   : > { %v7510_v30 = vsub.f32 %v14294_v4, %v7476_v51 }
 0x9fe   : > { %v14371_v43 = vpop.eup %8929  ;;  %v7530_v27 = vmul.f32 1.442695, %v7509_v49 }
 0x9ff   : > { %v7402_v9 = vpop.f32.mrf.mxu0  ;;  %v7561_v31 = vsel %vm7455_vm14, %v14371_v43, 0.0  ;;  %v14378_v57 = vpop.eup %8931  ;;  %v7532_v34 = vmul.f32 1.442695, %v7510_v30 }
 0xa00   : > { %v14347_v40 = vsel %vm7436_vm3, %v7402_v9, -1e+30  ;;  %8933 = vpow2.f32 %v7530_v27  ;;  %v7564_v63 = vsel %vm7455_vm14, %v14378_v57, 0.0 }
 0xa01   : > { %v7498_v19 = vsel %vm7455_vm14, %v14347_v40, -inf }
 0xa02   : > { %7478 = vmax.xlane.f32.xlu2 %v7477_v8  ;;  %7499 = vmax.xlane.f32.xlu0 %v7498_v19 }
 0xa05   : > { %v7433_v20 = vpop.f32.mrf.mxu1 }
 0xa06   : > { %v14360_v21 = vsel %vm7436_vm3, %v7433_v20, -1e+30  ;;  %v14382_v45 = vpop.eup %8933 }
 0xa07   : > { %v7501_v59 = vsel %vm7455_vm14, %v14360_v21, -inf  ;;  %v7567_v53 = vsel %vm7455_vm14, %v14382_v45, 0.0 }
 0xa08   : > { %7502 = vmax.xlane.f32.xlu1 %v7501_v59 }
 0xa0a   : > { %7556 = vadd.xlane.f32.xlu2 %v7555_v5  ;;  %7559 = vadd.xlane.f32.xlu0 %v7558_v16 }
 0xa12   : > { %7553 = vadd.xlane.f32.xlu2 %v7552_v0  ;;  %7562 = vadd.xlane.f32.xlu0 %v7561_v31 }
 0xa1a   : > { %7565 = vadd.xlane.f32.xlu2 %v7564_v63 }
 0xa22   : > { %7568 = vadd.xlane.f32.xlu2 %v7567_v53 }
 0xa5b   : > { %v7482_v13 = vpop.xlane.xlu2 %7481 }
 0xa5c   : > { %v7512_v44 = vsub.f32 %v14304_v54, %v7482_v13 }
 0xa5d   : > { %v7485_v35 = vpop.xlane.xlu0 %7484 }
 0xa5e   : > { %v7536_v29 = vmul.f32 1.442695, %v7512_v44  ;;  %v7513_v24 = vsub.f32 %v14310_v11, %v7485_v35 }
 0xa60   : > { %8935 = vpow2.f32 %v7536_v29  ;;  %v7538_v26 = vmul.f32 1.442695, %v7513_v24 }
 0xa62   : > { %8937 = vpow2.f32 %v7538_v26 }
 0xa63   : > { %8939 = vpow2.f32 %v7532_v34 }
 0xa65   : > { %v7488_v56 = vpop.xlane.xlu0 %7487 }
 0xa66   : > { %v14389_v14 = vpop.eup %8935  ;;  %v7514_v54 = vsub.f32 %v14316_v42, %v7488_v56 }
 0xa67   : > { %v7576_v46 = vsel %vm7455_vm14, %v14389_v14, 0.0 }
 0xa68   : > { %v14393_v39 = vpop.eup %8937  ;;  %7577 = vadd.xlane.f32.xlu0 %v7576_v46  ;;  %v7540_v4 = vmul.f32 1.442695, %v7514_v54 }
 0xa69   : > { %v7579_v11 = vsel %vm7455_vm14, %v14393_v39, 0.0  ;;  %v14399_v62 = vpop.eup %8939 }
 0xa6a   : > { %7580 = vadd.xlane.f32.xlu1 %v7579_v11  ;;  %8941 = vpow2.f32 %v7540_v4  ;;  %v7570_v60 = vsel %vm7455_vm14, %v14399_v62, 0.0 }
 0xa6d   : > { %v7494_v15 = vpop.xlane.xlu2 %7493  ;;  %v7491_v17 = vpop.xlane.xlu0 %7490 }
 0xa6e   : > { %v7516_v23 = vsub.f32 %v14327_v18, %v7494_v15  ;;  %v7497_v52 = vpop.xlane.xlu1 %7496  ;;  %v7515_v33 = vsub.f32 %v14322_v6, %v7491_v17 }
 0xa6f   : > { %v7517_v1 = vsub.f32 %v14334_v55, %v7497_v52 }
 0xa70   : > { %v7544_v41 = vmul.f32 1.442695, %v7516_v23  ;;  %v7542_v36 = vmul.f32 1.442695, %v7515_v33  ;;  %v14406_v28 = vpop.eup %8941 }
 0xa71   : > { %v7546_v42 = vmul.f32 1.442695, %v7517_v1  ;;  %v7582_v8 = vsel %vm7455_vm14, %v14406_v28, 0.0 }
 0xa72   : > { %8943 = vpow2.f32 %v7544_v41  ;;  %7571 = vadd.xlane.f32.xlu1 %v7570_v60 }
 0xa73   : > { %8945 = vpow2.f32 %v7546_v42 }
 0xa74   : > { %8947 = vpow2.f32 %v7542_v36 }
 0xa75   : > { %v7479_v10 = vpop.xlane.xlu2 %7478  ;;  %v7500_v12 = vpop.xlane.xlu0 %7499 }
 0xa76   : > { %v7511_v18 = vsub.f32 %v14342_v2, %v7479_v10  ;;  %v7518_v9 = vsub.f32 %v14347_v40, %v7500_v12 }
 0xa78   : > { %v14408_v61 = vpop.eup %8943  ;;  %v7534_v55 = vmul.f32 1.442695, %v7511_v18  ;;  %v7548_v25 = vmul.f32 1.442695, %v7518_v9 }
 0xa79   : > { %v7588_v6 = vsel %vm7455_vm14, %v14408_v61, 0.0  ;;  %v14413_v22 = vpop.eup %8945 }
 0xa7a   : > { %8949 = vpow2.f32 %v7534_v55  ;;  %7589 = vadd.xlane.f32.xlu0 %v7588_v6  ;;  %v7591_v2 = vsel %vm7455_vm14, %v14413_v22, 0.0  ;;  %7583 = vadd.xlane.f32.xlu1 %v7582_v8  ;;  %v14420_v3 = vpop.eup %8947 }
 0xa7b   : > { %v7503_v19 = vpop.xlane.xlu1 %7502  ;;  %7592 = vadd.xlane.f32.xlu2 %v7591_v2  ;;  %8951 = vpow2.f32 %v7548_v25  ;;  %v7585_v48 = vsel %vm7455_vm14, %v14420_v3, 0.0 }
 0xa7c   : > { %v7519_v40 = vsub.f32 %v14360_v21, %v7503_v19 }
 0xa7d   : > { %v7557_v37 = vpop.xlane.xlu2 %7556  ;;  %v14438_v49 = vpop.xlane.xlu0 %7559 }
 0xa7e   : > { %v7550_v38 = vmul.f32 1.442695, %v7519_v40  ;;  %v7624_v46 = vand.u32 2147483647, %v7557_v37  ;;  %v7626_v54 = vand.u32 2147483648, %v7557_v37  ;;  %vm7620_vm10 = vweird.f32 %v7557_v37 }
 0xa7f   : > { %vm7635_vm2 = vweird.f32 %v14438_v49  ;;  %v7639_v33 = vand.u32 2147483647, %v14438_v49  ;;  %v7641_v55 = vand.u32 2147483648, %v14438_v49 }
 0xa80   : > { %v14422_v50 = vpop.eup %8949  ;;  %8953 = vpow2.f32 %v7550_v38  ;;  %vm14476_vm0 = vcmp.eq.f32.partialorder %v7624_v46, 8.507059e+37  ;;  %v7627_v41 = vor.u32 1.1754944e-38, %v7626_v54 }
 0xa81   : > { %v7573_v20 = vsel %vm7455_vm14, %v14422_v50, 0.0  ;;  %v14428_v59 = vpop.eup %8951  ;;  %8955 = vrcp.f32 %v7557_v37 }
 0xa82   : > { %7574 = vadd.xlane.f32.xlu0 %v7573_v20  ;;  %7586 = vadd.xlane.f32.xlu1 %v7585_v48  ;;  %v7594_v16 = vsel %vm7455_vm14, %v14428_v59, 0.0  ;;  %8957 = vrcp.f32 %v14438_v49 }
 0xa85   : > { %v14436_v58 = vpop.xlane.xlu2 %7553  ;;  %v14443_v31 = vpop.xlane.xlu0 %7562 }
 0xa86   : > { %v14430_v5 = vpop.eup %8953  ;;  %8959 = vrcp.f32 %v14436_v58  ;;  %v7609_v9 = vand.u32 2147483647, %v14436_v58  ;;  %v7611_v6 = vand.u32 2147483648, %v14436_v58  ;;  %v7654_v19 = vand.u32 2147483647, %v14443_v31 }
 0xa87   : > { %v7597_v21 = vsel %vm7455_vm14, %v14430_v5, 0.0  ;;  %8961 = vrcp.f32 %v14443_v31  ;;  %v14447_v27 = vpop.eup %8955  ;;  %v7656_v40 = vand.u32 2147483648, %v14443_v31  ;;  %vm7605_vm1 = vweird.f32 %v14436_v58 }
 0xa88   : > { %7598 = vadd.xlane.f32.xlu2 %v7597_v21  ;;  %v14449_v63 = vpop.eup %8957  ;;  %v7616_v13 = vmul.f32 %v14447_v27, %v7557_v37  ;;  %vm7621_vm4 = vweird.f32 %v14447_v27 }
 0xa89   : > { %v7631_v35 = vmul.f32 %v14449_v63, %v14438_v49  ;;  %vm7636_vm5 = vweird.f32 %v14449_v63  ;;  %vm14497_vm13 = vmor %vm7620_vm10, %vm7621_vm4  ;;  %vm7640_vm4 = vcmp.eq.f32.partialorder %v7639_v33, 8.507059e+37  ;;  %v7642_v49 = vor.u32 1.1754944e-38, %v7641_v55 }
 0xa8a   : > { %7595 = vadd.xlane.f32.xlu1 %v7594_v16  ;;  %v7617_v29 = vsub.f32 1.0, %v7616_v13  ;;  %vm14510_vm14 = vmor %vm7635_vm2, %vm7636_vm5  ;;  %vm14526_vm5 = vcmp.eq.f32.partialorder %v7609_v9, 8.507059e+37 }
 0xa8b   : > { %v7632_v26 = vsub.f32 1.0, %v7631_v35 }
 0xa8c   : > { %v14453_v51 = vpop.eup %8959  ;;  %v7618_v11 = vmul.f32 %v14447_v27, %v7617_v29 }
 0xa8d   : > { %v14440_v0 = vpop.xlane.xlu2 %7565  ;;  %v14457_v44 = vpop.eup %8961  ;;  %v7601_v24 = vmul.f32 %v14453_v51, %v14436_v58  ;;  %v7633_v23 = vmul.f32 %v14449_v63, %v7632_v26  ;;  %vm7606_vm3 = vweird.f32 %v14453_v51  ;;  %v7657_v26 = vor.u32 1.1754944e-38, %v7656_v40 }
 0xa8e   : > { %8963 = vrcp.f32 %v14440_v0  ;;  %v7646_v30 = vmul.f32 %v14457_v44, %v14443_v31  ;;  %v7619_v42 = vadd.f32 %v14447_v27, %v7618_v11  ;;  %vm7651_vm10 = vweird.f32 %v14457_v44  ;;  %vm14522_vm2 = vmor %vm7605_vm1, %vm7606_vm3 }
 0xa8f   : > { %v7602_v4 = vsub.f32 1.0, %v7601_v24  ;;  %v7634_v18 = vadd.f32 %v14449_v63, %v7633_v23  ;;  %vm14540_vm1 = vcmp.eq.f32.partialorder %v7654_v19, 8.507059e+37 }
 0xa90   : > { %v7647_v15 = vsub.f32 1.0, %v7646_v30  ;;  %v7623_v38 = vsel %vm14497_vm13, %v14447_v27, %v7619_v42  ;;  %vm7650_vm13 = vweird.f32 %v14443_v31 }
 0xa91   : > { %v7603_v60 = vmul.f32 %v14453_v51, %v7602_v4  ;;  %v7638_v16 = vsel %vm14510_vm14, %v14449_v63, %v7634_v18  ;;  %v7628_v58 = vsel %vm14476_vm0, %v7627_v41, %v7623_v38  ;;  %v7612_v63 = vor.u32 1.1754944e-38, %v7611_v6  ;;  %vm14536_vm14 = vmor %vm7650_vm13, %vm7651_vm10 }
 0xa92   : > { %v7648_v36 = vmul.f32 %v14457_v44, %v7647_v15  ;;  %v7643_v46 = vsel %vm7640_vm4, %v7642_v49, %v7638_v16  ;;  %vm7665_vm0 = vweird.f32 %v14440_v0  ;;  %v7669_v15 = vand.u32 2147483647, %v14440_v0 }
 0xa93   : > { %v7604_v48 = vadd.f32 %v14453_v51, %v7603_v60  ;;  %v7629_v42 = vmul.f32 %v14354_v47, %v7628_v58 }
 0xa94   : > { %v14466_v34 = vpop.eup %8963  ;;  %v7649_v21 = vadd.f32 %v14457_v44, %v7648_v36  ;;  %vm7670_vm13 = vcmp.eq.f32.partialorder %v7669_v15, 8.507059e+37 }
 0xa95   : > { %v14451_v53 = vpop.xlane.xlu2 %7568  ;;  %v7661_v17 = vmul.f32 %v14466_v34, %v14440_v0  ;;  %v7608_v31 = vsel %vm14522_vm2, %v14453_v51, %v7604_v48  ;;  %vm7666_vm3 = vweird.f32 %v14466_v34  ;;  %v7856_v19 = vrot.slane %v7629_v42, 7 }
 0xa96   : > { %8965 = vrcp.f32 %v14451_v53  ;;  %v7653_v54 = vsel %vm14536_vm14, %v14457_v44, %v7649_v21  ;;  %v7613_v1 = vsel %vm14526_vm5, %v7612_v63, %v7608_v31  ;;  %v7686_v33 = vand.u32 2147483648, %v14451_v53  ;;  %vm14574_vm4 = vmor %vm7665_vm0, %vm7666_vm3 }
 0xa97   : > { %v7662_v12 = vsub.f32 1.0, %v7661_v17  ;;  %v7671_v17 = vand.u32 2147483648, %v14440_v0  ;;  %v7658_v41 = vsel %vm14540_vm1, %v7657_v26, %v7653_v54  ;;  %vm7680_vm2 = vweird.f32 %v14451_v53 }
 0xa98   : > { %v7684_v36 = vand.u32 2147483647, %v14451_v53  ;;  %v7614_v47 = vmul.f32 %v14369_v7, %v7613_v1  ;;  %v7659_v0 = vmul.f32 %v14371_v43, %v7658_v41  ;;  %v7687_v25 = vor.u32 1.1754944e-38, %v7686_v33 }
 0xa99   : > { %v7663_v37 = vmul.f32 %v14466_v34, %v7662_v12  ;;  %v7644_v12 = vmul.f32 %v14356_v32, %v7643_v46  ;;  %v7672_v6 = vor.u32 1.1754944e-38, %v7671_v17 }
 0xa9a   : > { %vm7685_vm14 = vcmp.eq.f32.partialorder %v7684_v36, 8.507059e+37  ;;  %v7857_v43 = vsel %vm6807_vm6, %v7856_v19, %v7614_v47  ;;  %v7860_v48 = vrot.slane %v7659_v0, 5 }
 0xa9b   : > { %v7664_v4 = vadd.f32 %v14466_v34, %v7663_v37  ;;  %v7858_v7 = vrot.slane %v7644_v12, 6 }
 0xa9c   : > { %v14468_v56 = vpop.eup %8965 }
 0xa9d   : > { %v7676_v52 = vmul.f32 %v14468_v56, %v14451_v53  ;;  %vm7681_vm10 = vweird.f32 %v14468_v56  ;;  %v7668_v55 = vsel %vm14574_vm4, %v14466_v34, %v7664_v4  ;;  %v7859_v63 = vsel %vm6810_vm7, %v7858_v7, %v7857_v43 }
 0xa9e   : > { %vm7682_vm5 = vmor %vm7680_vm2, %vm7681_vm10  ;;  %v7673_v40 = vsel %vm7670_vm13, %v7672_v6, %v7668_v55  ;;  %v7861_v31 = vsel %vm14898_vm9, %v7860_v48, %v7859_v63 }
 0xa9f   : > { %v7677_v8 = vsub.f32 1.0, %v7676_v52  ;;  %v7674_v16 = vmul.f32 %v14378_v57, %v7673_v40 }
 0xaa1   : > { %v7678_v35 = vmul.f32 %v14468_v56, %v7677_v8  ;;  %v7862_v26 = vrot.slane %v7674_v16, 4 }
 0xaa3   : > { %v7679_v51 = vadd.f32 %v14468_v56, %v7678_v35  ;;  %v7863_v60 = vsel %vm14897_vm8, %v7862_v26, %v7861_v31 }
 0xaa5   : > { %v7683_v8 = vsel %vm7682_vm5, %v14468_v56, %v7679_v51 }
 0xaa6   : > { %v7688_v38 = vsel %vm7685_vm14, %v7687_v25, %v7683_v8 }
 0xaa7   : > { %v7689_v27 = vmul.f32 %v14382_v45, %v7688_v38 }
 0xaa9   : > { %v7864_v54 = vrot.slane %v7689_v27, 3 }
 0xadb   : > { %v14486_v10 = vpop.xlane.xlu0 %7577 }
 0xadc   : > { %8967 = vrcp.f32 %v14486_v10  ;;  %v7731_v24 = vand.u32 2147483648, %v14486_v10  ;;  %vm7725_vm4 = vweird.f32 %v14486_v10  ;;  %v7729_v46 = vand.u32 2147483647, %v14486_v10 }
 0xadd   : > { %v14494_v2 = vpop.xlane.xlu1 %7580 }
 0xade   : > { %8969 = vrcp.f32 %v14494_v2  ;;  %vm7740_vm0 = vweird.f32 %v14494_v2  ;;  %v7746_v13 = vand.u32 2147483648, %v14494_v2  ;;  %v7744_v57 = vand.u32 2147483647, %v14494_v2 }
 0xadf   : > { %vm7730_vm14 = vcmp.eq.f32.partialorder %v7729_v46, 8.507059e+37 }
 0xae0   : > { %v7747_v15 = vor.u32 1.1754944e-38, %v7746_v13  ;;  %vm7745_vm5 = vcmp.eq.f32.partialorder %v7744_v57, 8.507059e+37 }
 0xae2   : > { %v14532_v29 = vpop.eup %8967 }
 0xae3   : > { %v7721_v23 = vmul.f32 %v14532_v29, %v14486_v10  ;;  %vm7726_vm3 = vweird.f32 %v14532_v29 }
 0xae4   : > { %v14551_v11 = vpop.eup %8969  ;;  %vm14625_vm2 = vmor %vm7725_vm4, %vm7726_vm3 }
 0xae5   : > { %v7736_v44 = vmul.f32 %v14551_v11, %v14494_v2  ;;  %v14563_v52 = vpop.xlane.xlu1 %7571  ;;  %v7722_v9 = vsub.f32 1.0, %v7721_v23  ;;  %vm7741_vm1 = vweird.f32 %v14551_v11 }
 0xae6   : > { %8971 = vrcp.f32 %v14563_v52  ;;  %vm14613_vm10 = vmor %vm7740_vm0, %vm7741_vm1  ;;  %v7699_v23 = vand.u32 2147483647, %v14563_v52  ;;  %v7701_v41 = vand.u32 2147483648, %v14563_v52  ;;  %vm7695_vm1 = vweird.f32 %v14563_v52 }
 0xae7   : > { %v7737_v18 = vsub.f32 1.0, %v7736_v44  ;;  %v7723_v34 = vmul.f32 %v14532_v29, %v7722_v9  ;;  %v7732_v44 = vor.u32 1.1754944e-38, %v7731_v24 }
 0xae8   : > { %vm7700_vm3 = vcmp.eq.f32.partialorder %v7699_v23, 8.507059e+37  ;;  %v7702_v0 = vor.u32 1.1754944e-38, %v7701_v41 }
 0xae9   : > { %v7738_v53 = vmul.f32 %v14551_v11, %v7737_v18  ;;  %v7724_v58 = vadd.f32 %v14532_v29, %v7723_v34  ;;  %v14652_v18 = vsel %vm14896_vm11, %v7864_v54, %v7863_v60 }
 0xaeb   : > { %v7739_v37 = vadd.f32 %v14551_v11, %v7738_v53  ;;  %v7728_v10 = vsel %vm14625_vm2, %v14532_v29, %v7724_v58 }
 0xaec   : > { %v14588_v32 = vpop.eup %8971  ;;  %v7733_v12 = vsel %vm7730_vm14, %v7732_v44, %v7728_v10 }
 0xaed   : > { %v14591_v20 = vpop.xlane.xlu0 %7589  ;;  %v7691_v56 = vmul.f32 %v14588_v32, %v14563_v52  ;;  %v14596_v21 = vpop.xlane.xlu1 %7583  ;;  %v7743_v2 = vsel %vm14613_vm10, %v14551_v11, %v7739_v37  ;;  %vm7696_vm13 = vweird.f32 %v14588_v32  ;;  %v14667_v25 = vmul.f32 %v14389_v14, %v7733_v12 }
 0xaee   : > { %8973 = vrcp.f32 %v14591_v20  ;;  %v14602_v49 = vpop.xlane.xlu2 %7592  ;;  %v7748_v1 = vsel %vm7745_vm5, %v7747_v15, %v7743_v2  ;;  %vm7697_vm0 = vmor %vm7695_vm1, %vm7696_vm13  ;;  %v7791_v9 = vand.u32 2147483648, %v14591_v20  ;;  %vm7785_vm10 = vweird.f32 %v14591_v20 }
 0xaef   : > { %v7692_v35 = vsub.f32 1.0, %v7691_v56  ;;  %8975 = vrcp.f32 %v14602_v49  ;;  %v14657_v55 = vmul.f32 %v14393_v39, %v7748_v1  ;;  %v7759_v53 = vand.u32 2147483647, %v14596_v21 }
 0xaf0   : > { %8977 = vrcp.f32 %v14596_v21  ;;  %v7789_v40 = vand.u32 2147483647, %v14591_v20  ;;  %v7761_v38 = vand.u32 2147483648, %v14596_v21  ;;  %v7792_v7 = vor.u32 1.1754944e-38, %v7791_v9 }
 0xaf1   : > { %v7693_v45 = vmul.f32 %v14588_v32, %v7692_v35  ;;  %v7870_v14 = vrot.slane %v14657_v55, 7  ;;  %v7806_v43 = vand.u32 2147483648, %v14602_v49  ;;  %vm7755_vm4 = vweird.f32 %v14596_v21 }
 0xaf2   : > { %vm14689_vm5 = vcmp.eq.f32.partialorder %v7759_v53, 8.507059e+37  ;;  %vm14695_vm14 = vcmp.eq.f32.partialorder %v7789_v40, 8.507059e+37  ;;  %vm7800_vm1 = vweird.f32 %v14602_v49 }
 0xaf3   : > { %v7694_v51 = vadd.f32 %v14588_v32, %v7693_v45 }
 0xaf4   : > { %v14630_v17 = vpop.eup %8973 }
 0xaf5   : > { %v14637_v11 = vpop.xlane.xlu0 %7574  ;;  %v7781_v33 = vmul.f32 %v14630_v17, %v14591_v20  ;;  %v14642_v42 = vpop.eup %8975  ;;  %v7698_v52 = vsel %vm7697_vm0, %v14588_v32, %v7694_v51  ;;  %v7804_v32 = vand.u32 2147483647, %v14602_v49  ;;  %vm7786_vm13 = vweird.f32 %v14630_v17 }
 0xaf6   : > { %8979 = vrcp.f32 %v14637_v11  ;;  %v14647_v29 = vpop.xlane.xlu1 %7586  ;;  %v14649_v36 = vpop.eup %8977  ;;  %v7796_v8 = vmul.f32 %v14642_v42, %v14602_v49  ;;  %v7703_v19 = vsel %vm7700_vm3, %v7702_v0, %v7698_v52  ;;  %vm7801_vm0 = vweird.f32 %v14642_v42 }
 0xaf7   : > { %v7751_v47 = vmul.f32 %v14649_v36, %v14596_v21  ;;  %v7782_v6 = vsub.f32 1.0, %v7781_v33  ;;  %8981 = vrcp.f32 %v14647_v29  ;;  %v7704_v13 = vmul.f32 %v14399_v62, %v7703_v19 }
 0xaf8   : > { %v7797_v37 = vsub.f32 1.0, %v7796_v8  ;;  %vm7756_vm2 = vweird.f32 %v14649_v36  ;;  %v7762_v62 = vor.u32 1.1754944e-38, %v7761_v38  ;;  %v7714_v30 = vand.u32 2147483647, %v14637_v11 }
 0xaf9   : > { %v7752_v39 = vsub.f32 1.0, %v7751_v47  ;;  %v7783_v16 = vmul.f32 %v14630_v17, %v7782_v6  ;;  %v7716_v45 = vand.u32 2147483648, %v14637_v11  ;;  %vm14713_vm3 = vmor %vm7755_vm4, %vm7756_vm2  ;;  %v7866_v15 = vrot.slane %v7704_v13, 2 }
 0xafa   : > { %v7798_v31 = vmul.f32 %v14642_v42, %v7797_v37  ;;  %vm7710_vm8 = vweird.f32 %v14637_v11  ;;  %vm14730_vm4 = vmor %vm7785_vm10, %vm7786_vm13  ;;  %v7774_v44 = vand.u32 2147483647, %v14647_v29  ;;  %v7776_v1 = vand.u32 2147483648, %v14647_v29 }
 0xafb   : > { %v7753_v48 = vmul.f32 %v14649_v36, %v7752_v39  ;;  %v14681_v56 = vpop.xlane.xlu2 %7598  ;;  %v7784_v2 = vadd.f32 %v14630_v17, %v7783_v16  ;;  %vm14737_vm2 = vcmp.eq.f32.partialorder %v7804_v32, 8.507059e+37  ;;  %vm7715_vm9 = vcmp.eq.f32.partialorder %v7714_v30, 8.507059e+37 }
 0xafc   : > { %v8980_v34 = vpop.eup %8979  ;;  %8983 = vrcp.f32 %v14681_v56  ;;  %v7867_v8 = vsel %vm6822_vm12, %v7866_v15, %v14652_v18  ;;  %vm7775_vm13 = vcmp.eq.f32.partialorder %v7774_v44, 8.507059e+37 }
 0xafd   : > { %v7706_v27 = vmul.f32 %v8980_v34, %v14637_v11  ;;  %v7754_v35 = vadd.f32 %v14649_v36, %v7753_v48  ;;  %v8982_v57 = vpop.eup %8981  ;;  %vm7711_vm11 = vweird.f32 %v8980_v34  ;;  %v7717_v11 = vor.u32 1.1754944e-38, %v7716_v45 }
 0xafe   : > { %v7766_v26 = vmul.f32 %v8982_v57, %v14647_v29  ;;  %v14705_v46 = vpop.xlane.xlu1 %7595  ;;  %vm7771_vm10 = vweird.f32 %v8982_v57  ;;  %v7788_v60 = vsel %vm14730_vm4, %v14630_v17, %v7784_v2  ;;  %v7777_v17 = vor.u32 1.1754944e-38, %v7776_v1 }
 0xaff   : > { %v7707_v24 = vsub.f32 1.0, %v7706_v27  ;;  %v7758_v23 = vsel %vm14713_vm3, %v14649_v36, %v7754_v35  ;;  %8985 = vrcp.f32 %v14705_v46  ;;  %vm7712_vm3 = vmor %vm7710_vm8, %vm7711_vm11  ;;  %v7799_v36 = vadd.f32 %v14642_v42, %v7798_v31 }
 0xb00   : > { %v7767_v10 = vsub.f32 1.0, %v7766_v26  ;;  %v7763_v12 = vsel %vm14689_vm5, %v7762_v62, %v7758_v23  ;;  %vm7770_vm8 = vweird.f32 %v14647_v29  ;;  %v7793_v39 = vsel %vm14695_vm14, %v7792_v7, %v7788_v60 }
 0xb01   : > { %v7708_v4 = vmul.f32 %v8980_v34, %v7707_v24  ;;  %vm7772_vm11 = vmor %vm7770_vm8, %vm7771_vm10  ;;  %v7764_v29 = vmul.f32 %v14406_v28, %v7763_v12  ;;  %v7794_v16 = vmul.f32 %v14408_v61, %v7793_v39  ;;  %v7834_v27 = vand.u32 2147483647, %v14681_v56 }
 0xb02   : > { %v7768_v20 = vmul.f32 %v8982_v57, %v7767_v10  ;;  %v8984_v33 = vpop.eup %8983  ;;  %vm15384_vm14 = vcmask 195584   ;;  %v7819_v61 = vand.u32 2147483647, %v14705_v46  ;;  %v7821_v49 = vand.u32 2147483648, %v14705_v46 }
 0xb03   : > { %v7709_v51 = vadd.f32 %v8980_v34, %v7708_v4  ;;  %v7826_v0 = vmul.f32 %v8984_v33, %v14681_v56  ;;  %vm7831_vm5 = vweird.f32 %v8984_v33  ;;  %v7872_v13 = vrot.slane %v7764_v29, 6 }
 0xb04   : > { %v7769_v47 = vadd.f32 %v8982_v57, %v7768_v20  ;;  %v7871_v24 = vsel %vm6807_vm6, %v7870_v14, %v14667_v25  ;;  %vm15385_vm10 = vcmask 1043459   ;;  %v7822_v31 = vor.u32 1.1754944e-38, %v7821_v49 }
 0xb05   : > { %v7713_v52 = vsel %vm7712_vm3, %v8980_v34, %v7709_v51  ;;  %v7827_v19 = vsub.f32 1.0, %v7826_v0  ;;  %v8986_v40 = vpop.eup %8985  ;;  %v7836_v34 = vand.u32 2147483648, %v14681_v56  ;;  %vm7835_vm3 = vcmp.eq.f32.partialorder %v7834_v27, 8.507059e+37 }
 0xb06   : > { %v7718_v9 = vsel %vm7715_vm9, %v7717_v11, %v7713_v52  ;;  %vm14759_vm9 = vmor %vm7800_vm1, %vm7801_vm0  ;;  %v7811_v48 = vmul.f32 %v8986_v40, %v14705_v46  ;;  %vm7830_vm1 = vweird.f32 %v14681_v56  ;;  %vm7816_vm4 = vweird.f32 %v8986_v40 }
 0xb07   : > { %v7719_v6 = vmul.f32 %v14422_v50, %v7718_v9  ;;  %v7773_v50 = vsel %vm7772_vm11, %v8982_v57, %v7769_v47  ;;  %v7803_v18 = vsel %vm14759_vm9, %v14642_v42, %v7799_v36  ;;  %v7828_v28 = vmul.f32 %v8984_v33, %v7827_v19  ;;  %vm7832_vm0 = vmor %vm7830_vm1, %vm7831_vm5 }
 0xb08   : > { %v7778_v38 = vsel %vm7775_vm13, %v7777_v17, %v7773_v50  ;;  %v7807_v42 = vor.u32 1.1754944e-38, %v7806_v43  ;;  %v7837_v63 = vor.u32 1.1754944e-38, %v7836_v34  ;;  %v7873_v56 = vsel %vm6810_vm7, %v7872_v13, %v7871_v24  ;;  %vm15388_vm13 = vmmov %vm15384_vm14 }
 0xb09   : > { %v7868_v32 = vrot.slane %v7719_v6, 1  ;;  %v7779_v7 = vmul.f32 %v14420_v3, %v7778_v38  ;;  %v7829_v35 = vadd.f32 %v8984_v33, %v7828_v28  ;;  %v7812_v3 = vsub.f32 1.0, %v7811_v48 }
 0xb0a   : > { %v7808_v58 = vsel %vm14737_vm2, %v7807_v42, %v7803_v18  ;;  %vm7815_vm2 = vweird.f32 %v14705_v46  ;;  %v7876_v54 = vrot.slane %v7794_v16, 4  ;;  %vm7820_vm11 = vcmp.eq.f32.partialorder %v7819_v61, 8.507059e+37 }
 0xb0b   : > { %v7869_v37 = vsel %vm6825_vm15, %v7868_v32, %v7867_v8  ;;  %v7874_v57 = vrot.slane %v7779_v7, 5  ;;  %v7833_v43 = vsel %vm7832_vm0, %v8984_v33, %v7829_v35  ;;  %v7813_v62 = vmul.f32 %v8986_v40, %v7812_v3  ;;  %vm7817_vm8 = vmor %vm7815_vm2, %vm7816_vm4 }
 0xb0c   : > { %7886 = vst.msk [vmem:[%s14770_s11] sm:$0xff] %vm15384_vm14, %v7869_v37  ;;  %v7838_v30 = vsel %vm7835_vm3, %v7837_v63, %v7833_v43  ;;  %v7809_v26 = vmul.f32 %v14413_v22, %v7808_v58  ;;  %vm15386_vm6 = vcmask 1044484   ;;  %vm15387_vm7 = vcmask 1045509  }
 0xb0d   : > { %v7814_v45 = vadd.f32 %v8986_v40, %v7813_v62  ;;  %v7875_v2 = vsel %vm15385_vm10, %v7874_v57, %v7873_v56  ;;  %v7839_v55 = vmul.f32 %v14430_v5, %v7838_v30 }
 0xb0e   : > { %v7877_v14 = vsel %vm15386_vm6, %v7876_v54, %v7875_v2  ;;  %v7878_v23 = vrot.slane %v7809_v26, 3 }
 0xb0f   : > { %v7818_v4 = vsel %vm7817_vm8, %v8986_v40, %v7814_v45  ;;  %v7882_v46 = vrot.slane %v7839_v55, 1 }
 0xb10   : > { %v7823_v25 = vsel %vm7820_vm11, %v7822_v31, %v7818_v4  ;;  %v7879_v22 = vsel %vm15387_vm7, %v7878_v23, %v7877_v14 }
 0xb11   : > { %v7824_v15 = vmul.f32 %v14428_v59, %v7823_v25 }
 0xb13   : > { %v7880_v10 = vrot.slane %v7824_v15, 2 }
 0xb15   : > { %v7881_v21 = vsel %vm6822_vm12, %v7880_v10, %v7879_v22 }
 0xb16   : > { %v7883_v51 = vsel %vm6825_vm15, %v7882_v46, %v7881_v21 }
 0xb17   : > { %7887 = vst.msk [vmem:[%s14770_s11 + $0x8] sm:$0xff] %vm15388_vm13, %v7883_v51 }
 0xb18 PF: > { %s16_s18 = sadd.s32 1, %s9004_s18  }
 0xb19   : > { %p13_p5 = scmp.ge.s32.totalorder %s16_s18, 4  }
 0xb1b   :  { %15 = sbr.rel (!%p13_p5) target bundleno = 1 (0x1), region = 81 }

</bundles_post_ra>
